<compile_context>
chip_gen: v7x
topology: tpu7x:2x2x1
jax: 0.10.0
libtpu: 0.0.40
codegen_flags: <defaults>
</compile_context>

<pallas_src>
import functools

import jax
import jax.numpy as jnp
from jax.experimental import pallas as pl
from jax.experimental.pallas import tpu as pltpu


# ---------------------------------------------------------------------------
# In-kernel helpers (operate on VMEM values; only last-dim-preserving reshapes,
# leading-axis concats, 2-D transposes and MXU matmuls are used).
# ---------------------------------------------------------------------------

def _pad_hw1(x_flat, H, W, C):
    """(H*W, C) row-major spatial -> zero-padded (H+2, W+2, C)   (padding=1)."""
    x4 = x_flat.reshape(H, W, 1, C)                       # both spatial dims leading
    zw = jnp.zeros((H, 1, 1, C), x_flat.dtype)
    x4 = jnp.concatenate([zw, x4, zw], axis=1)            # (H, W+2, 1, C)
    zh = jnp.zeros((1, W + 2, 1, C), x_flat.dtype)
    x4 = jnp.concatenate([zh, x4, zh], axis=0)            # (H+2, W+2, 1, C)
    return x4.reshape(H + 2, W + 2, C)


def _interleave_2x2(taps, H, W, C):
    """ConvTranspose2d(k=2, s=2) scatter: out[2h+dh, 2w+dw] = taps[dh][dw][h, w].

    taps[dh][dw]: (H*W, C).  Returns the row-major flattened (2H, 2W, C) as
    (4*H*W, C).  Built with leading-axis concats + last-dim-intact reshapes so
    the interleaved tensor never leaves VMEM.
    """
    t = [[taps[dh][dw].reshape(H, 1, W, 1, 1, C) for dw in range(2)]
         for dh in range(2)]
    g0 = jnp.concatenate([t[0][0], t[0][1]], axis=3)      # (H, 1, W, 2, 1, C)
    g1 = jnp.concatenate([t[1][0], t[1][1]], axis=3)
    g = jnp.concatenate([g0, g1], axis=1)                 # (H, 2, W, 2, 1, C)
    return g.reshape(4 * H * W, C)                        # row-major (2H, 2W, C)


def _conv3x3_in_relu(x_flat, H, W, w_ref, b_ref):
    """ReLU(InstanceNorm2d(Conv2d 3x3, pad=1)) for one sample.

    x_flat: (H*W, Cin) f32,  w_ref: (3, 3, Cin, Cout) bf16,  b_ref: (1, Cout) f32.
    """
    Cin = x_flat.shape[1]
    Cout = w_ref.shape[3]
    xp = _pad_hw1(x_flat, H, W, Cin)                      # (H+2, W+2, Cin) f32, VMEM
    acc = jnp.zeros((H * W, Cout), jnp.float32)
    for dh in range(3):                                   # 9 shifted MXU matmuls
        for dw in range(3):
            patch = xp[dh:dh + H, dw:dw + W, :].reshape(H * W, Cin)
            acc = acc + jnp.dot(patch.astype(jnp.bfloat16), w_ref[dh, dw],
                                preferred_element_type=jnp.float32)
    acc = acc + b_ref[...]
    # InstanceNorm2d (affine=False, eps=1e-5), single pass: sum & sum-of-squares.
    inv_n = 1.0 / (H * W)
    mean = jnp.sum(acc, axis=0, keepdims=True) * inv_n
    var = jnp.sum(acc * acc, axis=0, keepdims=True) * inv_n - mean * mean
    var = jnp.maximum(var, 0.0)
    y = (acc - mean) * jax.lax.rsqrt(var + 1e-5)
    return jnp.maximum(y, 0.0)                            # ReLU (f32)


# ---------------------------------------------------------------------------
# Fused decoder kernel (one grid step == one batch element)
# ---------------------------------------------------------------------------

def _make_decoder_kernel(bottleneck_dim, levels, out_channels, h0, w0):
    n_cb = levels - 1

    def kernel(*refs):
        it = iter(refs)
        z_ref = next(it)                                  # (N, bd)      f32, SMEM
        wb_ref = next(it)                                 # (bd, S0, C0) f32
        bb_ref = next(it)                                 # (S0, C0)     f32
        ups = [(next(it), next(it)) for _ in range(levels)]          # (2,2,Ci,Co) bf16 / (1,Co) f32
        cbs = [(next(it), next(it), next(it), next(it)) for _ in range(n_cb)]
        w1_ref = next(it)                                 # (out_ch, fm) bf16
        b1_ref = next(it)                                 # (out_ch, 1)  f32
        dec_refs = [next(it) for _ in range(levels)]      # (1, C_i, H_i*W_i) f32
        fin_ref = next(it)                                # (1, out_ch, H*W)  f32

        n = pl.program_id(0)

        # Bottleneck Linear; weight columns were pre-permuted at pack time so the
        # result is already in spatial-major (H*W, C) layout.
        x = bb_ref[...]
        for k in range(bottleneck_dim):
            x = x + z_ref[n, k] * wb_ref[k]               # scalar FMA (small bd)

        H, W = h0, w0
        xt = None
        for i in range(levels):
            w_up, b_up = ups[i]
            cout = w_up.shape[3]
            xb = x.astype(jnp.bfloat16)
            taps = [[jnp.dot(xb, w_up[dh, dw], preferred_element_type=jnp.float32)
                     for dw in range(2)] for dh in range(2)]
            x = _interleave_2x2(taps, H, W, cout) + b_up[...]   # (4*H*W, cout) f32
            H, W = 2 * H, 2 * W
            if i < levels - 1:
                wc1, bc1, wc2, bc2 = cbs[i]
                x = _conv3x3_in_relu(x, H, W, wc1, bc1)
                x = _conv3x3_in_relu(x, H, W, wc2, bc2)
            xt = jnp.transpose(x)                               # (cout, H*W)
            dec_refs[i][...] = xt.reshape(1, cout, H * W)       # lane-dense NCHW slab

        # Output Conv2d 1x1, computed directly in (C, H*W) orientation.
        fin = jnp.dot(w1_ref[...], xt.astype(jnp.bfloat16),
                      preferred_element_type=jnp.float32) + b1_ref[...]
        fin_ref[...] = fin.reshape(1, out_channels, H * W)

    return kernel


def decoder_forward(packed, inputs, encoder_outputs, *, input_size,
                    bottleneck_dim, out_channels, feature_maps, levels):
    """Whole Decoder.forward as one fused Pallas kernel; returns NCHW outputs."""
    # Parity with the torch code: encoder outputs are reversed but never used by
    # the deconv decoder path (UNetUpSamplingBlock2D is called with one argument).
    _ = list(reversed(list(encoder_outputs)))

    N = inputs.shape[0]
    h0 = input_size[0] // 2 ** levels
    w0 = input_size[1] // 2 ** levels
    c0 = feature_maps // 2 ** (levels - 1)
    s0 = h0 * w0

    couts, spat = [], []
    H, W = h0, w0
    for i in range(levels):
        c = feature_maps // 2 ** (levels - i - 2) if i < levels - 1 else feature_maps
        H, W = 2 * H, 2 * W
        couts.append(c)
        spat.append((H, W))

    in_arrays = [inputs, packed['wb'], packed['bb']]
    in_specs = [
        pl.BlockSpec((N, bottleneck_dim), lambda b: (0, 0),
                     memory_space=pltpu.MemorySpace.SMEM),
        pl.BlockSpec((bottleneck_dim, s0, c0), lambda b: (0, 0, 0)),
        pl.BlockSpec((s0, c0), lambda b: (0, 0)),
    ]
    for i in range(levels):
        wu, bu = packed['upconvs'][i]['w'], packed['upconvs'][i]['b']
        in_arrays += [wu, bu]
        in_specs += [pl.BlockSpec(wu.shape, lambda b: (0, 0, 0, 0)),
                     pl.BlockSpec(bu.shape, lambda b: (0, 0))]
    for i in range(levels - 1):
        cb = packed['convblocks'][i]
        for wk, bk in (('w1', 'b1'), ('w2', 'b2')):
            in_arrays += [cb[wk], cb[bk]]
            in_specs += [pl.BlockSpec(cb[wk].shape, lambda b: (0, 0, 0, 0)),
                         pl.BlockSpec(cb[bk].shape, lambda b: (0, 0))]
    in_arrays += [packed['w_out'], packed['b_out']]
    in_specs += [pl.BlockSpec(packed['w_out'].shape, lambda b: (0, 0)),
                 pl.BlockSpec(packed['b_out'].shape, lambda b: (0, 0))]

    out_shape, out_specs = [], []
    for i in range(levels):
        hi, wi = spat[i]
        out_shape.append(jax.ShapeDtypeStruct((N, couts[i], hi * wi), jnp.float32))
        out_specs.append(pl.BlockSpec((1, couts[i], hi * wi), lambda b: (b, 0, 0)))
    hl, wl = spat[-1]
    out_shape.append(jax.ShapeDtypeStruct((N, out_channels, hl * wl), jnp.float32))
    out_specs.append(pl.BlockSpec((1, out_channels, hl * wl), lambda b: (b, 0, 0)))

    kernel = _make_decoder_kernel(bottleneck_dim, levels, out_channels, h0, w0)
    outs = pl.pallas_call(
        kernel,
        grid=(N,),
        in_specs=in_specs,
        out_specs=out_specs,
        out_shape=out_shape,
        compiler_params=pltpu.CompilerParams(
            dimension_semantics=("parallel",),          # batch -> both TCs on v7x
            vmem_limit_bytes=32 * 1024 * 1024),
    )(*in_arrays)

    # (N, C, H*W) -> (N, C, H, W): free reshapes (already NCHW-ordered).
    decoder_outputs = [outs[i].reshape(N, couts[i], spat[i][0], spat[i][1])
                       for i in range(levels)]
    final = outs[levels].reshape(N, out_channels, hl, wl)
    return decoder_outputs, final


# ---------------------------------------------------------------------------
# Parameter init (torch-layout shapes) and one-time repack into kernel layouts
# ---------------------------------------------------------------------------

def init_decoder_params(key, input_size, bottleneck_dim, out_channels,
                        feature_maps, levels):
    fm_small = feature_maps // 2 ** (levels - 1)
    h0 = input_size[0] // 2 ** levels
    w0 = input_size[1] // 2 ** levels
    keys = iter(jax.random.split(key, 64))

    def nrm(shape, scale=0.1):
        return scale * jax.random.normal(next(keys), shape, jnp.float32)

    params = {}
    d_out = fm_small * h0 * w0
    params['bottleneck_w'] = nrm((d_out, bottleneck_dim))        # torch Linear (out, in)
    params['bottleneck_b'] = nrm((d_out,))
    params['upconvs'] = []
    params['convblocks'] = []
    for i in range(levels - 1):
        cin = feature_maps // 2 ** (levels - i - 1)
        cout = feature_maps // 2 ** (levels - i - 2)
        params['upconvs'].append({'w': nrm((cin, cout, 2, 2)), 'b': nrm((cout,))})
        params['convblocks'].append({
            'w1': nrm((cout, cout, 3, 3)), 'b1': nrm((cout,)),
            'w2': nrm((cout, cout, 3, 3)), 'b2': nrm((cout,)),
        })
    params['upconvs'].append({'w': nrm((feature_maps, feature_maps, 2, 2)),
                              'b': nrm((feature_maps,))})
    params['output_w'] = nrm((out_channels, feature_maps, 1, 1))
    params['output_b'] = nrm((out_channels,))
    return params


def pack_decoder_params(params, *, input_size, bottleneck_dim, feature_maps, levels):
    """One-time repack (parameter-prep time, not per call):
       * bottleneck weight columns permuted so its output is spatial-major,
       * conv / deconv weights transposed to (kh, kw, Cin, Cout) + cast to bf16
         (MXU operands); all biases kept f32."""
    h0 = input_size[0] // 2 ** levels
    w0 = input_size[1] // 2 ** levels
    c0 = feature_maps // 2 ** (levels - 1)
    s0 = h0 * w0

    idx = jnp.arange(s0 * c0)
    perm = (idx % c0) * s0 + idx // c0            # new (s, c) order <- old (c, s) order
    wb = params['bottleneck_w'][perm, :]                              # (S0*C0, bd)
    wb = jnp.transpose(wb, (1, 0)).reshape(bottleneck_dim, s0, c0).astype(jnp.float32)
    bb = params['bottleneck_b'][perm].reshape(s0, c0).astype(jnp.float32)

    packed = {'wb': wb, 'bb': bb, 'upconvs': [], 'convblocks': []}
    for up in params['upconvs']:
        packed['upconvs'].append({
            'w': jnp.transpose(up['w'], (2, 3, 0, 1)).astype(jnp.bfloat16),   # (2,2,Ci,Co)
            'b': up['b'].reshape(1, -1).astype(jnp.float32),
        })
    for cb in params['convblocks']:
        packed['convblocks'].append({
            'w1': jnp.transpose(cb['w1'], (2, 3, 1, 0)).astype(jnp.bfloat16),  # (3,3,Ci,Co)
            'b1': cb['b1'].reshape(1, -1).astype(jnp.float32),
            'w2': jnp.transpose(cb['w2'], (2, 3, 1, 0)).astype(jnp.bfloat16),
            'b2': cb['b2'].reshape(1, -1).astype(jnp.float32),
        })
    oc, fm = params['output_w'].shape[0], params['output_w'].shape[1]
    packed['w_out'] = params['output_w'].reshape(oc, fm).astype(jnp.bfloat16)  # (out_ch, fm)
    packed['b_out'] = params['output_b'].reshape(oc, 1).astype(jnp.float32)
    return packed


# ---------------------------------------------------------------------------

if __name__ == "__main__":
    key = jax.random.PRNGKey(0)
    k_in, k_p = jax.random.split(key)

    # Small, forward-consistent config
    input_size = (16, 16)
    bottleneck_dim = 2
    out_channels = 2
    feature_maps = 16
    levels = 3
    batch = 2

    params = init_decoder_params(k_p, input_size, bottleneck_dim, out_channels,
                                 feature_maps, levels)
    packed = pack_decoder_params(params, input_size=input_size,
                                 bottleneck_dim=bottleneck_dim,
                                 feature_maps=feature_maps, levels=levels)
    inputs = jax.random.normal(k_in, (batch, bottleneck_dim), jnp.float32)
    encoder_outputs = []   # unused by the deconv decoder path

    fwd = jax.jit(functools.partial(
        decoder_forward, input_size=input_size, bottleneck_dim=bottleneck_dim,
        out_channels=out_channels, feature_maps=feature_maps, levels=levels))

    dec_outs, out = fwd(packed, inputs, encoder_outputs)
    for d in dec_outs:
        jax.block_until_ready(d)
    out = jax.block_until_ready(out)

    assert out.shape == (batch, out_channels, input_size[0], input_size[1]), out.shape
    assert len(dec_outs) == levels
    assert dec_outs[0].shape == (batch, feature_maps // 2 ** (levels - 2),
                                 input_size[0] // 2 ** (levels - 1),
                                 input_size[1] // 2 ** (levels - 1)), dec_outs[0].shape
    assert dec_outs[-1].shape == (batch, feature_maps, input_size[0], input_size[1])
    assert bool(jnp.isfinite(out).all())
    print("KERNEL_OK")
</pallas_src>

<mosaic_0001>
module attributes {stable_mosaic.version = 11 : i64} {
  func.func @kernel(%arg0: i32, %arg1: memref<2x2xf32, #tpu.memory_space<smem>>, %arg2: memref<2x4x4xf32, #tpu.memory_space<vmem>>, %arg3: memref<4x4xf32, #tpu.memory_space<vmem>>, %arg4: memref<2x2x4x8xbf16, #tpu.memory_space<vmem>>, %arg5: memref<1x8xf32, #tpu.memory_space<vmem>>, %arg6: memref<2x2x8x16xbf16, #tpu.memory_space<vmem>>, %arg7: memref<1x16xf32, #tpu.memory_space<vmem>>, %arg8: memref<2x2x16x16xbf16, #tpu.memory_space<vmem>>, %arg9: memref<1x16xf32, #tpu.memory_space<vmem>>, %arg10: memref<3x3x8x8xbf16, #tpu.memory_space<vmem>>, %arg11: memref<1x8xf32, #tpu.memory_space<vmem>>, %arg12: memref<3x3x8x8xbf16, #tpu.memory_space<vmem>>, %arg13: memref<1x8xf32, #tpu.memory_space<vmem>>, %arg14: memref<3x3x16x16xbf16, #tpu.memory_space<vmem>>, %arg15: memref<1x16xf32, #tpu.memory_space<vmem>>, %arg16: memref<3x3x16x16xbf16, #tpu.memory_space<vmem>>, %arg17: memref<1x16xf32, #tpu.memory_space<vmem>>, %arg18: memref<2x16xbf16, #tpu.memory_space<vmem>>, %arg19: memref<2x1xf32, #tpu.memory_space<vmem>>, %arg20: memref<1x8x16xf32, #tpu.memory_space<vmem>>, %arg21: memref<1x16x64xf32, #tpu.memory_space<vmem>>, %arg22: memref<1x16x256xf32, #tpu.memory_space<vmem>>, %arg23: memref<1x2x256xf32, #tpu.memory_space<vmem>>) attributes {dimension_semantics = [#tpu.dimension_semantics<parallel>], iteration_bounds = array<i64: 2>, scalar_prefetch = 0 : i64, scratch_operands = 0 : i64, tpu.core_type = #tpu.core_type<tc>, window_params = [{transform_indices = @transform_0, window_bounds = array<i64: 2, 2>}, {pipeline_mode = #tpu.pipeline_mode<synchronous>, transform_indices = @transform_1, window_bounds = array<i64: 2, 4, 4>}, {pipeline_mode = #tpu.pipeline_mode<synchronous>, transform_indices = @transform_2, window_bounds = array<i64: 4, 4>}, {pipeline_mode = #tpu.pipeline_mode<synchronous>, transform_indices = @transform_3, window_bounds = array<i64: 2, 2, 4, 8>}, {pipeline_mode = #tpu.pipeline_mode<synchronous>, transform_indices = @transform_4, window_bounds = array<i64: 1, 8>}, {pipeline_mode = #tpu.pipeline_mode<synchronous>, transform_indices = @transform_5, window_bounds = array<i64: 2, 2, 8, 16>}, {pipeline_mode = #tpu.pipeline_mode<synchronous>, transform_indices = @transform_6, window_bounds = array<i64: 1, 16>}, {pipeline_mode = #tpu.pipeline_mode<synchronous>, transform_indices = @transform_7, window_bounds = array<i64: 2, 2, 16, 16>}, {pipeline_mode = #tpu.pipeline_mode<synchronous>, transform_indices = @transform_8, window_bounds = array<i64: 1, 16>}, {pipeline_mode = #tpu.pipeline_mode<synchronous>, transform_indices = @transform_9, window_bounds = array<i64: 3, 3, 8, 8>}, {pipeline_mode = #tpu.pipeline_mode<synchronous>, transform_indices = @transform_10, window_bounds = array<i64: 1, 8>}, {pipeline_mode = #tpu.pipeline_mode<synchronous>, transform_indices = @transform_11, window_bounds = array<i64: 3, 3, 8, 8>}, {pipeline_mode = #tpu.pipeline_mode<synchronous>, transform_indices = @transform_12, window_bounds = array<i64: 1, 8>}, {pipeline_mode = #tpu.pipeline_mode<synchronous>, transform_indices = @transform_13, window_bounds = array<i64: 3, 3, 16, 16>}, {pipeline_mode = #tpu.pipeline_mode<synchronous>, transform_indices = @transform_14, window_bounds = array<i64: 1, 16>}, {pipeline_mode = #tpu.pipeline_mode<synchronous>, transform_indices = @transform_15, window_bounds = array<i64: 3, 3, 16, 16>}, {pipeline_mode = #tpu.pipeline_mode<synchronous>, transform_indices = @transform_16, window_bounds = array<i64: 1, 16>}, {pipeline_mode = #tpu.pipeline_mode<synchronous>, transform_indices = @transform_17, window_bounds = array<i64: 2, 16>}, {pipeline_mode = #tpu.pipeline_mode<synchronous>, transform_indices = @transform_18, window_bounds = array<i64: 2, 1>}, {transform_indices = @transform_19, window_bounds = array<i64: 1, 8, 16>}, {transform_indices = @transform_20, window_bounds = array<i64: 1, 16, 64>}, {transform_indices = @transform_21, window_bounds = array<i64: 1, 16, 256>}, {transform_indices = @transform_22, window_bounds = array<i64: 1, 2, 256>}]} {
    %c0 = arith.constant 0 : index
    %c0_0 = arith.constant 0 : index
    %0 = vector.load %arg3[%c0, %c0_0] : memref<4x4xf32, #tpu.memory_space<vmem>>, vector<4x4xf32>
    %1 = arith.index_cast %arg0 : i32 to index
    %c0_1 = arith.constant 0 : index
    %2 = memref.load %arg1[%1, %c0_1] : memref<2x2xf32, #tpu.memory_space<smem>>
    %c0_2 = arith.constant 0 : index
    %c0_3 = arith.constant 0 : index
    %c0_4 = arith.constant 0 : index
    %3 = vector.load %arg2[%c0_2, %c0_3, %c0_4] : memref<2x4x4xf32, #tpu.memory_space<vmem>>, vector<1x4x4xf32>
    %4 = vector.shape_cast %3 : vector<1x4x4xf32> to vector<4x4xf32>
    %5 = vector.broadcast %2 : f32 to vector<4x4xf32>
    %6 = arith.mulf %5, %4 : vector<4x4xf32>
    %7 = arith.addf %0, %6 : vector<4x4xf32>
    %8 = arith.index_cast %arg0 : i32 to index
    %c1 = arith.constant 1 : index
    %9 = memref.load %arg1[%8, %c1] : memref<2x2xf32, #tpu.memory_space<smem>>
    %c1_5 = arith.constant 1 : index
    %c0_6 = arith.constant 0 : index
    %c0_7 = arith.constant 0 : index
    %10 = vector.load %arg2[%c1_5, %c0_6, %c0_7] : memref<2x4x4xf32, #tpu.memory_space<vmem>>, vector<1x4x4xf32>
    %11 = vector.shape_cast %10 : vector<1x4x4xf32> to vector<4x4xf32>
    %12 = vector.broadcast %9 : f32 to vector<4x4xf32>
    %13 = arith.mulf %12, %11 : vector<4x4xf32>
    %14 = arith.addf %7, %13 : vector<4x4xf32>
    %15 = arith.truncf %14 : vector<4x4xf32> to vector<4x4xbf16>
    %c0_8 = arith.constant 0 : index
    %c0_9 = arith.constant 0 : index
    %c0_10 = arith.constant 0 : index
    %c0_11 = arith.constant 0 : index
    %16 = vector.load %arg4[%c0_8, %c0_9, %c0_10, %c0_11] : memref<2x2x4x8xbf16, #tpu.memory_space<vmem>>, vector<1x1x4x8xbf16>
    %17 = vector.shape_cast %16 : vector<1x1x4x8xbf16> to vector<4x8xbf16>
    %cst = arith.constant dense<0.000000e+00> : vector<4x8xf32>
    %18 = tpu.matmul %15, %17, %cst {dimension_numbers = #tpu.dot_dimension_numbers<[1], [0], [0], [1], [0, 0, 1, 1], [], []>} : vector<4x4xbf16>, vector<4x8xbf16>, vector<4x8xf32> -> vector<4x8xf32>
    %c0_12 = arith.constant 0 : index
    %c1_13 = arith.constant 1 : index
    %c0_14 = arith.constant 0 : index
    %c0_15 = arith.constant 0 : index
    %19 = vector.load %arg4[%c0_12, %c1_13, %c0_14, %c0_15] : memref<2x2x4x8xbf16, #tpu.memory_space<vmem>>, vector<1x1x4x8xbf16>
    %20 = vector.shape_cast %19 : vector<1x1x4x8xbf16> to vector<4x8xbf16>
    %cst_16 = arith.constant dense<0.000000e+00> : vector<4x8xf32>
    %21 = tpu.matmul %15, %20, %cst_16 {dimension_numbers = #tpu.dot_dimension_numbers<[1], [0], [0], [1], [0, 0, 1, 1], [], []>} : vector<4x4xbf16>, vector<4x8xbf16>, vector<4x8xf32> -> vector<4x8xf32>
    %c1_17 = arith.constant 1 : index
    %c0_18 = arith.constant 0 : index
    %c0_19 = arith.constant 0 : index
    %c0_20 = arith.constant 0 : index
    %22 = vector.load %arg4[%c1_17, %c0_18, %c0_19, %c0_20] : memref<2x2x4x8xbf16, #tpu.memory_space<vmem>>, vector<1x1x4x8xbf16>
    %23 = vector.shape_cast %22 : vector<1x1x4x8xbf16> to vector<4x8xbf16>
    %cst_21 = arith.constant dense<0.000000e+00> : vector<4x8xf32>
    %24 = tpu.matmul %15, %23, %cst_21 {dimension_numbers = #tpu.dot_dimension_numbers<[1], [0], [0], [1], [0, 0, 1, 1], [], []>} : vector<4x4xbf16>, vector<4x8xbf16>, vector<4x8xf32> -> vector<4x8xf32>
    %c1_22 = arith.constant 1 : index
    %c1_23 = arith.constant 1 : index
    %c0_24 = arith.constant 0 : index
    %c0_25 = arith.constant 0 : index
    %25 = vector.load %arg4[%c1_22, %c1_23, %c0_24, %c0_25] : memref<2x2x4x8xbf16, #tpu.memory_space<vmem>>, vector<1x1x4x8xbf16>
    %26 = vector.shape_cast %25 : vector<1x1x4x8xbf16> to vector<4x8xbf16>
    %cst_26 = arith.constant dense<0.000000e+00> : vector<4x8xf32>
    %27 = tpu.matmul %15, %26, %cst_26 {dimension_numbers = #tpu.dot_dimension_numbers<[1], [0], [0], [1], [0, 0, 1, 1], [], []>} : vector<4x4xbf16>, vector<4x8xbf16>, vector<4x8xf32> -> vector<4x8xf32>
    %28 = vector.shape_cast %18 : vector<4x8xf32> to vector<2x1x2x1x1x8xf32>
    %29 = vector.shape_cast %21 : vector<4x8xf32> to vector<2x1x2x1x1x8xf32>
    %30 = vector.shape_cast %24 : vector<4x8xf32> to vector<2x1x2x1x1x8xf32>
    %31 = vector.shape_cast %27 : vector<4x8xf32> to vector<2x1x2x1x1x8xf32>
    %32 = tpu.concatenate %28, %29 in 3 : vector<2x1x2x1x1x8xf32>, vector<2x1x2x1x1x8xf32> -> vector<2x1x2x2x1x8xf32>
    %33 = tpu.concatenate %30, %31 in 3 : vector<2x1x2x1x1x8xf32>, vector<2x1x2x1x1x8xf32> -> vector<2x1x2x2x1x8xf32>
    %34 = tpu.concatenate %32, %33 in 1 : vector<2x1x2x2x1x8xf32>, vector<2x1x2x2x1x8xf32> -> vector<2x2x2x2x1x8xf32>
    %35 = vector.shape_cast %34 : vector<2x2x2x2x1x8xf32> to vector<16x8xf32>
    %c0_27 = arith.constant 0 : index
    %c0_28 = arith.constant 0 : index
    %36 = vector.load %arg5[%c0_27, %c0_28] : memref<1x8xf32, #tpu.memory_space<vmem>>, vector<1x8xf32>
    %37 = vector.broadcast %36 : vector<1x8xf32> to vector<16x8xf32>
    %38 = arith.addf %35, %37 : vector<16x8xf32>
    %39 = vector.shape_cast %38 : vector<16x8xf32> to vector<4x4x1x8xf32>
    %cst_29 = arith.constant 0.000000e+00 : f32
    %40 = vector.broadcast %cst_29 : f32 to vector<4x1x1x8xf32>
    %41 = tpu.concatenate %40, %39, %40 in 1 : vector<4x1x1x8xf32>, vector<4x4x1x8xf32>, vector<4x1x1x8xf32> -> vector<4x6x1x8xf32>
    %cst_30 = arith.constant 0.000000e+00 : f32
    %42 = vector.broadcast %cst_30 : f32 to vector<1x6x1x8xf32>
    %43 = tpu.concatenate %42, %41, %42 in 0 : vector<1x6x1x8xf32>, vector<4x6x1x8xf32>, vector<1x6x1x8xf32> -> vector<6x6x1x8xf32>
    %44 = vector.shape_cast %43 : vector<6x6x1x8xf32> to vector<6x6x8xf32>
    %cst_31 = arith.constant 0.000000e+00 : f32
    %45 = vector.broadcast %cst_31 : f32 to vector<16x8xf32>
    %46 = vector.extract_strided_slice %44 {offsets = [0, 0, 0], sizes = [4, 4, 8], strides = [1, 1, 1]} : vector<6x6x8xf32> to vector<4x4x8xf32>
    %47 = vector.shape_cast %46 : vector<4x4x8xf32> to vector<16x8xf32>
    %48 = arith.truncf %47 : vector<16x8xf32> to vector<16x8xbf16>
    %c0_32 = arith.constant 0 : index
    %c0_33 = arith.constant 0 : index
    %c0_34 = arith.constant 0 : index
    %c0_35 = arith.constant 0 : index
    %49 = vector.load %arg10[%c0_32, %c0_33, %c0_34, %c0_35] : memref<3x3x8x8xbf16, #tpu.memory_space<vmem>>, vector<1x1x8x8xbf16>
    %50 = vector.shape_cast %49 : vector<1x1x8x8xbf16> to vector<8x8xbf16>
    %cst_36 = arith.constant dense<0.000000e+00> : vector<16x8xf32>
    %51 = tpu.matmul %48, %50, %cst_36 {dimension_numbers = #tpu.dot_dimension_numbers<[1], [0], [0], [1], [0, 0, 1, 1], [], []>} : vector<16x8xbf16>, vector<8x8xbf16>, vector<16x8xf32> -> vector<16x8xf32>
    %52 = arith.addf %45, %51 : vector<16x8xf32>
    %53 = vector.extract_strided_slice %44 {offsets = [0, 1, 0], sizes = [4, 4, 8], strides = [1, 1, 1]} : vector<6x6x8xf32> to vector<4x4x8xf32>
    %54 = vector.shape_cast %53 : vector<4x4x8xf32> to vector<16x8xf32>
    %55 = arith.truncf %54 : vector<16x8xf32> to vector<16x8xbf16>
    %c0_37 = arith.constant 0 : index
    %c1_38 = arith.constant 1 : index
    %c0_39 = arith.constant 0 : index
    %c0_40 = arith.constant 0 : index
    %56 = vector.load %arg10[%c0_37, %c1_38, %c0_39, %c0_40] : memref<3x3x8x8xbf16, #tpu.memory_space<vmem>>, vector<1x1x8x8xbf16>
    %57 = vector.shape_cast %56 : vector<1x1x8x8xbf16> to vector<8x8xbf16>
    %cst_41 = arith.constant dense<0.000000e+00> : vector<16x8xf32>
    %58 = tpu.matmul %55, %57, %cst_41 {dimension_numbers = #tpu.dot_dimension_numbers<[1], [0], [0], [1], [0, 0, 1, 1], [], []>} : vector<16x8xbf16>, vector<8x8xbf16>, vector<16x8xf32> -> vector<16x8xf32>
    %59 = arith.addf %52, %58 : vector<16x8xf32>
    %60 = vector.extract_strided_slice %44 {offsets = [0, 2, 0], sizes = [4, 4, 8], strides = [1, 1, 1]} : vector<6x6x8xf32> to vector<4x4x8xf32>
    %61 = vector.shape_cast %60 : vector<4x4x8xf32> to vector<16x8xf32>
    %62 = arith.truncf %61 : vector<16x8xf32> to vector<16x8xbf16>
    %c0_42 = arith.constant 0 : index
    %c2 = arith.constant 2 : index
    %c0_43 = arith.constant 0 : index
    %c0_44 = arith.constant 0 : index
    %63 = vector.load %arg10[%c0_42, %c2, %c0_43, %c0_44] : memref<3x3x8x8xbf16, #tpu.memory_space<vmem>>, vector<1x1x8x8xbf16>
    %64 = vector.shape_cast %63 : vector<1x1x8x8xbf16> to vector<8x8xbf16>
    %cst_45 = arith.constant dense<0.000000e+00> : vector<16x8xf32>
    %65 = tpu.matmul %62, %64, %cst_45 {dimension_numbers = #tpu.dot_dimension_numbers<[1], [0], [0], [1], [0, 0, 1, 1], [], []>} : vector<16x8xbf16>, vector<8x8xbf16>, vector<16x8xf32> -> vector<16x8xf32>
    %66 = arith.addf %59, %65 : vector<16x8xf32>
    %67 = vector.extract_strided_slice %44 {offsets = [1, 0, 0], sizes = [4, 4, 8], strides = [1, 1, 1]} : vector<6x6x8xf32> to vector<4x4x8xf32>
    %68 = vector.shape_cast %67 : vector<4x4x8xf32> to vector<16x8xf32>
    %69 = arith.truncf %68 : vector<16x8xf32> to vector<16x8xbf16>
    %c1_46 = arith.constant 1 : index
    %c0_47 = arith.constant 0 : index
    %c0_48 = arith.constant 0 : index
    %c0_49 = arith.constant 0 : index
    %70 = vector.load %arg10[%c1_46, %c0_47, %c0_48, %c0_49] : memref<3x3x8x8xbf16, #tpu.memory_space<vmem>>, vector<1x1x8x8xbf16>
    %71 = vector.shape_cast %70 : vector<1x1x8x8xbf16> to vector<8x8xbf16>
    %cst_50 = arith.constant dense<0.000000e+00> : vector<16x8xf32>
    %72 = tpu.matmul %69, %71, %cst_50 {dimension_numbers = #tpu.dot_dimension_numbers<[1], [0], [0], [1], [0, 0, 1, 1], [], []>} : vector<16x8xbf16>, vector<8x8xbf16>, vector<16x8xf32> -> vector<16x8xf32>
    %73 = arith.addf %66, %72 : vector<16x8xf32>
    %74 = vector.extract_strided_slice %44 {offsets = [1, 1, 0], sizes = [4, 4, 8], strides = [1, 1, 1]} : vector<6x6x8xf32> to vector<4x4x8xf32>
    %75 = vector.shape_cast %74 : vector<4x4x8xf32> to vector<16x8xf32>
    %76 = arith.truncf %75 : vector<16x8xf32> to vector<16x8xbf16>
    %c1_51 = arith.constant 1 : index
    %c1_52 = arith.constant 1 : index
    %c0_53 = arith.constant 0 : index
    %c0_54 = arith.constant 0 : index
    %77 = vector.load %arg10[%c1_51, %c1_52, %c0_53, %c0_54] : memref<3x3x8x8xbf16, #tpu.memory_space<vmem>>, vector<1x1x8x8xbf16>
    %78 = vector.shape_cast %77 : vector<1x1x8x8xbf16> to vector<8x8xbf16>
    %cst_55 = arith.constant dense<0.000000e+00> : vector<16x8xf32>
    %79 = tpu.matmul %76, %78, %cst_55 {dimension_numbers = #tpu.dot_dimension_numbers<[1], [0], [0], [1], [0, 0, 1, 1], [], []>} : vector<16x8xbf16>, vector<8x8xbf16>, vector<16x8xf32> -> vector<16x8xf32>
    %80 = arith.addf %73, %79 : vector<16x8xf32>
    %81 = vector.extract_strided_slice %44 {offsets = [1, 2, 0], sizes = [4, 4, 8], strides = [1, 1, 1]} : vector<6x6x8xf32> to vector<4x4x8xf32>
    %82 = vector.shape_cast %81 : vector<4x4x8xf32> to vector<16x8xf32>
    %83 = arith.truncf %82 : vector<16x8xf32> to vector<16x8xbf16>
    %c1_56 = arith.constant 1 : index
    %c2_57 = arith.constant 2 : index
    %c0_58 = arith.constant 0 : index
    %c0_59 = arith.constant 0 : index
    %84 = vector.load %arg10[%c1_56, %c2_57, %c0_58, %c0_59] : memref<3x3x8x8xbf16, #tpu.memory_space<vmem>>, vector<1x1x8x8xbf16>
    %85 = vector.shape_cast %84 : vector<1x1x8x8xbf16> to vector<8x8xbf16>
    %cst_60 = arith.constant dense<0.000000e+00> : vector<16x8xf32>
    %86 = tpu.matmul %83, %85, %cst_60 {dimension_numbers = #tpu.dot_dimension_numbers<[1], [0], [0], [1], [0, 0, 1, 1], [], []>} : vector<16x8xbf16>, vector<8x8xbf16>, vector<16x8xf32> -> vector<16x8xf32>
    %87 = arith.addf %80, %86 : vector<16x8xf32>
    %88 = vector.extract_strided_slice %44 {offsets = [2, 0, 0], sizes = [4, 4, 8], strides = [1, 1, 1]} : vector<6x6x8xf32> to vector<4x4x8xf32>
    %89 = vector.shape_cast %88 : vector<4x4x8xf32> to vector<16x8xf32>
    %90 = arith.truncf %89 : vector<16x8xf32> to vector<16x8xbf16>
    %c2_61 = arith.constant 2 : index
    %c0_62 = arith.constant 0 : index
    %c0_63 = arith.constant 0 : index
    %c0_64 = arith.constant 0 : index
    %91 = vector.load %arg10[%c2_61, %c0_62, %c0_63, %c0_64] : memref<3x3x8x8xbf16, #tpu.memory_space<vmem>>, vector<1x1x8x8xbf16>
    %92 = vector.shape_cast %91 : vector<1x1x8x8xbf16> to vector<8x8xbf16>
    %cst_65 = arith.constant dense<0.000000e+00> : vector<16x8xf32>
    %93 = tpu.matmul %90, %92, %cst_65 {dimension_numbers = #tpu.dot_dimension_numbers<[1], [0], [0], [1], [0, 0, 1, 1], [], []>} : vector<16x8xbf16>, vector<8x8xbf16>, vector<16x8xf32> -> vector<16x8xf32>
    %94 = arith.addf %87, %93 : vector<16x8xf32>
    %95 = vector.extract_strided_slice %44 {offsets = [2, 1, 0], sizes = [4, 4, 8], strides = [1, 1, 1]} : vector<6x6x8xf32> to vector<4x4x8xf32>
    %96 = vector.shape_cast %95 : vector<4x4x8xf32> to vector<16x8xf32>
    %97 = arith.truncf %96 : vector<16x8xf32> to vector<16x8xbf16>
    %c2_66 = arith.constant 2 : index
    %c1_67 = arith.constant 1 : index
    %c0_68 = arith.constant 0 : index
    %c0_69 = arith.constant 0 : index
    %98 = vector.load %arg10[%c2_66, %c1_67, %c0_68, %c0_69] : memref<3x3x8x8xbf16, #tpu.memory_space<vmem>>, vector<1x1x8x8xbf16>
    %99 = vector.shape_cast %98 : vector<1x1x8x8xbf16> to vector<8x8xbf16>
    %cst_70 = arith.constant dense<0.000000e+00> : vector<16x8xf32>
    %100 = tpu.matmul %97, %99, %cst_70 {dimension_numbers = #tpu.dot_dimension_numbers<[1], [0], [0], [1], [0, 0, 1, 1], [], []>} : vector<16x8xbf16>, vector<8x8xbf16>, vector<16x8xf32> -> vector<16x8xf32>
    %101 = arith.addf %94, %100 : vector<16x8xf32>
    %102 = vector.extract_strided_slice %44 {offsets = [2, 2, 0], sizes = [4, 4, 8], strides = [1, 1, 1]} : vector<6x6x8xf32> to vector<4x4x8xf32>
    %103 = vector.shape_cast %102 : vector<4x4x8xf32> to vector<16x8xf32>
    %104 = arith.truncf %103 : vector<16x8xf32> to vector<16x8xbf16>
    %c2_71 = arith.constant 2 : index
    %c2_72 = arith.constant 2 : index
    %c0_73 = arith.constant 0 : index
    %c0_74 = arith.constant 0 : index
    %105 = vector.load %arg10[%c2_71, %c2_72, %c0_73, %c0_74] : memref<3x3x8x8xbf16, #tpu.memory_space<vmem>>, vector<1x1x8x8xbf16>
    %106 = vector.shape_cast %105 : vector<1x1x8x8xbf16> to vector<8x8xbf16>
    %cst_75 = arith.constant dense<0.000000e+00> : vector<16x8xf32>
    %107 = tpu.matmul %104, %106, %cst_75 {dimension_numbers = #tpu.dot_dimension_numbers<[1], [0], [0], [1], [0, 0, 1, 1], [], []>} : vector<16x8xbf16>, vector<8x8xbf16>, vector<16x8xf32> -> vector<16x8xf32>
    %108 = arith.addf %101, %107 : vector<16x8xf32>
    %c0_76 = arith.constant 0 : index
    %c0_77 = arith.constant 0 : index
    %109 = vector.load %arg11[%c0_76, %c0_77] : memref<1x8xf32, #tpu.memory_space<vmem>>, vector<1x8xf32>
    %110 = vector.broadcast %109 : vector<1x8xf32> to vector<16x8xf32>
    %111 = arith.addf %108, %110 : vector<16x8xf32>
    %cst_78 = arith.constant dense<0.000000e+00> : vector<8xf32>
    %112 = vector.multi_reduction <add>, %111, %cst_78 [0] : vector<16x8xf32> to vector<8xf32>
    %113 = vector.shape_cast %112 : vector<8xf32> to vector<1x8xf32>
    %cst_79 = arith.constant 6.250000e-02 : f32
    %114 = vector.broadcast %cst_79 : f32 to vector<1x8xf32>
    %115 = arith.mulf %113, %114 : vector<1x8xf32>
    %116 = arith.mulf %111, %111 : vector<16x8xf32>
    %cst_80 = arith.constant dense<0.000000e+00> : vector<8xf32>
    %117 = vector.multi_reduction <add>, %116, %cst_80 [0] : vector<16x8xf32> to vector<8xf32>
    %118 = vector.shape_cast %117 : vector<8xf32> to vector<1x8xf32>
    %cst_81 = arith.constant 6.250000e-02 : f32
    %119 = vector.broadcast %cst_81 : f32 to vector<1x8xf32>
    %120 = arith.mulf %118, %119 : vector<1x8xf32>
    %121 = arith.mulf %115, %115 : vector<1x8xf32>
    %122 = arith.subf %120, %121 : vector<1x8xf32>
    %cst_82 = arith.constant 0.000000e+00 : f32
    %123 = vector.broadcast %cst_82 : f32 to vector<1x8xf32>
    %124 = arith.maximumf %122, %123 : vector<1x8xf32>
    %125 = vector.broadcast %115 : vector<1x8xf32> to vector<16x8xf32>
    %126 = arith.subf %111, %125 : vector<16x8xf32>
    %cst_83 = arith.constant 9.99999974E-6 : f32
    %127 = vector.broadcast %cst_83 : f32 to vector<1x8xf32>
    %128 = arith.addf %124, %127 : vector<1x8xf32>
    %129 = math.rsqrt %128 : vector<1x8xf32>
    %130 = vector.broadcast %129 : vector<1x8xf32> to vector<16x8xf32>
    %131 = arith.mulf %126, %130 : vector<16x8xf32>
    %cst_84 = arith.constant 0.000000e+00 : f32
    %132 = vector.broadcast %cst_84 : f32 to vector<16x8xf32>
    %133 = arith.maximumf %131, %132 : vector<16x8xf32>
    %134 = vector.shape_cast %133 : vector<16x8xf32> to vector<4x4x1x8xf32>
    %cst_85 = arith.constant 0.000000e+00 : f32
    %135 = vector.broadcast %cst_85 : f32 to vector<4x1x1x8xf32>
    %136 = tpu.concatenate %135, %134, %135 in 1 : vector<4x1x1x8xf32>, vector<4x4x1x8xf32>, vector<4x1x1x8xf32> -> vector<4x6x1x8xf32>
    %cst_86 = arith.constant 0.000000e+00 : f32
    %137 = vector.broadcast %cst_86 : f32 to vector<1x6x1x8xf32>
    %138 = tpu.concatenate %137, %136, %137 in 0 : vector<1x6x1x8xf32>, vector<4x6x1x8xf32>, vector<1x6x1x8xf32> -> vector<6x6x1x8xf32>
    %139 = vector.shape_cast %138 : vector<6x6x1x8xf32> to vector<6x6x8xf32>
    %cst_87 = arith.constant 0.000000e+00 : f32
    %140 = vector.broadcast %cst_87 : f32 to vector<16x8xf32>
    %141 = vector.extract_strided_slice %139 {offsets = [0, 0, 0], sizes = [4, 4, 8], strides = [1, 1, 1]} : vector<6x6x8xf32> to vector<4x4x8xf32>
    %142 = vector.shape_cast %141 : vector<4x4x8xf32> to vector<16x8xf32>
    %143 = arith.truncf %142 : vector<16x8xf32> to vector<16x8xbf16>
    %c0_88 = arith.constant 0 : index
    %c0_89 = arith.constant 0 : index
    %c0_90 = arith.constant 0 : index
    %c0_91 = arith.constant 0 : index
    %144 = vector.load %arg12[%c0_88, %c0_89, %c0_90, %c0_91] : memref<3x3x8x8xbf16, #tpu.memory_space<vmem>>, vector<1x1x8x8xbf16>
    %145 = vector.shape_cast %144 : vector<1x1x8x8xbf16> to vector<8x8xbf16>
    %cst_92 = arith.constant dense<0.000000e+00> : vector<16x8xf32>
    %146 = tpu.matmul %143, %145, %cst_92 {dimension_numbers = #tpu.dot_dimension_numbers<[1], [0], [0], [1], [0, 0, 1, 1], [], []>} : vector<16x8xbf16>, vector<8x8xbf16>, vector<16x8xf32> -> vector<16x8xf32>
    %147 = arith.addf %140, %146 : vector<16x8xf32>
    %148 = vector.extract_strided_slice %139 {offsets = [0, 1, 0], sizes = [4, 4, 8], strides = [1, 1, 1]} : vector<6x6x8xf32> to vector<4x4x8xf32>
    %149 = vector.shape_cast %148 : vector<4x4x8xf32> to vector<16x8xf32>
    %150 = arith.truncf %149 : vector<16x8xf32> to vector<16x8xbf16>
    %c0_93 = arith.constant 0 : index
    %c1_94 = arith.constant 1 : index
    %c0_95 = arith.constant 0 : index
    %c0_96 = arith.constant 0 : index
    %151 = vector.load %arg12[%c0_93, %c1_94, %c0_95, %c0_96] : memref<3x3x8x8xbf16, #tpu.memory_space<vmem>>, vector<1x1x8x8xbf16>
    %152 = vector.shape_cast %151 : vector<1x1x8x8xbf16> to vector<8x8xbf16>
    %cst_97 = arith.constant dense<0.000000e+00> : vector<16x8xf32>
    %153 = tpu.matmul %150, %152, %cst_97 {dimension_numbers = #tpu.dot_dimension_numbers<[1], [0], [0], [1], [0, 0, 1, 1], [], []>} : vector<16x8xbf16>, vector<8x8xbf16>, vector<16x8xf32> -> vector<16x8xf32>
    %154 = arith.addf %147, %153 : vector<16x8xf32>
    %155 = vector.extract_strided_slice %139 {offsets = [0, 2, 0], sizes = [4, 4, 8], strides = [1, 1, 1]} : vector<6x6x8xf32> to vector<4x4x8xf32>
    %156 = vector.shape_cast %155 : vector<4x4x8xf32> to vector<16x8xf32>
    %157 = arith.truncf %156 : vector<16x8xf32> to vector<16x8xbf16>
    %c0_98 = arith.constant 0 : index
    %c2_99 = arith.constant 2 : index
    %c0_100 = arith.constant 0 : index
    %c0_101 = arith.constant 0 : index
    %158 = vector.load %arg12[%c0_98, %c2_99, %c0_100, %c0_101] : memref<3x3x8x8xbf16, #tpu.memory_space<vmem>>, vector<1x1x8x8xbf16>
    %159 = vector.shape_cast %158 : vector<1x1x8x8xbf16> to vector<8x8xbf16>
    %cst_102 = arith.constant dense<0.000000e+00> : vector<16x8xf32>
    %160 = tpu.matmul %157, %159, %cst_102 {dimension_numbers = #tpu.dot_dimension_numbers<[1], [0], [0], [1], [0, 0, 1, 1], [], []>} : vector<16x8xbf16>, vector<8x8xbf16>, vector<16x8xf32> -> vector<16x8xf32>
    %161 = arith.addf %154, %160 : vector<16x8xf32>
    %162 = vector.extract_strided_slice %139 {offsets = [1, 0, 0], sizes = [4, 4, 8], strides = [1, 1, 1]} : vector<6x6x8xf32> to vector<4x4x8xf32>
    %163 = vector.shape_cast %162 : vector<4x4x8xf32> to vector<16x8xf32>
    %164 = arith.truncf %163 : vector<16x8xf32> to vector<16x8xbf16>
    %c1_103 = arith.constant 1 : index
    %c0_104 = arith.constant 0 : index
    %c0_105 = arith.constant 0 : index
    %c0_106 = arith.constant 0 : index
    %165 = vector.load %arg12[%c1_103, %c0_104, %c0_105, %c0_106] : memref<3x3x8x8xbf16, #tpu.memory_space<vmem>>, vector<1x1x8x8xbf16>
    %166 = vector.shape_cast %165 : vector<1x1x8x8xbf16> to vector<8x8xbf16>
    %cst_107 = arith.constant dense<0.000000e+00> : vector<16x8xf32>
    %167 = tpu.matmul %164, %166, %cst_107 {dimension_numbers = #tpu.dot_dimension_numbers<[1], [0], [0], [1], [0, 0, 1, 1], [], []>} : vector<16x8xbf16>, vector<8x8xbf16>, vector<16x8xf32> -> vector<16x8xf32>
    %168 = arith.addf %161, %167 : vector<16x8xf32>
    %169 = vector.extract_strided_slice %139 {offsets = [1, 1, 0], sizes = [4, 4, 8], strides = [1, 1, 1]} : vector<6x6x8xf32> to vector<4x4x8xf32>
    %170 = vector.shape_cast %169 : vector<4x4x8xf32> to vector<16x8xf32>
    %171 = arith.truncf %170 : vector<16x8xf32> to vector<16x8xbf16>
    %c1_108 = arith.constant 1 : index
    %c1_109 = arith.constant 1 : index
    %c0_110 = arith.constant 0 : index
    %c0_111 = arith.constant 0 : index
    %172 = vector.load %arg12[%c1_108, %c1_109, %c0_110, %c0_111] : memref<3x3x8x8xbf16, #tpu.memory_space<vmem>>, vector<1x1x8x8xbf16>
    %173 = vector.shape_cast %172 : vector<1x1x8x8xbf16> to vector<8x8xbf16>
    %cst_112 = arith.constant dense<0.000000e+00> : vector<16x8xf32>
    %174 = tpu.matmul %171, %173, %cst_112 {dimension_numbers = #tpu.dot_dimension_numbers<[1], [0], [0], [1], [0, 0, 1, 1], [], []>} : vector<16x8xbf16>, vector<8x8xbf16>, vector<16x8xf32> -> vector<16x8xf32>
    %175 = arith.addf %168, %174 : vector<16x8xf32>
    %176 = vector.extract_strided_slice %139 {offsets = [1, 2, 0], sizes = [4, 4, 8], strides = [1, 1, 1]} : vector<6x6x8xf32> to vector<4x4x8xf32>
    %177 = vector.shape_cast %176 : vector<4x4x8xf32> to vector<16x8xf32>
    %178 = arith.truncf %177 : vector<16x8xf32> to vector<16x8xbf16>
    %c1_113 = arith.constant 1 : index
    %c2_114 = arith.constant 2 : index
    %c0_115 = arith.constant 0 : index
    %c0_116 = arith.constant 0 : index
    %179 = vector.load %arg12[%c1_113, %c2_114, %c0_115, %c0_116] : memref<3x3x8x8xbf16, #tpu.memory_space<vmem>>, vector<1x1x8x8xbf16>
    %180 = vector.shape_cast %179 : vector<1x1x8x8xbf16> to vector<8x8xbf16>
    %cst_117 = arith.constant dense<0.000000e+00> : vector<16x8xf32>
    %181 = tpu.matmul %178, %180, %cst_117 {dimension_numbers = #tpu.dot_dimension_numbers<[1], [0], [0], [1], [0, 0, 1, 1], [], []>} : vector<16x8xbf16>, vector<8x8xbf16>, vector<16x8xf32> -> vector<16x8xf32>
    %182 = arith.addf %175, %181 : vector<16x8xf32>
    %183 = vector.extract_strided_slice %139 {offsets = [2, 0, 0], sizes = [4, 4, 8], strides = [1, 1, 1]} : vector<6x6x8xf32> to vector<4x4x8xf32>
    %184 = vector.shape_cast %183 : vector<4x4x8xf32> to vector<16x8xf32>
    %185 = arith.truncf %184 : vector<16x8xf32> to vector<16x8xbf16>
    %c2_118 = arith.constant 2 : index
    %c0_119 = arith.constant 0 : index
    %c0_120 = arith.constant 0 : index
    %c0_121 = arith.constant 0 : index
    %186 = vector.load %arg12[%c2_118, %c0_119, %c0_120, %c0_121] : memref<3x3x8x8xbf16, #tpu.memory_space<vmem>>, vector<1x1x8x8xbf16>
    %187 = vector.shape_cast %186 : vector<1x1x8x8xbf16> to vector<8x8xbf16>
    %cst_122 = arith.constant dense<0.000000e+00> : vector<16x8xf32>
    %188 = tpu.matmul %185, %187, %cst_122 {dimension_numbers = #tpu.dot_dimension_numbers<[1], [0], [0], [1], [0, 0, 1, 1], [], []>} : vector<16x8xbf16>, vector<8x8xbf16>, vector<16x8xf32> -> vector<16x8xf32>
    %189 = arith.addf %182, %188 : vector<16x8xf32>
    %190 = vector.extract_strided_slice %139 {offsets = [2, 1, 0], sizes = [4, 4, 8], strides = [1, 1, 1]} : vector<6x6x8xf32> to vector<4x4x8xf32>
    %191 = vector.shape_cast %190 : vector<4x4x8xf32> to vector<16x8xf32>
    %192 = arith.truncf %191 : vector<16x8xf32> to vector<16x8xbf16>
    %c2_123 = arith.constant 2 : index
    %c1_124 = arith.constant 1 : index
    %c0_125 = arith.constant 0 : index
    %c0_126 = arith.constant 0 : index
    %193 = vector.load %arg12[%c2_123, %c1_124, %c0_125, %c0_126] : memref<3x3x8x8xbf16, #tpu.memory_space<vmem>>, vector<1x1x8x8xbf16>
    %194 = vector.shape_cast %193 : vector<1x1x8x8xbf16> to vector<8x8xbf16>
    %cst_127 = arith.constant dense<0.000000e+00> : vector<16x8xf32>
    %195 = tpu.matmul %192, %194, %cst_127 {dimension_numbers = #tpu.dot_dimension_numbers<[1], [0], [0], [1], [0, 0, 1, 1], [], []>} : vector<16x8xbf16>, vector<8x8xbf16>, vector<16x8xf32> -> vector<16x8xf32>
    %196 = arith.addf %189, %195 : vector<16x8xf32>
    %197 = vector.extract_strided_slice %139 {offsets = [2, 2, 0], sizes = [4, 4, 8], strides = [1, 1, 1]} : vector<6x6x8xf32> to vector<4x4x8xf32>
    %198 = vector.shape_cast %197 : vector<4x4x8xf32> to vector<16x8xf32>
    %199 = arith.truncf %198 : vector<16x8xf32> to vector<16x8xbf16>
    %c2_128 = arith.constant 2 : index
    %c2_129 = arith.constant 2 : index
    %c0_130 = arith.constant 0 : index
    %c0_131 = arith.constant 0 : index
    %200 = vector.load %arg12[%c2_128, %c2_129, %c0_130, %c0_131] : memref<3x3x8x8xbf16, #tpu.memory_space<vmem>>, vector<1x1x8x8xbf16>
    %201 = vector.shape_cast %200 : vector<1x1x8x8xbf16> to vector<8x8xbf16>
    %cst_132 = arith.constant dense<0.000000e+00> : vector<16x8xf32>
    %202 = tpu.matmul %199, %201, %cst_132 {dimension_numbers = #tpu.dot_dimension_numbers<[1], [0], [0], [1], [0, 0, 1, 1], [], []>} : vector<16x8xbf16>, vector<8x8xbf16>, vector<16x8xf32> -> vector<16x8xf32>
    %203 = arith.addf %196, %202 : vector<16x8xf32>
    %c0_133 = arith.constant 0 : index
    %c0_134 = arith.constant 0 : index
    %204 = vector.load %arg13[%c0_133, %c0_134] : memref<1x8xf32, #tpu.memory_space<vmem>>, vector<1x8xf32>
    %205 = vector.broadcast %204 : vector<1x8xf32> to vector<16x8xf32>
    %206 = arith.addf %203, %205 : vector<16x8xf32>
    %cst_135 = arith.constant dense<0.000000e+00> : vector<8xf32>
    %207 = vector.multi_reduction <add>, %206, %cst_135 [0] : vector<16x8xf32> to vector<8xf32>
    %208 = vector.shape_cast %207 : vector<8xf32> to vector<1x8xf32>
    %cst_136 = arith.constant 6.250000e-02 : f32
    %209 = vector.broadcast %cst_136 : f32 to vector<1x8xf32>
    %210 = arith.mulf %208, %209 : vector<1x8xf32>
    %211 = arith.mulf %206, %206 : vector<16x8xf32>
    %cst_137 = arith.constant dense<0.000000e+00> : vector<8xf32>
    %212 = vector.multi_reduction <add>, %211, %cst_137 [0] : vector<16x8xf32> to vector<8xf32>
    %213 = vector.shape_cast %212 : vector<8xf32> to vector<1x8xf32>
    %cst_138 = arith.constant 6.250000e-02 : f32
    %214 = vector.broadcast %cst_138 : f32 to vector<1x8xf32>
    %215 = arith.mulf %213, %214 : vector<1x8xf32>
    %216 = arith.mulf %210, %210 : vector<1x8xf32>
    %217 = arith.subf %215, %216 : vector<1x8xf32>
    %cst_139 = arith.constant 0.000000e+00 : f32
    %218 = vector.broadcast %cst_139 : f32 to vector<1x8xf32>
    %219 = arith.maximumf %217, %218 : vector<1x8xf32>
    %220 = vector.broadcast %210 : vector<1x8xf32> to vector<16x8xf32>
    %221 = arith.subf %206, %220 : vector<16x8xf32>
    %cst_140 = arith.constant 9.99999974E-6 : f32
    %222 = vector.broadcast %cst_140 : f32 to vector<1x8xf32>
    %223 = arith.addf %219, %222 : vector<1x8xf32>
    %224 = math.rsqrt %223 : vector<1x8xf32>
    %225 = vector.broadcast %224 : vector<1x8xf32> to vector<16x8xf32>
    %226 = arith.mulf %221, %225 : vector<16x8xf32>
    %cst_141 = arith.constant 0.000000e+00 : f32
    %227 = vector.broadcast %cst_141 : f32 to vector<16x8xf32>
    %228 = arith.maximumf %226, %227 : vector<16x8xf32>
    %229 = tpu.transpose %228, [1, 0] : vector<16x8xf32> -> vector<8x16xf32>
    %230 = vector.shape_cast %229 : vector<8x16xf32> to vector<1x8x16xf32>
    %c0_142 = arith.constant 0 : index
    %c0_143 = arith.constant 0 : index
    %c0_144 = arith.constant 0 : index
    %231 = vector.load %arg20[%c0_142, %c0_143, %c0_144] : memref<1x8x16xf32, #tpu.memory_space<vmem>>, vector<1x8x16xf32>
    tpu.vector_store %arg20[%c0_142, %c0_143, %c0_144], %230 {strides = array<i32>} : memref<1x8x16xf32, #tpu.memory_space<vmem>>, vector<1x8x16xf32>,
    %232 = arith.truncf %228 : vector<16x8xf32> to vector<16x8xbf16>
    %c0_145 = arith.constant 0 : index
    %c0_146 = arith.constant 0 : index
    %c0_147 = arith.constant 0 : index
    %c0_148 = arith.constant 0 : index
    %233 = vector.load %arg6[%c0_145, %c0_146, %c0_147, %c0_148] : memref<2x2x8x16xbf16, #tpu.memory_space<vmem>>, vector<1x1x8x16xbf16>
    %234 = vector.shape_cast %233 : vector<1x1x8x16xbf16> to vector<8x16xbf16>
    %cst_149 = arith.constant dense<0.000000e+00> : vector<16x16xf32>
    %235 = tpu.matmul %232, %234, %cst_149 {dimension_numbers = #tpu.dot_dimension_numbers<[1], [0], [0], [1], [0, 0, 1, 1], [], []>} : vector<16x8xbf16>, vector<8x16xbf16>, vector<16x16xf32> -> vector<16x16xf32>
    %c0_150 = arith.constant 0 : index
    %c1_151 = arith.constant 1 : index
    %c0_152 = arith.constant 0 : index
    %c0_153 = arith.constant 0 : index
    %236 = vector.load %arg6[%c0_150, %c1_151, %c0_152, %c0_153] : memref<2x2x8x16xbf16, #tpu.memory_space<vmem>>, vector<1x1x8x16xbf16>
    %237 = vector.shape_cast %236 : vector<1x1x8x16xbf16> to vector<8x16xbf16>
    %cst_154 = arith.constant dense<0.000000e+00> : vector<16x16xf32>
    %238 = tpu.matmul %232, %237, %cst_154 {dimension_numbers = #tpu.dot_dimension_numbers<[1], [0], [0], [1], [0, 0, 1, 1], [], []>} : vector<16x8xbf16>, vector<8x16xbf16>, vector<16x16xf32> -> vector<16x16xf32>
    %c1_155 = arith.constant 1 : index
    %c0_156 = arith.constant 0 : index
    %c0_157 = arith.constant 0 : index
    %c0_158 = arith.constant 0 : index
    %239 = vector.load %arg6[%c1_155, %c0_156, %c0_157, %c0_158] : memref<2x2x8x16xbf16, #tpu.memory_space<vmem>>, vector<1x1x8x16xbf16>
    %240 = vector.shape_cast %239 : vector<1x1x8x16xbf16> to vector<8x16xbf16>
    %cst_159 = arith.constant dense<0.000000e+00> : vector<16x16xf32>
    %241 = tpu.matmul %232, %240, %cst_159 {dimension_numbers = #tpu.dot_dimension_numbers<[1], [0], [0], [1], [0, 0, 1, 1], [], []>} : vector<16x8xbf16>, vector<8x16xbf16>, vector<16x16xf32> -> vector<16x16xf32>
    %c1_160 = arith.constant 1 : index
    %c1_161 = arith.constant 1 : index
    %c0_162 = arith.constant 0 : index
    %c0_163 = arith.constant 0 : index
    %242 = vector.load %arg6[%c1_160, %c1_161, %c0_162, %c0_163] : memref<2x2x8x16xbf16, #tpu.memory_space<vmem>>, vector<1x1x8x16xbf16>
    %243 = vector.shape_cast %242 : vector<1x1x8x16xbf16> to vector<8x16xbf16>
    %cst_164 = arith.constant dense<0.000000e+00> : vector<16x16xf32>
    %244 = tpu.matmul %232, %243, %cst_164 {dimension_numbers = #tpu.dot_dimension_numbers<[1], [0], [0], [1], [0, 0, 1, 1], [], []>} : vector<16x8xbf16>, vector<8x16xbf16>, vector<16x16xf32> -> vector<16x16xf32>
    %245 = vector.shape_cast %235 : vector<16x16xf32> to vector<4x1x4x1x1x16xf32>
    %246 = vector.shape_cast %238 : vector<16x16xf32> to vector<4x1x4x1x1x16xf32>
    %247 = vector.shape_cast %241 : vector<16x16xf32> to vector<4x1x4x1x1x16xf32>
    %248 = vector.shape_cast %244 : vector<16x16xf32> to vector<4x1x4x1x1x16xf32>
    %249 = tpu.concatenate %245, %246 in 3 : vector<4x1x4x1x1x16xf32>, vector<4x1x4x1x1x16xf32> -> vector<4x1x4x2x1x16xf32>
    %250 = tpu.concatenate %247, %248 in 3 : vector<4x1x4x1x1x16xf32>, vector<4x1x4x1x1x16xf32> -> vector<4x1x4x2x1x16xf32>
    %251 = tpu.concatenate %249, %250 in 1 : vector<4x1x4x2x1x16xf32>, vector<4x1x4x2x1x16xf32> -> vector<4x2x4x2x1x16xf32>
    %252 = vector.shape_cast %251 : vector<4x2x4x2x1x16xf32> to vector<64x16xf32>
    %c0_165 = arith.constant 0 : index
    %c0_166 = arith.constant 0 : index
    %253 = vector.load %arg7[%c0_165, %c0_166] : memref<1x16xf32, #tpu.memory_space<vmem>>, vector<1x16xf32>
    %254 = vector.broadcast %253 : vector<1x16xf32> to vector<64x16xf32>
    %255 = arith.addf %252, %254 : vector<64x16xf32>
    %256 = vector.shape_cast %255 : vector<64x16xf32> to vector<8x8x1x16xf32>
    %cst_167 = arith.constant 0.000000e+00 : f32
    %257 = vector.broadcast %cst_167 : f32 to vector<8x1x1x16xf32>
    %258 = tpu.concatenate %257, %256, %257 in 1 : vector<8x1x1x16xf32>, vector<8x8x1x16xf32>, vector<8x1x1x16xf32> -> vector<8x10x1x16xf32>
    %cst_168 = arith.constant 0.000000e+00 : f32
    %259 = vector.broadcast %cst_168 : f32 to vector<1x10x1x16xf32>
    %260 = tpu.concatenate %259, %258, %259 in 0 : vector<1x10x1x16xf32>, vector<8x10x1x16xf32>, vector<1x10x1x16xf32> -> vector<10x10x1x16xf32>
    %261 = vector.shape_cast %260 : vector<10x10x1x16xf32> to vector<10x10x16xf32>
    %cst_169 = arith.constant 0.000000e+00 : f32
    %262 = vector.broadcast %cst_169 : f32 to vector<64x16xf32>
    %263 = vector.extract_strided_slice %261 {offsets = [0, 0, 0], sizes = [8, 8, 16], strides = [1, 1, 1]} : vector<10x10x16xf32> to vector<8x8x16xf32>
    %264 = vector.shape_cast %263 : vector<8x8x16xf32> to vector<64x16xf32>
    %265 = arith.truncf %264 : vector<64x16xf32> to vector<64x16xbf16>
    %c0_170 = arith.constant 0 : index
    %c0_171 = arith.constant 0 : index
    %c0_172 = arith.constant 0 : index
    %c0_173 = arith.constant 0 : index
    %266 = vector.load %arg14[%c0_170, %c0_171, %c0_172, %c0_173] : memref<3x3x16x16xbf16, #tpu.memory_space<vmem>>, vector<1x1x16x16xbf16>
    %267 = vector.shape_cast %266 : vector<1x1x16x16xbf16> to vector<16x16xbf16>
    %cst_174 = arith.constant dense<0.000000e+00> : vector<64x16xf32>
    %268 = tpu.matmul %265, %267, %cst_174 {dimension_numbers = #tpu.dot_dimension_numbers<[1], [0], [0], [1], [0, 0, 1, 1], [], []>} : vector<64x16xbf16>, vector<16x16xbf16>, vector<64x16xf32> -> vector<64x16xf32>
    %269 = arith.addf %262, %268 : vector<64x16xf32>
    %270 = vector.extract_strided_slice %261 {offsets = [0, 1, 0], sizes = [8, 8, 16], strides = [1, 1, 1]} : vector<10x10x16xf32> to vector<8x8x16xf32>
    %271 = vector.shape_cast %270 : vector<8x8x16xf32> to vector<64x16xf32>
    %272 = arith.truncf %271 : vector<64x16xf32> to vector<64x16xbf16>
    %c0_175 = arith.constant 0 : index
    %c1_176 = arith.constant 1 : index
    %c0_177 = arith.constant 0 : index
    %c0_178 = arith.constant 0 : index
    %273 = vector.load %arg14[%c0_175, %c1_176, %c0_177, %c0_178] : memref<3x3x16x16xbf16, #tpu.memory_space<vmem>>, vector<1x1x16x16xbf16>
    %274 = vector.shape_cast %273 : vector<1x1x16x16xbf16> to vector<16x16xbf16>
    %cst_179 = arith.constant dense<0.000000e+00> : vector<64x16xf32>
    %275 = tpu.matmul %272, %274, %cst_179 {dimension_numbers = #tpu.dot_dimension_numbers<[1], [0], [0], [1], [0, 0, 1, 1], [], []>} : vector<64x16xbf16>, vector<16x16xbf16>, vector<64x16xf32> -> vector<64x16xf32>
    %276 = arith.addf %269, %275 : vector<64x16xf32>
    %277 = vector.extract_strided_slice %261 {offsets = [0, 2, 0], sizes = [8, 8, 16], strides = [1, 1, 1]} : vector<10x10x16xf32> to vector<8x8x16xf32>
    %278 = vector.shape_cast %277 : vector<8x8x16xf32> to vector<64x16xf32>
    %279 = arith.truncf %278 : vector<64x16xf32> to vector<64x16xbf16>
    %c0_180 = arith.constant 0 : index
    %c2_181 = arith.constant 2 : index
    %c0_182 = arith.constant 0 : index
    %c0_183 = arith.constant 0 : index
    %280 = vector.load %arg14[%c0_180, %c2_181, %c0_182, %c0_183] : memref<3x3x16x16xbf16, #tpu.memory_space<vmem>>, vector<1x1x16x16xbf16>
    %281 = vector.shape_cast %280 : vector<1x1x16x16xbf16> to vector<16x16xbf16>
    %cst_184 = arith.constant dense<0.000000e+00> : vector<64x16xf32>
    %282 = tpu.matmul %279, %281, %cst_184 {dimension_numbers = #tpu.dot_dimension_numbers<[1], [0], [0], [1], [0, 0, 1, 1], [], []>} : vector<64x16xbf16>, vector<16x16xbf16>, vector<64x16xf32> -> vector<64x16xf32>
    %283 = arith.addf %276, %282 : vector<64x16xf32>
    %284 = vector.extract_strided_slice %261 {offsets = [1, 0, 0], sizes = [8, 8, 16], strides = [1, 1, 1]} : vector<10x10x16xf32> to vector<8x8x16xf32>
    %285 = vector.shape_cast %284 : vector<8x8x16xf32> to vector<64x16xf32>
    %286 = arith.truncf %285 : vector<64x16xf32> to vector<64x16xbf16>
    %c1_185 = arith.constant 1 : index
    %c0_186 = arith.constant 0 : index
    %c0_187 = arith.constant 0 : index
    %c0_188 = arith.constant 0 : index
    %287 = vector.load %arg14[%c1_185, %c0_186, %c0_187, %c0_188] : memref<3x3x16x16xbf16, #tpu.memory_space<vmem>>, vector<1x1x16x16xbf16>
    %288 = vector.shape_cast %287 : vector<1x1x16x16xbf16> to vector<16x16xbf16>
    %cst_189 = arith.constant dense<0.000000e+00> : vector<64x16xf32>
    %289 = tpu.matmul %286, %288, %cst_189 {dimension_numbers = #tpu.dot_dimension_numbers<[1], [0], [0], [1], [0, 0, 1, 1], [], []>} : vector<64x16xbf16>, vector<16x16xbf16>, vector<64x16xf32> -> vector<64x16xf32>
    %290 = arith.addf %283, %289 : vector<64x16xf32>
    %291 = vector.extract_strided_slice %261 {offsets = [1, 1, 0], sizes = [8, 8, 16], strides = [1, 1, 1]} : vector<10x10x16xf32> to vector<8x8x16xf32>
    %292 = vector.shape_cast %291 : vector<8x8x16xf32> to vector<64x16xf32>
    %293 = arith.truncf %292 : vector<64x16xf32> to vector<64x16xbf16>
    %c1_190 = arith.constant 1 : index
    %c1_191 = arith.constant 1 : index
    %c0_192 = arith.constant 0 : index
    %c0_193 = arith.constant 0 : index
    %294 = vector.load %arg14[%c1_190, %c1_191, %c0_192, %c0_193] : memref<3x3x16x16xbf16, #tpu.memory_space<vmem>>, vector<1x1x16x16xbf16>
    %295 = vector.shape_cast %294 : vector<1x1x16x16xbf16> to vector<16x16xbf16>
    %cst_194 = arith.constant dense<0.000000e+00> : vector<64x16xf32>
    %296 = tpu.matmul %293, %295, %cst_194 {dimension_numbers = #tpu.dot_dimension_numbers<[1], [0], [0], [1], [0, 0, 1, 1], [], []>} : vector<64x16xbf16>, vector<16x16xbf16>, vector<64x16xf32> -> vector<64x16xf32>
    %297 = arith.addf %290, %296 : vector<64x16xf32>
    %298 = vector.extract_strided_slice %261 {offsets = [1, 2, 0], sizes = [8, 8, 16], strides = [1, 1, 1]} : vector<10x10x16xf32> to vector<8x8x16xf32>
    %299 = vector.shape_cast %298 : vector<8x8x16xf32> to vector<64x16xf32>
    %300 = arith.truncf %299 : vector<64x16xf32> to vector<64x16xbf16>
    %c1_195 = arith.constant 1 : index
    %c2_196 = arith.constant 2 : index
    %c0_197 = arith.constant 0 : index
    %c0_198 = arith.constant 0 : index
    %301 = vector.load %arg14[%c1_195, %c2_196, %c0_197, %c0_198] : memref<3x3x16x16xbf16, #tpu.memory_space<vmem>>, vector<1x1x16x16xbf16>
    %302 = vector.shape_cast %301 : vector<1x1x16x16xbf16> to vector<16x16xbf16>
    %cst_199 = arith.constant dense<0.000000e+00> : vector<64x16xf32>
    %303 = tpu.matmul %300, %302, %cst_199 {dimension_numbers = #tpu.dot_dimension_numbers<[1], [0], [0], [1], [0, 0, 1, 1], [], []>} : vector<64x16xbf16>, vector<16x16xbf16>, vector<64x16xf32> -> vector<64x16xf32>
    %304 = arith.addf %297, %303 : vector<64x16xf32>
    %305 = vector.extract_strided_slice %261 {offsets = [2, 0, 0], sizes = [8, 8, 16], strides = [1, 1, 1]} : vector<10x10x16xf32> to vector<8x8x16xf32>
    %306 = vector.shape_cast %305 : vector<8x8x16xf32> to vector<64x16xf32>
    %307 = arith.truncf %306 : vector<64x16xf32> to vector<64x16xbf16>
    %c2_200 = arith.constant 2 : index
    %c0_201 = arith.constant 0 : index
    %c0_202 = arith.constant 0 : index
    %c0_203 = arith.constant 0 : index
    %308 = vector.load %arg14[%c2_200, %c0_201, %c0_202, %c0_203] : memref<3x3x16x16xbf16, #tpu.memory_space<vmem>>, vector<1x1x16x16xbf16>
    %309 = vector.shape_cast %308 : vector<1x1x16x16xbf16> to vector<16x16xbf16>
    %cst_204 = arith.constant dense<0.000000e+00> : vector<64x16xf32>
    %310 = tpu.matmul %307, %309, %cst_204 {dimension_numbers = #tpu.dot_dimension_numbers<[1], [0], [0], [1], [0, 0, 1, 1], [], []>} : vector<64x16xbf16>, vector<16x16xbf16>, vector<64x16xf32> -> vector<64x16xf32>
    %311 = arith.addf %304, %310 : vector<64x16xf32>
    %312 = vector.extract_strided_slice %261 {offsets = [2, 1, 0], sizes = [8, 8, 16], strides = [1, 1, 1]} : vector<10x10x16xf32> to vector<8x8x16xf32>
    %313 = vector.shape_cast %312 : vector<8x8x16xf32> to vector<64x16xf32>
    %314 = arith.truncf %313 : vector<64x16xf32> to vector<64x16xbf16>
    %c2_205 = arith.constant 2 : index
    %c1_206 = arith.constant 1 : index
    %c0_207 = arith.constant 0 : index
    %c0_208 = arith.constant 0 : index
    %315 = vector.load %arg14[%c2_205, %c1_206, %c0_207, %c0_208] : memref<3x3x16x16xbf16, #tpu.memory_space<vmem>>, vector<1x1x16x16xbf16>
    %316 = vector.shape_cast %315 : vector<1x1x16x16xbf16> to vector<16x16xbf16>
    %cst_209 = arith.constant dense<0.000000e+00> : vector<64x16xf32>
    %317 = tpu.matmul %314, %316, %cst_209 {dimension_numbers = #tpu.dot_dimension_numbers<[1], [0], [0], [1], [0, 0, 1, 1], [], []>} : vector<64x16xbf16>, vector<16x16xbf16>, vector<64x16xf32> -> vector<64x16xf32>
    %318 = arith.addf %311, %317 : vector<64x16xf32>
    %319 = vector.extract_strided_slice %261 {offsets = [2, 2, 0], sizes = [8, 8, 16], strides = [1, 1, 1]} : vector<10x10x16xf32> to vector<8x8x16xf32>
    %320 = vector.shape_cast %319 : vector<8x8x16xf32> to vector<64x16xf32>
    %321 = arith.truncf %320 : vector<64x16xf32> to vector<64x16xbf16>
    %c2_210 = arith.constant 2 : index
    %c2_211 = arith.constant 2 : index
    %c0_212 = arith.constant 0 : index
    %c0_213 = arith.constant 0 : index
    %322 = vector.load %arg14[%c2_210, %c2_211, %c0_212, %c0_213] : memref<3x3x16x16xbf16, #tpu.memory_space<vmem>>, vector<1x1x16x16xbf16>
    %323 = vector.shape_cast %322 : vector<1x1x16x16xbf16> to vector<16x16xbf16>
    %cst_214 = arith.constant dense<0.000000e+00> : vector<64x16xf32>
    %324 = tpu.matmul %321, %323, %cst_214 {dimension_numbers = #tpu.dot_dimension_numbers<[1], [0], [0], [1], [0, 0, 1, 1], [], []>} : vector<64x16xbf16>, vector<16x16xbf16>, vector<64x16xf32> -> vector<64x16xf32>
    %325 = arith.addf %318, %324 : vector<64x16xf32>
    %c0_215 = arith.constant 0 : index
    %c0_216 = arith.constant 0 : index
    %326 = vector.load %arg15[%c0_215, %c0_216] : memref<1x16xf32, #tpu.memory_space<vmem>>, vector<1x16xf32>
    %327 = vector.broadcast %326 : vector<1x16xf32> to vector<64x16xf32>
    %328 = arith.addf %325, %327 : vector<64x16xf32>
    %cst_217 = arith.constant dense<0.000000e+00> : vector<16xf32>
    %329 = vector.multi_reduction <add>, %328, %cst_217 [0] : vector<64x16xf32> to vector<16xf32>
    %330 = vector.shape_cast %329 : vector<16xf32> to vector<1x16xf32>
    %cst_218 = arith.constant 1.562500e-02 : f32
    %331 = vector.broadcast %cst_218 : f32 to vector<1x16xf32>
    %332 = arith.mulf %330, %331 : vector<1x16xf32>
    %333 = arith.mulf %328, %328 : vector<64x16xf32>
    %cst_219 = arith.constant dense<0.000000e+00> : vector<16xf32>
    %334 = vector.multi_reduction <add>, %333, %cst_219 [0] : vector<64x16xf32> to vector<16xf32>
    %335 = vector.shape_cast %334 : vector<16xf32> to vector<1x16xf32>
    %cst_220 = arith.constant 1.562500e-02 : f32
    %336 = vector.broadcast %cst_220 : f32 to vector<1x16xf32>
    %337 = arith.mulf %335, %336 : vector<1x16xf32>
    %338 = arith.mulf %332, %332 : vector<1x16xf32>
    %339 = arith.subf %337, %338 : vector<1x16xf32>
    %cst_221 = arith.constant 0.000000e+00 : f32
    %340 = vector.broadcast %cst_221 : f32 to vector<1x16xf32>
    %341 = arith.maximumf %339, %340 : vector<1x16xf32>
    %342 = vector.broadcast %332 : vector<1x16xf32> to vector<64x16xf32>
    %343 = arith.subf %328, %342 : vector<64x16xf32>
    %cst_222 = arith.constant 9.99999974E-6 : f32
    %344 = vector.broadcast %cst_222 : f32 to vector<1x16xf32>
    %345 = arith.addf %341, %344 : vector<1x16xf32>
    %346 = math.rsqrt %345 : vector<1x16xf32>
    %347 = vector.broadcast %346 : vector<1x16xf32> to vector<64x16xf32>
    %348 = arith.mulf %343, %347 : vector<64x16xf32>
    %cst_223 = arith.constant 0.000000e+00 : f32
    %349 = vector.broadcast %cst_223 : f32 to vector<64x16xf32>
    %350 = arith.maximumf %348, %349 : vector<64x16xf32>
    %351 = vector.shape_cast %350 : vector<64x16xf32> to vector<8x8x1x16xf32>
    %cst_224 = arith.constant 0.000000e+00 : f32
    %352 = vector.broadcast %cst_224 : f32 to vector<8x1x1x16xf32>
    %353 = tpu.concatenate %352, %351, %352 in 1 : vector<8x1x1x16xf32>, vector<8x8x1x16xf32>, vector<8x1x1x16xf32> -> vector<8x10x1x16xf32>
    %cst_225 = arith.constant 0.000000e+00 : f32
    %354 = vector.broadcast %cst_225 : f32 to vector<1x10x1x16xf32>
    %355 = tpu.concatenate %354, %353, %354 in 0 : vector<1x10x1x16xf32>, vector<8x10x1x16xf32>, vector<1x10x1x16xf32> -> vector<10x10x1x16xf32>
    %356 = vector.shape_cast %355 : vector<10x10x1x16xf32> to vector<10x10x16xf32>
    %cst_226 = arith.constant 0.000000e+00 : f32
    %357 = vector.broadcast %cst_226 : f32 to vector<64x16xf32>
    %358 = vector.extract_strided_slice %356 {offsets = [0, 0, 0], sizes = [8, 8, 16], strides = [1, 1, 1]} : vector<10x10x16xf32> to vector<8x8x16xf32>
    %359 = vector.shape_cast %358 : vector<8x8x16xf32> to vector<64x16xf32>
    %360 = arith.truncf %359 : vector<64x16xf32> to vector<64x16xbf16>
    %c0_227 = arith.constant 0 : index
    %c0_228 = arith.constant 0 : index
    %c0_229 = arith.constant 0 : index
    %c0_230 = arith.constant 0 : index
    %361 = vector.load %arg16[%c0_227, %c0_228, %c0_229, %c0_230] : memref<3x3x16x16xbf16, #tpu.memory_space<vmem>>, vector<1x1x16x16xbf16>
    %362 = vector.shape_cast %361 : vector<1x1x16x16xbf16> to vector<16x16xbf16>
    %cst_231 = arith.constant dense<0.000000e+00> : vector<64x16xf32>
    %363 = tpu.matmul %360, %362, %cst_231 {dimension_numbers = #tpu.dot_dimension_numbers<[1], [0], [0], [1], [0, 0, 1, 1], [], []>} : vector<64x16xbf16>, vector<16x16xbf16>, vector<64x16xf32> -> vector<64x16xf32>
    %364 = arith.addf %357, %363 : vector<64x16xf32>
    %365 = vector.extract_strided_slice %356 {offsets = [0, 1, 0], sizes = [8, 8, 16], strides = [1, 1, 1]} : vector<10x10x16xf32> to vector<8x8x16xf32>
    %366 = vector.shape_cast %365 : vector<8x8x16xf32> to vector<64x16xf32>
    %367 = arith.truncf %366 : vector<64x16xf32> to vector<64x16xbf16>
    %c0_232 = arith.constant 0 : index
    %c1_233 = arith.constant 1 : index
    %c0_234 = arith.constant 0 : index
    %c0_235 = arith.constant 0 : index
    %368 = vector.load %arg16[%c0_232, %c1_233, %c0_234, %c0_235] : memref<3x3x16x16xbf16, #tpu.memory_space<vmem>>, vector<1x1x16x16xbf16>
    %369 = vector.shape_cast %368 : vector<1x1x16x16xbf16> to vector<16x16xbf16>
    %cst_236 = arith.constant dense<0.000000e+00> : vector<64x16xf32>
    %370 = tpu.matmul %367, %369, %cst_236 {dimension_numbers = #tpu.dot_dimension_numbers<[1], [0], [0], [1], [0, 0, 1, 1], [], []>} : vector<64x16xbf16>, vector<16x16xbf16>, vector<64x16xf32> -> vector<64x16xf32>
    %371 = arith.addf %364, %370 : vector<64x16xf32>
    %372 = vector.extract_strided_slice %356 {offsets = [0, 2, 0], sizes = [8, 8, 16], strides = [1, 1, 1]} : vector<10x10x16xf32> to vector<8x8x16xf32>
    %373 = vector.shape_cast %372 : vector<8x8x16xf32> to vector<64x16xf32>
    %374 = arith.truncf %373 : vector<64x16xf32> to vector<64x16xbf16>
    %c0_237 = arith.constant 0 : index
    %c2_238 = arith.constant 2 : index
    %c0_239 = arith.constant 0 : index
    %c0_240 = arith.constant 0 : index
    %375 = vector.load %arg16[%c0_237, %c2_238, %c0_239, %c0_240] : memref<3x3x16x16xbf16, #tpu.memory_space<vmem>>, vector<1x1x16x16xbf16>
    %376 = vector.shape_cast %375 : vector<1x1x16x16xbf16> to vector<16x16xbf16>
    %cst_241 = arith.constant dense<0.000000e+00> : vector<64x16xf32>
    %377 = tpu.matmul %374, %376, %cst_241 {dimension_numbers = #tpu.dot_dimension_numbers<[1], [0], [0], [1], [0, 0, 1, 1], [], []>} : vector<64x16xbf16>, vector<16x16xbf16>, vector<64x16xf32> -> vector<64x16xf32>
    %378 = arith.addf %371, %377 : vector<64x16xf32>
    %379 = vector.extract_strided_slice %356 {offsets = [1, 0, 0], sizes = [8, 8, 16], strides = [1, 1, 1]} : vector<10x10x16xf32> to vector<8x8x16xf32>
    %380 = vector.shape_cast %379 : vector<8x8x16xf32> to vector<64x16xf32>
    %381 = arith.truncf %380 : vector<64x16xf32> to vector<64x16xbf16>
    %c1_242 = arith.constant 1 : index
    %c0_243 = arith.constant 0 : index
    %c0_244 = arith.constant 0 : index
    %c0_245 = arith.constant 0 : index
    %382 = vector.load %arg16[%c1_242, %c0_243, %c0_244, %c0_245] : memref<3x3x16x16xbf16, #tpu.memory_space<vmem>>, vector<1x1x16x16xbf16>
    %383 = vector.shape_cast %382 : vector<1x1x16x16xbf16> to vector<16x16xbf16>
    %cst_246 = arith.constant dense<0.000000e+00> : vector<64x16xf32>
    %384 = tpu.matmul %381, %383, %cst_246 {dimension_numbers = #tpu.dot_dimension_numbers<[1], [0], [0], [1], [0, 0, 1, 1], [], []>} : vector<64x16xbf16>, vector<16x16xbf16>, vector<64x16xf32> -> vector<64x16xf32>
    %385 = arith.addf %378, %384 : vector<64x16xf32>
    %386 = vector.extract_strided_slice %356 {offsets = [1, 1, 0], sizes = [8, 8, 16], strides = [1, 1, 1]} : vector<10x10x16xf32> to vector<8x8x16xf32>
    %387 = vector.shape_cast %386 : vector<8x8x16xf32> to vector<64x16xf32>
    %388 = arith.truncf %387 : vector<64x16xf32> to vector<64x16xbf16>
    %c1_247 = arith.constant 1 : index
    %c1_248 = arith.constant 1 : index
    %c0_249 = arith.constant 0 : index
    %c0_250 = arith.constant 0 : index
    %389 = vector.load %arg16[%c1_247, %c1_248, %c0_249, %c0_250] : memref<3x3x16x16xbf16, #tpu.memory_space<vmem>>, vector<1x1x16x16xbf16>
    %390 = vector.shape_cast %389 : vector<1x1x16x16xbf16> to vector<16x16xbf16>
    %cst_251 = arith.constant dense<0.000000e+00> : vector<64x16xf32>
    %391 = tpu.matmul %388, %390, %cst_251 {dimension_numbers = #tpu.dot_dimension_numbers<[1], [0], [0], [1], [0, 0, 1, 1], [], []>} : vector<64x16xbf16>, vector<16x16xbf16>, vector<64x16xf32> -> vector<64x16xf32>
    %392 = arith.addf %385, %391 : vector<64x16xf32>
    %393 = vector.extract_strided_slice %356 {offsets = [1, 2, 0], sizes = [8, 8, 16], strides = [1, 1, 1]} : vector<10x10x16xf32> to vector<8x8x16xf32>
    %394 = vector.shape_cast %393 : vector<8x8x16xf32> to vector<64x16xf32>
    %395 = arith.truncf %394 : vector<64x16xf32> to vector<64x16xbf16>
    %c1_252 = arith.constant 1 : index
    %c2_253 = arith.constant 2 : index
    %c0_254 = arith.constant 0 : index
    %c0_255 = arith.constant 0 : index
    %396 = vector.load %arg16[%c1_252, %c2_253, %c0_254, %c0_255] : memref<3x3x16x16xbf16, #tpu.memory_space<vmem>>, vector<1x1x16x16xbf16>
    %397 = vector.shape_cast %396 : vector<1x1x16x16xbf16> to vector<16x16xbf16>
    %cst_256 = arith.constant dense<0.000000e+00> : vector<64x16xf32>
    %398 = tpu.matmul %395, %397, %cst_256 {dimension_numbers = #tpu.dot_dimension_numbers<[1], [0], [0], [1], [0, 0, 1, 1], [], []>} : vector<64x16xbf16>, vector<16x16xbf16>, vector<64x16xf32> -> vector<64x16xf32>
    %399 = arith.addf %392, %398 : vector<64x16xf32>
    %400 = vector.extract_strided_slice %356 {offsets = [2, 0, 0], sizes = [8, 8, 16], strides = [1, 1, 1]} : vector<10x10x16xf32> to vector<8x8x16xf32>
    %401 = vector.shape_cast %400 : vector<8x8x16xf32> to vector<64x16xf32>
    %402 = arith.truncf %401 : vector<64x16xf32> to vector<64x16xbf16>
    %c2_257 = arith.constant 2 : index
    %c0_258 = arith.constant 0 : index
    %c0_259 = arith.constant 0 : index
    %c0_260 = arith.constant 0 : index
    %403 = vector.load %arg16[%c2_257, %c0_258, %c0_259, %c0_260] : memref<3x3x16x16xbf16, #tpu.memory_space<vmem>>, vector<1x1x16x16xbf16>
    %404 = vector.shape_cast %403 : vector<1x1x16x16xbf16> to vector<16x16xbf16>
    %cst_261 = arith.constant dense<0.000000e+00> : vector<64x16xf32>
    %405 = tpu.matmul %402, %404, %cst_261 {dimension_numbers = #tpu.dot_dimension_numbers<[1], [0], [0], [1], [0, 0, 1, 1], [], []>} : vector<64x16xbf16>, vector<16x16xbf16>, vector<64x16xf32> -> vector<64x16xf32>
    %406 = arith.addf %399, %405 : vector<64x16xf32>
    %407 = vector.extract_strided_slice %356 {offsets = [2, 1, 0], sizes = [8, 8, 16], strides = [1, 1, 1]} : vector<10x10x16xf32> to vector<8x8x16xf32>
    %408 = vector.shape_cast %407 : vector<8x8x16xf32> to vector<64x16xf32>
    %409 = arith.truncf %408 : vector<64x16xf32> to vector<64x16xbf16>
    %c2_262 = arith.constant 2 : index
    %c1_263 = arith.constant 1 : index
    %c0_264 = arith.constant 0 : index
    %c0_265 = arith.constant 0 : index
    %410 = vector.load %arg16[%c2_262, %c1_263, %c0_264, %c0_265] : memref<3x3x16x16xbf16, #tpu.memory_space<vmem>>, vector<1x1x16x16xbf16>
    %411 = vector.shape_cast %410 : vector<1x1x16x16xbf16> to vector<16x16xbf16>
    %cst_266 = arith.constant dense<0.000000e+00> : vector<64x16xf32>
    %412 = tpu.matmul %409, %411, %cst_266 {dimension_numbers = #tpu.dot_dimension_numbers<[1], [0], [0], [1], [0, 0, 1, 1], [], []>} : vector<64x16xbf16>, vector<16x16xbf16>, vector<64x16xf32> -> vector<64x16xf32>
    %413 = arith.addf %406, %412 : vector<64x16xf32>
    %414 = vector.extract_strided_slice %356 {offsets = [2, 2, 0], sizes = [8, 8, 16], strides = [1, 1, 1]} : vector<10x10x16xf32> to vector<8x8x16xf32>
    %415 = vector.shape_cast %414 : vector<8x8x16xf32> to vector<64x16xf32>
    %416 = arith.truncf %415 : vector<64x16xf32> to vector<64x16xbf16>
    %c2_267 = arith.constant 2 : index
    %c2_268 = arith.constant 2 : index
    %c0_269 = arith.constant 0 : index
    %c0_270 = arith.constant 0 : index
    %417 = vector.load %arg16[%c2_267, %c2_268, %c0_269, %c0_270] : memref<3x3x16x16xbf16, #tpu.memory_space<vmem>>, vector<1x1x16x16xbf16>
    %418 = vector.shape_cast %417 : vector<1x1x16x16xbf16> to vector<16x16xbf16>
    %cst_271 = arith.constant dense<0.000000e+00> : vector<64x16xf32>
    %419 = tpu.matmul %416, %418, %cst_271 {dimension_numbers = #tpu.dot_dimension_numbers<[1], [0], [0], [1], [0, 0, 1, 1], [], []>} : vector<64x16xbf16>, vector<16x16xbf16>, vector<64x16xf32> -> vector<64x16xf32>
    %420 = arith.addf %413, %419 : vector<64x16xf32>
    %c0_272 = arith.constant 0 : index
    %c0_273 = arith.constant 0 : index
    %421 = vector.load %arg17[%c0_272, %c0_273] : memref<1x16xf32, #tpu.memory_space<vmem>>, vector<1x16xf32>
    %422 = vector.broadcast %421 : vector<1x16xf32> to vector<64x16xf32>
    %423 = arith.addf %420, %422 : vector<64x16xf32>
    %cst_274 = arith.constant dense<0.000000e+00> : vector<16xf32>
    %424 = vector.multi_reduction <add>, %423, %cst_274 [0] : vector<64x16xf32> to vector<16xf32>
    %425 = vector.shape_cast %424 : vector<16xf32> to vector<1x16xf32>
    %cst_275 = arith.constant 1.562500e-02 : f32
    %426 = vector.broadcast %cst_275 : f32 to vector<1x16xf32>
    %427 = arith.mulf %425, %426 : vector<1x16xf32>
    %428 = arith.mulf %423, %423 : vector<64x16xf32>
    %cst_276 = arith.constant dense<0.000000e+00> : vector<16xf32>
    %429 = vector.multi_reduction <add>, %428, %cst_276 [0] : vector<64x16xf32> to vector<16xf32>
    %430 = vector.shape_cast %429 : vector<16xf32> to vector<1x16xf32>
    %cst_277 = arith.constant 1.562500e-02 : f32
    %431 = vector.broadcast %cst_277 : f32 to vector<1x16xf32>
    %432 = arith.mulf %430, %431 : vector<1x16xf32>
    %433 = arith.mulf %427, %427 : vector<1x16xf32>
    %434 = arith.subf %432, %433 : vector<1x16xf32>
    %cst_278 = arith.constant 0.000000e+00 : f32
    %435 = vector.broadcast %cst_278 : f32 to vector<1x16xf32>
    %436 = arith.maximumf %434, %435 : vector<1x16xf32>
    %437 = vector.broadcast %427 : vector<1x16xf32> to vector<64x16xf32>
    %438 = arith.subf %423, %437 : vector<64x16xf32>
    %cst_279 = arith.constant 9.99999974E-6 : f32
    %439 = vector.broadcast %cst_279 : f32 to vector<1x16xf32>
    %440 = arith.addf %436, %439 : vector<1x16xf32>
    %441 = math.rsqrt %440 : vector<1x16xf32>
    %442 = vector.broadcast %441 : vector<1x16xf32> to vector<64x16xf32>
    %443 = arith.mulf %438, %442 : vector<64x16xf32>
    %cst_280 = arith.constant 0.000000e+00 : f32
    %444 = vector.broadcast %cst_280 : f32 to vector<64x16xf32>
    %445 = arith.maximumf %443, %444 : vector<64x16xf32>
    %446 = tpu.transpose %445, [1, 0] : vector<64x16xf32> -> vector<16x64xf32>
    %447 = vector.shape_cast %446 : vector<16x64xf32> to vector<1x16x64xf32>
    %c0_281 = arith.constant 0 : index
    %c0_282 = arith.constant 0 : index
    %c0_283 = arith.constant 0 : index
    %448 = vector.load %arg21[%c0_281, %c0_282, %c0_283] : memref<1x16x64xf32, #tpu.memory_space<vmem>>, vector<1x16x64xf32>
    tpu.vector_store %arg21[%c0_281, %c0_282, %c0_283], %447 {strides = array<i32>} : memref<1x16x64xf32, #tpu.memory_space<vmem>>, vector<1x16x64xf32>,
    %449 = arith.truncf %445 : vector<64x16xf32> to vector<64x16xbf16>
    %c0_284 = arith.constant 0 : index
    %c0_285 = arith.constant 0 : index
    %c0_286 = arith.constant 0 : index
    %c0_287 = arith.constant 0 : index
    %450 = vector.load %arg8[%c0_284, %c0_285, %c0_286, %c0_287] : memref<2x2x16x16xbf16, #tpu.memory_space<vmem>>, vector<1x1x16x16xbf16>
    %451 = vector.shape_cast %450 : vector<1x1x16x16xbf16> to vector<16x16xbf16>
    %cst_288 = arith.constant dense<0.000000e+00> : vector<64x16xf32>
    %452 = tpu.matmul %449, %451, %cst_288 {dimension_numbers = #tpu.dot_dimension_numbers<[1], [0], [0], [1], [0, 0, 1, 1], [], []>} : vector<64x16xbf16>, vector<16x16xbf16>, vector<64x16xf32> -> vector<64x16xf32>
    %c0_289 = arith.constant 0 : index
    %c1_290 = arith.constant 1 : index
    %c0_291 = arith.constant 0 : index
    %c0_292 = arith.constant 0 : index
    %453 = vector.load %arg8[%c0_289, %c1_290, %c0_291, %c0_292] : memref<2x2x16x16xbf16, #tpu.memory_space<vmem>>, vector<1x1x16x16xbf16>
    %454 = vector.shape_cast %453 : vector<1x1x16x16xbf16> to vector<16x16xbf16>
    %cst_293 = arith.constant dense<0.000000e+00> : vector<64x16xf32>
    %455 = tpu.matmul %449, %454, %cst_293 {dimension_numbers = #tpu.dot_dimension_numbers<[1], [0], [0], [1], [0, 0, 1, 1], [], []>} : vector<64x16xbf16>, vector<16x16xbf16>, vector<64x16xf32> -> vector<64x16xf32>
    %c1_294 = arith.constant 1 : index
    %c0_295 = arith.constant 0 : index
    %c0_296 = arith.constant 0 : index
    %c0_297 = arith.constant 0 : index
    %456 = vector.load %arg8[%c1_294, %c0_295, %c0_296, %c0_297] : memref<2x2x16x16xbf16, #tpu.memory_space<vmem>>, vector<1x1x16x16xbf16>
    %457 = vector.shape_cast %456 : vector<1x1x16x16xbf16> to vector<16x16xbf16>
    %cst_298 = arith.constant dense<0.000000e+00> : vector<64x16xf32>
    %458 = tpu.matmul %449, %457, %cst_298 {dimension_numbers = #tpu.dot_dimension_numbers<[1], [0], [0], [1], [0, 0, 1, 1], [], []>} : vector<64x16xbf16>, vector<16x16xbf16>, vector<64x16xf32> -> vector<64x16xf32>
    %c1_299 = arith.constant 1 : index
    %c1_300 = arith.constant 1 : index
    %c0_301 = arith.constant 0 : index
    %c0_302 = arith.constant 0 : index
    %459 = vector.load %arg8[%c1_299, %c1_300, %c0_301, %c0_302] : memref<2x2x16x16xbf16, #tpu.memory_space<vmem>>, vector<1x1x16x16xbf16>
    %460 = vector.shape_cast %459 : vector<1x1x16x16xbf16> to vector<16x16xbf16>
    %cst_303 = arith.constant dense<0.000000e+00> : vector<64x16xf32>
    %461 = tpu.matmul %449, %460, %cst_303 {dimension_numbers = #tpu.dot_dimension_numbers<[1], [0], [0], [1], [0, 0, 1, 1], [], []>} : vector<64x16xbf16>, vector<16x16xbf16>, vector<64x16xf32> -> vector<64x16xf32>
    %462 = vector.shape_cast %452 : vector<64x16xf32> to vector<8x1x8x1x1x16xf32>
    %463 = vector.shape_cast %455 : vector<64x16xf32> to vector<8x1x8x1x1x16xf32>
    %464 = vector.shape_cast %458 : vector<64x16xf32> to vector<8x1x8x1x1x16xf32>
    %465 = vector.shape_cast %461 : vector<64x16xf32> to vector<8x1x8x1x1x16xf32>
    %466 = tpu.concatenate %462, %463 in 3 : vector<8x1x8x1x1x16xf32>, vector<8x1x8x1x1x16xf32> -> vector<8x1x8x2x1x16xf32>
    %467 = tpu.concatenate %464, %465 in 3 : vector<8x1x8x1x1x16xf32>, vector<8x1x8x1x1x16xf32> -> vector<8x1x8x2x1x16xf32>
    %468 = tpu.concatenate %466, %467 in 1 : vector<8x1x8x2x1x16xf32>, vector<8x1x8x2x1x16xf32> -> vector<8x2x8x2x1x16xf32>
    %469 = vector.shape_cast %468 : vector<8x2x8x2x1x16xf32> to vector<256x16xf32>
    %c0_304 = arith.constant 0 : index
    %c0_305 = arith.constant 0 : index
    %470 = vector.load %arg9[%c0_304, %c0_305] : memref<1x16xf32, #tpu.memory_space<vmem>>, vector<1x16xf32>
    %471 = vector.broadcast %470 : vector<1x16xf32> to vector<256x16xf32>
    %472 = arith.addf %469, %471 : vector<256x16xf32>
    %473 = tpu.transpose %472, [1, 0] : vector<256x16xf32> -> vector<16x256xf32>
    %474 = vector.shape_cast %473 : vector<16x256xf32> to vector<1x16x256xf32>
    %c0_306 = arith.constant 0 : index
    %c0_307 = arith.constant 0 : index
    %c0_308 = arith.constant 0 : index
    %475 = vector.load %arg22[%c0_306, %c0_307, %c0_308] : memref<1x16x256xf32, #tpu.memory_space<vmem>>, vector<1x16x256xf32>
    tpu.vector_store %arg22[%c0_306, %c0_307, %c0_308], %474 {strides = array<i32>} : memref<1x16x256xf32, #tpu.memory_space<vmem>>, vector<1x16x256xf32>,
    %c0_309 = arith.constant 0 : index
    %c0_310 = arith.constant 0 : index
    %476 = vector.load %arg18[%c0_309, %c0_310] : memref<2x16xbf16, #tpu.memory_space<vmem>>, vector<2x16xbf16>
    %477 = arith.truncf %473 : vector<16x256xf32> to vector<16x256xbf16>
    %cst_311 = arith.constant dense<0.000000e+00> : vector<2x256xf32>
    %478 = tpu.matmul %476, %477, %cst_311 {dimension_numbers = #tpu.dot_dimension_numbers<[1], [0], [0], [1], [0, 0, 1, 1], [], []>} : vector<2x16xbf16>, vector<16x256xbf16>, vector<2x256xf32> -> vector<2x256xf32>
    %c0_312 = arith.constant 0 : index
    %c0_313 = arith.constant 0 : index
    %479 = vector.load %arg19[%c0_312, %c0_313] : memref<2x1xf32, #tpu.memory_space<vmem>>, vector<2x1xf32>
    %480 = vector.broadcast %479 : vector<2x1xf32> to vector<2x256xf32>
    %481 = arith.addf %478, %480 : vector<2x256xf32>
    %482 = vector.shape_cast %481 : vector<2x256xf32> to vector<1x2x256xf32>
    %c0_314 = arith.constant 0 : index
    %c0_315 = arith.constant 0 : index
    %c0_316 = arith.constant 0 : index
    %483 = vector.load %arg23[%c0_314, %c0_315, %c0_316] : memref<1x2x256xf32, #tpu.memory_space<vmem>>, vector<1x2x256xf32>
    tpu.vector_store %arg23[%c0_314, %c0_315, %c0_316], %482 {strides = array<i32>} : memref<1x2x256xf32, #tpu.memory_space<vmem>>, vector<1x2x256xf32>,
    return
  }
  func.func @transform_0(%arg0: i32) -> (i32, i32) {
    %c0_i32 = arith.constant 0 : i32
    %c0_i32_0 = arith.constant 0 : i32
    %c0_i32_1 = arith.constant 0 : i32
    return %c0_i32, %c0_i32_0 : i32, i32
  }
  func.func @transform_1(%arg0: i32) -> (i32, i32, i32) {
    %c0_i32 = arith.constant 0 : i32
    %c0_i32_0 = arith.constant 0 : i32
    %c0_i32_1 = arith.constant 0 : i32
    %c0_i32_2 = arith.constant 0 : i32
    return %c0_i32, %c0_i32_0, %c0_i32_1 : i32, i32, i32
  }
  func.func @transform_2(%arg0: i32) -> (i32, i32) {
    %c0_i32 = arith.constant 0 : i32
    %c0_i32_0 = arith.constant 0 : i32
    %c0_i32_1 = arith.constant 0 : i32
    return %c0_i32, %c0_i32_0 : i32, i32
  }
  func.func @transform_3(%arg0: i32) -> (i32, i32, i32, i32) {
    %c0_i32 = arith.constant 0 : i32
    %c0_i32_0 = arith.constant 0 : i32
    %c0_i32_1 = arith.constant 0 : i32
    %c0_i32_2 = arith.constant 0 : i32
    %c0_i32_3 = arith.constant 0 : i32
    return %c0_i32, %c0_i32_0, %c0_i32_1, %c0_i32_2 : i32, i32, i32, i32
  }
  func.func @transform_4(%arg0: i32) -> (i32, i32) {
    %c0_i32 = arith.constant 0 : i32
    %c0_i32_0 = arith.constant 0 : i32
    %c0_i32_1 = arith.constant 0 : i32
    return %c0_i32, %c0_i32_0 : i32, i32
  }
  func.func @transform_5(%arg0: i32) -> (i32, i32, i32, i32) {
    %c0_i32 = arith.constant 0 : i32
    %c0_i32_0 = arith.constant 0 : i32
    %c0_i32_1 = arith.constant 0 : i32
    %c0_i32_2 = arith.constant 0 : i32
    %c0_i32_3 = arith.constant 0 : i32
    return %c0_i32, %c0_i32_0, %c0_i32_1, %c0_i32_2 : i32, i32, i32, i32
  }
  func.func @transform_6(%arg0: i32) -> (i32, i32) {
    %c0_i32 = arith.constant 0 : i32
    %c0_i32_0 = arith.constant 0 : i32
    %c0_i32_1 = arith.constant 0 : i32
    return %c0_i32, %c0_i32_0 : i32, i32
  }
  func.func @transform_7(%arg0: i32) -> (i32, i32, i32, i32) {
    %c0_i32 = arith.constant 0 : i32
    %c0_i32_0 = arith.constant 0 : i32
    %c0_i32_1 = arith.constant 0 : i32
    %c0_i32_2 = arith.constant 0 : i32
    %c0_i32_3 = arith.constant 0 : i32
    return %c0_i32, %c0_i32_0, %c0_i32_1, %c0_i32_2 : i32, i32, i32, i32
  }
  func.func @transform_8(%arg0: i32) -> (i32, i32) {
    %c0_i32 = arith.constant 0 : i32
    %c0_i32_0 = arith.constant 0 : i32
    %c0_i32_1 = arith.constant 0 : i32
    return %c0_i32, %c0_i32_0 : i32, i32
  }
  func.func @transform_9(%arg0: i32) -> (i32, i32, i32, i32) {
    %c0_i32 = arith.constant 0 : i32
    %c0_i32_0 = arith.constant 0 : i32
    %c0_i32_1 = arith.constant 0 : i32
    %c0_i32_2 = arith.constant 0 : i32
    %c0_i32_3 = arith.constant 0 : i32
    return %c0_i32, %c0_i32_0, %c0_i32_1, %c0_i32_2 : i32, i32, i32, i32
  }
  func.func @transform_10(%arg0: i32) -> (i32, i32) {
    %c0_i32 = arith.constant 0 : i32
    %c0_i32_0 = arith.constant 0 : i32
    %c0_i32_1 = arith.constant 0 : i32
    return %c0_i32, %c0_i32_0 : i32, i32
  }
  func.func @transform_11(%arg0: i32) -> (i32, i32, i32, i32) {
    %c0_i32 = arith.constant 0 : i32
    %c0_i32_0 = arith.constant 0 : i32
    %c0_i32_1 = arith.constant 0 : i32
    %c0_i32_2 = arith.constant 0 : i32
    %c0_i32_3 = arith.constant 0 : i32
    return %c0_i32, %c0_i32_0, %c0_i32_1, %c0_i32_2 : i32, i32, i32, i32
  }
  func.func @transform_12(%arg0: i32) -> (i32, i32) {
    %c0_i32 = arith.constant 0 : i32
    %c0_i32_0 = arith.constant 0 : i32
    %c0_i32_1 = arith.constant 0 : i32
    return %c0_i32, %c0_i32_0 : i32, i32
  }
  func.func @transform_13(%arg0: i32) -> (i32, i32, i32, i32) {
    %c0_i32 = arith.constant 0 : i32
    %c0_i32_0 = arith.constant 0 : i32
    %c0_i32_1 = arith.constant 0 : i32
    %c0_i32_2 = arith.constant 0 : i32
    %c0_i32_3 = arith.constant 0 : i32
    return %c0_i32, %c0_i32_0, %c0_i32_1, %c0_i32_2 : i32, i32, i32, i32
  }
  func.func @transform_14(%arg0: i32) -> (i32, i32) {
    %c0_i32 = arith.constant 0 : i32
    %c0_i32_0 = arith.constant 0 : i32
    %c0_i32_1 = arith.constant 0 : i32
    return %c0_i32, %c0_i32_0 : i32, i32
  }
  func.func @transform_15(%arg0: i32) -> (i32, i32, i32, i32) {
    %c0_i32 = arith.constant 0 : i32
    %c0_i32_0 = arith.constant 0 : i32
    %c0_i32_1 = arith.constant 0 : i32
    %c0_i32_2 = arith.constant 0 : i32
    %c0_i32_3 = arith.constant 0 : i32
    return %c0_i32, %c0_i32_0, %c0_i32_1, %c0_i32_2 : i32, i32, i32, i32
  }
  func.func @transform_16(%arg0: i32) -> (i32, i32) {
    %c0_i32 = arith.constant 0 : i32
    %c0_i32_0 = arith.constant 0 : i32
    %c0_i32_1 = arith.constant 0 : i32
    return %c0_i32, %c0_i32_0 : i32, i32
  }
  func.func @transform_17(%arg0: i32) -> (i32, i32) {
    %c0_i32 = arith.constant 0 : i32
    %c0_i32_0 = arith.constant 0 : i32
    %c0_i32_1 = arith.constant 0 : i32
    return %c0_i32, %c0_i32_0 : i32, i32
  }
  func.func @transform_18(%arg0: i32) -> (i32, i32) {
    %c0_i32 = arith.constant 0 : i32
    %c0_i32_0 = arith.constant 0 : i32
    %c0_i32_1 = arith.constant 0 : i32
    return %c0_i32, %c0_i32_0 : i32, i32
  }
  func.func @transform_19(%arg0: i32) -> (i32, i32, i32) {
    %c0_i32 = arith.constant 0 : i32
    %c0_i32_0 = arith.constant 0 : i32
    %c0_i32_1 = arith.constant 0 : i32
    return %arg0, %c0_i32, %c0_i32_0 : i32, i32, i32
  }
  func.func @transform_20(%arg0: i32) -> (i32, i32, i32) {
    %c0_i32 = arith.constant 0 : i32
    %c0_i32_0 = arith.constant 0 : i32
    %c0_i32_1 = arith.constant 0 : i32
    return %arg0, %c0_i32, %c0_i32_0 : i32, i32, i32
  }
  func.func @transform_21(%arg0: i32) -> (i32, i32, i32) {
    %c0_i32 = arith.constant 0 : i32
    %c0_i32_0 = arith.constant 0 : i32
    %c0_i32_1 = arith.constant 0 : i32
    return %arg0, %c0_i32, %c0_i32_0 : i32, i32, i32
  }
  func.func @transform_22(%arg0: i32) -> (i32, i32, i32) {
    %c0_i32 = arith.constant 0 : i32
    %c0_i32_0 = arith.constant 0 : i32
    %c0_i32_1 = arith.constant 0 : i32
    return %arg0, %c0_i32, %c0_i32_0 : i32, i32, i32
  }
}

</mosaic_0001>

<bundles_post_ra>
// kernel: decoder_forward.1
= control target key start
LH: loop header
LB: loop body
LE: loop exit
PB: predicated region body
PF: predicated region fallthrough
CT: control target
= control target key end

     0   :  { %s18555_s0 = inlined_call_operand.vmem [shape: f32[2,2], index: 0, kind: input, shape index: {}]   ;;  %s18556_s1 = inlined_call_operand.vmem [shape: f32[2,4,4], index: 1, kind: input, shape index: {}]   ;;  %s18557_s2 = inlined_call_operand.vmem [shape: f32[4,4], index: 2, kind: input, shape index: {}]   ;;  %s18558_s3 = inlined_call_operand.hbm [shape: bf16[2,2,4,8], index: 3, kind: input, shape index: {}]   ;;  %s18559_s4 = inlined_call_operand.hbm [shape: f32[1,8], index: 4, kind: input, shape index: {}]   ;;  %s18560_s5 = inlined_call_operand.vmem [shape: bf16[2,2,8,16], index: 5, kind: input, shape index: {}]   ;;  %s18561_s6 = inlined_call_operand.hbm [shape: f32[1,16], index: 6, kind: input, shape index: {}]   ;;  %s18562_s7 = inlined_call_operand.hbm [shape: bf16[2,2,16,16], index: 7, kind: input, shape index: {}]   ;;  %s18563_s8 = inlined_call_operand.hbm [shape: f32[1,16], index: 8, kind: input, shape index: {}]   ;;  %s18564_s9 = inlined_call_operand.vmem [shape: bf16[3,3,8,8], index: 9, kind: input, shape index: {}]   ;;  %s18565_s10 = inlined_call_operand.hbm [shape: f32[1,8], index: 10, kind: input, shape index: {}]   ;;  %s18566_s11 = inlined_call_operand.hbm [shape: bf16[3,3,8,8], index: 11, kind: input, shape index: {}]   ;;  %s18567_s12 = inlined_call_operand.hbm [shape: f32[1,8], index: 12, kind: input, shape index: {}]   ;;  %s18568_s13 = inlined_call_operand.hbm [shape: bf16[3,3,16,16], index: 13, kind: input, shape index: {}]   ;;  %s18569_s14 = inlined_call_operand.hbm [shape: f32[1,16], index: 14, kind: input, shape index: {}]   ;;  %s18570_s15 = inlined_call_operand.hbm [shape: bf16[3,3,16,16], index: 15, kind: input, shape index: {}]   ;;  %s18571_s16 = inlined_call_operand.hbm [shape: f32[1,16], index: 16, kind: input, shape index: {}]   ;;  %s18572_s17 = inlined_call_operand.hbm [shape: bf16[2,16], index: 17, kind: input, shape index: {}]   ;;  %s18573_s18 = inlined_call_operand.vmem [shape: f32[2,1], index: 18, kind: input, shape index: {}]   ;;  %s18574_s19 = inlined_call_operand.vmem [shape: f32[2,8,16], index: 19, kind: output, shape index: {0}]   ;;  %s18575_s20 = inlined_call_operand.vmem [shape: f32[2,16,64], index: 20, kind: output, shape index: {1}]   ;;  %s18576_s21 = inlined_call_operand.vmem [shape: f32[2,16,256], index: 21, kind: output, shape index: {2}]   ;;  %s18577_s22 = inlined_call_operand.vmem [shape: f32[2,2,256], index: 22, kind: output, shape index: {3}]  }
   0x1   :  { %18758 = sst [smem:[#allocation235_spill]] %s18555_s0 }
   0x2   :  { %18759 = sst [smem:[#allocation236_spill]] %s18556_s1 }
   0x3   :  { %18760 = sst [smem:[#allocation237_spill]] %s18557_s2 }
   0x4   :  { %18761 = sst [smem:[#allocation238_spill]] %s18558_s3 }
   0x5   :  { %18762 = sst [smem:[#allocation239_spill]] %s18559_s4 }
   0x6   :  { %18763 = sst [smem:[#allocation240_spill]] %s18560_s5 }
   0x7   :  { %18764 = sst [smem:[#allocation241_spill]] %s18561_s6 }
   0x8   :  { %18765 = sst [smem:[#allocation242_spill]] %s18562_s7 }
   0x9   :  { %18766 = sst [smem:[#allocation243_spill]] %s18565_s10 }
   0xa   :  { %18767 = sst [smem:[#allocation244_spill]] %s18567_s12 }
   0xb   :  { %18768 = sst [smem:[#allocation245_spill]] %s18569_s14 }
   0xc   :  { %18769 = sst [smem:[#allocation246_spill]] %s18574_s19 }
   0xd   :  { %18770 = sst [smem:[#allocation247_spill]] %s18575_s20 }
   0xe   :  { %18771 = sst [smem:[#allocation248_spill]] %s18577_s22 }
   0xf   :  { %28 = vsyncpa [#allocation4], 0 }
  0x10   :  { %29 = vsyncpa [#allocation3], 0 }
  0x11   :  { %30 = vsyncpa [#allocation7], 0 }
  0x12   :  { %31 = vsyncpa [#allocation10], 0 }
  0x13   :  { %32 = vsyncpa [#allocation13], 0 }
  0x14   :  { %33 = vsyncpa [#allocation16], 0 }
  0x15   :  { %34 = vsyncpa [#allocation19], 0 }
  0x16   :  { %35 = vsyncpa [#allocation22], 0  ;;  %s13431_s3 = smov 0  }
  0x17 LB: > { %18772 = sst [smem:[#allocation32_spill]] %s13291_s3  ;;  %s13293_s28 = smov [#allocation6]   ;;  %s13291_s3 = sphi %s13431_s3, %s41_s3  }
  0x18   : > { %s592_s29 = sshll.u32 %s13293_s28, 4  ;;  %s13437_s30 = sadd.s32 4294967295, %s13291_s3   ;;  %s13442_s29 = int_to_ptr.vmem [resolvable:$true] %s592_s29 }
  0x19   : > { %p11819_p0 = scmp.ge.s32.totalorder %s13291_s3, 1  ;;  %p549_p1 = scmp.lt.s32.totalorder %s13291_s3, 3 }
  0x1a   : > { %p18585_p2 = scmp.eq.s32.totalorder %s13437_s30, 0  ;;  %s13294_s0 = smov [#allocation9]  }
  0x1b   : > { %p13444_p3 = pnand %p11819_p0, %p549_p1  ;;  %s616_s23 = sshll.u32 %s13294_s0, 4  ;;  %s13450_s23 = int_to_ptr.vmem [resolvable:$true] %s616_s23 }
  0x1c   : > { %s13295_s5 = smov [#allocation12]   ;;  %s13296_s6 = smov [#allocation15]  }
  0x1d   : > { %s18773_s4 = scalar_select %p13444_p3, 1, 0 }
  0x1e   : > { %p12741_p4 = pneg %p13444_p3  ;;  %s644_s24 = sshll.u32 %s13295_s5, 4  ;;  %s13458_s24 = int_to_ptr.vmem [resolvable:$true] %s644_s24 }
  0x1f   : > { %s13460_s25 = sshll.u32 %s13296_s6, 4  ;;  %s18775_s27 = sld [smem:[#allocation239_spill]]  ;;  %s669_s25 = int_to_ptr.vmem [resolvable:$true] %s13460_s25 }
  0x20   : > { %p13454_p5 = pnand %p18585_p2, %p12741_p4 }
  0x22   : > { %p13470_p7 = pneg %p13454_p5 }
  0x25   : > { %s12874_s28 = scalar_lea.hbm %s18775_s27, 16 }
  0x26   : > { %p12875_p6 = scmp.ne.s32.totalorder %s18775_s27, %s12874_s28  ;;  %p12881_p10 = scmp.lt.u32.totalorder %s12874_s28, %s18775_s27 }
  0x28   : > { %p12877_p8 = pnand %p13470_p7, %p12875_p6 }
  0x2a   : > { %p12878_p9 = pneg %p12877_p8 }
  0x2c   : > { %p12883_p11 = pnand %p12881_p10, %p12878_p9 }
  0x2e   : > { %12886 = shalt.err (!%p12883_p11)
}
  0x2f   : > { %s12887_s3 = scalar_lea.vmem %s13442_s29, 16  ;;  %s12894_s26 = scalar_lea.vmem %s13442_s29, 32 }
  0x30   : > { %p12888_p12 = scmp.ne.s32.totalorder %s13442_s29, %s12887_s3  ;;  %p12895_p1 = scmp.lt.s32.totalorder %s13442_s29, %s13442_s29 }
  0x31   : > { %p12896_p4 = scmp.lt.s32.totalorder %s12894_s26, %s12887_s3 }
  0x32   : > { %p12890_p13 = pnand %p12888_p12, %p13470_p7 }
  0x33   : > { %p12897_p6 = por %p12896_p4, %p12895_p1 }
  0x34   : > { %p12891_p0 = pneg %p12890_p13 }
  0x36   : > { %p12898_p8 = pnand %p12897_p6, %p12891_p0 }
  0x38   : > { %12901 = shalt.err (!%p12898_p8)
}
  0x39   : > { %12750 = dma.hbm_to_vmem [thread:$0]  (!%p13454_p5), %s18775_s27, 16, %s13442_s29, [#allocation7]  }
  0x3a   : > { %s18777_s7 = sld [smem:[#allocation242_spill]] }
  0x40   : > { %s12902_s6 = scalar_lea.hbm %s18777_s7, 512 }
  0x41   : > { %p12903_p9 = scmp.ne.s32.totalorder %s18777_s7, %s12902_s6  ;;  %p12909_p12 = scmp.lt.u32.totalorder %s12902_s6, %s18777_s7 }
  0x43   : > { %p12905_p10 = pnand %p12903_p9, %p13470_p7 }
  0x45   : > { %p12906_p11 = pneg %p12905_p10 }
  0x47   : > { %p12911_p13 = pnand %p12909_p12, %p12906_p11 }
  0x49   : > { %12914 = shalt.err (!%p12911_p13)
}
  0x4a   : > { %s12915_s29 = scalar_lea.vmem %s13450_s23, 512  ;;  %p12923_p6 = scmp.lt.s32.totalorder %s13450_s23, %s13450_s23 }
  0x4b   : > { %p12916_p0 = scmp.ne.s32.totalorder %s13450_s23, %s12915_s29  ;;  %p12924_p8 = scmp.lt.s32.totalorder %s12915_s29, %s12915_s29 }
  0x4d   : > { %p12918_p1 = pnand %p12916_p0, %p13470_p7  ;;  %p12925_p9 = por %p12924_p8, %p12923_p6 }
  0x4f   : > { %p12919_p4 = pneg %p12918_p1 }
  0x51   : > { %p12926_p10 = pnand %p12925_p9, %p12919_p4 }
  0x53   : > { %12929 = shalt.err (!%p12926_p10)
}
  0x54   : > { %s18587_s19 = smov 64   ;;  %s18589_s20 = smov 4  }
  0x55   : > { %12756 = dma.hbm_to_vmem [thread:$0]  (!%p13454_p5), %s18777_s7, 512, %s13450_s23, [#allocation10], %s18587_s19, %s18587_s19, %s18589_s20  }
  0x56   : > { %s18778_s10 = sld [smem:[#allocation243_spill]] }
  0x5c   : > { %s12930_s6 = scalar_lea.hbm %s18778_s10, 16 }
  0x5d   : > { %p12931_p11 = scmp.ne.s32.totalorder %s18778_s10, %s12930_s6  ;;  %p12937_p0 = scmp.lt.u32.totalorder %s12930_s6, %s18778_s10 }
  0x5f   : > { %p12933_p12 = pnand %p12931_p11, %p13470_p7 }
  0x61   : > { %p12934_p13 = pneg %p12933_p12 }
  0x63   : > { %p12939_p1 = pnand %p12937_p0, %p12934_p13 }
  0x65   : > { %12942 = shalt.err (!%p12939_p1)
}
  0x66   : > { %s12943_s23 = scalar_lea.vmem %s13458_s24, 16  ;;  %s12950_s2 = scalar_lea.vmem %s13458_s24, 32 }
  0x67   : > { %p12944_p4 = scmp.ne.s32.totalorder %s13458_s24, %s12943_s23  ;;  %p12951_p9 = scmp.lt.s32.totalorder %s13458_s24, %s13458_s24 }
  0x68   : > { %p12952_p10 = scmp.lt.s32.totalorder %s12950_s2, %s12943_s23 }
  0x69   : > { %p12946_p6 = pnand %p12944_p4, %p13470_p7 }
  0x6a   : > { %p12953_p11 = por %p12952_p10, %p12951_p9 }
  0x6b   : > { %p12947_p8 = pneg %p12946_p6 }
  0x6d   : > { %p12954_p12 = pnand %p12953_p11, %p12947_p8 }
  0x6f   : > { %12957 = shalt.err (!%p12954_p12)
}
  0x70   : > { %12762 = dma.hbm_to_vmem [thread:$0]  (!%p13454_p5), %s18778_s10, 16, %s13458_s24, [#allocation13]  }
  0x71   : > { %s18779_s12 = sld [smem:[#allocation244_spill]] }
  0x77   : > { %s12958_s6 = scalar_lea.hbm %s18779_s12, 16 }
  0x78   : > { %p12959_p13 = scmp.ne.s32.totalorder %s18779_s12, %s12958_s6  ;;  %p12965_p4 = scmp.lt.u32.totalorder %s12958_s6, %s18779_s12 }
  0x7a   : > { %p12961_p0 = pnand %p12959_p13, %p13470_p7 }
  0x7c   : > { %p12962_p1 = pneg %p12961_p0 }
  0x7e   : > { %p12967_p6 = pnand %p12965_p4, %p12962_p1 }
  0x80   : > { %12970 = shalt.err (!%p12967_p6)
}
  0x81   : > { %s12971_s2 = scalar_lea.vmem %s669_s25, 16  ;;  %s12978_s24 = scalar_lea.vmem %s669_s25, 32 }
  0x82   : > { %p12972_p8 = scmp.ne.s32.totalorder %s669_s25, %s12971_s2  ;;  %p12979_p11 = scmp.lt.s32.totalorder %s669_s25, %s669_s25 }
  0x83   : > { %p12980_p12 = scmp.lt.s32.totalorder %s12978_s24, %s12971_s2 }
  0x84   : > { %p12974_p9 = pnand %p12972_p8, %p13470_p7 }
  0x85   : > { %p12981_p2 = por %p12980_p12, %p12979_p11 }
  0x86   : > { %p12975_p10 = pneg %p12974_p9 }
  0x88   : > { %p12982_p3 = pnand %p12981_p2, %p12975_p10 }
  0x8a   : > { %12985 = shalt.err (!%p12982_p3)
}
  0x8b   : > { %12768 = dma.hbm_to_vmem [thread:$0]  (!%p13454_p5), %s18779_s12, 16, %s669_s25, [#allocation16]  }
  0x8c   : > { %s13299_s0 = smov [#allocation18]   ;;  %s13300_s6 = smov [#allocation21]  }
  0x8d   : > { %s692_s5 = sshll.u32 %s13299_s0, 4  ;;  %s716_s3 = sshll.u32 %s13300_s6, 4  ;;  %s693_s5 = int_to_ptr.vmem [resolvable:$true] %s692_s5  ;;  %s717_s3 = int_to_ptr.vmem [resolvable:$true] %s716_s3 }
  0x8e   : > { %s18780_s14 = sld [smem:[#allocation245_spill]] }
  0x94   : > { %s12986_s23 = scalar_lea.hbm %s18780_s14, 16 }
  0x95   : > { %p12987_p2 = scmp.ne.s32.totalorder %s18780_s14, %s12986_s23  ;;  %p12993_p0 = scmp.lt.u32.totalorder %s12986_s23, %s18780_s14 }
  0x97   : > { %p12989_p3 = pnand %p12987_p2, %p13470_p7 }
  0x99   : > { %p12990_p13 = pneg %p12989_p3 }
  0x9b   : > { %p12995_p1 = pnand %p12993_p0, %p12990_p13 }
  0x9d   : > { %12998 = shalt.err (!%p12995_p1)
}
  0x9e   : > { %s12999_s25 = scalar_lea.vmem %s693_s5, 16  ;;  %s13006_s28 = scalar_lea.vmem %s693_s5, 32 }
  0x9f   : > { %p13000_p4 = scmp.ne.s32.totalorder %s693_s5, %s12999_s25  ;;  %p13007_p9 = scmp.lt.s32.totalorder %s693_s5, %s693_s5 }
  0xa0   : > { %p13008_p10 = scmp.lt.s32.totalorder %s13006_s28, %s12999_s25 }
  0xa1   : > { %p13002_p6 = pnand %p13000_p4, %p13470_p7 }
  0xa2   : > { %p13009_p11 = por %p13008_p10, %p13007_p9 }
  0xa3   : > { %p13003_p8 = pneg %p13002_p6 }
  0xa5   : > { %p13010_p12 = pnand %p13009_p11, %p13003_p8 }
  0xa7   : > { %13013 = shalt.err (!%p13010_p12)
}
  0xa8   : > { %12774 = dma.hbm_to_vmem [thread:$0]  (!%p13454_p5), %s18780_s14, 16, %s693_s5, [#allocation19]  }
  0xa9   : > { %s18781_s29 = sld [smem:[#allocation235_spill]]  ;;  %s13014_s27 = scalar_lea.hbm %s18571_s16, 16 }
  0xaa   : > { %p13015_p2 = scmp.ne.s32.totalorder %s18571_s16, %s13014_s27  ;;  %p13021_p0 = scmp.lt.u32.totalorder %s13014_s27, %s18571_s16 }
  0xac   : > { %p13017_p3 = pnand %p13015_p2, %p13470_p7 }
  0xae   : > { %p13018_p13 = pneg %p13017_p3 }
  0xaf   : > { %s562_s23 = sshll.u32 %s18781_s29, 4  ;;  %s563_s23 = int_to_ptr.vmem [resolvable:$true] %s562_s23 }
  0xb0   : > { %p13023_p1 = pnand %p13021_p0, %p13018_p13 }
  0xb2   : > { %13026 = shalt.err (!%p13023_p1)
}
  0xb3   : > { %s13027_s5 = scalar_lea.vmem %s717_s3, 16  ;;  %s13034_s6 = scalar_lea.vmem %s717_s3, 32 }
  0xb4   : > { %p13028_p4 = scmp.ne.s32.totalorder %s717_s3, %s13027_s5  ;;  %p13035_p9 = scmp.lt.s32.totalorder %s717_s3, %s717_s3 }
  0xb5   : > { %p13036_p10 = scmp.lt.s32.totalorder %s13034_s6, %s13027_s5 }
  0xb6   : > { %p13030_p6 = pnand %p13028_p4, %p13470_p7 }
  0xb7   : > { %p13037_p11 = por %p13036_p10, %p13035_p9 }
  0xb8   : > { %p13031_p8 = pneg %p13030_p6 }
  0xba   : > { %p13038_p12 = pnand %p13037_p11, %p13031_p8 }
  0xbc   : > { %13041 = shalt.err (!%p13038_p12)
}
  0xbd   : > { %12780 = dma.hbm_to_vmem [thread:$0]  (!%p13454_p5), %s18571_s16, 16, %s717_s3, [#allocation22]  }
  0xbe   : > { %s13042_s20 = scalar_lea.vmem %s563_s23, 32  ;;  %p13050_p0 = scmp.lt.s32.totalorder %s563_s23, %s563_s23 }
  0xbf   : > { %p13043_p2 = scmp.ne.s32.totalorder %s563_s23, %s13042_s20  ;;  %p13051_p1 = scmp.lt.s32.totalorder %s13042_s20, %s13042_s20 }
  0xc1   : > { %p13045_p3 = pnand %p13043_p2, %p13470_p7  ;;  %p13052_p4 = por %p13051_p1, %p13050_p0 }
  0xc3   : > { %p13046_p13 = pneg %p13045_p3 }
  0xc5   : > { %p13053_p6 = pnand %p13052_p4, %p13046_p13 }
  0xc7   : > { %13056 = shalt.err (!%p13053_p6)
}
  0xc8   : > { %s13301_s29 = smov [#allocation2]   ;;  %s13302_s2 = smov [#allocation5]  }
  0xc9   : > { %12744 = dma.vmem_to_smem (!%p13454_p5), %s563_s23, 32, %s13301_s29, [#allocation4]  }
  0xca   : > { %s578_s24 = sshll.u32 %s13302_s2, 4  ;;  %s18782_s25 = sld [smem:[#allocation238_spill]]  ;;  %s579_s24 = int_to_ptr.vmem [resolvable:$true] %s578_s24 }
  0xd0   : > { %s13057_s28 = scalar_lea.hbm %s18782_s25, 128 }
  0xd1   : > { %p13058_p8 = scmp.ne.s32.totalorder %s18782_s25, %s13057_s28  ;;  %p13064_p11 = scmp.lt.u32.totalorder %s13057_s28, %s18782_s25 }
  0xd3   : > { %p13060_p9 = pnand %p13058_p8, %p13470_p7 }
  0xd5   : > { %p13061_p10 = pneg %p13060_p9 }
  0xd7   : > { %p13066_p12 = pnand %p13064_p11, %p13061_p10 }
  0xd9   : > { %13069 = shalt.err (!%p13066_p12)
}
  0xda   : > { %s13070_s23 = scalar_lea.vmem %s579_s24, 128  ;;  %p13078_p0 = scmp.lt.s32.totalorder %s579_s24, %s579_s24 }
  0xdb   : > { %p13071_p2 = scmp.ne.s32.totalorder %s579_s24, %s13070_s23  ;;  %p13079_p1 = scmp.lt.s32.totalorder %s13070_s23, %s13070_s23 }
  0xdd   : > { %p13073_p3 = pnand %p13071_p2, %p13470_p7  ;;  %p13080_p4 = por %p13079_p1, %p13078_p0 }
  0xdf   : > { %p13074_p13 = pneg %p13073_p3 }
  0xe1   : > { %p13081_p6 = pnand %p13080_p4, %p13074_p13 }
  0xe3   : > { %13084 = shalt.err (!%p13081_p6)
}
  0xe4   : > { %s13303_s26 = smov 32   ;;  %s13304_s20 = smov 2  }
  0xe5   : > { %12747 = dma.hbm_to_vmem [thread:$0]  (!%p13454_p5), %s18782_s25, 128, %s579_s24, [#allocation3], %s13303_s26, %s13303_s26, %s13304_s20  }
  0xe6   : > { %s13305_s3 = smov [#allocation8]   ;;  %s13306_s28 = smov [#allocation11]  }
  0xe7   : > { %s606_s27 = sshll.u32 %s13305_s3, 4  ;;  %s630_s0 = sshll.u32 %s13306_s28, 4  ;;  %s607_s27 = int_to_ptr.vmem [resolvable:$true] %s606_s27  ;;  %s631_s0 = int_to_ptr.vmem [resolvable:$true] %s630_s0 }
  0xe8   : > { %s18783_s19 = sld [smem:[#allocation241_spill]] }
  0xee   : > { %s13085_s23 = scalar_lea.hbm %s18783_s19, 16 }
  0xef   : > { %p13086_p8 = scmp.ne.s32.totalorder %s18783_s19, %s13085_s23  ;;  %p13092_p11 = scmp.lt.u32.totalorder %s13085_s23, %s18783_s19 }
  0xf1   : > { %p13088_p9 = pnand %p13086_p8, %p13470_p7 }
  0xf3   : > { %p13089_p10 = pneg %p13088_p9 }
  0xf5   : > { %p13094_p12 = pnand %p13092_p11, %p13089_p10 }
  0xf7   : > { %13097 = shalt.err (!%p13094_p12)
}
  0xf8   : > { %s13098_s24 = scalar_lea.vmem %s607_s27, 16  ;;  %s13105_s26 = scalar_lea.vmem %s607_s27, 32 }
  0xf9   : > { %p13099_p2 = scmp.ne.s32.totalorder %s607_s27, %s13098_s24  ;;  %p13106_p0 = scmp.lt.s32.totalorder %s607_s27, %s607_s27 }
  0xfa   : > { %p13107_p1 = scmp.lt.s32.totalorder %s13105_s26, %s13098_s24 }
  0xfb   : > { %p13101_p3 = pnand %p13099_p2, %p13470_p7 }
  0xfc   : > { %p13108_p4 = por %p13107_p1, %p13106_p0 }
  0xfd   : > { %p13102_p13 = pneg %p13101_p3 }
  0xff   : > { %p13109_p6 = pnand %p13108_p4, %p13102_p13 }
 0x101   : > { %13112 = shalt.err (!%p13109_p6)
}
 0x102   : > { %12753 = dma.hbm_to_vmem [thread:$0]  (!%p13454_p5), %s18783_s19, 16, %s607_s27, [#allocation7]  }
 0x103   : > { %s13113_s20 = scalar_lea.hbm %s18563_s8, 16 }
 0x104   : > { %p13114_p8 = scmp.ne.s32.totalorder %s18563_s8, %s13113_s20  ;;  %p13120_p11 = scmp.lt.u32.totalorder %s13113_s20, %s18563_s8 }
 0x106   : > { %p13116_p9 = pnand %p13114_p8, %p13470_p7 }
 0x108   : > { %p13117_p10 = pneg %p13116_p9 }
 0x10a   : > { %p13122_p12 = pnand %p13120_p11, %p13117_p10 }
 0x10c   : > { %13125 = shalt.err (!%p13122_p12)
}
 0x10d   : > { %s13126_s5 = scalar_lea.vmem %s631_s0, 16  ;;  %s13133_s27 = scalar_lea.vmem %s631_s0, 32 }
 0x10e   : > { %p13127_p2 = scmp.ne.s32.totalorder %s631_s0, %s13126_s5  ;;  %p13134_p0 = scmp.lt.s32.totalorder %s631_s0, %s631_s0 }
 0x10f   : > { %p13135_p1 = scmp.lt.s32.totalorder %s13133_s27, %s13126_s5 }
 0x110   : > { %p13129_p3 = pnand %p13127_p2, %p13470_p7 }
 0x111   : > { %p13136_p4 = por %p13135_p1, %p13134_p0 }
 0x112   : > { %p13130_p13 = pneg %p13129_p3 }
 0x114   : > { %p13137_p6 = pnand %p13136_p4, %p13130_p13 }
 0x116   : > { %13140 = shalt.err (!%p13137_p6)
}
 0x117   : > { %12759 = dma.hbm_to_vmem [thread:$0]  (!%p13454_p5), %s18563_s8, 16, %s631_s0, [#allocation10]  }
 0x118   : > { %s13307_s24 = smov [#allocation14]   ;;  %s13308_s7 = smov [#allocation17]  }
 0x119   : > { %s654_s26 = sshll.u32 %s13307_s24, 4  ;;  %s678_s10 = sshll.u32 %s13308_s7, 4  ;;  %s655_s26 = int_to_ptr.vmem [resolvable:$true] %s654_s26  ;;  %s679_s10 = int_to_ptr.vmem [resolvable:$true] %s678_s10 }
 0x11a   : > { %s13141_s20 = scalar_lea.hbm %s18566_s11, 576 }
 0x11b   : > { %p13142_p8 = scmp.ne.s32.totalorder %s18566_s11, %s13141_s20  ;;  %p13148_p11 = scmp.lt.u32.totalorder %s13141_s20, %s18566_s11 }
 0x11d   : > { %p13144_p9 = pnand %p13142_p8, %p13470_p7 }
 0x11f   : > { %p13145_p10 = pneg %p13144_p9 }
 0x121   : > { %p13150_p12 = pnand %p13148_p11, %p13145_p10 }
 0x123   : > { %13153 = shalt.err (!%p13150_p12)
}
 0x124   : > { %s13154_s0 = scalar_lea.vmem %s655_s26, 576  ;;  %p13162_p0 = scmp.lt.s32.totalorder %s655_s26, %s655_s26 }
 0x125   : > { %p13155_p2 = scmp.ne.s32.totalorder %s655_s26, %s13154_s0  ;;  %p13163_p1 = scmp.lt.s32.totalorder %s13154_s0, %s13154_s0 }
 0x127   : > { %p13157_p3 = pnand %p13155_p2, %p13470_p7  ;;  %p13164_p4 = por %p13163_p1, %p13162_p0 }
 0x129   : > { %p13158_p13 = pneg %p13157_p3 }
 0x12b   : > { %p13165_p6 = pnand %p13164_p4, %p13158_p13 }
 0x12d   : > { %13168 = shalt.err (!%p13165_p6)
}
 0x12e   : > { %s18784_s5 = smov 4   ;;  %s18785_s27 = smov 64  }
 0x12f   : > { %12765 = dma.hbm_to_vmem [thread:$0]  (!%p13454_p5), %s18566_s11, 576, %s655_s26, [#allocation13], %s18785_s27, %s18785_s27, %s18784_s5  }
 0x130   : > { %s13169_s12 = scalar_lea.hbm %s18568_s13, 1152 }
 0x131   : > { %p13170_p8 = scmp.ne.s32.totalorder %s18568_s13, %s13169_s12  ;;  %p13176_p11 = scmp.lt.u32.totalorder %s13169_s12, %s18568_s13 }
 0x133   : > { %p13172_p9 = pnand %p13170_p8, %p13470_p7 }
 0x135   : > { %p13173_p10 = pneg %p13172_p9 }
 0x137   : > { %p13178_p12 = pnand %p13176_p11, %p13173_p10 }
 0x139   : > { %13181 = shalt.err (!%p13178_p12)
}
 0x13a   : > { %s13182_s3 = scalar_lea.vmem %s679_s10, 1152  ;;  %p13190_p0 = scmp.lt.s32.totalorder %s679_s10, %s679_s10 }
 0x13b   : > { %p13183_p2 = scmp.ne.s32.totalorder %s679_s10, %s13182_s3  ;;  %p13191_p1 = scmp.lt.s32.totalorder %s13182_s3, %s13182_s3 }
 0x13d   : > { %p13185_p3 = pnand %p13183_p2, %p13470_p7  ;;  %p13192_p4 = por %p13191_p1, %p13190_p0 }
 0x13f   : > { %p13186_p13 = pneg %p13185_p3 }
 0x141   : > { %p13193_p6 = pnand %p13192_p4, %p13186_p13 }
 0x143   : > { %13196 = shalt.err (!%p13193_p6)
}
 0x144   : > { %12771 = dma.hbm_to_vmem [thread:$0]  (!%p13454_p5), %s18568_s13, 1152, %s679_s10, [#allocation16], %s18785_s27, %s18785_s27, %s18784_s5  }
 0x145   : > { %s13309_s0 = smov [#allocation20]   ;;  %s13310_s23 = smov [#allocation23]  }
 0x146   : > { %s702_s6 = sshll.u32 %s13309_s0, 4  ;;  %s727_s24 = sshll.u32 %s13310_s23, 4  ;;  %s703_s6 = int_to_ptr.vmem [resolvable:$true] %s702_s6  ;;  %s728_s24 = int_to_ptr.vmem [resolvable:$true] %s727_s24 }
 0x147   : > { %s13197_s14 = scalar_lea.hbm %s18570_s15, 1152 }
 0x148   : > { %p13198_p8 = scmp.ne.s32.totalorder %s18570_s15, %s13197_s14  ;;  %p13204_p11 = scmp.lt.u32.totalorder %s13197_s14, %s18570_s15 }
 0x14a   : > { %p13200_p9 = pnand %p13198_p8, %p13470_p7 }
 0x14c   : > { %p13201_p10 = pneg %p13200_p9 }
 0x14e   : > { %p13206_p12 = pnand %p13204_p11, %p13201_p10 }
 0x150   : > { %13209 = shalt.err (!%p13206_p12)
}
 0x151   : > { %s13210_s10 = scalar_lea.vmem %s703_s6, 1152  ;;  %p13218_p0 = scmp.lt.s32.totalorder %s703_s6, %s703_s6 }
 0x152   : > { %p13211_p2 = scmp.ne.s32.totalorder %s703_s6, %s13210_s10  ;;  %p13219_p1 = scmp.lt.s32.totalorder %s13210_s10, %s13210_s10 }
 0x154   : > { %p13213_p3 = pnand %p13211_p2, %p13470_p7  ;;  %p13220_p4 = por %p13219_p1, %p13218_p0 }
 0x156   : > { %p13214_p13 = pneg %p13213_p3 }
 0x158   : > { %p13221_p6 = pnand %p13220_p4, %p13214_p13 }
 0x15a   : > { %13224 = shalt.err (!%p13221_p6)
}
 0x15b   : > { %12777 = dma.hbm_to_vmem [thread:$0]  (!%p13454_p5), %s18570_s15, 1152, %s703_s6, [#allocation19], %s18785_s27, %s18785_s27, %s18784_s5  }
 0x15c   : > { %s13225_s7 = scalar_lea.hbm %s18572_s17, 16 }
 0x15d   : > { %p13226_p8 = scmp.ne.s32.totalorder %s18572_s17, %s13225_s7  ;;  %p13232_p11 = scmp.lt.u32.totalorder %s13225_s7, %s18572_s17 }
 0x15f   : > { %p13228_p9 = pnand %p13226_p8, %p13470_p7 }
 0x161   : > { %p13229_p10 = pneg %p13228_p9 }
 0x163   : > { %p13234_p12 = pnand %p13232_p11, %p13229_p10 }
 0x165   : > { %13237 = shalt.err (!%p13234_p12)
}
 0x166   : > { %s13238_s2 = scalar_lea.vmem %s728_s24, 16  ;;  %s13245_s5 = scalar_lea.vmem %s728_s24, 32 }
 0x167   : > { %p13239_p2 = scmp.ne.s32.totalorder %s728_s24, %s13238_s2  ;;  %p13246_p0 = scmp.lt.s32.totalorder %s728_s24, %s728_s24 }
 0x168   : > { %p13247_p1 = scmp.lt.s32.totalorder %s13245_s5, %s13238_s2 }
 0x169   : > { %p13241_p3 = pnand %p13239_p2, %p13470_p7 }
 0x16a   : > { %p13248_p4 = por %p13247_p1, %p13246_p0 }
 0x16b   : > { %p13242_p13 = pneg %p13241_p3 }
 0x16d   : > { %p13249_p6 = pnand %p13248_p4, %p13242_p13 }
 0x16f   : > { %13252 = shalt.err (!%p13249_p6)
}
 0x170   : > { %12783 = dma.hbm_to_vmem [thread:$0]  (!%p13454_p5), %s18572_s17, 16, %s728_s24, [#allocation22]  }
 0x171   : > { %p18786_p8 = scmp.ne.s32.totalorder %s18773_s4, 0 }
 0x173   : > { %743 = sbr.rel (%p18786_p8) target bundleno = 3346 (0xd12), region = 96 }
 0x17a   : > { %p18787_p9 = scmp.eq.s32.totalorder %s13437_s30, 0 }
 0x17c   : > { %13258 = dma.done.wait (%p18787_p9), [#allocation4], 32   ;;  %p18788_p7 = pmov %p18787_p9 }
 0x17e   : > { %13260 = vsyncadd (%p18788_p7), [#allocation4], 4294967264  ;;  %p18789_p10 = pmov %p18788_p7 }
 0x17f   : > { %p18790_p11 = pmov %p18788_p7 }
 0x180   : > { %13262 = dma.done.wait (%p18789_p10), [#allocation3], 128  }
 0x181   : > { %13264 = vsyncadd (%p18790_p11), [#allocation3], 4294967168  ;;  %p18791_p12 = pmov %p18788_p7 }
 0x182   : > { %p18792_p5 = pmov %p18788_p7 }
 0x183   : > { %13266 = dma.done.wait (%p18791_p12), [#allocation7], 32  }
 0x184   : > { %13268 = vsyncadd (%p18792_p5), [#allocation7], 4294967264  ;;  %p18793_p2 = pmov %p18792_p5 }
 0x186   : > { %13270 = dma.done.wait (%p18793_p2), [#allocation10], 528   ;;  %p18794_p3 = pmov %p18793_p2 }
 0x187   : > { %p18795_p13 = pmov %p18793_p2 }
 0x188   : > { %13272 = vsyncadd (%p18794_p3), [#allocation10], 4294966768 }
 0x189   : > { %13274 = dma.done.wait (%p18795_p13), [#allocation13], 592   ;;  %p18796_p0 = pmov %p18793_p2 }
 0x18b   : > { %13276 = vsyncadd (%p18796_p0), [#allocation13], 4294966704  ;;  %p18797_p1 = pmov %p18796_p0 }
 0x18c   : > { %p18798_p4 = pmov %p18796_p0 }
 0x18d   : > { %13278 = dma.done.wait (%p18797_p1), [#allocation16], 1168  }
 0x18e   : > { %13280 = vsyncadd (%p18798_p4), [#allocation16], 4294966128  ;;  %p18799_p6 = pmov %p18796_p0 }
 0x18f   : > { %p18800_p8 = pmov %p18796_p0 }
 0x190   : > { %13282 = dma.done.wait (%p18799_p6), [#allocation19], 1168  }
 0x191   : > { %13284 = vsyncadd (%p18800_p8), [#allocation19], 4294966128  ;;  %p18801_p9 = pmov %p18796_p0 }
 0x192   : > { %p18802_p7 = pmov %p18796_p0 }
 0x193   : > { %13286 = dma.done.wait (%p18801_p9), [#allocation22], 32  }
 0x194   : > { %13288 = vsyncadd (%p18802_p7), [#allocation22], 4294967264 }
 0x195   : > { %801 = sfence }
 0x196   : > { %v902_v0 = vld [vmem:[#allocation5] sm:$0x3]  ;;  %vm907_vm0 = vcmask 1041408   ;;  %v952_v1 = vld [vmem:[#allocation5 + $0x2] sm:$0x3]  ;;  %v18591_v2 = vmov 0.0   ;;  %v1090_v25 = vlaneseq }
 0x197   : > { %12181 = vmatprep.subr.bf16.mxu0 %v18591_v2  ;;  %12187 = vmatprep.subr.bf16.mxu1 %v18591_v2  ;;  %v909_v3 = vsel %vm907_vm0, %v902_v0, 0  ;;  %v954_v4 = vsel %vm907_vm0, %v952_v1, 0  ;;  %s11856_s22 = sshll.u32 %s13437_s30, 7  ;;  %vm13312_vm1 = vmmov 0   ;;  %v997_v5 = vld [vmem:[#allocation5 + $0x4] sm:$0x3] }
 0x198   : > { %12182 = vmatpush3.bf16.msra.mxu0 %v909_v3  ;;  %12188 = vmatpush3.bf16.msra.mxu1 %v954_v4  ;;  %s889_s4 = sld [smem:[#allocation2 + %s11856_s22]]  ;;  %s894_s1 = sadd.s32 1, %s11856_s22  ;;  %v1042_v6 = vld [vmem:[#allocation5 + $0x6] sm:$0x3]  ;;  %v999_v8 = vsel %vm907_vm0, %v997_v5, 0  ;;  %vm903_vm2 = vcmask 31744  }
 0x199   : > { %12183 = vmatprep.mubr.msk.bf16.mxu0 %vm13312_vm1, %v18591_v2  ;;  %12189 = vmatprep.mubr.msk.bf16.mxu1 %vm13312_vm1, %v18591_v2  ;;  %s895_s24 = sld [smem:[#allocation2 + %s894_s1]]  ;;  %v1044_v9 = vsel %vm907_vm0, %v1042_v6, 0  ;;  %v1291_v19 = vld [vmem:[%s18564_s9] sm:$0xf]  ;;  %vm1363_vm3 = vcmask 1043456   ;;  %v1091_v27 = vshrl.u32 %v1090_v25, 7 }
 0x19a   : > { %s18803_s26 = sld [smem:[#allocation236_spill]]  ;;  %12193 = vmatprep.subr.bf16.mxu0 %v18591_v2  ;;  %12199 = vmatprep.subr.bf16.mxu1 %v18591_v2  ;;  %s18804_s12 = sld [smem:[#allocation237_spill]]  ;;  %v11863_v20 = vld [vmem:[%s18564_s9 + $0x4] sm:$0xf]  ;;  %v1434_v21 = vsel %vm1363_vm3, %v1291_v19, 0  ;;  %v13314_v30 = vmov 0.0|0.0  }
 0x19b   : > { %v1365_v22 = vsel %vm1363_vm3, %v11863_v20, 0  ;;  %v13313_v23 = vmov 1966171168   ;;  %v11862_v29 = vld [vmem:[#allocation6] ss:$0 sm:$0xff]  ;;  %v13821_v31 = vunpack.c.l.b16 %v13314_v30  ;;  %vm1324_vm4 = vcmask 1041409  }
 0x19c   : > { %v1088_v24 = vunpack.c.l.s4 %v13313_v23  ;;  %v1208_v32 = vcombine.high %v11862_v29, %v11862_v29  ;;  %vm1327_vm5 = vcmask 1042434   ;;  %vm1330_vm6 = vcmask 1043459   ;;  %v11868_v51 = vld [vmem:[%s18564_s9 + $0xc] sm:$0xf]  ;;  %v11866_v58 = vld [vmem:[%s18564_s9 + $0x8] sm:$0xf] }
 0x19d   : > { %18806 = vst [vmem:[#allocation34_spill] sm:$0xff] %v13821_v31  ;;  %v1323_v34 = vrot.slane %v13821_v31, 7  ;;  %v1326_v36 = vrot.slane %v13821_v31, 6  ;;  %v13830_v40 = vrot.slane %v13821_v31, 5  ;;  %v13842_v46 = vrot.slane %v13821_v31, 4  ;;  %s18823_s29 = sld [smem:[#allocation240_spill]] }
 0x19e   : > { %v891_v12 = vstv %s889_s4  ;;  %v1089_v26 = vunpack.c.0.s8 %v1088_v24  ;;  %vm1333_vm7 = vcmask 1044484   ;;  %v11872_v59 = vld [vmem:[%s18564_s9 + $0x14] sm:$0xf]  ;;  %v13873_v0 = vrot.slane %v13821_v31, 1  ;;  %p867_p10 = scmp.lt.s32.totalorder %s13437_s30, 1  ;;  %s19513_s14 = sld [smem:[#allocation247_spill]] }
 0x19f   : > { %v898_v14 = vstv %s895_s24  ;;  %v1325_v37 = vsel %vm1324_vm4, %v1323_v34, %v13821_v31  ;;  %v13876_v1 = vrot.slane %v13821_v31, 3  ;;  %vm1336_vm8 = vcmask 1045509   ;;  %s19514_s6 = sld [smem:[#allocation246_spill]] }
 0x1a0   : > { %v890_v7 = vld [vmem:[%s18803_s26] sm:$0xf]  ;;  %v11857_v10 = vld [vmem:[%s18803_s26 + $0x4] sm:$0xf]  ;;  %v13819_v28 = vsub.s32 %v1089_v26, %v1091_v27  ;;  %v1328_v42 = vsel %vm1327_vm5, %v1326_v36, %v1325_v37  ;;  %18807 = vst [vmem:[#allocation35_spill] sm:$0xff] %v13873_v0  ;;  %vm1339_vm9 = vcmask 1046534  }
 0x1a1   : > { %v887_v11 = vld [vmem:[%s18804_s12] sm:$0xf]  ;;  %v892_v13 = vmul.f32 %v891_v12, %v890_v7  ;;  %v899_v15 = vmul.f32 %v11857_v10, %v898_v14  ;;  %v13846_v47 = vsel %vm1330_vm6, %v13830_v40, %v1328_v42  ;;  %v11876_v10 = vld [vmem:[%s18564_s9 + $0x1c] sm:$0xf]  ;;  %v13890_v12 = vsel %vm1363_vm3, %v11868_v51, 0  ;;  %s19518_s30 = smov (!%p867_p10, %s13437_s30), 1 }
 0x1a2   : > { %18805 = vst [vmem:[#allocation33_spill] sm:$0xff] %v13819_v28  ;;  %v1215_v33 = vrot.slane %v11862_v29, %v13819_v28  ;;  %v1222_v35 = vrot.slane %v1208_v32, %v13819_v28  ;;  %v13870_v63 = vsel %vm1333_vm7, %v13842_v46, %v13846_v47  ;;  %v13896_v14 = vsel %vm1363_vm3, %v11872_v59, 0  ;;  %s12017_s3 = sshll.u32 %s19518_s30, 5  ;;  %s12016_s23 = sshll.u32 %s19518_s30, 4 }
 0x1a3   : > { %v893_v16 = vadd.f32 %v892_v13, %v887_v11  ;;  %v13887_v11 = vrot.slane %v13821_v31, 2  ;;  %v13893_v13 = vsel %vm1363_vm3, %v11866_v58, 0  ;;  %vm1342_vm10 = vcmask 1047559   ;;  %s880_s0 = scalar_lea.vmem %s18576_s21, %s12017_s3  ;;  %s11849_s2 = sshll.u32 %s19518_s30, 3 }
 0x1a4   : > { %v1223_v38 = vcombine.high %v1215_v33, %v1215_v33  ;;  %v1224_v39 = vcombine.high %v1222_v35, %v1222_v35  ;;  %v1231_v41 = vrot.slane %v1215_v33, %v13819_v28  ;;  %v13836_v44 = vrot.slane %v1222_v35, %v13819_v28  ;;  %s875_s20 = scalar_lea.vmem %s19513_s14, %s12016_s23  ;;  %s12018_s4 = sshll.u32 %s19518_s30, 2 }
 0x1a5   : > { %v900_v17 = vadd.f32 %v899_v15, %v893_v16  ;;  %vm1359_vm11 = vcmask 64512   ;;  %vm2892_vm12 = vcmask 130048   ;;  %vm7061_vm13 = vcmask 523264   ;;  %s870_s22 = scalar_lea.vmem %s19514_s6, %s11849_s2  ;;  %s19515_s3 = sld [smem:[#allocation248_spill]] }
 0x1a6   : > { %v1245_v43 = vrot.slane %v1223_v38, %v13819_v28  ;;  %v13839_v45 = vrot.slane %v1224_v39, %v13819_v28  ;;  %v1253_v49 = vcombine.high %v1231_v41, %v1231_v41  ;;  %v13855_v57 = vcombine.high %v13836_v44, %v13836_v44 }
 0x1a7   : > { %v901_v18 = vpack.c.bf16 %v900_v17, %v900_v17 }
 0x1a8   : > { %v1255_v54 = vcombine.high %v1245_v43, %v1245_v43  ;;  %v13865_v62 = vcombine.high %v13839_v45, %v13839_v45 }
 0x1a9   : > { %12184 = vmatmul.mubr.msk.bf16.vlgmr.msra.gmra.mrb[0].mxu0 %vm903_vm2, %v901_v18  ;;  %12190 = vmatmul.mubr.msk.bf16.vlgmr.msra.gmra.mrb[0].mxu1 %vm903_vm2, %v901_v18 }
 0x1aa   : > { %12194 = vmatpush3.bf16.msra.mxu0 %v999_v8  ;;  %12200 = vmatpush3.bf16.msra.mxu1 %v1044_v9  ;;  %v11870_v9 = vld [vmem:[%s18564_s9 + $0x10] sm:$0xf] }
 0x1ab   : > { %12195 = vmatprep.mubr.msk.bf16.mxu0 %vm13312_vm1, %v18591_v2  ;;  %12201 = vmatprep.mubr.msk.bf16.mxu1 %vm13312_vm1, %v18591_v2  ;;  %s885_s10 = scalar_lea.vmem %s19515_s3, %s12018_s4 }
 0x1ac   : > { %12211 = vmatprep.subr.bf16.mxu1 %v18591_v2  ;;  %12205 = vmatprep.subr.bf16.mxu0 %v18591_v2 }
 0x1b1   : > { %12196 = vmatmul.mubr.msk.bf16.vlgmr.msra.gmra.mrb[4].mxu0 %vm903_vm2, %v901_v18  ;;  %12202 = vmatmul.mubr.msk.bf16.vlgmr.msra.gmra.mrb[4].mxu1 %vm903_vm2, %v901_v18 }
 0x1b2   : > { %12213 = vmatprep.mubr.msk.bf16.mxu1 %vm13312_vm1, %v18591_v2  ;;  %12207 = vmatprep.mubr.msk.bf16.mxu0 %vm13312_vm1, %v18591_v2 }
 0x1b3   : > { %12212 = vmatpush3.bf16.msra.mxu1 %v1434_v21  ;;  %12206 = vmatpush3.bf16.msra.mxu0 %v1365_v22  ;;  %v13901_v21 = vsel %vm1363_vm3, %v11870_v9, 0  ;;  %v13904_v22 = vsel %vm1363_vm3, %v11876_v10, 0 }
 0x1b4   : > { %12223 = vmatprep.subr.bf16.mxu1 %v18591_v2  ;;  %12217 = vmatprep.subr.bf16.mxu0 %v18591_v2 }
 0x27c   : > { %v945_v48 = vpop.f32.mrb[0].mxu0  ;;  %v990_v50 = vpop.f32.mrb[0].mxu1 }
 0x27d   : > { %v1093_v52 = vrot.slane %v945_v48, %v13819_v28  ;;  %v1122_v53 = vrot.slane %v990_v50, %v13819_v28  ;;  %v12185_v55 = vpop.f32.mrb[1].mxu0  ;;  %v12191_v56 = vpop.f32.mrb[1].mxu1 }
 0x27e   : > { %v948_v60 = vpop.f32.mrb[2].mxu0  ;;  %v993_v61 = vpop.f32.mrb[2].mxu1 }
 0x27f   : > { %v1094_v3 = vcombine.high %v1093_v52, %v1093_v52  ;;  %v1101_v4 = vrot.slane %v1093_v52, %v13819_v28  ;;  %v1123_v5 = vcombine.high %v1122_v53, %v1122_v53  ;;  %v1130_v6 = vrot.slane %v1122_v53, %v13819_v28  ;;  %v12186_v7 = vpop.f32.mrb[3].mxu0  ;;  %v12192_v8 = vpop.f32.mrb[3].mxu1 }
 0x281   : > { %v1108_v15 = vrot.slane %v1094_v3, %v13819_v28  ;;  %v1109_v16 = vcombine.high %v1101_v4, %v1101_v4  ;;  %v1265_v17 = vadd.f32 %v1231_v41, %v1101_v4  ;;  %v1137_v18 = vrot.slane %v1123_v5, %v13819_v28 }
 0x282   : > { %v1138_v19 = vcombine.high %v1130_v6, %v1130_v6  ;;  %v1266_v20 = vadd.f32 %v1245_v43, %v1130_v6 }
 0x283   : > { %v1110_v23 = vcombine.high %v1108_v15, %v1108_v15  ;;  %v1267_v24 = vadd.f32 %v1253_v49, %v1108_v15  ;;  %v1273_v25 = vadd.f32 %v1231_v41, %v1109_v16  ;;  %v1282_v26 = vpack.c.bf16 %v1265_v17, %v1265_v17 }
 0x284   : > { %v1139_v27 = vcombine.high %v1137_v18, %v1137_v18  ;;  %v1268_v29 = vadd.f32 %v1255_v54, %v1137_v18  ;;  %v1274_v30 = vadd.f32 %v1245_v43, %v1138_v19  ;;  %v1283_v32 = vpack.c.bf16 %v1266_v20, %v1266_v20  ;;  %v1035_v33 = vpop.f32.mrb[4].mxu0  ;;  %v1080_v34 = vpop.f32.mrb[4].mxu1 }
 0x285   : > { %v1275_v35 = vadd.f32 %v1253_v49, %v1110_v23  ;;  %v1284_v36 = vpack.c.bf16 %v1267_v24, %v1267_v24  ;;  %v1288_v37 = vpack.c.bf16 %v1273_v25, %v1273_v25  ;;  %v1311_v38 = vunpack.c.l.b16 %v1282_v26  ;;  %v12197_v39 = vpop.f32.mrb[5].mxu0  ;;  %v12203_v42 = vpop.f32.mrb[5].mxu1 }
 0x286   : > { %v1276_v48 = vadd.f32 %v1255_v54, %v1139_v27  ;;  %v1289_v50 = vpack.c.bf16 %v1274_v30, %v1274_v30  ;;  %v1292_v51 = vpack.c.bf16 %v1268_v29, %v1268_v29  ;;  %v13906_v52 = vunpack.c.l.b16 %v1283_v32  ;;  %v1038_v53 = vpop.f32.mrb[6].mxu0  ;;  %v1083_v41 = vpop.f32.mrb[6].mxu1 }
 0x287   : > { %v1290_v55 = vpack.c.bf16 %v1275_v35, %v1275_v35  ;;  %v13908_v56 = vunpack.c.l.b16 %v1284_v36  ;;  %v13910_v43 = vunpack.c.l.b16 %v1288_v37  ;;  %v1332_v58 = vrot.slane %v1311_v38, 4  ;;  %v12198_v49 = vpop.f32.mrb[7].mxu0  ;;  %v12204_v59 = vpop.f32.mrb[7].mxu1 }
 0x288   : > { %v1410_v60 = vrot.slane %v1311_v38, 3  ;;  %v1560_v61 = vrot.slane %v1311_v38, 7  ;;  %v1294_v3 = vpack.c.bf16 %v1276_v48, %v1276_v48  ;;  %v13912_v4 = vunpack.c.l.b16 %v1292_v51 }
 0x289   : > { %v13914_v54 = vunpack.c.l.b16 %v1290_v55  ;;  %v13918_v5 = vsel %vm1333_vm7, %v1332_v58, %v13846_v47  ;;  %v1350_v6 = vrot.slane %v13910_v43, 4  ;;  %v1423_v7 = vrot.slane %v13910_v43, 3 }
 0x28a   : > { %v13924_v8 = vsel %vm1324_vm4, %v1560_v61, %v13821_v31  ;;  %v1564_v9 = vrot.slane %v13908_v56, 5  ;;  %v1573_v10 = vrot.slane %v13910_v43, 7  ;;  %v1643_v15 = vrot.slane %v13908_v56, 6 }
 0x28b   : > { %v1721_v17 = vrot.slane %v13908_v56, 7  ;;  %v1733_v18 = vrot.slane %v13914_v54, 7  ;;  %v13932_v19 = vunpack.c.l.b16 %v1289_v50  ;;  %v13938_v23 = vunpack.c.l.b16 %v1294_v3 }
 0x28c   : > { %v13936_v20 = vsel %vm1324_vm4, %v1573_v10, %v13821_v31  ;;  %v1341_v24 = vrot.slane %v13912_v4, 1  ;;  %v1479_v25 = vrot.slane %v13906_v52, 4  ;;  %v1562_v27 = vrot.slane %v13906_v52, 6 }
 0x28d   : > { %v1575_v29 = vrot.slane %v13932_v19, 6  ;;  %v1641_v30 = vrot.slane %v13906_v52, 7  ;;  %v1645_v35 = vrot.slane %v13912_v4, 5  ;;  %v1722_v42 = vsel %vm1324_vm4, %v1721_v17, %v13906_v52 }
 0x28e   : > { %v1723_v48 = vrot.slane %v13912_v4, 6  ;;  %v1734_v50 = vsel %vm1324_vm4, %v1733_v18, %v13932_v19  ;;  %v1735_v53 = vrot.slane %v13938_v23, 6  ;;  %v1151_v41 = vrot.slane %v1035_v33, %v13819_v28 }
 0x28f   : > { %v1642_v39 = vsel %vm1324_vm4, %v1641_v30, %v1311_v38  ;;  %v1180_v55 = vrot.slane %v1080_v34, %v13819_v28  ;;  %v1411_v49 = vsel %vm1336_vm8, %v1410_v60, %v13870_v63  ;;  %v1412_v59 = vrot.slane %v13906_v52, 2 }
 0x290   : > { %v1644_v51 = vsel %vm1327_vm5, %v1643_v15, %v1642_v39  ;;  %v13962_v38 = vsel %vm1327_vm5, %v1723_v48, %v1722_v42  ;;  %v13968_v61 = vsel %vm1327_vm5, %v1735_v53, %v1734_v50  ;;  %v1152_v3 = vcombine.high %v1151_v41, %v1151_v41 }
 0x291   : > { %v1646_v58 = vsel %vm1330_vm6, %v1645_v35, %v1644_v51  ;;  %v1159_v10 = vrot.slane %v1151_v41, %v13819_v28  ;;  %v1181_v15 = vcombine.high %v1180_v55, %v1180_v55  ;;  %v1188_v33 = vrot.slane %v1180_v55, %v13819_v28 }
 0x292   : > { %v1413_v34 = vsel %vm1339_vm9, %v1412_v59, %v1411_v49  ;;  %v1414_v17 = vrot.slane %v13908_v56, 1  ;;  %v1425_v18 = vrot.slane %v13932_v19, 2  ;;  %v1166_v30 = vrot.slane %v1152_v3, %v13819_v28 }
 0x293   : > { %v1167_v60 = vcombine.high %v1159_v10, %v1159_v10  ;;  %v1269_v35 = vadd.f32 %v13836_v44, %v1159_v10  ;;  %v1195_v39 = vrot.slane %v1181_v15, %v13819_v28  ;;  %v1196_v42 = vcombine.high %v1188_v33, %v1188_v33 }
 0x294   : > { %v1270_v48 = vadd.f32 %v13839_v45, %v1188_v33  ;;  %v13980_v50 = vsel %vm1342_vm10, %v1414_v17, %v1413_v34  ;;  %v1427_v51 = vrot.slane %v13914_v54, 1  ;;  %v1168_v53 = vcombine.high %v1166_v30, %v1166_v30 }
 0x295   : > { %v1271_v41 = vadd.f32 %v13855_v57, %v1166_v30  ;;  %v1277_v55 = vadd.f32 %v13836_v44, %v1167_v60  ;;  %v1285_v49 = vpack.c.bf16 %v1269_v35, %v1269_v35  ;;  %v1197_v59 = vcombine.high %v1195_v39, %v1195_v39 }
 0x296   : > { %v1272_v3 = vadd.f32 %v13865_v62, %v1195_v39  ;;  %v1278_v10 = vadd.f32 %v13839_v45, %v1196_v42  ;;  %v1286_v15 = vpack.c.bf16 %v1270_v48, %v1270_v48  ;;  %v1279_v37 = vadd.f32 %v13855_v57, %v1168_v53 }
 0x297   : > { %v1287_v33 = vpack.c.bf16 %v1271_v41, %v1271_v41  ;;  %v13988_v16 = vunpack.c.l.b16 %v1285_v49  ;;  %v1549_v34 = vpack.c.bf16 %v1277_v55, %v1277_v55  ;;  %v1280_v17 = vadd.f32 %v13865_v62, %v1197_v59 }
 0x298   : > { %v1293_v36 = vpack.c.bf16 %v1272_v3, %v1272_v3  ;;  %v13991_v32 = vunpack.c.l.b16 %v1286_v15  ;;  %v1550_v30 = vpack.c.bf16 %v1278_v10, %v1278_v10  ;;  %v1551_v35 = vpack.c.bf16 %v1279_v37, %v1279_v37 }
 0x299   : > { %v13993_v44 = vunpack.c.l.b16 %v1287_v33  ;;  %v1416_v60 = vrot.slane %v13988_v16, 7  ;;  %v13996_v39 = vunpack.c.l.b16 %v1549_v34  ;;  %v1567_v45 = vrot.slane %v13988_v16, 3 }
 0x29a   : > { %v1647_v57 = vrot.slane %v13988_v16, 4  ;;  %v14000_v42 = vunpack.c.l.b16 %v1293_v36  ;;  %v1344_v48 = vrot.slane %v13991_v32, 7  ;;  %v14008_v37 = vunpack.c.l.b16 %v1551_v35 }
 0x29b   : > { %v1346_v62 = vrot.slane %v13993_v44, 6  ;;  %v1417_v53 = vsel %vm1324_vm4, %v1416_v60, %v13821_v31  ;;  %v1420_v41 = vrot.slane %v13993_v44, 5  ;;  %v1487_v55 = vrot.slane %v13993_v44, 7 }
 0x29c   : > { %v14012_v59 = vsel %vm1333_vm7, %v1647_v57, %v1646_v58  ;;  %v1797_v3 = vrot.slane %v13996_v39, 7  ;;  %v1345_v10 = vsel %vm1324_vm4, %v1344_v48, %v13988_v16  ;;  %v1348_v15 = vrot.slane %v14000_v42, 5 }
 0x29d   : > { %v1418_v33 = vrot.slane %v13991_v32, 6  ;;  %v1923_v60 = vrot.slane %v14008_v37, 7  ;;  %v1347_v35 = vsel %vm1327_vm5, %v1346_v62, %v1345_v10  ;;  %v1488_v58 = vsel %vm1324_vm4, %v1487_v55, %v13991_v32 }
 0x29e   : > { %v14027_v57 = vsel %vm1324_vm4, %v1797_v3, %v13821_v31  ;;  %v1349_v36 = vsel %vm1330_vm6, %v1348_v15, %v1347_v35  ;;  %v1489_v48 = vrot.slane %v14000_v42, 6  ;;  %v14031_v26 = vunpack.c.l.b16 %v1550_v30 }
 0x29f   : > { %v1636_v49 = vpack.c.bf16 %v1280_v17, %v1280_v17  ;;  %v1730_v62 = vrot.slane %v14000_v42, 2  ;;  %v1419_v30 = vsel %vm1327_vm5, %v1418_v33, %v1417_v53  ;;  %v1335_v17 = vrot.slane %v13906_v52, 3 }
 0x2a0   : > { %v1490_v55 = vsel %vm1327_vm5, %v1489_v48, %v1488_v58  ;;  %v1924_v15 = vsel %vm1324_vm4, %v1923_v60, %v14031_v26  ;;  %v1338_v34 = vrot.slane %v13908_v56, 2  ;;  %v1421_v2 = vsel %vm1330_vm6, %v1420_v41, %v1419_v30 }
 0x2a1   : > { %v14041_v35 = vunpack.c.l.b16 %v1636_v49  ;;  %v1351_v58 = vsel %vm1333_vm7, %v1350_v6, %v1349_v36  ;;  %v1352_v48 = vrot.slane %v13932_v19, 3  ;;  %v1354_v10 = vrot.slane %v13914_v54, 2 }
 0x2a2   : > { %v1422_v33 = vsel %vm1333_vm7, %v13842_v46, %v1421_v2  ;;  %v1337_v6 = vsel %vm1336_vm8, %v1335_v17, %v13918_v5  ;;  %v1356_v30 = vrot.slane %v13938_v23, 1  ;;  %v1569_v17 = vrot.slane %v13991_v32, 2 }
 0x2a3   : > { %v1925_v53 = vrot.slane %v14041_v35, 6  ;;  %v1424_v41 = vsel %vm1336_vm8, %v1423_v7, %v1422_v33  ;;  %v1353_v36 = vsel %vm1336_vm8, %v1352_v48, %v1351_v58  ;;  %v1340_v2 = vsel %vm1339_vm9, %v1338_v34, %v1337_v6 }
 0x2a4   : > { %v1426_v49 = vsel %vm1339_vm9, %v1425_v18, %v1424_v41  ;;  %v1355_v60 = vsel %vm1339_vm9, %v1354_v10, %v1353_v36  ;;  %v1343_v5 = vsel %vm1342_vm10, %v1341_v24, %v1340_v2  ;;  %v1563_v18 = vsel %vm1327_vm5, %v1562_v27, %v13924_v8 }
 0x2a5   : > { %v14065_v3 = vsel %vm1327_vm5, %v1925_v53, %v1924_v15  ;;  %v14075_v7 = vsel %vm1342_vm10, %v1427_v51, %v1426_v49  ;;  %v14081_v15 = vsel %vm1342_vm10, %v1356_v30, %v1355_v60  ;;  %v1565_v51 = vsel %vm1330_vm6, %v1564_v9, %v1563_v18 }
 0x2a6   : > { %v1429_v34 = vpack.c.b16 %v14075_v7, %v13980_v50  ;;  %v1358_v10 = vpack.c.b16 %v14081_v15, %v1343_v5  ;;  %v1566_v24 = vsel %vm1333_vm7, %v13842_v46, %v1565_v51  ;;  %v1571_v58 = vrot.slane %v13993_v44, 1 }
 0x2a7   : > { %v1576_v8 = vsel %vm1327_vm5, %v1575_v29, %v13936_v20  ;;  %v1577_v27 = vrot.slane %v13914_v54, 5  ;;  %v1568_v9 = vsel %vm1336_vm8, %v1567_v45, %v1566_v24  ;;  %v1582_v50 = vrot.slane %v14031_v26, 2 }
 0x2a8   : > { %12214 = vmatmul.mubr.msk.bf16.vlgmr.msra.gmra.mrb[8].mxu1 %vm1359_vm11, %v1429_v34  ;;  %12208 = vmatmul.mubr.msk.bf16.vlgmr.msra.gmra.mrb[8].mxu0 %vm1359_vm11, %v1358_v10  ;;  %v1584_v48 = vrot.slane %v14008_v37, 1  ;;  %v1480_v60 = vsel %vm1333_vm7, %v1479_v25, %v13846_v47  ;;  %v1570_v20 = vsel %vm1339_vm9, %v1569_v17, %v1568_v9  ;;  %v1481_v16 = vrot.slane %v13908_v56, 3 }
 0x2a9   : > { %12224 = vmatpush3.bf16.msra.mxu1 %v13890_v12  ;;  %12218 = vmatpush3.bf16.msra.mxu0 %v13893_v13  ;;  %v1578_v29 = vsel %vm1330_vm6, %v1577_v27, %v1576_v8  ;;  %v1491_v45 = vsel %vm1330_vm6, %v13830_v40, %v1490_v55  ;;  %v18808_v49 = vmov 0.0   ;;  %v1572_v52 = vsel %vm1342_vm10, %v1571_v58, %v1570_v20 }
 0x2aa   : > { %12225 = vmatprep.mubr.msk.bf16.mxu1 %vm13312_vm1, %v18808_v49  ;;  %12219 = vmatprep.mubr.msk.bf16.mxu0 %vm13312_vm1, %v18808_v49  ;;  %v1579_v12 = vsel %vm1333_vm7, %v13842_v46, %v1578_v29  ;;  %v1492_v13 = vrot.slane %v13932_v19, 4  ;;  %v1494_v25 = vrot.slane %v13914_v54, 3  ;;  %v18809_v56 = vrot.slane %v13996_v39, 3 }
 0x2ab   : > { %v1482_v55 = vsel %vm1336_vm8, %v1481_v16, %v1480_v60  ;;  %12235 = vmatprep.subr.bf16.mxu1 %v18808_v49  ;;  %12229 = vmatprep.subr.bf16.mxu0 %v18808_v49  ;;  %v1725_v33 = vsel %vm1330_vm6, %v13830_v40, %v13962_v38  ;;  %v1728_v41 = vrot.slane %v13993_v44, 3  ;;  %v18810_v36 = vrot.slane %v13912_v4, 2 }
 0x2ac   : > { %v1581_v53 = vsel %vm1336_vm8, %v18809_v56, %v1579_v12  ;;  %v1493_v2 = vsel %vm1333_vm7, %v1492_v13, %v1491_v45  ;;  %v18811_v5 = vrot.slane %v13991_v32, 4  ;;  %v18812_v4 = vrot.slane %v13938_v23, 2 }
 0x2ad   : > { %v1583_v6 = vsel %vm1339_vm9, %v1582_v50, %v1581_v53  ;;  %v1484_v30 = vsel %vm1339_vm9, %v18810_v36, %v1482_v55  ;;  %v1495_v38 = vsel %vm1336_vm8, %v1494_v25, %v1493_v2  ;;  %v1737_v8 = vsel %vm1330_vm6, %v13830_v40, %v13968_v61 }
 0x2ae   : > { %v1727_v18 = vsel %vm1333_vm7, %v18811_v5, %v1725_v33  ;;  %v1585_v34 = vsel %vm1342_vm10, %v1584_v48, %v1583_v6  ;;  %v1486_v10 = vsel %vm1342_vm10, %v13873_v0, %v1484_v30  ;;  %v1497_v24 = vsel %vm1339_vm9, %v18812_v4, %v1495_v38  ;;  %v11874_v5 = vld [vmem:[%s18564_s9 + $0x18] sm:$0xf] }
 0x2af   : > { %v1729_v51 = vsel %vm1336_vm8, %v1728_v41, %v1727_v18  ;;  %v1586_v17 = vpack.c.b16 %v1585_v34, %v1572_v52  ;;  %v14163_v27 = vsel %vm1342_vm10, %v13873_v0, %v1497_v24  ;;  %v1738_v50 = vrot.slane %v14031_v26, 4 }
 0x2b0   : > { %v1731_v58 = vsel %vm1339_vm9, %v1730_v62, %v1729_v51  ;;  %v1740_v48 = vrot.slane %v14008_v37, 3  ;;  %v1499_v60 = vpack.c.b16 %v14163_v27, %v1486_v10  ;;  %v1649_v62 = vrot.slane %v13991_v32, 3 }
 0x2b1   : > { %v1732_v9 = vsel %vm1342_vm10, %v13873_v0, %v1731_v58  ;;  %12226 = vmatmul.mubr.msk.bf16.vlgmr.msra.gmra.mrb[12].mxu1 %vm1359_vm11, %v1586_v17  ;;  %v1651_v20 = vrot.slane %v13993_v44, 2  ;;  %v18813_v61 = vrot.slane %v13932_v19, 7  ;;  %v1739_v16 = vsel %vm1333_vm7, %v1738_v50, %v1737_v8 }
 0x2b2   : > { %12236 = vmatpush3.bf16.msra.mxu1 %v13896_v14  ;;  %12237 = vmatprep.mubr.msk.bf16.mxu1 %vm13312_vm1, %v18808_v49  ;;  %v18814_v45 = vrot.slane %v13914_v54, 6  ;;  %v1663_v32 = vrot.slane %v14031_v26, 3  ;;  %v1665_v44 = vrot.slane %v14008_v37, 2  ;;  %v1741_v19 = vsel %vm1336_vm8, %v1740_v48, %v1739_v16  ;;  %v11878_v16 = vld [vmem:[%s18564_s9 + $0x20] sm:$0xf] }
 0x2b3   : > { %v1656_v29 = vsel %vm1324_vm4, %v18813_v61, %v13910_v43  ;;  %12220 = vmatmul.mubr.msk.bf16.vlgmr.msra.gmra.mrb[12].mxu0 %vm1359_vm11, %v1499_v60  ;;  %v1650_v14 = vsel %vm1336_vm8, %v1649_v62, %v14012_v59  ;;  %v18815_v43 = vrot.slane %v13938_v23, 5  ;;  %v1667_v13 = vrot.slane %v14041_v35, 1  ;;  %12247 = vmatprep.subr.bf16.mxu1 %v18808_v49 }
 0x2b4   : > { %v1658_v52 = vsel %vm1327_vm5, %v18814_v45, %v1656_v29  ;;  %12230 = vmatpush3.bf16.msra.mxu0 %v13901_v21  ;;  %12231 = vmatprep.mubr.msk.bf16.mxu0 %vm13312_vm1, %v18808_v49  ;;  %v18816_v54 = vrot.slane %v14041_v35, 2  ;;  %v1652_v56 = vsel %vm1339_vm9, %v1651_v20, %v1650_v14  ;;  %v18817_v59 = vrot.slane %v13996_v39, 4 }
 0x2b5   : > { %v1660_v12 = vsel %vm1330_vm6, %v18815_v43, %v1658_v52  ;;  %v1801_v53 = vrot.slane %v14008_v37, 5  ;;  %v18818_v21 = vrot.slane %v14000_v42, 1  ;;  %12241 = vmatprep.subr.bf16.mxu0 %v18808_v49  ;;  %v18819_v6 = vrot.slane %v14031_v26, 7 }
 0x2b6   : > { %v1743_v25 = vsel %vm1339_vm9, %v18816_v54, %v1741_v19  ;;  %v1662_v23 = vsel %vm1333_vm7, %v18817_v59, %v1660_v12  ;;  %v18820_v42 = vrot.slane %v14008_v37, 6  ;;  %v18821_v34 = vrot.slane %v14031_v26, 6 }
 0x2b7   : > { %v1744_v55 = vsel %vm1342_vm10, %v13873_v0, %v1743_v25  ;;  %v1654_v33 = vsel %vm1342_vm10, %v18818_v21, %v1652_v56  ;;  %v1664_v41 = vsel %vm1336_vm8, %v1663_v32, %v1662_v23  ;;  %v1862_v36 = vsel %vm1324_vm4, %v18819_v6, %v13996_v39 }
 0x2b8   : > { %v1745_v30 = vpack.c.b16 %v1744_v55, %v1732_v9  ;;  %v1666_v2 = vsel %vm1339_vm9, %v1665_v44, %v1664_v41  ;;  %v1864_v18 = vsel %vm1327_vm5, %v18820_v42, %v1862_v36  ;;  %v1800_v10 = vsel %vm1327_vm5, %v18821_v34, %v14027_v57 }
 0x2b9   : > { %v1668_v38 = vsel %vm1342_vm10, %v1667_v13, %v1666_v2  ;;  %v18822_v39 = vrot.slane %v14041_v35, 5  ;;  %v1802_v17 = vsel %vm1330_vm6, %v1801_v53, %v1800_v10  ;;  %v1927_v4 = vsel %vm1330_vm6, %v13830_v40, %v14065_v3 }
 0x2ba   : > { %v1669_v37 = vpack.c.b16 %v1668_v38, %v1654_v33  ;;  %v1803_v26 = vsel %vm1333_vm7, %v13842_v46, %v1802_v17  ;;  %v1928_v57 = vsel %vm1333_vm7, %v13842_v46, %v1927_v4  ;;  %12238 = vmatmul.mubr.msk.bf16.vlgmr.msra.gmra.mrb[16].mxu1 %vm1359_vm11, %v1745_v30  ;;  %v1814_v35 = vsel %vm1363_vm3, %v11874_v5, 0 }
 0x2bb   : > { %v1866_v51 = vsel %vm1330_vm6, %v18822_v39, %v1864_v18  ;;  %v1805_v3 = vsel %vm1336_vm8, %v13876_v1, %v1803_v26  ;;  %v1929_v8 = vsel %vm1336_vm8, %v13876_v1, %v1928_v57  ;;  %12248 = vmatpush3.bf16.msra.mxu1 %v13904_v22  ;;  %12249 = vmatprep.mubr.msk.bf16.mxu1 %vm13312_vm1, %v18808_v49  ;;  %v1937_v45 = vsel %vm1363_vm3, %v11878_v16, 0 }
 0x2bc   : > { %v1867_v24 = vsel %vm1333_vm7, %v13842_v46, %v1866_v51  ;;  %v1807_v50 = vsel %vm1339_vm9, %v13887_v11, %v1805_v3  ;;  %v1930_v48 = vsel %vm1339_vm9, %v13887_v11, %v1929_v8  ;;  %12232 = vmatmul.mubr.msk.bf16.vlgmr.msra.gmra.mrb[16].mxu0 %vm1359_vm11, %v1669_v37  ;;  %12259 = vmatprep.subr.bf16.mxu1 %v18808_v49 }
 0x2bd   : > { %v1868_v58 = vsel %vm1336_vm8, %v13876_v1, %v1867_v24  ;;  %v1808_v22 = vsel %vm1342_vm10, %v13873_v0, %v1807_v50  ;;  %v1931_v62 = vsel %vm1342_vm10, %v13873_v0, %v1930_v48  ;;  %12242 = vmatpush3.bf16.msra.mxu0 %v1814_v35  ;;  %12243 = vmatprep.mubr.msk.bf16.mxu0 %vm13312_vm1, %v18808_v49 }
 0x2be   : > { %v1869_v9 = vsel %vm1339_vm9, %v13887_v11, %v1868_v58  ;;  %v1809_v61 = vpack.c.b16 %v1808_v22, %v14075_v7  ;;  %v1932_v29 = vpack.c.b16 %v1931_v62, %v14163_v27  ;;  %12253 = vmatprep.subr.bf16.mxu0 %v18808_v49  ;;  %v2149_v7 = vld [vmem:[#allocation14] sm:$0xf] }
 0x2bf   : > { %v1870_v60 = vsel %vm1342_vm10, %v13873_v0, %v1869_v9  ;;  %v2273_v27 = vsel %vm1363_vm3, %v2149_v7, 0 }
 0x2c0   : > { %v1871_v20 = vpack.c.b16 %v1870_v60, %v14081_v15  ;;  %v2154_v15 = vld [vmem:[#allocation14 + $0x4] sm:$0xf] }
 0x2c1   : > { %v2206_v52 = vsel %vm1363_vm3, %v2154_v15, 0 }
 0x2c2   : > { %12250 = vmatmul.mubr.msk.bf16.vlgmr.msra.gmra.mrb[20].mxu1 %vm1359_vm11, %v1871_v20 }
 0x2c3   : > { %12261 = vmatprep.mubr.msk.bf16.mxu1 %vm13312_vm1, %v18808_v49  ;;  %12260 = vmatpush3.bf16.msra.mxu1 %v2206_v52 }
 0x2c4   : > { %12244 = vmatmul.mubr.msk.bf16.vlgmr.msra.gmra.mrb[20].mxu0 %vm1359_vm11, %v1809_v61  ;;  %12271 = vmatprep.subr.bf16.mxu1 %v18808_v49 }
 0x2c5   : > { %12254 = vmatpush3.bf16.msra.mxu0 %v1937_v45  ;;  %12255 = vmatprep.mubr.msk.bf16.mxu0 %vm13312_vm1, %v18808_v49 }
 0x2c6   : > { %12265 = vmatprep.subr.bf16.mxu0 %v18808_v49 }
 0x2cc   : > { %12256 = vmatmul.mubr.msk.bf16.vlgmr.msra.gmra.mrb[24].mxu0 %vm1359_vm11, %v1932_v29  ;;  %v11880_v29 = vld [vmem:[#allocation12] ss:$0 sm:$0xff] }
 0x2cd   : > { %12267 = vmatprep.mubr.msk.bf16.mxu0 %vm13312_vm1, %v18808_v49  ;;  %12266 = vmatpush3.bf16.msra.mxu0 %v2273_v27 }
 0x2ce   : > { %12277 = vmatprep.subr.bf16.mxu0 %v18808_v49 }
 0x37b   : > { %v1470_v32 = vpop.f32.mrb[8].mxu1  ;;  %v1401_v44 = vpop.f32.mrb[8].mxu0 }
 0x37c   : > { %v1471_v19 = vadd.f32 %v1470_v32, %v1401_v44  ;;  %v12215_v14 = vpop.f32.mrb[9].mxu1  ;;  %v12209_v43 = vpop.f32.mrb[9].mxu0 }
 0x37d   : > { %v1473_v12 = vpop.f32.mrb[10].mxu1  ;;  %v1404_v13 = vpop.f32.mrb[10].mxu0 }
 0x37e   : > { %v1474_v54 = vadd.f32 %v1473_v12, %v1404_v13  ;;  %v12216_v25 = vpop.f32.mrb[11].mxu1  ;;  %v12210_v56 = vpop.f32.mrb[11].mxu0 }
 0x384   : > { %v1627_v59 = vpop.f32.mrb[12].mxu1 }
 0x385   : > { %v12227_v23 = vpop.f32.mrb[13].mxu1 }
 0x386   : > { %v1540_v53 = vpop.f32.mrb[12].mxu0  ;;  %v1630_v55 = vpop.f32.mrb[14].mxu1 }
 0x387   : > { %v1547_v21 = vadd.f32 %v1540_v53, %v1471_v19  ;;  %v12221_v33 = vpop.f32.mrb[13].mxu0  ;;  %v12228_v41 = vpop.f32.mrb[15].mxu1 }
 0x388   : > { %v1543_v6 = vpop.f32.mrb[14].mxu0 }
 0x389   : > { %v1548_v36 = vadd.f32 %v1543_v6, %v1474_v54  ;;  %v12222_v30 = vpop.f32.mrb[15].mxu0  ;;  %v1634_v2 = vadd.f32 %v1627_v59, %v1547_v21 }
 0x38b   : > { %v1635_v5 = vadd.f32 %v1630_v55, %v1548_v36 }
 0x38d   : > { %v1786_v42 = vpop.f32.mrb[16].mxu1 }
 0x38e   : > { %v12239_v18 = vpop.f32.mrb[17].mxu1 }
 0x38f   : > { %v1710_v34 = vpop.f32.mrb[16].mxu0  ;;  %v1789_v10 = vpop.f32.mrb[18].mxu1 }
 0x390   : > { %v1717_v38 = vadd.f32 %v1710_v34, %v1634_v2  ;;  %v12233_v39 = vpop.f32.mrb[17].mxu0  ;;  %v12240_v51 = vpop.f32.mrb[19].mxu1 }
 0x391   : > { %v1713_v17 = vpop.f32.mrb[18].mxu0 }
 0x392   : > { %v1718_v4 = vadd.f32 %v1713_v17, %v1635_v5  ;;  %v12234_v37 = vpop.f32.mrb[19].mxu0  ;;  %v1793_v24 = vadd.f32 %v1786_v42, %v1717_v38 }
 0x394   : > { %v1794_v26 = vadd.f32 %v1789_v10, %v1718_v4 }
 0x395   : > { %v1912_v57 = vpop.f32.mrb[20].mxu1 }
 0x396   : > { %v12251_v35 = vpop.f32.mrb[21].mxu1 }
 0x397   : > { %v1850_v58 = vpop.f32.mrb[20].mxu0  ;;  %v1915_v3 = vpop.f32.mrb[22].mxu1  ;;  %v2317_v35 = vld [vmem:[#allocation14 + $0x8] sm:$0xf] }
 0x398   : > { %v1857_v8 = vadd.f32 %v1850_v58, %v1793_v24  ;;  %v12245_v9 = vpop.f32.mrb[21].mxu0  ;;  %v12252_v50 = vpop.f32.mrb[23].mxu1  ;;  %v2391_v24 = vld [vmem:[#allocation14 + $0xc] sm:$0xf]  ;;  %v2558_v58 = vld [vmem:[#allocation14 + $0x14] sm:$0xf] }
 0x399   : > { %v1853_v48 = vpop.f32.mrb[22].mxu0 }
 0x39a   : > { %v1858_v60 = vadd.f32 %v1853_v48, %v1794_v26  ;;  %v12246_v22 = vpop.f32.mrb[23].mxu0  ;;  %v1919_v62 = vadd.f32 %v1912_v57, %v1857_v8  ;;  %v2476_v48 = vld [vmem:[#allocation14 + $0x10] sm:$0xf] }
 0x39b   : > { %v14298_v22 = vsel %vm1363_vm3, %v2391_v24, 0 }
 0x39c   : > { %v1920_v20 = vadd.f32 %v1915_v3, %v1858_v60  ;;  %v2696_v60 = vld [vmem:[#allocation14 + $0x1c] sm:$0xf] }
 0x39f   : > { %v1973_v61 = vpop.f32.mrb[24].mxu0 }
 0x3a0   : > { %v1980_v16 = vadd.f32 %v1973_v61, %v1919_v62  ;;  %v12257_v45 = vpop.f32.mrb[25].mxu0  ;;  %v14301_v62 = vsel %vm1363_vm3, %v2317_v35, 0 }
 0x3a1   : > { %v1976_v7 = vpop.f32.mrb[26].mxu0 }
 0x3a2   : > { %v1989_v15 = vadd.f32 %v11880_v29, %v1980_v16  ;;  %v1981_v27 = vadd.f32 %v1976_v7, %v1920_v20  ;;  %v12258_v52 = vpop.f32.mrb[27].mxu0  ;;  %v14304_v20 = vsel %vm1363_vm3, %v2558_v58, 0 }
 0x3a3   : > { %v14314_v52 = vsel %vm1363_vm3, %v2696_v60, 0 }
 0x3a4   : > { %v2001_v32 = vmul.f32 %v1989_v15, %v1989_v15  ;;  %v1990_v44 = vadd.f32 %v11880_v29, %v1981_v27  ;;  %v1991_v19 = vsel %vm1359_vm11, %v1989_v15, 0.0  ;;  %v14311_v27 = vsel %vm1363_vm3, %v2476_v48, 0 }
 0x3a6   : > { %v1992_v14 = vsel %vm1359_vm11, %v1990_v44, 0.0  ;;  %v2002_v43 = vmul.f32 %v1990_v44, %v1990_v44  ;;  %v2003_v13 = vsel %vm1359_vm11, %v2001_v32, 0.0 }
 0x3a7   : > { %v1993_v12 = vadd.f32 %v1992_v14, %v1991_v19 }
 0x3a8   : > { %v2004_v54 = vsel %vm1359_vm11, %v2002_v43, 0.0 }
 0x3a9   : > { %v1994_v25 = vrot.slane %v1993_v12, 4  ;;  %v2005_v56 = vadd.f32 %v2004_v54, %v2003_v13 }
 0x3ab   : > { %v1995_v59 = vadd.f32 %v1994_v25, %v1993_v12  ;;  %v2006_v23 = vrot.slane %v2005_v56, 4 }
 0x3ad   : > { %v1996_v53 = vrot.slane %v1995_v59, 2  ;;  %v2007_v55 = vadd.f32 %v2006_v23, %v2005_v56 }
 0x3af   : > { %v1997_v21 = vadd.f32 %v1996_v53, %v1995_v59  ;;  %v2008_v33 = vrot.slane %v2007_v55, 2 }
 0x3b1   : > { %v1998_v41 = vrot.slane %v1997_v21, 1  ;;  %v2009_v6 = vadd.f32 %v2008_v33, %v2007_v55 }
 0x3b3   : > { %v1999_v36 = vadd.f32 %v1998_v41, %v1997_v21  ;;  %v2010_v30 = vrot.slane %v2009_v6, 1 }
 0x3b5   : > { %v2000_v2 = vmul.f32 0.0625, %v1999_v36  ;;  %v2011_v5 = vadd.f32 %v2010_v30, %v2009_v6 }
 0x3b7   : > { %v2012_v42 = vmul.f32 0.0625, %v2011_v5  ;;  %v2013_v18 = vmul.f32 %v2000_v2, %v2000_v2  ;;  %v2016_v34 = vsub.f32 %v1989_v15, %v2000_v2  ;;  %v2017_v10 = vsub.f32 %v1990_v44, %v2000_v2 }
 0x3b9   : > { %v2014_v38 = vsub.f32 %v2012_v42, %v2013_v18 }
 0x3bb   : > { %v2015_v39 = vmax.f32 %v2014_v38, 0.0 }
 0x3bd   : > { %v2018_v51 = vadd.f32 1e-05, %v2015_v39 }
 0x3bf   : > { %12866 = vrsqrt.f32 %v2018_v51 }
 0x3c9   : > { %v12867_v17 = vpop.eup %12866 }
 0x3ca   : > { %v2020_v4 = vmul.f32 %v12867_v17, %v2016_v34  ;;  %v2021_v37 = vmul.f32 %v12867_v17, %v2017_v10 }
 0x3cc   : > { %v2022_v26 = vmax.f32 %v2020_v4, 0.0  ;;  %v2023_v57 = vmax.f32 %v2021_v37, 0.0 }
 0x3ce   : > { %v2026_v3 = vcombine.high %v2022_v26, %v2022_v26  ;;  %v2033_v8 = vrot.slane %v2022_v26, %v13819_v28  ;;  %v2075_v9 = vcombine.high %v2023_v57, %v2023_v57  ;;  %v2082_v50 = vrot.slane %v2023_v57, %v13819_v28 }
 0x3d0   : > { %v2040_v61 = vrot.slane %v2026_v3, %v13819_v28  ;;  %v2041_v29 = vcombine.high %v2033_v8, %v2033_v8  ;;  %v2049_v16 = vrot.slane %v2033_v8, %v13819_v28  ;;  %v2089_v45 = vrot.slane %v2075_v9, %v13819_v28 }
 0x3d1   : > { %v2090_v7 = vcombine.high %v2082_v50, %v2082_v50  ;;  %v2098_v15 = vrot.slane %v2082_v50, %v13819_v28 }
 0x3d2   : > { %v2042_v32 = vcombine.high %v2040_v61, %v2040_v61  ;;  %v2056_v44 = vrot.slane %v2040_v61, %v13819_v28  ;;  %v14318_v19 = vrot.slane %v2041_v29, %v13819_v28  ;;  %v2071_v14 = vcombine.high %v2049_v16, %v2049_v16 }
 0x3d3   : > { %v2091_v43 = vcombine.high %v2089_v45, %v2089_v45  ;;  %v2105_v12 = vrot.slane %v2089_v45, %v13819_v28  ;;  %v2112_v13 = vrot.slane %v2090_v7, %v13819_v28  ;;  %v2120_v54 = vcombine.high %v2098_v15, %v2098_v15 }
 0x3d4   : > { %v2070_v25 = vrot.slane %v2042_v32, %v13819_v28  ;;  %v2072_v56 = vcombine.high %v2056_v44, %v2056_v44  ;;  %v2140_v59 = vpack.c.bf16 %v2049_v16, %v2049_v16  ;;  %v2141_v23 = vpack.c.bf16 %v14318_v19, %v14318_v19 }
 0x3d5   : > { %v2119_v53 = vrot.slane %v2091_v43, %v13819_v28  ;;  %v2121_v55 = vcombine.high %v2105_v12, %v2105_v12  ;;  %v2122_v21 = vcombine.high %v2112_v13, %v2112_v13  ;;  %v2142_v33 = vpack.c.bf16 %v2071_v14, %v2071_v14 }
 0x3d6   : > { %v2074_v41 = vcombine.high %v2070_v25, %v2070_v25  ;;  %v2143_v6 = vpack.c.bf16 %v2056_v44, %v2056_v44  ;;  %v2144_v36 = vpack.c.bf16 %v2070_v25, %v2070_v25  ;;  %v2145_v30 = vpack.c.bf16 %v2072_v56, %v2072_v56 }
 0x3d7   : > { %v2123_v2 = vcombine.high %v2119_v53, %v2119_v53  ;;  %v2146_v5 = vpack.c.bf16 %v2098_v15, %v2098_v15  ;;  %v2147_v42 = vpack.c.bf16 %v2112_v13, %v2112_v13  ;;  %v2148_v18 = vpack.c.bf16 %v2120_v54, %v2120_v54 }
 0x3d8   : > { %v2151_v34 = vpack.c.bf16 %v2074_v41, %v2074_v41  ;;  %v2152_v10 = vpack.c.bf16 %v2122_v21, %v2122_v21  ;;  %v14326_v38 = vunpack.c.l.b16 %v2140_v59  ;;  %v14328_v39 = vunpack.c.l.b16 %v2141_v23 }
 0x3d9   : > { %v14330_v51 = vunpack.c.l.b16 %v2142_v33  ;;  %v14332_v17 = vunpack.c.l.b16 %v2143_v6  ;;  %v14334_v4 = vunpack.c.l.b16 %v2144_v36  ;;  %v14336_v37 = vunpack.c.l.b16 %v2145_v30 }
 0x3da   : > { %v14338_v24 = vunpack.c.l.b16 %v2151_v34  ;;  %v14340_v26 = vunpack.c.l.b16 %v2146_v5  ;;  %v14342_v57 = vunpack.c.l.b16 %v2147_v42  ;;  %v14344_v35 = vunpack.c.l.b16 %v2148_v18 }
 0x3db   : > { %v14346_v58 = vunpack.c.l.b16 %v2152_v10  ;;  %v2387_v3 = vpack.c.bf16 %v2105_v12, %v2105_v12  ;;  %v2388_v8 = vpack.c.bf16 %v2119_v53, %v2119_v53  ;;  %v2389_v9 = vpack.c.bf16 %v2121_v55, %v2121_v55 }
 0x3dc   : > { %v2193_v50 = vrot.slane %v14340_v26, 4  ;;  %v2411_v48 = vrot.slane %v14340_v26, 7  ;;  %v2474_v60 = vpack.c.bf16 %v2123_v2, %v2123_v2  ;;  %v2493_v61 = vrot.slane %v14342_v57, 7 }
 0x3dd   : > { %v14351_v29 = vunpack.c.l.b16 %v2387_v3  ;;  %v14353_v16 = vunpack.c.l.b16 %v2388_v8  ;;  %v14355_v45 = vunpack.c.l.b16 %v2389_v9  ;;  %v2573_v7 = vrot.slane %v14346_v58, 6 }
 0x3de   : > { %v14358_v15 = vunpack.c.l.b16 %v2474_v60  ;;  %v14362_v32 = vsel %vm1324_vm4, %v2493_v61, %v14340_v26  ;;  %v2249_v44 = vrot.slane %v14326_v38, 3  ;;  %v2251_v14 = vrot.slane %v14328_v39, 2 }
 0x3df   : > { %v2635_v43 = vrot.slane %v14351_v29, 7  ;;  %v2697_v12 = vrot.slane %v14353_v16, 7  ;;  %v2253_v13 = vrot.slane %v14330_v51, 1  ;;  %v2255_v54 = vrot.slane %v14332_v17, 7 }
 0x3e0   : > { %v2761_v25 = vrot.slane %v14358_v15, 6  ;;  %v2250_v56 = vsel %vm1336_vm8, %v2249_v44, %v13870_v63  ;;  %v2257_v59 = vrot.slane %v14334_v4, 6  ;;  %v2259_v23 = vrot.slane %v14336_v37, 5 }
 0x3e1   : > { %v14377_v53 = vsel %vm1324_vm4, %v2697_v12, %v14351_v29  ;;  %v2252_v55 = vsel %vm1339_vm9, %v2251_v14, %v2250_v56  ;;  %v2256_v21 = vsel %vm1324_vm4, %v2255_v54, %v13821_v31  ;;  %v2262_v33 = vrot.slane %v14340_v26, 3 }
 0x3e2   : > { %v2254_v41 = vsel %vm1342_vm10, %v2253_v13, %v2252_v55  ;;  %v2258_v6 = vsel %vm1327_vm5, %v2257_v59, %v2256_v21  ;;  %v2264_v36 = vrot.slane %v14342_v57, 2  ;;  %v2266_v30 = vrot.slane %v14344_v35, 1 }
 0x3e3   : > { %v2260_v2 = vsel %vm1330_vm6, %v2259_v23, %v2258_v6  ;;  %v2073_v5 = vcombine.high %v14318_v19, %v14318_v19  ;;  %v2179_v42 = vrot.slane %v14326_v38, 4  ;;  %v2181_v18 = vrot.slane %v14328_v39, 3 }
 0x3e4   : > { %v2261_v34 = vsel %vm1333_vm7, %v13842_v46, %v2260_v2  ;;  %v2183_v10 = vrot.slane %v14330_v51, 2  ;;  %v2187_v3 = vrot.slane %v14334_v4, 7  ;;  %v2189_v8 = vrot.slane %v14336_v37, 6 }
 0x3e5   : > { %v2263_v9 = vsel %vm1336_vm8, %v2262_v33, %v2261_v34  ;;  %v2150_v60 = vpack.c.bf16 %v2073_v5, %v2073_v5  ;;  %v2180_v61 = vsel %vm1333_vm7, %v2179_v42, %v13846_v47  ;;  %v2191_v19 = vrot.slane %v14338_v24, 5 }
 0x3e6   : > { %v2265_v44 = vsel %vm1339_vm9, %v2264_v36, %v2263_v9  ;;  %v2182_v14 = vsel %vm1336_vm8, %v2181_v18, %v2180_v61  ;;  %v2188_v12 = vsel %vm1324_vm4, %v2187_v3, %v14332_v17  ;;  %v2195_v13 = vrot.slane %v14342_v57, 3 }
 0x3e7   : > { %v14407_v54 = vsel %vm1342_vm10, %v2266_v30, %v2265_v44  ;;  %v14409_v56 = vunpack.c.l.b16 %v2150_v60  ;;  %v2184_v59 = vsel %vm1339_vm9, %v2183_v10, %v2182_v14  ;;  %v2190_v23 = vsel %vm1327_vm5, %v2189_v8, %v2188_v12 }
 0x3e8   : > { %v2268_v55 = vpack.c.b16 %v14407_v54, %v2254_v41  ;;  %v2192_v21 = vsel %vm1330_vm6, %v2191_v19, %v2190_v23  ;;  %v2197_v33 = vrot.slane %v14344_v35, 2  ;;  %v2199_v6 = vrot.slane %v14346_v58, 1 }
 0x3e9   : > { %v2185_v36 = vrot.slane %v14409_v56, 1  ;;  %v2194_v2 = vsel %vm1333_vm7, %v2193_v50, %v2192_v21  ;;  %v2398_v30 = vrot.slane %v14326_v38, 7  ;;  %v2400_v5 = vrot.slane %v14328_v39, 6 }
 0x3ea   : > { %12268 = vmatmul.mubr.msk.bf16.vlgmr.msra.gmra.mrb[28].mxu0 %vm1359_vm11, %v2268_v55  ;;  %v2196_v42 = vsel %vm1336_vm8, %v2195_v13, %v2194_v2  ;;  %v2402_v41 = vrot.slane %v14330_v51, 5  ;;  %v2405_v18 = vrot.slane %v14332_v17, 3  ;;  %v2407_v34 = vrot.slane %v14334_v4, 2 }
 0x3eb   : > { %v2186_v10 = vsel %vm1342_vm10, %v2185_v36, %v2184_v59  ;;  %v2198_v3 = vsel %vm1339_vm9, %v2197_v33, %v2196_v42  ;;  %12278 = vmatpush3.bf16.msra.mxu0 %v14298_v22  ;;  %12279 = vmatprep.mubr.msk.bf16.mxu0 %vm13312_vm1, %v18808_v49  ;;  %v2399_v50 = vsel %vm1324_vm4, %v2398_v30, %v13821_v31  ;;  %v2409_v8 = vrot.slane %v14336_v37, 1 }
 0x3ec   : > { %v14435_v9 = vsel %vm1342_vm10, %v2199_v6, %v2198_v3  ;;  %v2401_v60 = vsel %vm1327_vm5, %v2400_v5, %v2399_v50  ;;  %v2412_v61 = vsel %vm1324_vm4, %v2411_v48, %v13821_v31  ;;  %v2413_v22 = vrot.slane %v14342_v57, 6  ;;  %12289 = vmatprep.subr.bf16.mxu0 %v18808_v49 }
 0x3ed   : > { %v2201_v19 = vpack.c.b16 %v14435_v9, %v2186_v10  ;;  %v2403_v44 = vsel %vm1330_vm6, %v2402_v41, %v2401_v60  ;;  %v2415_v14 = vrot.slane %v14344_v35, 5  ;;  %v2418_v12 = vrot.slane %v14351_v29, 3 }
 0x3ee   : > { %v2404_v13 = vsel %vm1333_vm7, %v13842_v46, %v2403_v44  ;;  %v2414_v59 = vsel %vm1327_vm5, %v2413_v22, %v2412_v61  ;;  %v2420_v26 = vrot.slane %v14353_v16, 2  ;;  %v2422_v48 = vrot.slane %v14355_v45, 1 }
 0x3ef   : > { %12262 = vmatmul.mubr.msk.bf16.vlgmr.msra.gmra.mrb[24].mxu1 %vm1359_vm11, %v2201_v19  ;;  %v2406_v23 = vsel %vm1336_vm8, %v2405_v18, %v2404_v13  ;;  %v2416_v55 = vsel %vm1330_vm6, %v2415_v14, %v2414_v59  ;;  %v2318_v21 = vrot.slane %v14328_v39, 4  ;;  %v2320_v33 = vrot.slane %v14330_v51, 3 }
 0x3f0   : > { %12272 = vmatpush3.bf16.msra.mxu1 %v14301_v62  ;;  %12273 = vmatprep.mubr.msk.bf16.mxu1 %vm13312_vm1, %v18808_v49  ;;  %v2408_v6 = vsel %vm1339_vm9, %v2407_v34, %v2406_v23  ;;  %v2417_v36 = vsel %vm1333_vm7, %v13842_v46, %v2416_v55  ;;  %v2322_v2 = vrot.slane %v14409_v56, 2  ;;  %v2325_v30 = vrot.slane %v14336_v37, 7 }
 0x3f1   : > { %v2410_v5 = vsel %vm1342_vm10, %v2409_v8, %v2408_v6  ;;  %v2419_v42 = vsel %vm1336_vm8, %v2418_v12, %v2417_v36  ;;  %v2319_v41 = vsel %vm1333_vm7, %v2318_v21, %v13846_v47  ;;  %v2327_v62 = vrot.slane %v14338_v24, 6  ;;  %12283 = vmatprep.subr.bf16.mxu1 %v18808_v49 }
 0x3f2   : > { %v2421_v18 = vsel %vm1339_vm9, %v2420_v26, %v2419_v42  ;;  %v2321_v34 = vsel %vm1336_vm8, %v2320_v33, %v2319_v41  ;;  %v2326_v10 = vsel %vm1324_vm4, %v2325_v30, %v14334_v4  ;;  %v2330_v3 = vrot.slane %v14342_v57, 4 }
 0x3f3   : > { %v2423_v50 = vsel %vm1342_vm10, %v2422_v48, %v2421_v18  ;;  %v2323_v8 = vsel %vm1339_vm9, %v2322_v2, %v2321_v34  ;;  %v2328_v60 = vsel %vm1327_vm5, %v2327_v62, %v2326_v10  ;;  %v2332_v47 = vrot.slane %v14344_v35, 3 }
 0x3f4   : > { %v2424_v61 = vpack.c.b16 %v2423_v50, %v2410_v5  ;;  %v2324_v22 = vsel %vm1342_vm10, %v13873_v0, %v2323_v8  ;;  %v2329_v19 = vsel %vm1330_vm6, %v13830_v40, %v2328_v60  ;;  %v2334_v44 = vrot.slane %v14346_v58, 2 }
 0x3f5   : > { %v2331_v14 = vsel %vm1333_vm7, %v2330_v3, %v2329_v19  ;;  %v2559_v12 = vrot.slane %v14330_v51, 7  ;;  %v2561_v13 = vrot.slane %v14409_v56, 6  ;;  %v2564_v59 = vrot.slane %v14334_v4, 4 }
 0x3f6   : > { %12280 = vmatmul.mubr.msk.bf16.vlgmr.msra.gmra.mrb[32].mxu0 %vm1359_vm11, %v2424_v61  ;;  %v2333_v26 = vsel %vm1336_vm8, %v2332_v47, %v2331_v14  ;;  %v2566_v48 = vrot.slane %v14336_v37, 3  ;;  %v2568_v23 = vrot.slane %v14338_v24, 2  ;;  %v2571_v55 = vrot.slane %v14344_v35, 7 }
 0x3f7   : > { %v2335_v21 = vsel %vm1339_vm9, %v2334_v44, %v2333_v26  ;;  %12290 = vmatpush3.bf16.msra.mxu0 %v14304_v20  ;;  %12291 = vmatprep.mubr.msk.bf16.mxu0 %vm13312_vm1, %v18808_v49  ;;  %v2560_v33 = vsel %vm1324_vm4, %v2559_v12, %v14328_v39  ;;  %v2576_v6 = vrot.slane %v14353_v16, 4  ;;  %v2578_v36 = vrot.slane %v14355_v45, 3 }
 0x3f8   : > { %v14505_v2 = vsel %vm1342_vm10, %v13873_v0, %v2335_v21  ;;  %v2562_v30 = vsel %vm1327_vm5, %v2561_v13, %v2560_v33  ;;  %v2572_v5 = vsel %vm1324_vm4, %v2571_v55, %v14342_v57  ;;  %v2580_v20 = vrot.slane %v14358_v15, 2  ;;  %12301 = vmatprep.subr.bf16.mxu0 %v18808_v49 }
 0x3f9   : > { %v2337_v42 = vpack.c.b16 %v14505_v2, %v2324_v22  ;;  %v2563_v41 = vsel %vm1330_vm6, %v13830_v40, %v2562_v30  ;;  %v2574_v62 = vsel %vm1327_vm5, %v2573_v7, %v2572_v5  ;;  %v2479_v18 = vrot.slane %v14328_v39, 7 }
 0x3fa   : > { %v2565_v34 = vsel %vm1333_vm7, %v2564_v59, %v2563_v41  ;;  %v2575_v57 = vsel %vm1330_vm6, %v13830_v40, %v2574_v62  ;;  %v2481_v10 = vrot.slane %v14330_v51, 6  ;;  %v2483_v3 = vrot.slane %v14409_v56, 5 }
 0x3fb   : > { %12274 = vmatmul.mubr.msk.bf16.vlgmr.msra.gmra.mrb[28].mxu1 %vm1359_vm11, %v2337_v42  ;;  %v2567_v50 = vsel %vm1336_vm8, %v2566_v48, %v2565_v34  ;;  %v2577_v8 = vsel %vm1333_vm7, %v2576_v6, %v2575_v57  ;;  %v2480_v7 = vsel %vm1324_vm4, %v2479_v18, %v14326_v38  ;;  %v2485_v39 = vrot.slane %v14332_v17, 4 }
 0x3fc   : > { %12284 = vmatpush3.bf16.msra.mxu1 %v14311_v27  ;;  %12285 = vmatprep.mubr.msk.bf16.mxu1 %vm13312_vm1, %v18808_v49  ;;  %v2569_v51 = vsel %vm1339_vm9, %v2568_v23, %v2567_v50  ;;  %v2579_v56 = vsel %vm1336_vm8, %v2578_v36, %v2577_v8  ;;  %v2482_v60 = vsel %vm1327_vm5, %v2481_v10, %v2480_v7  ;;  %v2487_v47 = vrot.slane %v14334_v4, 3 }
 0x3fd   : > { %v2570_v61 = vsel %vm1342_vm10, %v13873_v0, %v2569_v51  ;;  %v2581_v38 = vsel %vm1339_vm9, %v2580_v20, %v2579_v56  ;;  %v2484_v17 = vsel %vm1330_vm6, %v2483_v3, %v2482_v60  ;;  %v2489_v27 = vrot.slane %v14336_v37, 2  ;;  %12295 = vmatprep.subr.bf16.mxu1 %v18808_v49 }
 0x3fe   : > { %v2582_v22 = vsel %vm1342_vm10, %v13873_v0, %v2581_v38  ;;  %v2486_v19 = vsel %vm1333_vm7, %v2485_v39, %v2484_v17  ;;  %v2491_v44 = vrot.slane %v14338_v24, 1  ;;  %v2495_v4 = vrot.slane %v14344_v35, 6 }
 0x3ff   : > { %v2583_v14 = vpack.c.b16 %v2582_v22, %v2570_v61  ;;  %v2488_v12 = vsel %vm1336_vm8, %v2487_v47, %v2486_v19  ;;  %v2497_v13 = vrot.slane %v14346_v58, 5  ;;  %v2499_v59 = vrot.slane %v14351_v29, 4  ;;  %v2634_v58 = vld [vmem:[#allocation14 + $0x18] sm:$0xf] }
 0x400   : > { %v2490_v37 = vsel %vm1339_vm9, %v2489_v27, %v2488_v12  ;;  %v2496_v26 = vsel %vm1327_vm5, %v2495_v4, %v14362_v32  ;;  %v2501_v48 = vrot.slane %v14353_v16, 3  ;;  %v2503_v23 = vrot.slane %v14355_v45, 2 }
 0x401   : > { %12292 = vmatmul.mubr.msk.bf16.vlgmr.msra.gmra.mrb[36].mxu0 %vm1359_vm11, %v2583_v14  ;;  %v2492_v24 = vsel %vm1342_vm10, %v2491_v44, %v2490_v37  ;;  %v2498_v35 = vsel %vm1330_vm6, %v2497_v13, %v2496_v26  ;;  %v2505_v55 = vrot.slane %v14358_v15, 1  ;;  %v2699_v21 = vrot.slane %v14355_v45, 6 }
 0x402   : > { %v2500_v33 = vsel %vm1333_vm7, %v2499_v59, %v2498_v35  ;;  %12302 = vmatpush3.bf16.msra.mxu0 %v14314_v52  ;;  %12303 = vmatprep.mubr.msk.bf16.mxu0 %vm13312_vm1, %v18808_v49  ;;  %v2701_v32 = vrot.slane %v14358_v15, 5  ;;  %v2636_v6 = vsel %vm1324_vm4, %v2635_v43, %v13821_v31  ;;  %v2637_v36 = vrot.slane %v14353_v16, 6 }
 0x403   : > { %v2502_v30 = vsel %vm1336_vm8, %v2501_v48, %v2500_v33  ;;  %v2700_v5 = vsel %vm1327_vm5, %v2699_v21, %v14377_v53  ;;  %v2639_v20 = vrot.slane %v14355_v45, 5  ;;  %v2759_v52 = vrot.slane %v14355_v45, 7  ;;  %12313 = vmatprep.subr.bf16.mxu0 %v18808_v49 }
 0x404   : > { %v2504_v42 = vsel %vm1339_vm9, %v2503_v23, %v2502_v30  ;;  %v2650_v41 = vsel %vm1363_vm3, %v2634_v58, 0  ;;  %v2702_v29 = vsel %vm1330_vm6, %v2701_v32, %v2700_v5  ;;  %v2638_v43 = vsel %vm1327_vm5, %v2637_v36, %v2636_v6 }
 0x405   : > { %v2506_v62 = vsel %vm1342_vm10, %v2505_v55, %v2504_v42  ;;  %v2703_v18 = vsel %vm1333_vm7, %v13842_v46, %v2702_v29  ;;  %v2640_v53 = vsel %vm1330_vm6, %v2639_v20, %v2638_v43  ;;  %v2760_v45 = vsel %vm1324_vm4, %v2759_v52, %v14353_v16 }
 0x406   : > { %v2507_v34 = vpack.c.b16 %v2506_v62, %v2492_v24  ;;  %v2704_v57 = vsel %vm1336_vm8, %v13876_v1, %v2703_v18  ;;  %v2641_v10 = vsel %vm1333_vm7, %v13842_v46, %v2640_v53  ;;  %v2762_v3 = vsel %vm1327_vm5, %v2761_v25, %v2760_v45 }
 0x407   : > { %v2705_v50 = vsel %vm1339_vm9, %v13887_v11, %v2704_v57  ;;  %v2642_v8 = vsel %vm1336_vm8, %v13876_v1, %v2641_v10  ;;  %v2763_v16 = vsel %vm1330_vm6, %v13830_v40, %v2762_v3 }
 0x408   : > { %12286 = vmatmul.mubr.msk.bf16.vlgmr.msra.gmra.mrb[32].mxu1 %vm1359_vm11, %v2507_v34  ;;  %v2706_v7 = vsel %vm1342_vm10, %v13873_v0, %v2705_v50  ;;  %v2643_v39 = vsel %vm1339_vm9, %v13887_v11, %v2642_v8  ;;  %v2764_v15 = vsel %vm1333_vm7, %v13842_v46, %v2763_v16  ;;  %v2758_v46 = vld [vmem:[#allocation14 + $0x20] sm:$0xf] }
 0x409   : > { %12296 = vmatpush3.bf16.msra.mxu1 %v2650_v41  ;;  %12297 = vmatprep.mubr.msk.bf16.mxu1 %vm13312_vm1, %v18808_v49  ;;  %v2707_v25 = vpack.c.b16 %v2706_v7, %v14435_v9  ;;  %v2644_v40 = vsel %vm1342_vm10, %v13873_v0, %v2643_v39  ;;  %v2765_v51 = vsel %vm1336_vm8, %v13876_v1, %v2764_v15  ;;  %v2773_v61 = vsel %vm1363_vm3, %v2758_v46, 0 }
 0x40a   : > { %v2645_v56 = vpack.c.b16 %v2644_v40, %v14407_v54  ;;  %12307 = vmatprep.subr.bf16.mxu1 %v18808_v49  ;;  %v2766_v60 = vsel %vm1339_vm9, %v13887_v11, %v2765_v51  ;;  %v2895_v54 = vld [vmem:[%s18823_s29] sm:$0xf] }
 0x40b   : > { %12304 = vmatmul.mubr.msk.bf16.vlgmr.msra.gmra.mrb[40].mxu0 %vm1359_vm11, %v2707_v25  ;;  %v2767_v47 = vsel %vm1342_vm10, %v13873_v0, %v2766_v60  ;;  %v2900_v38 = vsel %vm1363_vm3, %v2895_v54, 0 }
 0x40c   : > { %v2768_v9 = vpack.c.b16 %v2767_v47, %v14505_v2  ;;  %12315 = vmatprep.mubr.msk.bf16.mxu0 %vm13312_vm1, %v18808_v49  ;;  %v11892_v2 = vld [vmem:[%s18823_s29 + $0x4] sm:$0xf]  ;;  %12314 = vmatpush3.bf16.msra.mxu0 %v2900_v38 }
 0x40d   : > { %v2946_v17 = vsel %vm1363_vm3, %v11892_v2, 0  ;;  %12325 = vmatprep.subr.bf16.mxu0 %v18808_v49 }
 0x410   : > { %12298 = vmatmul.mubr.msk.bf16.vlgmr.msra.gmra.mrb[36].mxu1 %vm1359_vm11, %v2645_v56  ;;  %v11890_v56 = vld [vmem:[#allocation15] ss:$0 sm:$0xff] }
 0x411   : > { %12308 = vmatpush3.bf16.msra.mxu1 %v2773_v61  ;;  %12309 = vmatprep.mubr.msk.bf16.mxu1 %vm13312_vm1, %v18808_v49 }
 0x412   : > { %12319 = vmatprep.subr.bf16.mxu1 %v18808_v49 }
 0x418   : > { %12310 = vmatmul.mubr.msk.bf16.vlgmr.msra.gmra.mrb[40].mxu1 %vm1359_vm11, %v2768_v9 }
 0x419   : > { %12321 = vmatprep.mubr.msk.bf16.mxu1 %vm13312_vm1, %v18808_v49  ;;  %12320 = vmatpush3.bf16.msra.mxu1 %v2946_v17 }
 0x41a   : > { %12331 = vmatprep.subr.bf16.mxu1 %v18808_v49 }
 0x4bd   : > { %v2309_v27 = vpop.f32.mrb[28].mxu0 }
 0x4be   : > { %v12269_v22 = vpop.f32.mrb[29].mxu0 }
 0x4bf   : > { %v2312_v19 = vpop.f32.mrb[30].mxu0 }
 0x4c0   : > { %v12270_v44 = vpop.f32.mrb[31].mxu0 }
 0x4c2   : > { %v2242_v4 = vpop.f32.mrb[24].mxu1 }
 0x4c3   : > { %v2310_v14 = vadd.f32 %v2309_v27, %v2242_v4  ;;  %v12263_v12 = vpop.f32.mrb[25].mxu1 }
 0x4c4   : > { %v2245_v13 = vpop.f32.mrb[26].mxu1 }
 0x4c5   : > { %v2313_v59 = vadd.f32 %v2312_v19, %v2245_v13  ;;  %v12264_v37 = vpop.f32.mrb[27].mxu1 }
 0x4c9   : > { %v2465_v26 = vpop.f32.mrb[32].mxu0 }
 0x4ca   : > { %v12281_v48 = vpop.f32.mrb[33].mxu0 }
 0x4cb   : > { %v2468_v23 = vpop.f32.mrb[34].mxu0 }
 0x4cc   : > { %v12282_v24 = vpop.f32.mrb[35].mxu0 }
 0x4ce   : > { %v2378_v35 = vpop.f32.mrb[28].mxu1 }
 0x4cf   : > { %v2385_v55 = vadd.f32 %v2378_v35, %v2310_v14  ;;  %v12275_v58 = vpop.f32.mrb[29].mxu1 }
 0x4d0   : > { %v2381_v21 = vpop.f32.mrb[30].mxu1 }
 0x4d1   : > { %v2386_v33 = vadd.f32 %v2381_v21, %v2313_v59  ;;  %v12276_v32 = vpop.f32.mrb[31].mxu1  ;;  %v2472_v6 = vadd.f32 %v2465_v26, %v2385_v55 }
 0x4d3   : > { %v2473_v36 = vadd.f32 %v2468_v23, %v2386_v33 }
 0x4d4   : > { %v2624_v30 = vpop.f32.mrb[36].mxu0 }
 0x4d5   : > { %v12293_v5 = vpop.f32.mrb[37].mxu0 }
 0x4d6   : > { %v2627_v20 = vpop.f32.mrb[38].mxu0 }
 0x4d7   : > { %v12294_v52 = vpop.f32.mrb[39].mxu0 }
 0x4db   : > { %v2548_v42 = vpop.f32.mrb[32].mxu1 }
 0x4dc   : > { %v2555_v41 = vadd.f32 %v2548_v42, %v2472_v6  ;;  %v12287_v29 = vpop.f32.mrb[33].mxu1 }
 0x4dd   : > { %v2551_v43 = vpop.f32.mrb[34].mxu1 }
 0x4de   : > { %v2556_v62 = vadd.f32 %v2551_v43, %v2473_v36  ;;  %v12288_v18 = vpop.f32.mrb[35].mxu1  ;;  %v2748_v53 = vpop.f32.mrb[40].mxu0  ;;  %v2631_v45 = vadd.f32 %v2624_v30, %v2555_v41  ;;  %v11894_v43 = vld [vmem:[%s18823_s29 + $0x8] sm:$0xf] }
 0x4df   : > { %v12305_v34 = vpop.f32.mrb[41].mxu0 }
 0x4e0   : > { %v2751_v57 = vpop.f32.mrb[42].mxu0  ;;  %v2632_v10 = vadd.f32 %v2627_v20, %v2556_v62  ;;  %v11896_v62 = vld [vmem:[%s18823_s29 + $0xc] sm:$0xf]  ;;  %v2992_v34 = vsel %vm1363_vm3, %v11894_v43, 0 }
 0x4e1   : > { %v12306_v3 = vpop.f32.mrb[43].mxu0 }
 0x4e3   : > { %v2686_v50 = vpop.f32.mrb[36].mxu1 }
 0x4e4   : > { %v2693_v8 = vadd.f32 %v2686_v50, %v2631_v45  ;;  %v12299_v16 = vpop.f32.mrb[37].mxu1 }
 0x4e5   : > { %v2689_v7 = vpop.f32.mrb[38].mxu1  ;;  %v3845_v16 = vsel %vm1336_vm8, %v13876_v1, %v13870_v63 }
 0x4e6   : > { %v2694_v39 = vadd.f32 %v2689_v7, %v2632_v10  ;;  %v12300_v15 = vpop.f32.mrb[39].mxu1  ;;  %v2755_v25 = vadd.f32 %v2748_v53, %v2693_v8  ;;  %v11898_v10 = vld [vmem:[#allocation8] ss:$0 sm:$0xff] }
 0x4e7   : > { %v3551_v3 = vcombine.high %v11898_v10, %v11898_v10  ;;  %v3558_v50 = vrot.slane %v11898_v10, %v13819_v28 }
 0x4e8   : > { %v2756_v40 = vadd.f32 %v2751_v57, %v2694_v39  ;;  %v3038_v57 = vsel %vm1363_vm3, %v11896_v62, 0 }
 0x4e9   : > { %v3565_v8 = vrot.slane %v3551_v3, %v13819_v28  ;;  %v3566_v7 = vcombine.high %v3558_v50, %v3558_v50  ;;  %v14678_v15 = vrot.slane %v3558_v50, %v13819_v28 }
 0x4eb   : > { %v2809_v51 = vpop.f32.mrb[40].mxu1  ;;  %v3567_v39 = vcombine.high %v3565_v8, %v3565_v8 }
 0x4ec   : > { %v2816_v60 = vadd.f32 %v2809_v51, %v2755_v25  ;;  %v12311_v46 = vpop.f32.mrb[41].mxu1  ;;  %v3846_v25 = vsel %vm1339_vm9, %v13887_v11, %v3845_v16 }
 0x4ed   : > { %v2812_v47 = vpop.f32.mrb[42].mxu1  ;;  %v14697_v11 = vsel %vm1342_vm10, %v13873_v0, %v3846_v25 }
 0x4ee   : > { %v2825_v9 = vadd.f32 %v11890_v56, %v2816_v60  ;;  %v2817_v61 = vadd.f32 %v2812_v47, %v2756_v40  ;;  %v12312_v54 = vpop.f32.mrb[43].mxu1  ;;  %v14689_v60 = vrot.slane %v3567_v39, %v13819_v28 }
 0x4ef   : > { %v14701_v54 = vcombine.high %v14678_v15, %v14678_v15 }
 0x4f0   : > { %v2837_v2 = vmul.f32 %v2825_v9, %v2825_v9  ;;  %v2826_v38 = vadd.f32 %v11890_v56, %v2817_v61  ;;  %v2827_v17 = vsel %vm1359_vm11, %v2825_v9, 0.0  ;;  %v14686_v56 = vrot.slane %v3566_v7, %v13819_v28 }
 0x4f2   : > { %v2828_v27 = vsel %vm1359_vm11, %v2826_v38, 0.0  ;;  %v2838_v22 = vmul.f32 %v2826_v38, %v2826_v38  ;;  %v2839_v44 = vsel %vm1359_vm11, %v2837_v2, 0.0 }
 0x4f3   : > { %v2829_v19 = vadd.f32 %v2828_v27, %v2827_v17 }
 0x4f4   : > { %v2840_v4 = vsel %vm1359_vm11, %v2838_v22, 0.0 }
 0x4f5   : > { %v2830_v14 = vrot.slane %v2829_v19, 4  ;;  %v2841_v12 = vadd.f32 %v2840_v4, %v2839_v44 }
 0x4f7   : > { %v2831_v13 = vadd.f32 %v2830_v14, %v2829_v19  ;;  %v2842_v59 = vrot.slane %v2841_v12, 4 }
 0x4f9   : > { %v2832_v37 = vrot.slane %v2831_v13, 2  ;;  %v2843_v26 = vadd.f32 %v2842_v59, %v2841_v12  ;;  %v14722_v59 = vcombine.high %v14686_v56, %v14686_v56 }
 0x4fb   : > { %v2833_v48 = vadd.f32 %v2832_v37, %v2831_v13  ;;  %v2844_v23 = vrot.slane %v2843_v26, 2  ;;  %v14726_v37 = vcombine.high %v14689_v60, %v14689_v60 }
 0x4fd   : > { %v2834_v24 = vrot.slane %v2833_v48, 1  ;;  %v2845_v35 = vadd.f32 %v2844_v23, %v2843_v26 }
 0x4ff   : > { %v2835_v55 = vadd.f32 %v2834_v24, %v2833_v48  ;;  %v2846_v58 = vrot.slane %v2845_v35, 1 }
 0x501   : > { %v2836_v21 = vmul.f32 0.0625, %v2835_v55  ;;  %v2847_v33 = vadd.f32 %v2846_v58, %v2845_v35 }
 0x503   : > { %v2848_v32 = vmul.f32 0.0625, %v2847_v33  ;;  %v2849_v6 = vmul.f32 %v2836_v21, %v2836_v21  ;;  %v2852_v36 = vsub.f32 %v2825_v9, %v2836_v21  ;;  %v2853_v30 = vsub.f32 %v2826_v38, %v2836_v21  ;;  %v12844_v33 = vld [vmem:[#allocation17 + $0x8] sm:$0xff]  }
 0x505   : > { %v2850_v5 = vsub.f32 %v2848_v32, %v2849_v6 }
 0x507   : > { %v2851_v20 = vmax.f32 %v2850_v5, 0.0 }
 0x509   : > { %v2854_v52 = vadd.f32 1e-05, %v2851_v20 }
 0x50b   : > { %12868 = vrsqrt.f32 %v2854_v52 }
 0x515   : > { %v12869_v42 = vpop.eup %12868 }
 0x516   : > { %v14646_v41 = vmul.f32 %v12869_v42, %v2852_v36  ;;  %v14648_v29 = vmul.f32 %v12869_v42, %v2853_v30 }
 0x518   : > { %18824 = vst [vmem:[#allocation36_spill] sm:$0xff] %v14646_v41  ;;  %18825 = vst [vmem:[#allocation37_spill] sm:$0xff] %v14648_v29  ;;  %v18594_v18 = vmax.f32 %v14646_v41, 0.0  ;;  %v18593_v53 = vmax.f32 %v14648_v29, 0.0 }
 0x51a   : > { %v2894_v45 = vpack.c.bf16 %v18593_v53, %v18594_v18 }
 0x51c   : > { %12316 = vmatmul.mubr.msk.bf16.vlgmr.msra.gmra.mrb[44].mxu0 %vm1359_vm11, %v2894_v45  ;;  %12322 = vmatmul.mubr.msk.bf16.vlgmr.msra.gmra.mrb[44].mxu1 %vm1359_vm11, %v2894_v45 }
 0x51d   : > { %12326 = vmatpush3.bf16.msra.mxu0 %v2992_v34  ;;  %12332 = vmatpush3.bf16.msra.mxu1 %v3038_v57 }
 0x51e   : > { %12327 = vmatprep.mubr.msk.bf16.mxu0 %vm13312_vm1, %v18808_v49  ;;  %12333 = vmatprep.mubr.msk.bf16.mxu1 %vm13312_vm1, %v18808_v49  ;;  %v14681_v49 = vrot.slane %v3565_v8, %v13819_v28 }
 0x51f   : > { %12337 = vmatprep.subr.bf16.mxu0 %v12844_v33 }
 0x520   : > { %v14705_v2 = vcombine.high %v14681_v49, %v14681_v49 }
 0x524   : > { %12328 = vmatmul.mubr.msk.bf16.vlgmr.msra.gmra.mrb[48].mxu0 %vm1359_vm11, %v2894_v45  ;;  %12334 = vmatmul.mubr.msk.bf16.vlgmr.msra.gmra.mrb[48].mxu1 %vm1359_vm11, %v2894_v45 }
 0x525   : > { %12338 = vmatpush3.bf16.msra.mxu0 %v12844_v33 }
 0x5ef   : > { %v2936_v40 = vpop.f32.mrb[44].mxu0  ;;  %v2982_v51 = vpop.f32.mrb[44].mxu1 }
 0x5f0   : > { %v3083_v63 = vcombine.high %v2936_v40, %v2936_v40  ;;  %v3090_v1 = vrot.slane %v2936_v40, %v13819_v28  ;;  %v3199_v46 = vcombine.high %v2982_v51, %v2982_v51  ;;  %v14693_v47 = vrot.slane %v2982_v51, %v13819_v28  ;;  %v12317_v9 = vpop.f32.mrb[45].mxu0  ;;  %v12323_v61 = vpop.f32.mrb[45].mxu1 }
 0x5f1   : > { %v14707_v38 = vpop.f32.mrb[46].mxu0  ;;  %v14709_v17 = vpop.f32.mrb[46].mxu1 }
 0x5f2   : > { %v3097_v27 = vrot.slane %v3083_v63, %v13819_v28  ;;  %v3098_v22 = vcombine.high %v3090_v1, %v3090_v1  ;;  %v3106_v19 = vrot.slane %v3090_v1, %v13819_v28  ;;  %v3213_v44 = vrot.slane %v3199_v46, %v13819_v28  ;;  %v12318_v4 = vpop.f32.mrb[47].mxu0  ;;  %v12324_v14 = vpop.f32.mrb[47].mxu1 }
 0x5f3   : > { %v3214_v12 = vcombine.high %v14693_v47, %v14693_v47  ;;  %v14718_v13 = vrot.slane %v14693_v47, %v13819_v28  ;;  %v3132_v58 = vcombine.high %v14707_v38, %v14707_v38  ;;  %v14735_v21 = vrot.slane %v14707_v38, %v13819_v28 }
 0x5f4   : > { %v3099_v26 = vcombine.high %v3097_v27, %v3097_v27  ;;  %v3113_v48 = vrot.slane %v3097_v27, %v13819_v28  ;;  %v3120_v23 = vrot.slane %v3098_v22, %v13819_v28  ;;  %v3128_v24 = vcombine.high %v3106_v19, %v3106_v19 }
 0x5f5   : > { %v3608_v35 = vadd.f32 %v14678_v15, %v3106_v19  ;;  %v3215_v55 = vcombine.high %v3213_v44, %v3213_v44  ;;  %v14742_v42 = vrot.slane %v3213_v44, %v13819_v28 }
 0x5f6   : > { %v3127_v32 = vrot.slane %v3099_v26, %v13819_v28  ;;  %v3129_v6 = vcombine.high %v3113_v48, %v3113_v48  ;;  %v3130_v36 = vcombine.high %v3120_v23, %v3120_v23  ;;  %v3610_v30 = vadd.f32 %v14701_v54, %v3120_v23 }
 0x5f7   : > { %v3612_v5 = vadd.f32 %v14681_v49, %v3128_v24  ;;  %v3624_v20 = vadd.f32 %v14678_v15, %v3113_v48  ;;  %v3672_v52 = vpack.c.bf16 %v3608_v35, %v3608_v35  ;;  %v14744_v43 = vpop.f32.mrb[48].mxu0  ;;  %v14746_v62 = vpop.f32.mrb[48].mxu1  ;;  %v3236_v26 = vrot.slane %v3214_v12, %v13819_v28 }
 0x5f8   : > { %v3131_v45 = vcombine.high %v3127_v32, %v3127_v32  ;;  %v3614_v34 = vadd.f32 %v14705_v2, %v3130_v36  ;;  %v3626_v57 = vadd.f32 %v14701_v54, %v3127_v32  ;;  %v3628_v10 = vadd.f32 %v14681_v49, %v3129_v6  ;;  %v12329_v3 = vpop.f32.mrb[49].mxu0  ;;  %v12335_v50 = vpop.f32.mrb[49].mxu1 }
 0x5f9   : > { %v3674_v8 = vpack.c.bf16 %v3610_v30, %v3610_v30  ;;  %v3676_v16 = vpack.c.bf16 %v3612_v5, %v3612_v5  ;;  %v3686_v7 = vpack.c.bf16 %v3624_v20, %v3624_v20  ;;  %v14751_v39 = vunpack.c.l.b16 %v3672_v52  ;;  %v14753_v25 = vpop.f32.mrb[50].mxu0  ;;  %v14755_v40 = vpop.f32.mrb[50].mxu1 }
 0x5fa   : > { %v3630_v51 = vadd.f32 %v14705_v2, %v3131_v45  ;;  %v3678_v63 = vpack.c.bf16 %v3614_v34, %v3614_v34  ;;  %v3688_v1 = vpack.c.bf16 %v3626_v57, %v3626_v57  ;;  %v3690_v46 = vpack.c.bf16 %v3628_v10, %v3628_v10  ;;  %v12330_v47 = vpop.f32.mrb[51].mxu0  ;;  %v12336_v9 = vpop.f32.mrb[51].mxu1 }
 0x5fb   : > { %v14758_v61 = vunpack.c.l.b16 %v3674_v8  ;;  %v14760_v27 = vunpack.c.l.b16 %v3676_v16  ;;  %v14762_v22 = vunpack.c.l.b16 %v3686_v7  ;;  %v4033_v19 = vrot.slane %v14751_v39, 7  ;;  %v14794_v8 = vld [vmem:[#allocation17] sm:$0xff]  }
 0x5fc   : > { %v3692_v44 = vpack.c.bf16 %v3630_v51, %v3630_v51  ;;  %v14765_v4 = vunpack.c.l.b16 %v3688_v1  ;;  %v14767_v14 = vunpack.c.l.b16 %v3690_v46  ;;  %v14770_v48 = vunpack.c.l.b16 %v3678_v63  ;;  %18827 = vst [vmem:[#allocation39_spill] sm:$0xff] %v14794_v8  ;;  %12347 = vmatprep.subr.bf16.mxu0 %v14794_v8 }
 0x5fd   : > { %18826 = vst [vmem:[#allocation38_spill] sm:$0xff] %v14758_v61  ;;  %v3850_v23 = vrot.slane %v14758_v61, 6  ;;  %v3243_v35 = vrot.slane %v3215_v55, %v13819_v28  ;;  %v4034_v6 = vsel %vm1324_vm4, %v4033_v19, %v13821_v31  ;;  %v4061_v5 = vrot.slane %v14762_v22, 7 }
 0x5fe   : > { %v14775_v33 = vunpack.c.l.b16 %v3692_v44  ;;  %v3878_v32 = vrot.slane %v14765_v4, 6  ;;  %v4065_v20 = vrot.slane %v14765_v4, 5  ;;  %v4069_v55 = vrot.slane %v14767_v14, 3 }
 0x5ff   : > { %v4221_v34 = vrot.slane %v14758_v61, 7  ;;  %v4062_v57 = vsel %vm1324_vm4, %v4061_v5, %v13821_v31  ;;  %v4225_v10 = vrot.slane %v14760_v27, 5  ;;  %v4247_v50 = vrot.slane %v14765_v4, 7 }
 0x600   : > { %v3244_v16 = vcombine.high %v14718_v13, %v14718_v13  ;;  %v3245_v7 = vcombine.high %v14742_v42, %v14742_v42  ;;  %v3246_v51 = vcombine.high %v3236_v26, %v3236_v26  ;;  %v3247_v63 = vcombine.high %v3243_v35, %v3243_v35 }
 0x601   : > { %v3609_v1 = vadd.f32 %v14686_v56, %v14718_v13  ;;  %v3611_v46 = vadd.f32 %v14722_v59, %v3236_v26  ;;  %v3625_v47 = vadd.f32 %v14686_v56, %v14742_v42  ;;  %v3627_v9 = vadd.f32 %v14722_v59, %v3243_v35 }
 0x602   : > { %v3613_v19 = vadd.f32 %v14689_v60, %v3244_v16  ;;  %v3615_v44 = vadd.f32 %v14726_v37, %v3246_v51  ;;  %v3629_v5 = vadd.f32 %v14689_v60, %v3245_v7  ;;  %v3631_v53 = vadd.f32 %v14726_v37, %v3247_v63 }
 0x603   : > { %v3673_v18 = vpack.c.bf16 %v3609_v1, %v3609_v1  ;;  %v3675_v3 = vpack.c.bf16 %v3611_v46, %v3611_v46  ;;  %v3687_v13 = vpack.c.bf16 %v3625_v47, %v3625_v47  ;;  %v3689_v12 = vpack.c.bf16 %v3627_v9, %v3627_v9 }
 0x604   : > { %v3677_v26 = vpack.c.bf16 %v3613_v19, %v3613_v19  ;;  %v3691_v45 = vpack.c.bf16 %v3629_v5, %v3629_v5  ;;  %v3723_v36 = vpack.c.bf16 %v3615_v44, %v3615_v44  ;;  %v3725_v42 = vpack.c.bf16 %v3631_v53, %v3631_v53 }
 0x605   : > { %v3790_v52 = vunpack.c.l.b16 %v3673_v18  ;;  %v14811_v35 = vunpack.c.l.b16 %v3675_v3  ;;  %v3806_v24 = vunpack.c.l.b16 %v3687_v13  ;;  %v3808_v30 = vunpack.c.l.b16 %v3689_v12 }
 0x606   : > { %v14813_v16 = vunpack.c.l.b16 %v3677_v26  ;;  %v14815_v51 = vunpack.c.l.b16 %v3723_v36  ;;  %v14817_v7 = vunpack.c.l.b16 %v3691_v45  ;;  %v14819_v63 = vunpack.c.l.b16 %v3725_v42 }
 0x607   : > { %v4251_v1 = vrot.slane %v14767_v14, 5  ;;  %v3848_v46 = vrot.slane %v3790_v52, 7  ;;  %v3876_v47 = vrot.slane %v3806_v24, 7  ;;  %v3880_v9 = vrot.slane %v3808_v30, 5 }
 0x608   : > { %v4255_v53 = vrot.slane %v14775_v33, 3  ;;  %v4035_v44 = vrot.slane %v3790_v52, 6  ;;  %v4063_v42 = vrot.slane %v3806_v24, 6 }
 0x609   : > { %v3849_v36 = vsel %vm1324_vm4, %v3848_v46, %v14751_v39  ;;  %v3877_v45 = vsel %vm1324_vm4, %v3876_v47, %v14762_v22  ;;  %v4067_v22 = vrot.slane %v3808_v30, 4  ;;  %v3431_v39 = vcombine.high %v14746_v62, %v14746_v62 }
 0x60a   : > { %v14832_v5 = vsel %vm1327_vm5, %v3850_v23, %v3849_v36  ;;  %v3879_v13 = vsel %vm1327_vm5, %v3878_v32, %v3877_v45  ;;  %v14840_v12 = vsel %vm1327_vm5, %v4035_v44, %v4034_v6  ;;  %v4064_v47 = vsel %vm1327_vm5, %v4063_v42, %v4062_v57 }
 0x60b   : > { %v14837_v3 = vsel %vm1330_vm6, %v3880_v9, %v3879_v13  ;;  %18828 = vst [vmem:[#allocation40_spill] sm:$0xff] %v14840_v12  ;;  %v4222_v23 = vsel %vm1324_vm4, %v4221_v34, %v3790_v52  ;;  %v4223_v32 = vrot.slane %v14811_v35, 6  ;;  %v4066_v36 = vsel %vm1330_vm6, %v4065_v20, %v4064_v47 }
 0x60c   : > { %v4071_v9 = vrot.slane %v14817_v7, 2  ;;  %v4248_v6 = vsel %vm1324_vm4, %v4247_v50, %v3806_v24  ;;  %v4249_v45 = vrot.slane %v3808_v30, 6  ;;  %v4068_v44 = vsel %vm1333_vm7, %v4067_v22, %v4066_v36 }
 0x60d   : > { %v4224_v13 = vsel %vm1327_vm5, %v4223_v32, %v4222_v23  ;;  %v4253_v57 = vrot.slane %v14817_v7, 4  ;;  %v4070_v52 = vsel %vm1336_vm8, %v4069_v55, %v4068_v44  ;;  %v3146_v30 = vrot.slane %v3132_v58, %v13819_v28 }
 0x60e   : > { %v14862_v4 = vsel %vm1330_vm6, %v4225_v10, %v4224_v13  ;;  %v4250_v24 = vsel %vm1327_vm5, %v4249_v45, %v4248_v6  ;;  %v14870_v20 = vsel %vm1339_vm9, %v4071_v9, %v4070_v52  ;;  %v3147_v55 = vcombine.high %v14735_v21, %v14735_v21 }
 0x60f   : > { %18829 = vst [vmem:[#allocation41_spill] sm:$0xff] %v14862_v4  ;;  %18830 = vst [vmem:[#allocation42_spill] sm:$0xff] %v14870_v20  ;;  %v4252_v34 = vsel %vm1330_vm6, %v4251_v1, %v4250_v24  ;;  %v3155_v50 = vrot.slane %v14735_v21, %v13819_v28  ;;  %v4257_v42 = vrot.slane %v14819_v63, 2  ;;  %v3148_v22 = vcombine.high %v3146_v30, %v3146_v30 }
 0x610   : > { %v4254_v10 = vsel %vm1333_vm7, %v4253_v57, %v4252_v34  ;;  %v3162_v47 = vrot.slane %v3146_v30, %v13819_v28  ;;  %v3169_v58 = vrot.slane %v3147_v55, %v13819_v28 }
 0x611   : > { %v4256_v38 = vsel %vm1336_vm8, %v4255_v53, %v4254_v10  ;;  %v3177_v23 = vcombine.high %v3155_v50, %v3155_v50  ;;  %v3640_v1 = vadd.f32 %v14678_v15, %v3155_v50  ;;  %v3176_v36 = vrot.slane %v3148_v22, %v13819_v28 }
 0x612   : > { %v14884_v32 = vsel %vm1339_vm9, %v4257_v42, %v4256_v38  ;;  %v3178_v21 = vcombine.high %v3162_v47, %v3162_v47  ;;  %v3656_v9 = vadd.f32 %v14678_v15, %v3162_v47  ;;  %v3179_v6 = vcombine.high %v3169_v58, %v3169_v58 }
 0x613   : > { %18831 = vst [vmem:[#allocation43_spill] sm:$0xff] %v14884_v32  ;;  %v3642_v45 = vadd.f32 %v14701_v54, %v3169_v58  ;;  %v3644_v44 = vadd.f32 %v14681_v49, %v3177_v23  ;;  %v3700_v13 = vpack.c.bf16 %v3640_v1, %v3640_v1  ;;  %v3180_v53 = vcombine.high %v3176_v36, %v3176_v36 }
 0x614   : > { %v3658_v57 = vadd.f32 %v14701_v54, %v3176_v36  ;;  %v3660_v52 = vadd.f32 %v14681_v49, %v3178_v21  ;;  %v3714_v24 = vpack.c.bf16 %v3656_v9, %v3656_v9  ;;  %v3646_v30 = vadd.f32 %v14705_v2, %v3179_v6 }
 0x615   : > { %v3702_v34 = vpack.c.bf16 %v3642_v45, %v3642_v45  ;;  %v3704_v55 = vpack.c.bf16 %v3644_v44, %v3644_v44  ;;  %v14893_v50 = vunpack.c.l.b16 %v3700_v13  ;;  %v3662_v10 = vadd.f32 %v14705_v2, %v3180_v53 }
 0x616   : > { %v3716_v42 = vpack.c.bf16 %v3658_v57, %v3658_v57  ;;  %v3718_v22 = vpack.c.bf16 %v3660_v52, %v3660_v52  ;;  %v14896_v47 = vunpack.c.l.b16 %v3714_v24  ;;  %v3706_v38 = vpack.c.bf16 %v3646_v30, %v3646_v30 }
 0x617   : > { %v14898_v58 = vunpack.c.l.b16 %v3702_v34  ;;  %v14900_v23 = vunpack.c.l.b16 %v3704_v55  ;;  %v4089_v1 = vrot.slane %v14893_v50, 7  ;;  %v3720_v36 = vpack.c.bf16 %v3662_v10, %v3662_v10 }
 0x618   : > { %v14903_v21 = vunpack.c.l.b16 %v3716_v42  ;;  %v14905_v9 = vunpack.c.l.b16 %v3718_v22  ;;  %v4117_v6 = vrot.slane %v14896_v47, 7  ;;  %v14909_v44 = vunpack.c.l.b16 %v3706_v38 }
 0x619   : > { %18832 = vst [vmem:[#allocation44_spill] sm:$0xff] %v14898_v58  ;;  %v3248_v53 = vcombine.high %v14709_v17, %v14709_v17  ;;  %v14914_v57 = vunpack.c.l.b16 %v3720_v36  ;;  %v14920_v30 = vsel %vm1324_vm4, %v4089_v1, %v13821_v31  ;;  %v3255_v55 = vrot.slane %v14709_v17, %v13819_v28 }
 0x61a   : > { %18833 = vst [vmem:[#allocation45_spill] sm:$0xff] %v14903_v21  ;;  %18834 = vst [vmem:[#allocation46_spill] sm:$0xff] %v14905_v9  ;;  %v14927_v42 = vsel %vm1324_vm4, %v4117_v6, %v13821_v31  ;;  %v3315_v22 = vcombine.high %v14744_v43, %v14744_v43  ;;  %v14943_v38 = vrot.slane %v14744_v43, %v13819_v28 }
 0x61b   : > { %18835 = vst [vmem:[#allocation47_spill] sm:$0xff] %v14914_v57  ;;  %v3262_v10 = vrot.slane %v3248_v53, %v13819_v28  ;;  %v3263_v1 = vcombine.high %v3255_v55, %v3255_v55  ;;  %v3271_v24 = vrot.slane %v3255_v55, %v13819_v28  ;;  %v14957_v43 = vrot.slane %v14746_v62, %v13819_v28 }
 0x61c   : > { %v14951_v6 = vrot.slane %v3315_v22, %v13819_v28  ;;  %v3330_v52 = vcombine.high %v14943_v38, %v14943_v38  ;;  %v14965_v22 = vrot.slane %v14943_v38, %v13819_v28  ;;  %v14968_v45 = vrot.slane %v3431_v39, %v13819_v28 }
 0x61d   : > { %v3264_v34 = vcombine.high %v3262_v10, %v3262_v10  ;;  %v3278_v17 = vrot.slane %v3262_v10, %v13819_v28  ;;  %v3285_v26 = vrot.slane %v3263_v1, %v13819_v28  ;;  %v3293_v18 = vcombine.high %v3271_v24, %v3271_v24 }
 0x61e   : > { %v3641_v10 = vadd.f32 %v14686_v56, %v3271_v24 }
 0x61f   : > { %v3292_v19 = vrot.slane %v3264_v34, %v13819_v28  ;;  %v3294_v55 = vcombine.high %v3278_v17, %v3278_v17  ;;  %v3657_v53 = vadd.f32 %v14686_v56, %v3278_v17  ;;  %v3295_v46 = vcombine.high %v3285_v26, %v3285_v26 }
 0x620   : > { %v3643_v36 = vadd.f32 %v14722_v59, %v3285_v26  ;;  %v3645_v1 = vadd.f32 %v14689_v60, %v3293_v18  ;;  %v3701_v24 = vpack.c.bf16 %v3641_v10, %v3641_v10 }
 0x621   : > { %v3296_v62 = vcombine.high %v3292_v19, %v3292_v19  ;;  %v3659_v34 = vadd.f32 %v14722_v59, %v3292_v19  ;;  %v3661_v13 = vadd.f32 %v14689_v60, %v3294_v55  ;;  %v3715_v29 = vpack.c.bf16 %v3657_v53, %v3657_v53 }
 0x622   : > { %v3647_v17 = vadd.f32 %v14726_v37, %v3295_v46  ;;  %v3703_v41 = vpack.c.bf16 %v3643_v36, %v3643_v36  ;;  %v3705_v32 = vpack.c.bf16 %v3645_v1, %v3645_v1  ;;  %v3822_v4 = vunpack.c.l.b16 %v3701_v24 }
 0x623   : > { %v3663_v38 = vadd.f32 %v14726_v37, %v3296_v62  ;;  %v3717_v39 = vpack.c.bf16 %v3659_v34, %v3659_v34  ;;  %v3719_v0 = vpack.c.bf16 %v3661_v13, %v3661_v13  ;;  %v3838_v20 = vunpack.c.l.b16 %v3715_v29 }
 0x624   : > { %v3727_v61 = vpack.c.bf16 %v3647_v17, %v3647_v17  ;;  %v14976_v12 = vunpack.c.l.b16 %v3703_v41  ;;  %v14978_v18 = vunpack.c.l.b16 %v3705_v32  ;;  %v3904_v53 = vrot.slane %v3822_v4, 7 }
 0x625   : > { %v3729_v26 = vpack.c.bf16 %v3663_v38, %v3663_v38  ;;  %v14980_v19 = vunpack.c.l.b16 %v3717_v39  ;;  %v14982_v55 = vunpack.c.l.b16 %v3719_v0  ;;  %v3932_v46 = vrot.slane %v3838_v20, 7 }
 0x626   : > { %18836 = vst [vmem:[#allocation48_spill] sm:$0xff] %v14978_v18  ;;  %v14984_v10 = vunpack.c.l.b16 %v3727_v61  ;;  %v3331_v13 = vcombine.high %v14951_v6, %v14951_v6  ;;  %v3345_v29 = vrot.slane %v14951_v6, %v13819_v28  ;;  %v3905_v41 = vsel %vm1324_vm4, %v3904_v53, %v14893_v50 }
 0x627   : > { %18837 = vst [vmem:[#allocation49_spill] sm:$0xff] %v14980_v19  ;;  %18838 = vst [vmem:[#allocation50_spill] sm:$0xff] %v14982_v55  ;;  %v14986_v36 = vunpack.c.l.b16 %v3729_v26  ;;  %v14998_v62 = vsel %vm1324_vm4, %v3932_v46, %v14896_v47  ;;  %v18842_v61 = vrot.slane %v14898_v58, 6  ;;  %v4091_v24 = vrot.slane %v3822_v4, 6 }
 0x628   : > { %18839 = vst [vmem:[#allocation51_spill] sm:$0xff] %v14984_v10  ;;  %18841 = vst [vmem:[#allocation53_spill] sm:$0xff] %v14998_v62  ;;  %v4119_v38 = vrot.slane %v3838_v20, 6  ;;  %v18843_v39 = vrot.slane %v14898_v58, 7  ;;  %v18846_v6 = vrot.slane %v14903_v21, 7  ;;  %v3352_v46 = vrot.slane %v3330_v52, %v13819_v28 }
 0x629   : > { %18840 = vst [vmem:[#allocation52_spill] sm:$0xff] %v14986_v36  ;;  %v15003_v1 = vsel %vm1327_vm5, %v18842_v61, %v3905_v41  ;;  %v15014_v26 = vsel %vm1327_vm5, %v4091_v24, %v14920_v30  ;;  %v4275_v41 = vrot.slane %v14976_v12, 6  ;;  %v3359_v53 = vrot.slane %v3331_v13, %v13819_v28 }
 0x62a   : > { %v4274_v47 = vsel %vm1324_vm4, %v18843_v39, %v3822_v4  ;;  %18844 = vst [vmem:[#allocation54_spill] sm:$0xff] %v15014_v26  ;;  %v15021_v61 = vsel %vm1327_vm5, %v4119_v38, %v14927_v42  ;;  %v4300_v4 = vsel %vm1324_vm4, %v18846_v6, %v3838_v20  ;;  %v4301_v39 = vrot.slane %v14980_v19, 6 }
 0x62b   : > { %18845 = vst [vmem:[#allocation55_spill] sm:$0xff] %v15021_v61  ;;  %v4276_v30 = vsel %vm1327_vm5, %v4275_v41, %v4274_v47  ;;  %v18847_v50 = vrot.slane %v14900_v23, 5  ;;  %v3360_v20 = vcombine.high %v14965_v22, %v14965_v22  ;;  %v3361_v6 = vcombine.high %v3345_v29, %v3345_v29 }
 0x62c   : > { %v15038_v38 = vsel %vm1327_vm5, %v4301_v39, %v4300_v4  ;;  %v3362_v17 = vcombine.high %v3352_v46, %v3352_v46  ;;  %v3363_v47 = vcombine.high %v3359_v53, %v3359_v53  ;;  %v3616_v41 = vadd.f32 %v14678_v15, %v14965_v22 }
 0x62d   : > { %v15035_v42 = vsel %vm1330_vm6, %v18847_v50, %v4276_v30  ;;  %18849 = vst [vmem:[#allocation57_spill] sm:$0xff] %v15038_v38  ;;  %v3618_v52 = vadd.f32 %v14701_v54, %v3352_v46  ;;  %v3620_v13 = vadd.f32 %v14681_v49, %v3360_v20  ;;  %v3632_v24 = vadd.f32 %v14678_v15, %v3345_v29 }
 0x62e   : > { %18848 = vst [vmem:[#allocation56_spill] sm:$0xff] %v15035_v42  ;;  %v3634_v50 = vadd.f32 %v14701_v54, %v3359_v53  ;;  %v3636_v4 = vadd.f32 %v14681_v49, %v3361_v6  ;;  %v3622_v39 = vadd.f32 %v14705_v2, %v3362_v17  ;;  %v3638_v30 = vadd.f32 %v14705_v2, %v3363_v47 }
 0x62f   : > { %v3679_v34 = vpack.c.bf16 %v3616_v41, %v3616_v41  ;;  %v3681_v0 = vpack.c.bf16 %v3618_v52, %v3618_v52  ;;  %v3683_v32 = vpack.c.bf16 %v3620_v13, %v3620_v13  ;;  %v3693_v38 = vpack.c.bf16 %v3632_v24, %v3632_v24 }
 0x630   : > { %v3695_v42 = vpack.c.bf16 %v3634_v50, %v3634_v50  ;;  %v3697_v22 = vpack.c.bf16 %v3636_v4, %v3636_v4  ;;  %v3685_v61 = vpack.c.bf16 %v3622_v39, %v3622_v39  ;;  %v3699_v46 = vpack.c.bf16 %v3638_v30, %v3638_v30 }
 0x631   : > { %v15051_v58 = vunpack.c.l.b16 %v3679_v34  ;;  %v15053_v20 = vunpack.c.l.b16 %v3681_v0  ;;  %v15055_v29 = vunpack.c.l.b16 %v3683_v32  ;;  %v15057_v53 = vunpack.c.l.b16 %v3693_v38 }
 0x632   : > { %v15059_v6 = vunpack.c.l.b16 %v3695_v42  ;;  %v15061_v17 = vunpack.c.l.b16 %v3697_v22  ;;  %v15065_v41 = vunpack.c.l.b16 %v3685_v61  ;;  %v15068_v34 = vunpack.c.l.b16 %v3699_v46 }
 0x633   : > { %v4047_v52 = vrot.slane %v15051_v58, 7  ;;  %v4075_v30 = vrot.slane %v15057_v53, 7  ;;  %v4234_v24 = vrot.slane %v15053_v20, 7  ;;  %v3446_v42 = vcombine.high %v14957_v43, %v14957_v43 }
 0x634   : > { %v3447_v39 = vcombine.high %v14968_v45, %v14968_v45  ;;  %v3454_v32 = vrot.slane %v14957_v43, %v13819_v28  ;;  %v3461_v13 = vrot.slane %v14968_v45, %v13819_v28  ;;  %v3364_v4 = vcombine.high %v14753_v25, %v14753_v25 }
 0x635   : > { %v15077_v50 = vsel %vm1324_vm4, %v4047_v52, %v13821_v31  ;;  %v4076_v22 = vsel %vm1324_vm4, %v4075_v30, %v13821_v31  ;;  %v3468_v47 = vrot.slane %v3446_v42, %v13819_v28  ;;  %v15107_v52 = vrot.slane %v14753_v25, %v13819_v28 }
 0x636   : > { %v3475_v38 = vrot.slane %v3447_v39, %v13819_v28  ;;  %v3476_v30 = vcombine.high %v3454_v32, %v3454_v32  ;;  %v3477_v61 = vcombine.high %v3461_v13, %v3461_v13  ;;  %v3617_v46 = vadd.f32 %v14686_v56, %v3454_v32 }
 0x637   : > { %v3633_v43 = vadd.f32 %v14686_v56, %v3461_v13  ;;  %v3478_v0 = vcombine.high %v3468_v47, %v3468_v47  ;;  %v3619_v45 = vadd.f32 %v14722_v59, %v3468_v47 }
 0x638   : > { %v3479_v26 = vcombine.high %v3475_v38, %v3475_v38  ;;  %v3635_v42 = vadd.f32 %v14722_v59, %v3475_v38  ;;  %v3621_v39 = vadd.f32 %v14689_v60, %v3476_v30  ;;  %v3637_v36 = vadd.f32 %v14689_v60, %v3477_v61 }
 0x639   : > { %v3680_v55 = vpack.c.bf16 %v3617_v46, %v3617_v46  ;;  %v3694_v57 = vpack.c.bf16 %v3633_v43, %v3633_v43  ;;  %v3623_v25 = vadd.f32 %v14726_v37, %v3478_v0  ;;  %v3682_v10 = vpack.c.bf16 %v3619_v45, %v3619_v45 }
 0x63a   : > { %v3639_v9 = vadd.f32 %v14726_v37, %v3479_v26  ;;  %v3696_v32 = vpack.c.bf16 %v3635_v42, %v3635_v42  ;;  %v3684_v8 = vpack.c.bf16 %v3621_v39, %v3621_v39  ;;  %v3698_v13 = vpack.c.bf16 %v3637_v36, %v3637_v36 }
 0x63b   : > { %v3798_v19 = vunpack.c.l.b16 %v3680_v55  ;;  %v3814_v21 = vunpack.c.l.b16 %v3694_v57  ;;  %v3724_v62 = vpack.c.bf16 %v3623_v25, %v3623_v25  ;;  %v3800_v18 = vunpack.c.l.b16 %v3682_v10 }
 0x63c   : > { %v3726_v47 = vpack.c.bf16 %v3639_v9, %v3639_v9  ;;  %v15117_v38 = vunpack.c.l.b16 %v3696_v32  ;;  %v15119_v30 = vunpack.c.l.b16 %v3684_v8  ;;  %v15121_v61 = vunpack.c.l.b16 %v3698_v13 }
 0x63d   : > { %v3862_v46 = vrot.slane %v3798_v19, 7  ;;  %v3890_v43 = vrot.slane %v3814_v21, 7  ;;  %v15123_v0 = vunpack.c.l.b16 %v3724_v62  ;;  %v3866_v26 = vrot.slane %v3800_v18, 5 }
 0x63e   : > { %v3480_v45 = vcombine.high %v14755_v40, %v14755_v40  ;;  %v15129_v57 = vrot.slane %v14755_v40, %v13819_v28  ;;  %v15131_v9 = vunpack.c.l.b16 %v3726_v47  ;;  %v18850_v36 = vrot.slane %v15053_v20, 6 }
 0x63f   : > { %v3863_v8 = vsel %vm1324_vm4, %v3862_v46, %v15051_v58  ;;  %v15137_v55 = vsel %vm1324_vm4, %v3890_v43, %v15057_v53  ;;  %v4049_v39 = vrot.slane %v3798_v19, 6  ;;  %v4053_v40 = vrot.slane %v3800_v18, 4 }
 0x640   : > { %v3865_v62 = vsel %vm1327_vm5, %v18850_v36, %v3863_v8  ;;  %v4077_v13 = vrot.slane %v3814_v21, 6  ;;  %v4057_v47 = vrot.slane %v15119_v30, 2  ;;  %v4235_v46 = vsel %vm1324_vm4, %v4234_v24, %v3798_v19 }
 0x641   : > { %v15145_v25 = vsel %vm1330_vm6, %v3866_v26, %v3865_v62  ;;  %v4050_v53 = vsel %vm1327_vm5, %v4049_v39, %v15077_v50  ;;  %v4236_v43 = vrot.slane %v3800_v18, 6  ;;  %v18851_v8 = vrot.slane %v15053_v20, 5 }
 0x642   : > { %v15157_v26 = vsel %vm1327_vm5, %v4077_v13, %v4076_v22  ;;  %v18852_v58 = vrot.slane %v15059_v6, 7  ;;  %v4240_v19 = vrot.slane %v15119_v30, 4  ;;  %v4262_v18 = vrot.slane %v15117_v38, 6 }
 0x643   : > { %v4052_v36 = vsel %vm1330_vm6, %v18851_v8, %v4050_v53  ;;  %v4237_v39 = vsel %vm1327_vm5, %v4236_v43, %v4235_v46  ;;  %v18853_v20 = vrot.slane %v15055_v29, 3  ;;  %v18854_v22 = vrot.slane %v15055_v29, 5 }
 0x644   : > { %v4261_v10 = vsel %vm1324_vm4, %v18852_v58, %v3814_v21  ;;  %v4054_v50 = vsel %vm1333_vm7, %v4053_v40, %v4052_v36  ;;  %v4244_v53 = vrot.slane %v15123_v0, 2  ;;  %v3378_v21 = vrot.slane %v3364_v4, %v13819_v28 }
 0x645   : > { %v4056_v24 = vsel %vm1336_vm8, %v18853_v20, %v4054_v50  ;;  %v4239_v13 = vsel %vm1330_vm6, %v18854_v22, %v4237_v39  ;;  %v15180_v46 = vsel %vm1327_vm5, %v4262_v18, %v4261_v10  ;;  %v3379_v43 = vcombine.high %v15107_v52, %v15107_v52 }
 0x646   : > { %v15176_v40 = vsel %vm1339_vm9, %v4057_v47, %v4056_v24  ;;  %v4241_v58 = vsel %vm1333_vm7, %v4240_v19, %v4239_v13  ;;  %18855 = vst [vmem:[#allocation58_spill] sm:$0xff] %v15180_v46  ;;  %v18856_v8 = vrot.slane %v15065_v41, 3  ;;  %v3380_v50 = vcombine.high %v3378_v21, %v3378_v21 }
 0x647   : > { %v3387_v39 = vrot.slane %v15107_v52, %v13819_v28  ;;  %v3394_v4 = vrot.slane %v3378_v21, %v13819_v28  ;;  %v3401_v18 = vrot.slane %v3379_v43, %v13819_v28 }
 0x648   : > { %v4243_v36 = vsel %vm1336_vm8, %v18856_v8, %v4241_v58  ;;  %v3408_v20 = vrot.slane %v3380_v50, %v13819_v28 }
 0x649   : > { %v15191_v47 = vsel %vm1339_vm9, %v4244_v53, %v4243_v36  ;;  %v3409_v24 = vcombine.high %v3387_v39, %v3387_v39  ;;  %v3410_v22 = vcombine.high %v3394_v4, %v3394_v4  ;;  %v3648_v13 = vadd.f32 %v14678_v15, %v3387_v39 }
 0x64a   : > { %18857 = vst [vmem:[#allocation59_spill] sm:$0xff] %v15191_v47  ;;  %v3411_v58 = vcombine.high %v3401_v18, %v3401_v18  ;;  %v3650_v52 = vadd.f32 %v14701_v54, %v3401_v18  ;;  %v3664_v21 = vadd.f32 %v14678_v15, %v3394_v4  ;;  %v3494_v53 = vrot.slane %v3480_v45, %v13819_v28 }
 0x64b   : > { %v3412_v8 = vcombine.high %v3408_v20, %v3408_v20  ;;  %v3652_v36 = vadd.f32 %v14681_v49, %v3409_v24  ;;  %v3666_v10 = vadd.f32 %v14701_v54, %v3408_v20  ;;  %v3668_v43 = vadd.f32 %v14681_v49, %v3410_v22 }
 0x64c   : > { %v3654_v50 = vadd.f32 %v14705_v2, %v3411_v58  ;;  %v3707_v19 = vpack.c.bf16 %v3648_v13, %v3648_v13  ;;  %v3709_v62 = vpack.c.bf16 %v3650_v52, %v3650_v52  ;;  %v4407_v32 = vpack.c.bf16 %v3664_v21, %v3664_v21 }
 0x64d   : > { %v3670_v39 = vadd.f32 %v14705_v2, %v3412_v8  ;;  %v3711_v42 = vpack.c.bf16 %v3652_v36, %v3652_v36  ;;  %v4409_v18 = vpack.c.bf16 %v3666_v10, %v3666_v10  ;;  %v4411_v46 = vpack.c.bf16 %v3668_v43, %v3668_v43 }
 0x64e   : > { %v3713_v15 = vpack.c.bf16 %v3654_v50, %v3654_v50  ;;  %v15206_v4 = vunpack.c.l.b16 %v3707_v19  ;;  %v15208_v45 = vunpack.c.l.b16 %v3709_v62  ;;  %v15210_v24 = vunpack.c.l.b16 %v4407_v32 }
 0x64f   : > { %v15212_v54 = vunpack.c.l.b16 %v3711_v42  ;;  %v4413_v49 = vpack.c.bf16 %v3670_v39, %v3670_v39  ;;  %v15214_v20 = vunpack.c.l.b16 %v4409_v18  ;;  %v15216_v22 = vunpack.c.l.b16 %v4411_v46 }
 0x650   : > { %v15218_v13 = vunpack.c.l.b16 %v3713_v15  ;;  %v4103_v2 = vrot.slane %v15206_v4, 7  ;;  %v3495_v10 = vcombine.high %v15129_v57, %v15129_v57  ;;  %v3496_v19 = vcombine.high %v3494_v53, %v3494_v53 }
 0x651   : > { %18858 = vst [vmem:[#allocation60_spill] sm:$0xff] %v15214_v20  ;;  %18859 = vst [vmem:[#allocation61_spill] sm:$0xff] %v15216_v22  ;;  %v4286_v52 = vrot.slane %v15208_v45, 7  ;;  %v4431_v8 = vrot.slane %v15210_v24, 7  ;;  %v15233_v43 = vunpack.c.l.b16 %v4413_v49  ;;  %v4658_v58 = vrot.slane %v15214_v20, 7 }
 0x652   : > { %v4104_v46 = vsel %vm1324_vm4, %v4103_v2, %v13821_v31  ;;  %v3503_v42 = vrot.slane %v15129_v57, %v13819_v28  ;;  %v3510_v49 = vrot.slane %v3494_v53, %v13819_v28  ;;  %v3517_v36 = vrot.slane %v3495_v10, %v13819_v28 }
 0x653   : > { %v15239_v18 = vsel %vm1324_vm4, %v4431_v8, %v13821_v31  ;;  %v3524_v50 = vrot.slane %v3496_v19, %v13819_v28  ;;  %v18860_v8 = vrot.slane %v14811_v35, 5  ;;  %v18861_v2 = vrot.slane %v15055_v29, 4 }
 0x654   : > { %v18862_v57 = vrot.slane %v14767_v14, 4  ;;  %v3525_v10 = vcombine.high %v3503_v42, %v3503_v42  ;;  %v3526_v21 = vcombine.high %v3510_v49, %v3510_v49  ;;  %v3527_v19 = vcombine.high %v3517_v36, %v3517_v36 }
 0x655   : > { %v3853_v15 = vsel %vm1330_vm6, %v18860_v8, %v14832_v5  ;;  %v3869_v32 = vsel %vm1333_vm7, %v18861_v2, %v15145_v25  ;;  %v3528_v62 = vcombine.high %v3524_v50, %v3524_v50  ;;  %v3649_v39 = vadd.f32 %v14686_v56, %v3503_v42 }
 0x656   : > { %v3883_v53 = vsel %vm1333_vm7, %v18862_v57, %v14837_v3  ;;  %v3651_v31 = vadd.f32 %v14722_v59, %v3517_v36  ;;  %v3665_v5 = vadd.f32 %v14686_v56, %v3510_v49  ;;  %v3667_v8 = vadd.f32 %v14722_v59, %v3524_v50 }
 0x657   : > { %v3653_v29 = vadd.f32 %v14689_v60, %v3525_v10  ;;  %v3655_v25 = vadd.f32 %v14726_v37, %v3527_v19  ;;  %v3669_v14 = vadd.f32 %v14689_v60, %v3526_v21  ;;  %v3671_v3 = vadd.f32 %v14726_v37, %v3528_v62 }
 0x658   : > { %v3708_v2 = vpack.c.bf16 %v3649_v39, %v3649_v39  ;;  %v3710_v57 = vpack.c.bf16 %v3651_v31, %v3651_v31  ;;  %v4408_v28 = vpack.c.bf16 %v3665_v5, %v3665_v5  ;;  %v4410_v22 = vpack.c.bf16 %v3667_v8, %v3667_v8 }
 0x659   : > { %v3712_v20 = vpack.c.bf16 %v3653_v29, %v3653_v29  ;;  %v3728_v42 = vpack.c.bf16 %v3655_v25, %v3655_v25  ;;  %v4412_v47 = vpack.c.bf16 %v3669_v14, %v3669_v14  ;;  %v4540_v36 = vpack.c.bf16 %v3671_v3, %v3671_v3 }
 0x65a   : > { %v3830_v49 = vunpack.c.l.b16 %v3708_v2  ;;  %v15271_v59 = vunpack.c.l.b16 %v3710_v57  ;;  %v3858_v50 = vrot.slane %v14770_v48, 2  ;;  %v4425_v37 = vunpack.c.l.b16 %v4408_v28 }
 0x65b   : > { %v15274_v10 = vunpack.c.l.b16 %v3712_v20  ;;  %v15276_v60 = vunpack.c.l.b16 %v3728_v42  ;;  %v15278_v62 = vunpack.c.l.b16 %v4410_v22  ;;  %v15280_v39 = vunpack.c.l.b16 %v4412_v47 }
 0x65c   : > { %v3918_v31 = vrot.slane %v3830_v49, 7  ;;  %v4105_v21 = vrot.slane %v3830_v49, 6  ;;  %v15282_v19 = vunpack.c.l.b16 %v4540_v36  ;;  %v3922_v5 = vrot.slane %v15271_v59, 5 }
 0x65d   : > { %v3926_v8 = vrot.slane %v15274_v10, 3  ;;  %v4287_v20 = vsel %vm1324_vm4, %v4286_v52, %v3830_v49  ;;  %v3930_v22 = vrot.slane %v15276_v60, 1  ;;  %v4288_v47 = vrot.slane %v15271_v59, 6 }
 0x65e   : > { %v3919_v28 = vsel %vm1324_vm4, %v3918_v31, %v15206_v4  ;;  %v15292_v25 = vsel %vm1327_vm5, %v4105_v21, %v4104_v46  ;;  %v18863_v14 = vrot.slane %v15208_v45, 6  ;;  %v4433_v52 = vrot.slane %v4425_v37, 6  ;;  %v18890_v4 = vld [vmem:[#allocation51_spill] sm:$0xff] }
 0x65f   : > { %v4289_v42 = vsel %vm1327_vm5, %v4288_v47, %v4287_v20  ;;  %v4546_v49 = vrot.slane %v4425_v37, 7  ;;  %v18864_v46 = vrot.slane %v15212_v54, 5  ;;  %v18865_v36 = vrot.slane %v14760_v27, 4 }
 0x660   : > { %v3921_v3 = vsel %vm1327_vm5, %v18863_v14, %v3919_v28  ;;  %v15310_v21 = vsel %vm1327_vm5, %v4433_v52, %v15239_v18  ;;  %v4659_v28 = vsel %vm1324_vm4, %v4658_v58, %v4425_v37  ;;  %v4660_v14 = vrot.slane %v15278_v62, 6 }
 0x661   : > { %v15306_v31 = vsel %vm1330_vm6, %v18864_v46, %v4289_v42  ;;  %v15316_v20 = vsel %vm1324_vm4, %v4546_v49, %v15210_v24  ;;  %v3855_v42 = vsel %vm1333_vm7, %v18865_v36, %v3853_v15  ;;  %v18866_v18 = vrot.slane %v14813_v16, 3 }
 0x662   : > { %v15324_v46 = vsel %vm1327_vm5, %v4660_v14, %v4659_v28  ;;  %v18867_v37 = vrot.slane %v15119_v30, 3  ;;  %v18868_v52 = vrot.slane %v14817_v7, 3  ;;  %v18869_v47 = vrot.slane %v15065_v41, 2 }
 0x663   : > { %v3857_v58 = vsel %vm1336_vm8, %v18866_v18, %v3855_v42  ;;  %v18870_v36 = vrot.slane %v14775_v33, 2  ;;  %v18871_v14 = vrot.slane %v15059_v6, 6  ;;  %v18875_v18 = vrot.slane %v15117_v38, 5 }
 0x664   : > { %v3871_v24 = vsel %vm1336_vm8, %v18867_v37, %v3869_v32  ;;  %v3885_v49 = vsel %vm1336_vm8, %v18868_v52, %v3883_v53  ;;  %v3859_v56 = vsel %vm1339_vm9, %v3858_v50, %v3857_v58  ;;  %v18872_v32 = vrot.slane %v14815_v51, 1 }
 0x665   : > { %v3873_v15 = vsel %vm1339_vm9, %v18869_v47, %v3871_v24  ;;  %v3887_v28 = vsel %vm1339_vm9, %v18870_v36, %v3885_v49  ;;  %v3893_v30 = vsel %vm1327_vm5, %v18871_v14, %v15137_v55  ;;  %v18873_v53 = vrot.slane %v15123_v0, 1  ;;  %v15383_v14 = vld [vmem:[#allocation17 + $0x10] sm:$0xff]  }
 0x666   : > { %v15349_v7 = vsel %vm1342_vm10, %v18872_v32, %v3859_v56  ;;  %v18874_v47 = vrot.slane %v14819_v63, 1  ;;  %v3895_v58 = vsel %vm1330_vm6, %v18875_v18, %v3893_v30  ;;  %v18877_v0 = vrot.slane %v15061_v17, 4 }
 0x667   : > { %v15354_v50 = vsel %vm1342_vm10, %v18873_v53, %v3873_v15  ;;  %v3946_v55 = vpack.c.b16 %v15349_v7, %v14697_v11  ;;  %v3900_v63 = vrot.slane %v15068_v34, 2  ;;  %v18878_v24 = vrot.slane %v15121_v61, 3 }
 0x668   : > { %v15359_v42 = vsel %vm1342_vm10, %v18874_v47, %v3887_v28  ;;  %v3897_v37 = vsel %vm1333_vm7, %v18877_v0, %v3895_v58  ;;  %v3902_v49 = vrot.slane %v15131_v9, 1  ;;  %v18879_v15 = vrot.slane %v14976_v12, 5  ;;  %v18881_v58 = vld [vmem:[#allocation48_spill] sm:$0xff] }
 0x669   : > { %v15368_v56 = vpack.c.b16 %v15359_v42, %v15354_v50  ;;  %v3899_v52 = vsel %vm1336_vm8, %v18878_v24, %v3897_v37  ;;  %v3914_v28 = vrot.slane %v14909_v44, 2  ;;  %12339 = vmatprep.mubr.msk.bf16.mxu0 %vm2892_vm12, %v3946_v55  ;;  %v18880_v32 = vrot.slane %v14900_v23, 4  ;;  %v18884_v24 = vld [vmem:[#allocation53_spill] sm:$0xff] }
 0x66a   : > { %v3909_v36 = vsel %vm1330_vm6, %v18879_v15, %v15003_v1  ;;  %v3901_v30 = vsel %vm1339_vm9, %v3900_v63, %v3899_v52  ;;  %v3923_v47 = vsel %vm1330_vm6, %v3922_v5, %v3921_v3  ;;  %v3928_v18 = vrot.slane %v15218_v13, 2  ;;  %v18885_v52 = vld [vmem:[#allocation45_spill] sm:$0xff] }
 0x66b   : > { %18876 = vst [vmem:[#allocation62_spill] sm:$0xff] %v15368_v56  ;;  %v3911_v53 = vsel %vm1333_vm7, %v18880_v32, %v3909_v36  ;;  %12340 = vmatmul.mubr.msk.bf16.vlgmr.msra.gmra.mrb[52].mxu0 %vm2892_vm12, %v15368_v56  ;;  %v15395_v1 = vsel %vm1342_vm10, %v3902_v49, %v3901_v30  ;;  %v18882_v0 = vrot.slane %v18881_v58, 3  ;;  %v18883_v37 = vrot.slane %v15212_v54, 4  ;;  %v18887_v30 = vld [vmem:[#allocation49_spill] sm:$0xff]  ;;  %v18894_v36 = vld [vmem:[#allocation47_spill] sm:$0xff] }
 0x66c   : > { %v18886_v15 = vrot.slane %v18885_v52, 6  ;;  %v18888_v32 = vrot.slane %v18887_v30, 5  ;;  %v3942_v57 = vrot.slane %v18894_v36, 2  ;;  %v4045_v29 = vrot.slane %v14770_v48, 1 }
 0x66d   : > { %v3913_v55 = vsel %vm1336_vm8, %v18882_v0, %v3911_v53  ;;  %v3925_v63 = vsel %vm1333_vm7, %v18883_v37, %v3923_v47  ;;  %v18889_v0 = vld [vmem:[#allocation39_spill] sm:$0xff]  ;;  %v18891_v47 = vrot.slane %v18890_v4, 1  ;;  %v18901_v56 = vrot.slane %v15065_v41, 1 }
 0x66e   : > { %v3935_v5 = vsel %vm1327_vm5, %v18886_v15, %v18884_v24  ;;  %v3915_v3 = vsel %vm1339_vm9, %v3914_v28, %v3913_v55  ;;  %v3927_v49 = vsel %vm1336_vm8, %v3926_v8, %v3925_v63  ;;  %12348 = vmatpush3.bf16.msra.mxu0 %v18889_v0  ;;  %v18892_v15 = vld [vmem:[#allocation46_spill] sm:$0xff]  ;;  %v18905_v41 = vrot.slane %v15059_v6, 5 }
 0x66f   : > { %v3937_v53 = vsel %vm1330_vm6, %v18888_v32, %v3935_v5  ;;  %v15418_v37 = vsel %vm1342_vm10, %v18891_v47, %v3915_v3  ;;  %v3929_v24 = vsel %vm1339_vm9, %v3928_v18, %v3927_v49  ;;  %v18893_v28 = vrot.slane %v18892_v15, 4  ;;  %12357 = vmatprep.subr.bf16.mxu0 %v15383_v14  ;;  %v18895_v5 = vld [vmem:[#allocation50_spill] sm:$0xff]  ;;  %v18897_v18 = vld [vmem:[#allocation52_spill] sm:$0xff] }
 0x670   : > { %v15428_v8 = vpack.c.b16 %v15418_v37, %v15395_v1  ;;  %v15431_v63 = vsel %vm1342_vm10, %v3930_v22, %v3929_v24  ;;  %v18896_v3 = vrot.slane %v18895_v5, 3  ;;  %v3944_v49 = vrot.slane %v18897_v18, 1  ;;  %v18899_v47 = vld [vmem:[#allocation38_spill] sm:$0xff] }
 0x671   : > { %v3939_v55 = vsel %vm1333_vm7, %v18893_v28, %v3937_v53  ;;  %v18898_v53 = vld [vmem:[#allocation40_spill] sm:$0xff]  ;;  %v18900_v28 = vrot.slane %v18899_v47, 5  ;;  %v15447_v22 = vsel %vm1342_vm10, %v18901_v56, %v15176_v40  ;;  %v4080_v40 = vsel %vm1330_vm6, %v18905_v41, %v15157_v26 }
 0x672   : > { %v3941_v32 = vsel %vm1336_vm8, %v18896_v3, %v3939_v55  ;;  %12343 = vmatprep.mubr.msk.bf16.mxu0 %vm2892_vm12, %v15428_v8  ;;  %v18903_v3 = vld [vmem:[#allocation42_spill] sm:$0xff]  ;;  %v18908_v6 = vrot.slane %v14813_v16, 2  ;;  %v18909_v47 = vrot.slane %v15061_v17, 3 }
 0x673   : > { %v3943_v0 = vsel %vm1339_vm9, %v3942_v57, %v3941_v32  ;;  %v4038_v2 = vsel %vm1330_vm6, %v18900_v28, %v18898_v53  ;;  %v18902_v57 = vrot.slane %v14811_v35, 4  ;;  %v18904_v32 = vrot.slane %v14775_v33, 1 }
 0x674   : > { %v15452_v24 = vsel %vm1342_vm10, %v3944_v49, %v3943_v0  ;;  %v18906_v49 = vrot.slane %v14760_v27, 3  ;;  %v18907_v33 = vrot.slane %v15117_v38, 4  ;;  %v4085_v27 = vrot.slane %v15121_v61, 2  ;;  %v18910_v38 = vld [vmem:[#allocation54_spill] sm:$0xff] }
 0x675   : > { %v4040_v55 = vsel %vm1333_vm7, %v18902_v57, %v4038_v2  ;;  %v15461_v53 = vsel %vm1342_vm10, %v18904_v32, %v18903_v3  ;;  %v15469_v56 = vpack.c.b16 %v15452_v24, %v15431_v63  ;;  %v4087_v57 = vrot.slane %v15068_v34, 1  ;;  %v18911_v3 = vld [vmem:[#allocation44_spill] sm:$0xff] }
 0x676   : > { %v4042_v35 = vsel %vm1336_vm8, %v18906_v49, %v4040_v55  ;;  %v15476_v2 = vpack.c.b16 %v15461_v53, %v15447_v22  ;;  %v4082_v0 = vsel %vm1333_vm7, %v18907_v33, %v4080_v40  ;;  %v18912_v32 = vrot.slane %v18911_v3, 5 }
 0x677   : > { %v4044_v26 = vsel %vm1339_vm9, %v18908_v6, %v4042_v35  ;;  %v4084_v28 = vsel %vm1336_vm8, %v18909_v47, %v4082_v0  ;;  %12344 = vmatmul.mubr.msk.bf16.gmra.mrb[56].mxu0 %vm2892_vm12, %v15469_v56  ;;  %v4101_v40 = vrot.slane %v14909_v44, 1  ;;  %v18913_v49 = vrot.slane %v15208_v45, 5 }
 0x678   : > { %v15492_v55 = vsel %vm1342_vm10, %v4045_v29, %v4044_v26  ;;  %v4094_v41 = vsel %vm1330_vm6, %v18912_v32, %v18910_v38  ;;  %v4086_v0 = vsel %vm1339_vm9, %v4085_v27, %v4084_v28  ;;  %v18914_v29 = vrot.slane %v14976_v12, 4 }
 0x679   : > { %v4108_v35 = vsel %vm1330_vm6, %v18913_v49, %v15292_v25  ;;  %v4131_v33 = vpack.c.b16 %v15492_v55, %v14697_v11  ;;  %v18915_v26 = vrot.slane %v15271_v59, 4  ;;  %v15513_v38 = vsel %vm1342_vm10, %v4087_v57, %v4086_v0 }
 0x67a   : > { %v4096_v6 = vsel %vm1333_vm7, %v18914_v29, %v4094_v41  ;;  %v18916_v45 = vrot.slane %v14900_v23, 3  ;;  %v18917_v3 = vrot.slane %v15212_v54, 3  ;;  %v4115_v28 = vrot.slane %v15218_v13, 1  ;;  %v18920_v41 = vld [vmem:[#allocation55_spill] sm:$0xff] }
 0x67b   : > { %v4110_v47 = vsel %vm1333_vm7, %v18915_v26, %v4108_v35  ;;  %12349 = vmatprep.mubr.msk.bf16.mxu0 %vm2892_vm12, %v4131_v33  ;;  %v18918_v12 = vrot.slane %v18881_v58, 2  ;;  %v4446_v27 = vpack.c.b16 %v15513_v38, %v15461_v53  ;;  %v18919_v57 = vrot.slane %v15274_v10, 2  ;;  %v12851_v53 = vld [vmem:[#allocation17 + $0x38] sm:$0xff]  }
 0x67c   : > { %v4098_v25 = vsel %vm1336_vm8, %v18916_v45, %v4096_v6  ;;  %v4112_v32 = vsel %vm1336_vm8, %v18917_v3, %v4110_v47  ;;  %v18921_v54 = vrot.slane %v18885_v52, 5  ;;  %v18922_v0 = vrot.slane %v18887_v30, 4  ;;  %v18924_v45 = vld [vmem:[#allocation41_spill] sm:$0xff] }
 0x67d   : > { %v4100_v59 = vsel %vm1339_vm9, %v18918_v12, %v4098_v25  ;;  %v4114_v23 = vsel %vm1339_vm9, %v18919_v57, %v4112_v32  ;;  %v4127_v6 = vrot.slane %v18895_v5, 2  ;;  %v18923_v52 = vrot.slane %v18892_v15, 3  ;;  %v18927_v12 = vld [vmem:[#allocation59_spill] sm:$0xff] }
 0x67e   : > { %v4122_v49 = vsel %vm1330_vm6, %v18921_v54, %v18920_v41  ;;  %v15536_v35 = vsel %vm1342_vm10, %v4101_v40, %v4100_v59  ;;  %v15539_v33 = vsel %vm1342_vm10, %v4115_v28, %v4114_v23  ;;  %v4129_v40 = vrot.slane %v18894_v36, 1  ;;  %v18928_v59 = vld [vmem:[#allocation35_spill] sm:$0xff]  ;;  %v15571_v54 = vld [vmem:[#allocation17 + $0x18] sm:$0xff]  }
 0x67f   : > { %v4124_v29 = vsel %vm1333_vm7, %v18922_v0, %v4122_v49  ;;  %v15547_v26 = vpack.c.b16 %v15536_v35, %v15513_v38  ;;  %v18925_v25 = vrot.slane %v14813_v16, 4  ;;  %v18926_v32 = vrot.slane %v14770_v48, 3  ;;  %v18929_v23 = vld [vmem:[#allocation43_spill] sm:$0xff]  ;;  %12350 = vmatmul.mubr.msk.bf16.vlgmr.msra.gmra.mrb[52].mxu0 %vm2892_vm12, %v15476_v2  ;;  %v18960_v38 = vld [vmem:[#allocation62_spill] sm:$0xff] }
 0x680   : > { %v4126_v47 = vsel %vm1336_vm8, %v18923_v52, %v4124_v29  ;;  %v15564_v57 = vsel %vm1342_vm10, %v18928_v59, %v18927_v12  ;;  %v15569_v41 = vsel %vm1342_vm10, %v18928_v59, %v18929_v23  ;;  %v18930_v49 = vrot.slane %v14815_v51, 2  ;;  %v18931_v29 = vld [vmem:[#allocation58_spill] sm:$0xff]  ;;  %12358 = vmatpush3.bf16.msra.mxu0 %v15383_v14 }
 0x681   : > { %v4228_v3 = vsel %vm1333_vm7, %v18925_v25, %v18924_v45  ;;  %v4128_v30 = vsel %vm1339_vm9, %v4127_v6, %v4126_v47  ;;  %v15581_v0 = vpack.c.b16 %v15569_v41, %v15564_v57  ;;  %v18932_v6 = vrot.slane %v15061_v17, 5  ;;  %v18934_v25 = vld [vmem:[#allocation56_spill] sm:$0xff]  ;;  %12353 = vmatprep.mubr.msk.bf16.mxu0 %vm2892_vm12, %v15547_v26  ;;  %12367 = vmatprep.subr.bf16.mxu0 %v15571_v54 }
 0x682   : > { %v4230_v28 = vsel %vm1336_vm8, %v18926_v32, %v4228_v3  ;;  %v15574_v16 = vsel %vm1342_vm10, %v4129_v40, %v4128_v30  ;;  %v18933_v40 = vrot.slane %v15121_v61, 4  ;;  %v18935_v17 = vrot.slane %v18881_v58, 4 }
 0x683   : > { %v4232_v48 = vsel %vm1339_vm9, %v18930_v49, %v4230_v28  ;;  %v4265_v52 = vsel %vm1330_vm6, %v18932_v6, %v18931_v29  ;;  %v15591_v47 = vpack.c.b16 %v15574_v16, %v15539_v33  ;;  %v4664_v30 = vrot.slane %v15280_v39, 4 }
 0x684   : > { %v15595_v51 = vsel %vm1342_vm10, %v18928_v59, %v4232_v48  ;;  %v4267_v45 = vsel %vm1333_vm7, %v18933_v40, %v4265_v52  ;;  %v4280_v3 = vsel %vm1333_vm7, %v18935_v17, %v18934_v25  ;;  %v18936_v28 = vrot.slane %v15068_v34, 3  ;;  %v18941_v34 = vld [vmem:[#allocation57_spill] sm:$0xff] }
 0x685   : > { %v4312_v32 = vpack.c.b16 %v15595_v51, %v14697_v11  ;;  %v18937_v12 = vrot.slane %v14909_v44, 3  ;;  %v18938_v23 = vrot.slane %v15131_v9, 2  ;;  %v18939_v48 = vrot.slane %v18890_v4, 2 }
 0x686   : > { %v4269_v61 = vsel %vm1336_vm8, %v18936_v28, %v4267_v45  ;;  %v18940_v6 = vrot.slane %v15274_v10, 4  ;;  %v18942_v52 = vrot.slane %v18892_v15, 5  ;;  %v18943_v40 = vrot.slane %v15218_v13, 3 }
 0x687   : > { %v4282_v58 = vsel %vm1336_vm8, %v18937_v12, %v4280_v3  ;;  %v4271_v49 = vsel %vm1339_vm9, %v18938_v23, %v4269_v61  ;;  %v18945_v17 = vrot.slane %v15276_v60, 2  ;;  %v18946_v28 = vrot.slane %v18894_v36, 3  ;;  %v18948_v36 = vld [vmem:[#allocation60_spill] sm:$0xff]  ;;  %12354 = vmatmul.mubr.msk.bf16.gmra.mrb[56].mxu0 %vm2892_vm12, %v15591_v47 }
 0x688   : > { %v4284_v29 = vsel %vm1339_vm9, %v18939_v48, %v4282_v58  ;;  %v4293_v14 = vsel %vm1333_vm7, %v18940_v6, %v15306_v31  ;;  %v4304_v44 = vsel %vm1330_vm6, %v18942_v52, %v18941_v34  ;;  %v15633_v9 = vsel %vm1342_vm10, %v18928_v59, %v4271_v49  ;;  %12359 = vmatprep.mubr.msk.bf16.mxu0 %vm2892_vm12, %v4312_v32 }
 0x689   : > { %v15637_v4 = vsel %vm1342_vm10, %v18928_v59, %v4284_v29  ;;  %v4295_v10 = vsel %vm1336_vm8, %v18943_v40, %v4293_v14  ;;  %v18944_v31 = vrot.slane %v18895_v5, 4  ;;  %v4672_v25 = vpack.c.b16 %v15633_v9, %v15569_v41 }
 0x68a   : > { %v15647_v45 = vpack.c.b16 %v15637_v4, %v15633_v9  ;;  %v4297_v3 = vsel %vm1339_vm9, %v18945_v17, %v4295_v10  ;;  %v18947_v61 = vrot.slane %v18897_v18, 2  ;;  %v4445_v58 = vpack.c.b16 %v15447_v22, %v15492_v55 }
 0x68b   : > { %v4306_v15 = vsel %vm1333_vm7, %v18944_v31, %v4304_v44  ;;  %v4298_v5 = vsel %vm1342_vm10, %v18928_v59, %v4297_v3  ;;  %v4447_v41 = vpack.c.b16 %v15539_v33, %v15536_v35  ;;  %v18949_v23 = vrot.slane %v18948_v36, 5 }
 0x68c   : > { %v4308_v13 = vsel %vm1336_vm8, %v18946_v28, %v4306_v15  ;;  %v4441_v48 = vrot.slane %v15280_v39, 2  ;;  %v4560_v18 = vpack.c.b16 %v15354_v50, %v15349_v7  ;;  %v18950_v22 = vrot.slane %v15278_v62, 4 }
 0x68d   : > { %v4310_v12 = vsel %vm1339_vm9, %v18947_v61, %v4308_v13  ;;  %v4436_v49 = vsel %vm1330_vm6, %v18949_v23, %v15310_v21  ;;  %v4562_v35 = vpack.c.b16 %v15431_v63, %v15418_v37  ;;  %v18951_v33 = vrot.slane %v18948_v36, 6  ;;  %v18952_v21 = vld [vmem:[#allocation61_spill] sm:$0xff] }
 0x68e   : > { %v4311_v60 = vsel %vm1342_vm10, %v18928_v59, %v4310_v12  ;;  %v4438_v55 = vsel %vm1333_vm7, %v18950_v22, %v4436_v49  ;;  %v18953_v14 = vrot.slane %v18952_v21, 3  ;;  %v4443_v50 = vrot.slane %v15233_v43, 1  ;;  %v12848_v12 = vld [vmem:[#allocation17 + $0x20] sm:$0xff]  }
 0x68f   : > { %v15675_v29 = vpack.c.b16 %v4311_v60, %v4298_v5  ;;  %v4549_v6 = vsel %vm1327_vm5, %v18951_v33, %v15316_v20  ;;  %v18954_v34 = vrot.slane %v15278_v62, 5  ;;  %v4556_v37 = vrot.slane %v15233_v43, 2  ;;  %12360 = vmatmul.mubr.msk.bf16.vlgmr.msra.gmra.mrb[52].mxu0 %vm2892_vm12, %v15581_v0 }
 0x690   : > { %v4440_v7 = vsel %vm1336_vm8, %v18953_v14, %v4438_v55  ;;  %v18955_v20 = vrot.slane %v18952_v21, 4  ;;  %v4671_v9 = vpack.c.b16 %v15564_v57, %v15595_v51  ;;  %v4673_v40 = vpack.c.b16 %v4298_v5, %v15637_v4  ;;  %12363 = vmatprep.mubr.msk.bf16.mxu0 %vm2892_vm12, %v15647_v45  ;;  %12368 = vmatpush3.bf16.msra.mxu0 %v15571_v54 }
 0x691   : > { %v4551_v52 = vsel %vm1330_vm6, %v18954_v34, %v4549_v6  ;;  %v4442_v63 = vsel %vm1339_vm9, %v4441_v48, %v4440_v7  ;;  %v18956_v62 = vrot.slane %v15280_v39, 3  ;;  %v4558_v15 = vrot.slane %v15282_v19, 1  ;;  %12377 = vmatprep.subr.bf16.mxu0 %v12848_v12 }
 0x692   : > { %v4553_v44 = vsel %vm1333_vm7, %v18955_v20, %v4551_v52  ;;  %v4444_v10 = vsel %vm1342_vm10, %v4443_v50, %v4442_v63  ;;  %v18957_v32 = vrot.slane %v18952_v21, 5  ;;  %v4668_v3 = vrot.slane %v15282_v19, 2 }
 0x693   : > { %v4555_v31 = vsel %vm1336_vm8, %v18956_v62, %v4553_v44  ;;  %v4448_v28 = vpack.c.b16 %v4444_v10, %v15574_v16  ;;  %v18958_v39 = vrot.slane %v15233_v43, 3  ;;  %v12849_v43 = vld [vmem:[#allocation17 + $0x28] sm:$0xff]   ;;  %v18959_v54 = vpack.c.b16 %v15395_v1, %v15359_v42  ;;  %v12852_v42 = vld [vmem:[#allocation17 + $0x40] sm:$0xff]  }
 0x694   : > { %v4663_v17 = vsel %vm1330_vm6, %v18957_v32, %v15324_v46  ;;  %v4557_v57 = vsel %vm1339_vm9, %v4556_v37, %v4555_v31  ;;  %v4769_v1 = vpack.c.b16 %v14697_v11, %v4444_v10 }
 0x695   : > { %v4665_v51 = vsel %vm1333_vm7, %v4664_v30, %v4663_v17  ;;  %v4559_v4 = vsel %vm1342_vm10, %v4558_v15, %v4557_v57 }
 0x696   : > { %v4667_v13 = vsel %vm1336_vm8, %v18958_v39, %v4665_v51  ;;  %v4563_v5 = vpack.c.b16 %v4559_v4, %v15452_v24  ;;  %v12850_v24 = vld [vmem:[#allocation17 + $0x30] sm:$0xff]  }
 0x697   : > { %v4669_v61 = vsel %vm1339_vm9, %v4668_v3, %v4667_v13  ;;  %12364 = vmatmul.mubr.msk.bf16.gmra.mrb[56].mxu0 %vm2892_vm12, %v15675_v29 }
 0x698   : > { %v4670_v19 = vsel %vm1342_vm10, %v18928_v59, %v4669_v61  ;;  %12369 = vmatprep.mubr.msk.bf16.mxu0 %vm2892_vm12, %v4445_v58 }
 0x699   : > { %v4674_v46 = vpack.c.b16 %v4670_v19, %v4311_v60 }
 0x69f   : > { %12370 = vmatmul.mubr.msk.bf16.vlgmr.msra.gmra.mrb[52].mxu0 %vm2892_vm12, %v4446_v27  ;;  %v4941_v27 = vpack.c.b16 %v14697_v11, %v4670_v19 }
 0x6a0   : > { %12373 = vmatprep.mubr.msk.bf16.mxu0 %vm2892_vm12, %v4447_v41  ;;  %12378 = vmatpush3.bf16.msra.mxu0 %v12848_v12 }
 0x6a1   : > { %12387 = vmatprep.subr.bf16.mxu0 %v12849_v43 }
 0x6a7   : > { %12374 = vmatmul.mubr.msk.bf16.gmra.mrb[56].mxu0 %vm2892_vm12, %v4448_v28 }
 0x6a8   : > { %12379 = vmatprep.mubr.msk.bf16.mxu0 %vm2892_vm12, %v4560_v18 }
 0x6af   : > { %12380 = vmatmul.mubr.msk.bf16.vlgmr.msra.gmra.mrb[52].mxu0 %vm2892_vm12, %v18959_v54 }
 0x6b0   : > { %12383 = vmatprep.mubr.msk.bf16.mxu0 %vm2892_vm12, %v4562_v35  ;;  %12388 = vmatpush3.bf16.msra.mxu0 %v12849_v43 }
 0x6b1   : > { %12397 = vmatprep.subr.bf16.mxu0 %v12850_v24 }
 0x6b7   : > { %12384 = vmatmul.mubr.msk.bf16.gmra.mrb[56].mxu0 %vm2892_vm12, %v4563_v5 }
 0x6b8   : > { %12389 = vmatprep.mubr.msk.bf16.mxu0 %vm2892_vm12, %v4671_v9 }
 0x6bf   : > { %12390 = vmatmul.mubr.msk.bf16.vlgmr.msra.gmra.mrb[52].mxu0 %vm2892_vm12, %v4672_v25 }
 0x6c0   : > { %12393 = vmatprep.mubr.msk.bf16.mxu0 %vm2892_vm12, %v4673_v40  ;;  %12398 = vmatpush3.bf16.msra.mxu0 %v12850_v24  ;;  %v15819_v24 = vld [vmem:[#allocation20] sm:$0xff]  }
 0x6c1   : > { %12407 = vmatprep.subr.bf16.mxu0 %v12851_v53 }
 0x6c7   : > { %12394 = vmatmul.mubr.msk.bf16.gmra.mrb[56].mxu0 %vm2892_vm12, %v4674_v46 }
 0x6c8   : > { %12399 = vmatprep.mubr.msk.bf16.mxu0 %vm2892_vm12, %v15476_v2  ;;  %v4855_v2 = vpack.c.b16 %v14697_v11, %v4559_v4 }
 0x6cf   : > { %12400 = vmatmul.mubr.msk.bf16.vlgmr.msra.gmra.mrb[52].mxu0 %vm2892_vm12, %v15547_v26 }
 0x6d0   : > { %12403 = vmatprep.mubr.msk.bf16.mxu0 %vm2892_vm12, %v15591_v47  ;;  %12408 = vmatpush3.bf16.msra.mxu0 %v12851_v53 }
 0x6d1   : > { %12417 = vmatprep.subr.bf16.mxu0 %v12852_v42 }
 0x6d7   : > { %12404 = vmatmul.mubr.msk.bf16.gmra.mrb[56].mxu0 %vm2892_vm12, %v4769_v1 }
 0x6d8   : > { %12409 = vmatprep.mubr.msk.bf16.mxu0 %vm2892_vm12, %v18960_v38 }
 0x6df   : > { %12410 = vmatmul.mubr.msk.bf16.vlgmr.msra.gmra.mrb[52].mxu0 %vm2892_vm12, %v15428_v8  ;;  %v12853_v8 = vld [vmem:[#allocation20 + $0x8] sm:$0xff]  }
 0x6e0   : > { %12413 = vmatprep.mubr.msk.bf16.mxu0 %vm2892_vm12, %v15469_v56  ;;  %12418 = vmatpush3.bf16.msra.mxu0 %v12852_v42  ;;  %v11944_v56 = vld [vmem:[#allocation18] ss:$0 sm:$0xff] }
 0x6e1   : > { %12427 = vmatprep.subr.bf16.mxu1 %v12853_v8 }
 0x6e2   : > { %12428 = vmatpush3.bf16.msra.mxu1 %v12853_v8 }
 0x6e3   : > { %12437 = vmatprep.subr.bf16.mxu1 %v15819_v24 }
 0x6e7   : > { %12414 = vmatmul.mubr.msk.bf16.gmra.mrb[56].mxu0 %vm2892_vm12, %v4855_v2 }
 0x6e8   : > { %12419 = vmatprep.mubr.msk.bf16.mxu0 %vm2892_vm12, %v15581_v0 }
 0x6ef   : > { %12420 = vmatmul.mubr.msk.bf16.vlgmr.msra.gmra.mrb[52].mxu0 %vm2892_vm12, %v15647_v45 }
 0x6f0   : > { %12423 = vmatprep.mubr.msk.bf16.mxu0 %vm2892_vm12, %v15675_v29 }
 0x6f7   : > { %12424 = vmatmul.mubr.msk.bf16.gmra.mrb[56].mxu0 %vm2892_vm12, %v4941_v27 }
 0x7c2   : > { %v12421_v26 = vpop.f32.mrb[52].mxu0 }
 0x7c3   : > { %v4985_v16 = vpop.f32.mrb[53].mxu0  ;;  %v15774_v47 = vadd.f32 %v12421_v26, %v11944_v56 }
 0x7c4   : > { %v15776_v30 = vadd.f32 %v11944_v56, %v4985_v16  ;;  %v12422_v0 = vpop.f32.mrb[54].mxu0 }
 0x7c5   : > { %v4988_v25 = vpop.f32.mrb[55].mxu0  ;;  %v15780_v58 = vadd.f32 %v12422_v0, %v11944_v56  ;;  %v5063_v60 = vmul.f32 %v15774_v47, %v15774_v47  ;;  %v5042_v18 = vsel %vm2892_vm12, %v15774_v47, 0.0 }
 0x7c6   : > { %v5061_v45 = vmul.f32 %v15776_v30, %v15776_v30  ;;  %v15782_v41 = vadd.f32 %v11944_v56, %v4988_v25  ;;  %v5039_v36 = vsel %vm2892_vm12, %v15776_v30, 0.0 }
 0x7c7   : > { %v5064_v22 = vmul.f32 %v15780_v58, %v15780_v58  ;;  %v5072_v14 = vsel %vm2892_vm12, %v5063_v60, 0.0  ;;  %v5044_v7 = vsel %vm2892_vm12, %v15780_v58, 0.0 }
 0x7c8   : > { %v5040_v23 = vsel %vm2892_vm12, %v15782_v41, 0.0  ;;  %v5062_v49 = vmul.f32 %v15782_v41, %v15782_v41  ;;  %v5069_v29 = vsel %vm2892_vm12, %v5061_v45, 0.0 }
 0x7c9   : > { %v5041_v48 = vadd.f32 %v5040_v23, %v5039_v36  ;;  %v5074_v44 = vsel %vm2892_vm12, %v5064_v22, 0.0 }
 0x7ca   : > { %v5070_v55 = vsel %vm2892_vm12, %v5062_v49, 0.0  ;;  %v12425_v35 = vpop.f32.mrb[56].mxu0 }
 0x7cb   : > { %v5043_v33 = vadd.f32 %v5042_v18, %v5041_v48  ;;  %v5071_v6 = vadd.f32 %v5070_v55, %v5069_v29  ;;  %v5001_v21 = vpop.f32.mrb[57].mxu0  ;;  %v15803_v37 = vadd.f32 %v12425_v35, %v11944_v56 }
 0x7cc   : > { %v15801_v50 = vadd.f32 %v11944_v56, %v5001_v21  ;;  %v12426_v34 = vpop.f32.mrb[58].mxu0 }
 0x7cd   : > { %v5073_v52 = vadd.f32 %v5072_v14, %v5071_v6  ;;  %v5045_v63 = vadd.f32 %v5044_v7, %v5043_v33  ;;  %v5004_v20 = vpop.f32.mrb[59].mxu0  ;;  %v5038_v15 = vadd.f32 %v12426_v34, %v11944_v56  ;;  %v5067_v3 = vmul.f32 %v15803_v37, %v15803_v37 }
 0x7ce   : > { %v5046_v9 = vsel %vm2892_vm12, %v15801_v50, 0.0  ;;  %v5065_v40 = vmul.f32 %v15801_v50, %v15801_v50  ;;  %v5036_v10 = vadd.f32 %v11944_v56, %v5004_v20  ;;  %v5050_v4 = vsel %vm2892_vm12, %v15803_v37, 0.0 }
 0x7cf   : > { %v5047_v62 = vadd.f32 %v5046_v9, %v5045_v63  ;;  %v5075_v31 = vadd.f32 %v5074_v44, %v5073_v52  ;;  %v5068_v39 = vmul.f32 %v5038_v15, %v5038_v15  ;;  %v5052_v61 = vsel %vm2892_vm12, %v5038_v15, 0.0 }
 0x7d0   : > { %v5076_v32 = vsel %vm2892_vm12, %v5065_v40, 0.0  ;;  %v5048_v17 = vsel %vm2892_vm12, %v5036_v10, 0.0  ;;  %v5066_v51 = vmul.f32 %v5036_v10, %v5036_v10  ;;  %v5080_v19 = vsel %vm2892_vm12, %v5067_v3, 0.0 }
 0x7d1   : > { %v5077_v28 = vadd.f32 %v5076_v32, %v5075_v31  ;;  %v5049_v57 = vadd.f32 %v5048_v17, %v5047_v62  ;;  %v5082_v54 = vsel %vm2892_vm12, %v5068_v39, 0.0  ;;  %v18962_v32 = vld [vmem:[#allocation33_spill] sm:$0xff] }
 0x7d2   : > { %v5078_v5 = vsel %vm2892_vm12, %v5066_v51, 0.0 }
 0x7d3   : > { %v5051_v13 = vadd.f32 %v5050_v4, %v5049_v57  ;;  %v5079_v12 = vadd.f32 %v5078_v5, %v5077_v28 }
 0x7d5   : > { %v5053_v46 = vadd.f32 %v5052_v61, %v5051_v13  ;;  %v5081_v43 = vadd.f32 %v5080_v19, %v5079_v12 }
 0x7d7   : > { %v5054_v53 = vrot.slane %v5053_v46, 4  ;;  %v5083_v42 = vadd.f32 %v5082_v54, %v5081_v43 }
 0x7d9   : > { %v5055_v1 = vadd.f32 %v5054_v53, %v5053_v46  ;;  %v5084_v38 = vrot.slane %v5083_v42, 4 }
 0x7db   : > { %v5056_v2 = vrot.slane %v5055_v1, 2  ;;  %v5085_v27 = vadd.f32 %v5084_v38, %v5083_v42 }
 0x7dd   : > { %v5057_v8 = vadd.f32 %v5056_v2, %v5055_v1  ;;  %v5086_v56 = vrot.slane %v5085_v27, 2 }
 0x7df   : > { %v5058_v26 = vrot.slane %v5057_v8, 1  ;;  %v5087_v16 = vadd.f32 %v5086_v56, %v5085_v27 }
 0x7e1   : > { %v5059_v0 = vadd.f32 %v5058_v26, %v5057_v8  ;;  %v5088_v25 = vrot.slane %v5087_v16, 1 }
 0x7e3   : > { %v5060_v45 = vmul.f32 0.015625, %v5059_v0  ;;  %v5089_v60 = vadd.f32 %v5088_v25, %v5087_v16 }
 0x7e5   : > { %v5091_v36 = vmul.f32 %v5060_v45, %v5060_v45  ;;  %v5099_v23 = vsub.f32 %v5036_v10, %v5060_v45  ;;  %v5094_v49 = vsub.f32 %v15776_v30, %v5060_v45  ;;  %v5095_v48 = vsub.f32 %v15782_v41, %v5060_v45 }
 0x7e6   : > { %v5090_v18 = vmul.f32 0.015625, %v5089_v60  ;;  %v5096_v29 = vsub.f32 %v15774_v47, %v5060_v45  ;;  %v5097_v22 = vsub.f32 %v15780_v58, %v5060_v45  ;;  %v5098_v55 = vsub.f32 %v15801_v50, %v5060_v45 }
 0x7e7   : > { %v5100_v35 = vsub.f32 %v15803_v37, %v5060_v45  ;;  %v5101_v33 = vsub.f32 %v5038_v15, %v5060_v45 }
 0x7e8   : > { %v5092_v6 = vsub.f32 %v5090_v18, %v5091_v36 }
 0x7ea   : > { %v5093_v21 = vmax.f32 %v5092_v6, 0.0 }
 0x7ec   : > { %v5102_v14 = vadd.f32 1e-05, %v5093_v21 }
 0x7ee   : > { %12870 = vrsqrt.f32 %v5102_v14 }
 0x7f8   : > { %v12871_v7 = vpop.eup %12870 }
 0x7f9   : > { %v5109_v34 = vmul.f32 %v12871_v7, %v5099_v23  ;;  %v5104_v52 = vmul.f32 %v12871_v7, %v5094_v49  ;;  %v5105_v30 = vmul.f32 %v12871_v7, %v5095_v48  ;;  %v5106_v63 = vmul.f32 %v12871_v7, %v5096_v29 }
 0x7fa   : > { %v5107_v41 = vmul.f32 %v12871_v7, %v5097_v22  ;;  %v5108_v20 = vmul.f32 %v12871_v7, %v5098_v55  ;;  %v5110_v44 = vmul.f32 %v12871_v7, %v5100_v35  ;;  %v5111_v47 = vmul.f32 %v12871_v7, %v5101_v33 }
 0x7fb   : > { %v5117_v9 = vmax.f32 %v5109_v34, 0.0  ;;  %v5112_v58 = vmax.f32 %v5104_v52, 0.0  ;;  %v5113_v40 = vmax.f32 %v5105_v30, 0.0  ;;  %v15829_v50 = vmax.f32 %v5106_v63, 0.0  ;;  %v18964_v52 = vld [vmem:[#allocation34_spill] sm:$0xff] }
 0x7fc   : > { %v15831_v37 = vmax.f32 %v5107_v41, 0.0  ;;  %v15833_v10 = vmax.f32 %v5108_v20, 0.0  ;;  %v15835_v62 = vmax.f32 %v5110_v44, 0.0  ;;  %v15837_v31 = vmax.f32 %v5111_v47, 0.0 }
 0x7fd   : > { %v5373_v15 = vcombine.high %v5117_v9, %v5117_v9  ;;  %v5380_v17 = vrot.slane %v5117_v9, %v18962_v32  ;;  %v5128_v3 = vcombine.high %v5112_v58, %v5112_v58  ;;  %v5135_v28 = vrot.slane %v5112_v58, %v18962_v32 }
 0x7fe   : > { %18961 = vst [vmem:[#allocation48_spill] sm:$0xff] %v15837_v31  ;;  %v5177_v57 = vcombine.high %v5113_v40, %v5113_v40  ;;  %v15842_v51 = vrot.slane %v5113_v40, %v18962_v32  ;;  %v5226_v4 = vcombine.high %v15829_v50, %v15829_v50  ;;  %v15848_v39 = vrot.slane %v15829_v50, %v18962_v32 }
 0x7ff   : > { %v5387_v13 = vrot.slane %v5373_v15, %v18962_v32  ;;  %v5388_v5 = vcombine.high %v5380_v17, %v5380_v17  ;;  %v5396_v61 = vrot.slane %v5380_v17, %v18962_v32  ;;  %v5142_v12 = vrot.slane %v5128_v3, %v18962_v32 }
 0x800   : > { %v5143_v19 = vcombine.high %v5135_v28, %v5135_v28  ;;  %v5151_v46 = vrot.slane %v5135_v28, %v18962_v32  ;;  %v15855_v43 = vrot.slane %v5177_v57, %v18962_v32  ;;  %v5192_v54 = vcombine.high %v15842_v51, %v15842_v51 }
 0x801   : > { %v5389_v53 = vcombine.high %v5387_v13, %v5387_v13  ;;  %v5403_v42 = vrot.slane %v5387_v13, %v18962_v32  ;;  %v5410_v1 = vrot.slane %v5388_v5, %v18962_v32  ;;  %v5418_v38 = vcombine.high %v5396_v61, %v5396_v61 }
 0x802   : > { %v5619_v2 = vpack.c.bf16 %v5396_v61, %v5396_v61  ;;  %v5144_v27 = vcombine.high %v5142_v12, %v5142_v12  ;;  %v5158_v8 = vrot.slane %v5142_v12, %v18962_v32  ;;  %v5165_v56 = vrot.slane %v5143_v19, %v18962_v32 }
 0x803   : > { %v15864_v26 = vrot.slane %v5389_v53, %v18962_v32  ;;  %v5419_v16 = vcombine.high %v5403_v42, %v5403_v42  ;;  %v5420_v0 = vcombine.high %v5410_v1, %v5410_v1  ;;  %v5620_v25 = vpack.c.bf16 %v5410_v1, %v5410_v1 }
 0x804   : > { %v5621_v45 = vpack.c.bf16 %v5418_v38, %v5418_v38  ;;  %v5623_v60 = vpack.c.bf16 %v5403_v42, %v5403_v42  ;;  %v5741_v36 = vunpack.c.l.b16 %v5619_v2  ;;  %v5172_v23 = vrot.slane %v5144_v27, %v18962_v32 }
 0x805   : > { %v5622_v49 = vpack.c.bf16 %v5420_v0, %v5420_v0  ;;  %v5624_v48 = vpack.c.bf16 %v15864_v26, %v15864_v26  ;;  %v5625_v18 = vpack.c.bf16 %v5419_v16, %v5419_v16  ;;  %v15869_v29 = vunpack.c.l.b16 %v5620_v25 }
 0x806   : > { %v15871_v22 = vunpack.c.l.b16 %v5621_v45  ;;  %v15873_v55 = vunpack.c.l.b16 %v5623_v60  ;;  %v6012_v35 = vrot.slane %v5741_v36, 7  ;;  %v5173_v33 = vcombine.high %v5151_v46, %v5151_v46 }
 0x807   : > { %18963 = vst [vmem:[#allocation53_spill] sm:$0xff] %v15869_v29  ;;  %v15875_v6 = vunpack.c.l.b16 %v5622_v49  ;;  %v15877_v21 = vunpack.c.l.b16 %v5624_v48  ;;  %v15879_v14 = vunpack.c.l.b16 %v5625_v18  ;;  %v5827_v7 = vrot.slane %v15869_v29, 7 }
 0x808   : > { %v15885_v30 = vsel %vm1324_vm4, %v6012_v35, %v18964_v52  ;;  %v6195_v47 = vrot.slane %v15871_v22, 7  ;;  %v5174_v40 = vcombine.high %v5158_v8, %v5158_v8  ;;  %v5175_v15 = vcombine.high %v5165_v56, %v5165_v56 }
 0x809   : > { %18965 = vst [vmem:[#allocation45_spill] sm:$0xff] %v15885_v30  ;;  %v15890_v20 = vsel %vm1324_vm4, %v5827_v7, %v5741_v36  ;;  %v5176_v17 = vcombine.high %v5172_v23, %v5172_v23  ;;  %v5584_v28 = vpack.c.bf16 %v5151_v46, %v5151_v46  ;;  %v5585_v57 = vpack.c.bf16 %v5165_v56, %v5165_v56 }
 0x80a   : > { %v15898_v3 = vsel %vm1324_vm4, %v6195_v47, %v15869_v29  ;;  %v5586_v13 = vpack.c.bf16 %v5173_v33, %v5173_v33  ;;  %v5587_v5 = vpack.c.bf16 %v5175_v15, %v5175_v15  ;;  %v5588_v61 = vpack.c.bf16 %v5158_v8, %v5158_v8 }
 0x80b   : > { %18966 = vst [vmem:[#allocation49_spill] sm:$0xff] %v15898_v3  ;;  %v5589_v12 = vpack.c.bf16 %v5172_v23, %v5172_v23  ;;  %v5590_v19 = vpack.c.bf16 %v5174_v40, %v5174_v40  ;;  %v5635_v53 = vpack.c.bf16 %v5176_v17, %v5176_v17  ;;  %v15900_v42 = vunpack.c.l.b16 %v5584_v28 }
 0x80c   : > { %v15902_v1 = vunpack.c.l.b16 %v5585_v57  ;;  %v15904_v38 = vunpack.c.l.b16 %v5586_v13  ;;  %v15906_v2 = vunpack.c.l.b16 %v5587_v5  ;;  %v15908_v27 = vunpack.c.l.b16 %v5588_v61 }
 0x80d   : > { %v15910_v16 = vunpack.c.l.b16 %v5589_v12  ;;  %v15912_v46 = vunpack.c.l.b16 %v5590_v19  ;;  %v15914_v56 = vunpack.c.l.b16 %v5635_v53  ;;  %v5193_v25 = vcombine.high %v15855_v43, %v15855_v43 }
 0x80e   : > { %18967 = vst [vmem:[#allocation39_spill] sm:$0xff] %v15902_v1  ;;  %v5757_v8 = vrot.slane %v15902_v1, 7  ;;  %v5759_v0 = vrot.slane %v15904_v38, 6  ;;  %v5761_v45 = vrot.slane %v15906_v2, 5  ;;  %v5763_v60 = vrot.slane %v15908_v27, 4 }
 0x80f   : > { %18968 = vst [vmem:[#allocation51_spill] sm:$0xff] %v15912_v46  ;;  %18969 = vst [vmem:[#allocation46_spill] sm:$0xff] %v15914_v56  ;;  %v5765_v36 = vrot.slane %v15910_v16, 3  ;;  %v5767_v23 = vrot.slane %v15912_v46, 2  ;;  %v5769_v48 = vrot.slane %v15914_v56, 1  ;;  %v5200_v18 = vrot.slane %v15842_v51, %v18962_v32 }
 0x810   : > { %v5758_v49 = vsel %vm1324_vm4, %v5757_v8, %v15900_v42  ;;  %v5207_v35 = vrot.slane %v15855_v43, %v18962_v32  ;;  %v5214_v7 = vrot.slane %v5192_v54, %v18962_v32  ;;  %v5221_v47 = vrot.slane %v5193_v25, %v18962_v32 }
 0x811   : > { %v5760_v33 = vsel %vm1327_vm5, %v5759_v0, %v5758_v49  ;;  %v5240_v40 = vrot.slane %v5226_v4, %v18962_v32  ;;  %v5222_v17 = vcombine.high %v5200_v18, %v5200_v18  ;;  %v5241_v43 = vcombine.high %v15848_v39, %v15848_v39 }
 0x812   : > { %v5762_v15 = vsel %vm1330_vm6, %v5761_v45, %v5760_v33  ;;  %v5223_v28 = vcombine.high %v5207_v35, %v5207_v35  ;;  %v5224_v13 = vcombine.high %v5214_v7, %v5214_v7  ;;  %v5225_v5 = vcombine.high %v5221_v47, %v5221_v47 }
 0x813   : > { %v5764_v57 = vsel %vm1333_vm7, %v5763_v60, %v5762_v15  ;;  %v5242_v51 = vcombine.high %v5240_v40, %v5240_v40  ;;  %v5249_v61 = vrot.slane %v15848_v39, %v18962_v32  ;;  %v5256_v50 = vrot.slane %v5240_v40, %v18962_v32 }
 0x814   : > { %v5766_v54 = vsel %vm1336_vm8, %v5765_v36, %v5764_v57  ;;  %v5263_v4 = vrot.slane %v5241_v43, %v18962_v32  ;;  %v5591_v53 = vpack.c.bf16 %v5200_v18, %v5200_v18  ;;  %v5592_v8 = vpack.c.bf16 %v5214_v7, %v5214_v7 }
 0x815   : > { %v5768_v12 = vsel %vm1339_vm9, %v5767_v23, %v5766_v54  ;;  %v5270_v19 = vrot.slane %v5242_v51, %v18962_v32  ;;  %v5271_v25 = vcombine.high %v5249_v61, %v5249_v61  ;;  %v5272_v45 = vcombine.high %v5256_v50, %v5256_v50 }
 0x816   : > { %v15953_v0 = vsel %vm1342_vm10, %v5769_v48, %v5768_v12  ;;  %v5273_v60 = vcombine.high %v5263_v4, %v5263_v4  ;;  %v5593_v49 = vpack.c.bf16 %v5222_v17, %v5222_v17  ;;  %v5594_v33 = vpack.c.bf16 %v5224_v13, %v5224_v13 }
 0x817   : > { %18970 = vst [vmem:[#allocation47_spill] sm:$0xff] %v15953_v0  ;;  %v5855_v36 = vpack.c.b16 %v15953_v0, %v14697_v11  ;;  %v5274_v39 = vcombine.high %v5270_v19, %v5270_v19  ;;  %v5595_v40 = vpack.c.bf16 %v5207_v35, %v5207_v35  ;;  %v5596_v15 = vpack.c.bf16 %v5221_v47, %v5221_v47 }
 0x818   : > { %v5597_v43 = vpack.c.bf16 %v5223_v28, %v5223_v28  ;;  %v5598_v23 = vpack.c.bf16 %v5249_v61, %v5249_v61  ;;  %v5599_v18 = vpack.c.bf16 %v5263_v4, %v5263_v4  ;;  %v5600_v7 = vpack.c.bf16 %v5271_v25, %v5271_v25 }
 0x819   : > { %12429 = vmatprep.mubr.msk.bf16.mxu1 %vm2892_vm12, %v5855_v36  ;;  %v5601_v57 = vpack.c.bf16 %v5273_v60, %v5273_v60  ;;  %v5602_v48 = vpack.c.bf16 %v5256_v50, %v5256_v50  ;;  %v5603_v51 = vpack.c.bf16 %v5270_v19, %v5270_v19  ;;  %v5604_v54 = vpack.c.bf16 %v5272_v45, %v5272_v45 }
 0x81a   : > { %v5636_v12 = vpack.c.bf16 %v5225_v5, %v5225_v5  ;;  %v5637_v58 = vpack.c.bf16 %v5274_v39, %v5274_v39  ;;  %v15958_v9 = vunpack.c.l.b16 %v5591_v53  ;;  %v15960_v41 = vunpack.c.l.b16 %v5592_v8 }
 0x81b   : > { %v15962_v17 = vunpack.c.l.b16 %v5593_v49  ;;  %v15964_v35 = vunpack.c.l.b16 %v5594_v33  ;;  %v15966_v47 = vunpack.c.l.b16 %v5595_v40  ;;  %v15968_v28 = vunpack.c.l.b16 %v5596_v15 }
 0x81c   : > { %v15970_v13 = vunpack.c.l.b16 %v5597_v43  ;;  %v15972_v61 = vunpack.c.l.b16 %v5636_v12  ;;  %v15974_v50 = vunpack.c.l.b16 %v5598_v23  ;;  %v15976_v5 = vunpack.c.l.b16 %v5599_v18 }
 0x81d   : > { %v15978_v4 = vunpack.c.l.b16 %v5600_v7  ;;  %v15980_v19 = vunpack.c.l.b16 %v5601_v57  ;;  %v15982_v53 = vunpack.c.l.b16 %v5602_v48  ;;  %v15984_v8 = vunpack.c.l.b16 %v5603_v51 }
 0x81e   : > { %18971 = vst [vmem:[#allocation50_spill] sm:$0xff] %v15972_v61  ;;  %v15986_v25 = vunpack.c.l.b16 %v5604_v54  ;;  %v15988_v45 = vunpack.c.l.b16 %v5637_v58  ;;  %v5771_v60 = vrot.slane %v15960_v41, 7  ;;  %v5773_v36 = vrot.slane %v15962_v17, 6 }
 0x81f   : > { %18972 = vst [vmem:[#allocation52_spill] sm:$0xff] %v15984_v8  ;;  %v5775_v39 = vrot.slane %v15964_v35, 5  ;;  %v5777_v49 = vrot.slane %v15966_v47, 4  ;;  %v5779_v33 = vrot.slane %v15968_v28, 3  ;;  %v5781_v40 = vrot.slane %v15970_v13, 2 }
 0x820   : > { %18973 = vst [vmem:[#allocation40_spill] sm:$0xff] %v15986_v25  ;;  %18974 = vst [vmem:[#allocation38_spill] sm:$0xff] %v15988_v45  ;;  %v5783_v15 = vrot.slane %v15972_v61, 1  ;;  %v5785_v43 = vrot.slane %v15976_v5, 7  ;;  %v5772_v58 = vsel %vm1324_vm4, %v5771_v60, %v15958_v9  ;;  %v5787_v23 = vrot.slane %v15978_v4, 6 }
 0x821   : > { %v5789_v18 = vrot.slane %v15980_v19, 5  ;;  %v5791_v7 = vrot.slane %v15982_v53, 4  ;;  %v5774_v57 = vsel %vm1327_vm5, %v5773_v36, %v5772_v58  ;;  %v5793_v51 = vrot.slane %v15984_v8, 3 }
 0x822   : > { %v5786_v48 = vsel %vm1324_vm4, %v5785_v43, %v15974_v50  ;;  %v5795_v54 = vrot.slane %v15986_v25, 2  ;;  %v5776_v12 = vsel %vm1330_vm6, %v5775_v39, %v5774_v57  ;;  %v5797_v60 = vrot.slane %v15988_v45, 1 }
 0x823   : > { %v5788_v63 = vsel %vm1327_vm5, %v5787_v23, %v5786_v48  ;;  %v5778_v34 = vsel %vm1333_vm7, %v5777_v49, %v5776_v12 }
 0x824   : > { %v5790_v0 = vsel %vm1330_vm6, %v5789_v18, %v5788_v63  ;;  %v5780_v58 = vsel %vm1336_vm8, %v5779_v33, %v5778_v34  ;;  %v5275_v63 = vcombine.high %v15831_v37, %v15831_v37  ;;  %v5324_v33 = vcombine.high %v15833_v10, %v15833_v10 }
 0x825   : > { %v5792_v31 = vsel %vm1333_vm7, %v5791_v7, %v5790_v0  ;;  %v5782_v57 = vsel %vm1339_vm9, %v5781_v40, %v5780_v58  ;;  %v5282_v0 = vrot.slane %v15831_v37, %v18962_v32  ;;  %v5331_v7 = vrot.slane %v15833_v10, %v18962_v32 }
 0x826   : > { %v5794_v48 = vsel %vm1336_vm8, %v5793_v51, %v5792_v31  ;;  %v16026_v18 = vsel %vm1342_vm10, %v5783_v15, %v5782_v57  ;;  %v5289_v31 = vrot.slane %v5275_v63, %v18962_v32  ;;  %v16041_v15 = vcombine.high %v15864_v26, %v15864_v26 }
 0x827   : > { %18975 = vst [vmem:[#allocation42_spill] sm:$0xff] %v16026_v18  ;;  %v5796_v34 = vsel %vm1339_vm9, %v5795_v54, %v5794_v48  ;;  %v5290_v37 = vcombine.high %v5282_v0, %v5282_v0  ;;  %v5298_v54 = vrot.slane %v5282_v0, %v18962_v32  ;;  %v5338_v12 = vrot.slane %v5324_v33, %v18962_v32 }
 0x828   : > { %v16034_v40 = vsel %vm1342_vm10, %v5797_v60, %v5796_v34  ;;  %v16049_v60 = vld [vmem:[#allocation20 + $0x10] sm:$0xff]   ;;  %v5291_v58 = vcombine.high %v5289_v31, %v5289_v31  ;;  %v5305_v57 = vrot.slane %v5289_v31, %v18962_v32  ;;  %v5339_v48 = vcombine.high %v5331_v7, %v5331_v7 }
 0x829   : > { %18976 = vst [vmem:[#allocation54_spill] sm:$0xff] %v16034_v40  ;;  %v16045_v51 = vpack.c.b16 %v16034_v40, %v16026_v18  ;;  %18978 = vst [vmem:[#allocation55_spill] sm:$0xff] %v16049_v60  ;;  %v5347_v10 = vrot.slane %v5331_v7, %v18962_v32  ;;  %v5312_v26 = vrot.slane %v5290_v37, %v18962_v32 }
 0x82a   : > { %v5320_v63 = vcombine.high %v5298_v54, %v5298_v54  ;;  %v5340_v34 = vcombine.high %v5338_v12, %v5338_v12  ;;  %v5354_v49 = vrot.slane %v5338_v12, %v18962_v32  ;;  %v5319_v0 = vrot.slane %v5291_v58, %v18962_v32 }
 0x82b   : > { %18977 = vst [vmem:[#allocation44_spill] sm:$0xff] %v16045_v51  ;;  %12430 = vmatmul.mubr.msk.bf16.vlgmr.msra.gmra.mrb[52].mxu1 %vm2892_vm12, %v16045_v51  ;;  %v5321_v33 = vcombine.high %v5305_v57, %v5305_v57  ;;  %v5361_v23 = vrot.slane %v5339_v48, %v18962_v32  ;;  %v5369_v39 = vcombine.high %v5347_v10, %v5347_v10 }
 0x82c   : > { %12438 = vmatpush3.bf16.msra.mxu1 %v15819_v24  ;;  %v5322_v31 = vcombine.high %v5312_v26, %v5312_v26  ;;  %v5368_v7 = vrot.slane %v5340_v34, %v18962_v32  ;;  %v5370_v43 = vcombine.high %v5354_v49, %v5354_v49  ;;  %v5605_v36 = vpack.c.bf16 %v5298_v54, %v5298_v54 }
 0x82d   : > { %12447 = vmatprep.subr.bf16.mxu1 %v16049_v60  ;;  %v5323_v37 = vcombine.high %v5319_v0, %v5319_v0  ;;  %v5371_v44 = vcombine.high %v5361_v23, %v5361_v23  ;;  %v5606_v51 = vpack.c.bf16 %v5312_v26, %v5312_v26  ;;  %v5607_v18 = vpack.c.bf16 %v5320_v63, %v5320_v63 }
 0x82e   : > { %v5372_v12 = vcombine.high %v5368_v7, %v5368_v7  ;;  %v5608_v3 = vpack.c.bf16 %v5322_v31, %v5322_v31  ;;  %v5609_v58 = vpack.c.bf16 %v5305_v57, %v5305_v57  ;;  %v5610_v45 = vpack.c.bf16 %v5319_v0, %v5319_v0 }
 0x82f   : > { %v5611_v61 = vpack.c.bf16 %v5321_v33, %v5321_v33  ;;  %v5612_v48 = vpack.c.bf16 %v5347_v10, %v5347_v10  ;;  %v5613_v59 = vpack.c.bf16 %v5361_v23, %v5361_v23  ;;  %v5614_v56 = vpack.c.bf16 %v5369_v39, %v5369_v39 }
 0x830   : > { %v5615_v24 = vpack.c.bf16 %v5371_v44, %v5371_v44  ;;  %v5616_v29 = vpack.c.bf16 %v5354_v49, %v5354_v49  ;;  %v5617_v30 = vpack.c.bf16 %v5368_v7, %v5368_v7  ;;  %v5618_v34 = vpack.c.bf16 %v5370_v43, %v5370_v43 }
 0x831   : > { %v5638_v25 = vpack.c.bf16 %v5323_v37, %v5323_v37  ;;  %v5639_v54 = vpack.c.bf16 %v5372_v12, %v5372_v12  ;;  %v16062_v8 = vunpack.c.l.b16 %v5605_v36  ;;  %v16064_v60 = vunpack.c.l.b16 %v5606_v51 }
 0x832   : > { %v16066_v26 = vunpack.c.l.b16 %v5607_v18  ;;  %v16068_v63 = vunpack.c.l.b16 %v5608_v3  ;;  %v16070_v57 = vunpack.c.l.b16 %v5609_v58  ;;  %v16072_v0 = vunpack.c.l.b16 %v5610_v45 }
 0x833   : > { %v16074_v23 = vunpack.c.l.b16 %v5611_v61  ;;  %v16076_v44 = vunpack.c.l.b16 %v5638_v25  ;;  %v16078_v39 = vunpack.c.l.b16 %v5612_v48  ;;  %v16080_v43 = vunpack.c.l.b16 %v5613_v59 }
 0x834   : > { %v16082_v36 = vunpack.c.l.b16 %v5614_v56  ;;  %v16084_v49 = vunpack.c.l.b16 %v5615_v24  ;;  %v16086_v18 = vunpack.c.l.b16 %v5616_v29  ;;  %v16088_v3 = vunpack.c.l.b16 %v5617_v30 }
 0x835   : > { %18979 = vst [vmem:[#allocation41_spill] sm:$0xff] %v16076_v44  ;;  %v16090_v51 = vunpack.c.l.b16 %v5618_v34  ;;  %v16092_v45 = vunpack.c.l.b16 %v5639_v54  ;;  %v5799_v61 = vrot.slane %v16064_v60, 7  ;;  %v5801_v25 = vrot.slane %v16066_v26, 6 }
 0x836   : > { %18980 = vst [vmem:[#allocation59_spill] sm:$0xff] %v16082_v36  ;;  %18981 = vst [vmem:[#allocation43_spill] sm:$0xff] %v16088_v3  ;;  %v5803_v10 = vrot.slane %v16068_v63, 5  ;;  %v5805_v59 = vrot.slane %v16070_v57, 4  ;;  %v5807_v56 = vrot.slane %v16072_v0, 3  ;;  %v5809_v33 = vrot.slane %v16074_v23, 2 }
 0x837   : > { %18982 = vst [vmem:[#allocation58_spill] sm:$0xff] %v16092_v45  ;;  %v5800_v29 = vsel %vm1324_vm4, %v5799_v61, %v16062_v8  ;;  %v5811_v30 = vrot.slane %v16076_v44, 1  ;;  %v5813_v31 = vrot.slane %v16080_v43, 7  ;;  %v5815_v7 = vrot.slane %v16082_v36, 6 }
 0x838   : > { %v5802_v37 = vsel %vm1327_vm5, %v5801_v25, %v5800_v29  ;;  %v5817_v12 = vrot.slane %v16084_v49, 5  ;;  %v5819_v58 = vrot.slane %v16086_v18, 4  ;;  %v5821_v48 = vrot.slane %v16088_v3, 3 }
 0x839   : > { %v5804_v24 = vsel %vm1330_vm6, %v5803_v10, %v5802_v37  ;;  %v5814_v34 = vsel %vm1324_vm4, %v5813_v31, %v16078_v39  ;;  %v5823_v54 = vrot.slane %v16090_v51, 2  ;;  %v5825_v61 = vrot.slane %v16092_v45, 1 }
 0x83a   : > { %v5806_v44 = vsel %vm1333_vm7, %v5805_v59, %v5804_v24  ;;  %v5816_v36 = vsel %vm1327_vm5, %v5815_v7, %v5814_v34  ;;  %v5422_v25 = vcombine.high %v15835_v62, %v15835_v62  ;;  %v5429_v29 = vrot.slane %v15835_v62, %v18962_v32 }
 0x83b   : > { %v5808_v3 = vsel %vm1336_vm8, %v5807_v56, %v5806_v44  ;;  %v5818_v10 = vsel %vm1330_vm6, %v5817_v12, %v5816_v36  ;;  %v5640_v31 = vpack.c.bf16 %v16041_v15, %v16041_v15  ;;  %v18983_v37 = vrot.slane %v15871_v22, 6 }
 0x83c   : > { %v5810_v7 = vsel %vm1339_vm9, %v5809_v33, %v5808_v3  ;;  %v5820_v24 = vsel %vm1333_vm7, %v5819_v58, %v5818_v10  ;;  %v5436_v34 = vrot.slane %v5422_v25, %v18962_v32  ;;  %v5437_v45 = vcombine.high %v5429_v29, %v5429_v29 }
 0x83d   : > { %v5830_v59 = vsel %vm1327_vm5, %v18983_v37, %v15890_v20  ;;  %v16132_v62 = vsel %vm1342_vm10, %v5811_v30, %v5810_v7  ;;  %v5822_v44 = vsel %vm1336_vm8, %v5821_v48, %v5820_v24  ;;  %v5445_v36 = vrot.slane %v5429_v29, %v18962_v32 }
 0x83e   : > { %18984 = vst [vmem:[#allocation56_spill] sm:$0xff] %v16132_v62  ;;  %v16136_v15 = vunpack.c.l.b16 %v5640_v31  ;;  %v5824_v56 = vsel %vm1339_vm9, %v5823_v54, %v5822_v44  ;;  %v5438_v3 = vcombine.high %v5436_v34, %v5436_v34  ;;  %v5452_v33 = vrot.slane %v5436_v34, %v18962_v32 }
 0x83f   : > { %v16143_v12 = vsel %vm1342_vm10, %v5825_v61, %v5824_v56  ;;  %v5459_v30 = vrot.slane %v5437_v45, %v18962_v32  ;;  %v5467_v58 = vcombine.high %v5445_v36, %v5445_v36  ;;  %v5626_v25 = vpack.c.bf16 %v5445_v36, %v5445_v36 }
 0x840   : > { %18985 = vst [vmem:[#allocation57_spill] sm:$0xff] %v16136_v15  ;;  %18986 = vst [vmem:[#allocation60_spill] sm:$0xff] %v16143_v12  ;;  %v16148_v48 = vpack.c.b16 %v16143_v12, %v16132_v62  ;;  %v5466_v29 = vrot.slane %v5438_v3, %v18962_v32  ;;  %v5468_v54 = vcombine.high %v5452_v33, %v5452_v33  ;;  %v18988_v3 = vrot.slane %v15875_v6, 5 }
 0x841   : > { %v5630_v10 = vpack.c.bf16 %v5452_v33, %v5452_v33  ;;  %v5469_v31 = vcombine.high %v5459_v30, %v5459_v30  ;;  %v5627_v37 = vpack.c.bf16 %v5459_v30, %v5459_v30  ;;  %v5628_v7 = vpack.c.bf16 %v5467_v58, %v5467_v58 }
 0x842   : > { %18987 = vst [vmem:[#allocation61_spill] sm:$0xff] %v16148_v48  ;;  %v16151_v24 = vunpack.c.l.b16 %v5626_v25  ;;  %12433 = vmatprep.mubr.msk.bf16.mxu1 %vm2892_vm12, %v16148_v48  ;;  %v5470_v61 = vcombine.high %v5466_v29, %v5466_v29  ;;  %v5631_v45 = vpack.c.bf16 %v5466_v29, %v5466_v29  ;;  %v5632_v34 = vpack.c.bf16 %v5468_v54, %v5468_v54 }
 0x843   : > { %v16155_v44 = vunpack.c.l.b16 %v5630_v10  ;;  %v5629_v36 = vpack.c.bf16 %v5469_v31, %v5469_v31  ;;  %v16157_v56 = vunpack.c.l.b16 %v5627_v37  ;;  %v16159_v20 = vunpack.c.l.b16 %v5628_v7 }
 0x844   : > { %v5832_v33 = vsel %vm1330_vm6, %v18988_v3, %v5830_v59  ;;  %v5641_v30 = vpack.c.bf16 %v5470_v61, %v5470_v61  ;;  %v16164_v58 = vunpack.c.l.b16 %v5631_v45  ;;  %v16166_v25 = vunpack.c.l.b16 %v5632_v34 }
 0x845   : > { %v5833_v48 = vrot.slane %v15873_v55, 4  ;;  %v16169_v29 = vunpack.c.l.b16 %v5629_v36  ;;  %v5835_v54 = vrot.slane %v15877_v21, 3  ;;  %v5837_v10 = vrot.slane %v15879_v14, 2 }
 0x846   : > { %v5839_v31 = vrot.slane %v16136_v15, 1  ;;  %v16174_v37 = vunpack.c.l.b16 %v5641_v30  ;;  %v5841_v59 = vrot.slane %v16157_v56, 7  ;;  %v5843_v61 = vrot.slane %v16159_v20, 6 }
 0x847   : > { %v5834_v7 = vsel %vm1333_vm7, %v5833_v48, %v5832_v33  ;;  %v5845_v34 = vrot.slane %v16169_v29, 5  ;;  %v5847_v36 = vrot.slane %v16155_v44, 4  ;;  %v5849_v3 = vrot.slane %v16164_v58, 3 }
 0x848   : > { %18989 = vst [vmem:[#allocation62_spill] sm:$0xff] %v16174_v37  ;;  %v5836_v45 = vsel %vm1336_vm8, %v5835_v54, %v5834_v7  ;;  %v5842_v30 = vsel %vm1324_vm4, %v5841_v59, %v16151_v24  ;;  %v5851_v62 = vrot.slane %v16166_v25, 2  ;;  %v5853_v48 = vrot.slane %v16174_v37, 1 }
 0x849   : > { %v5838_v40 = vsel %vm1339_vm9, %v5837_v10, %v5836_v45  ;;  %v5844_v54 = vsel %vm1327_vm5, %v5843_v61, %v5842_v30  ;;  %v5942_v7 = vrot.slane %v15900_v42, 7  ;;  %v5944_v12 = vrot.slane %v15902_v1, 6 }
 0x84a   : > { %v16189_v33 = vsel %vm1342_vm10, %v5839_v31, %v5838_v40  ;;  %v5846_v32 = vsel %vm1330_vm6, %v5845_v34, %v5844_v54  ;;  %v5946_v10 = vrot.slane %v15904_v38, 5  ;;  %v5948_v45 = vrot.slane %v15906_v2, 4 }
 0x84b   : > { %18990 = vst [vmem:[#allocation34_spill] sm:$0xff] %v16189_v33  ;;  %v5950_v59 = vrot.slane %v15908_v27, 3  ;;  %v5848_v15 = vsel %vm1333_vm7, %v5847_v36, %v5846_v32  ;;  %v5943_v40 = vsel %vm1324_vm4, %v5942_v7, %v18964_v52  ;;  %v5952_v31 = vrot.slane %v15910_v16, 2 }
 0x84c   : > { %v5954_v61 = vrot.slane %v15912_v46, 1  ;;  %v5850_v42 = vsel %vm1336_vm8, %v5849_v3, %v5848_v15  ;;  %v5945_v30 = vsel %vm1327_vm5, %v5944_v12, %v5943_v40  ;;  %v18991_v34 = vrot.slane %v15958_v9, 7 }
 0x84d   : > { %v5958_v37 = vrot.slane %v15960_v41, 6  ;;  %v5852_v32 = vsel %vm1339_vm9, %v5851_v62, %v5850_v42  ;;  %v5947_v36 = vsel %vm1330_vm6, %v5946_v10, %v5945_v30  ;;  %v5960_v7 = vrot.slane %v15962_v17, 5 }
 0x84e   : > { %v5957_v54 = vsel %vm1324_vm4, %v18991_v34, %v18964_v52  ;;  %v5962_v1 = vrot.slane %v15964_v35, 4  ;;  %v16215_v46 = vsel %vm1342_vm10, %v5853_v48, %v5852_v32  ;;  %v5949_v15 = vsel %vm1333_vm7, %v5948_v45, %v5947_v36 }
 0x84f   : > { %18992 = vst [vmem:[#allocation63_spill] sm:$0xff] %v16215_v46  ;;  %v5959_v12 = vsel %vm1327_vm5, %v5958_v37, %v5957_v54  ;;  %v5964_v9 = vrot.slane %v15966_v47, 3  ;;  %v16222_v3 = vpack.c.b16 %v16215_v46, %v16189_v33  ;;  %v5951_v62 = vsel %vm1336_vm8, %v5950_v59, %v5949_v15  ;;  %v18996_v15 = vld [vmem:[#allocation52_spill] sm:$0xff] }
 0x850   : > { %v5961_v10 = vsel %vm1330_vm6, %v5960_v7, %v5959_v12  ;;  %v5966_v40 = vrot.slane %v15968_v28, 2  ;;  %v5953_v42 = vsel %vm1339_vm9, %v5952_v31, %v5951_v62  ;;  %v5968_v45 = vrot.slane %v15970_v13, 1 }
 0x851   : > { %18993 = vst [vmem:[#allocation64_spill] sm:$0xff] %v16222_v3  ;;  %v5963_v48 = vsel %vm1333_vm7, %v5962_v1, %v5961_v10  ;;  %v18994_v37 = vrot.slane %v15974_v50, 7  ;;  %12434 = vmatmul.mubr.msk.bf16.gmra.mrb[56].mxu1 %vm2892_vm12, %v16222_v3  ;;  %v16237_v59 = vsel %vm1342_vm10, %v5954_v61, %v5953_v42  ;;  %v5972_v54 = vrot.slane %v15976_v5, 6 }
 0x852   : > { %v5965_v34 = vsel %vm1336_vm8, %v5964_v9, %v5963_v48  ;;  %v5974_v31 = vrot.slane %v15978_v4, 5  ;;  %v6040_v1 = vpack.c.b16 %v16237_v59, %v14697_v11  ;;  %v5976_v50 = vrot.slane %v15980_v19, 4  ;;  %v18997_v9 = vld [vmem:[#allocation40_spill] sm:$0xff] }
 0x853   : > { %v5971_v30 = vsel %vm1324_vm4, %v18994_v37, %v18964_v52  ;;  %v5967_v32 = vsel %vm1339_vm9, %v5966_v40, %v5965_v34  ;;  %v5978_v36 = vrot.slane %v15982_v53, 3  ;;  %v5980_v12 = vrot.slane %v18996_v15, 2 }
 0x854   : > { %v16248_v7 = vsel %vm1342_vm10, %v5968_v45, %v5967_v32  ;;  %v5973_v61 = vsel %vm1327_vm5, %v5972_v54, %v5971_v30  ;;  %v5982_v62 = vrot.slane %v18997_v9, 1  ;;  %12439 = vmatprep.mubr.msk.bf16.mxu1 %vm2892_vm12, %v6040_v1  ;;  %v5984_v42 = vrot.slane %v16062_v8, 7 }
 0x855   : > { %18995 = vst [vmem:[#allocation65_spill] sm:$0xff] %v16248_v7  ;;  %v5975_v10 = vsel %vm1330_vm6, %v5974_v31, %v5973_v61  ;;  %v5986_v40 = vrot.slane %v16064_v60, 6  ;;  %v5988_v48 = vrot.slane %v16066_v26, 5  ;;  %v5990_v45 = vrot.slane %v16068_v63, 4 }
 0x856   : > { %v5977_v37 = vsel %vm1333_vm7, %v5976_v50, %v5975_v10  ;;  %v5992_v30 = vrot.slane %v16070_v57, 3  ;;  %v5994_v34 = vrot.slane %v16072_v0, 2  ;;  %v5985_v1 = vsel %vm1324_vm4, %v5984_v42, %v18964_v52  ;;  %v18998_v10 = vld [vmem:[#allocation59_spill] sm:$0xff] }
 0x857   : > { %v5979_v54 = vsel %vm1336_vm8, %v5978_v36, %v5977_v37  ;;  %v5996_v31 = vrot.slane %v16074_v23, 1  ;;  %v5998_v8 = vrot.slane %v16078_v39, 7  ;;  %v5987_v61 = vsel %vm1327_vm5, %v5986_v40, %v5985_v1  ;;  %v16285_v1 = vld [vmem:[#allocation20 + $0x18] sm:$0xff]  }
 0x858   : > { %v5981_v32 = vsel %vm1339_vm9, %v5980_v12, %v5979_v54  ;;  %v6000_v50 = vrot.slane %v16080_v43, 6  ;;  %v6002_v3 = vrot.slane %v18998_v10, 5  ;;  %v5989_v36 = vsel %vm1330_vm6, %v5988_v48, %v5987_v61 }
 0x859   : > { %v16272_v46 = vsel %vm1342_vm10, %v5982_v62, %v5981_v32  ;;  %v5999_v42 = vsel %vm1324_vm4, %v5998_v8, %v18964_v52  ;;  %v6004_v37 = vrot.slane %v16084_v49, 4  ;;  %v5991_v12 = vsel %vm1333_vm7, %v5990_v45, %v5989_v36  ;;  %v19001_v32 = vld [vmem:[#allocation43_spill] sm:$0xff]  ;;  %v19003_v36 = vld [vmem:[#allocation53_spill] sm:$0xff] }
 0x85a   : > { %18999 = vst [vmem:[#allocation52_spill] sm:$0xff] %v16272_v46  ;;  %v16280_v39 = vpack.c.b16 %v16272_v46, %v16248_v7  ;;  %v6001_v40 = vsel %vm1327_vm5, %v6000_v50, %v5999_v42  ;;  %v6006_v54 = vrot.slane %v16086_v18, 3  ;;  %v5993_v62 = vsel %vm1336_vm8, %v5992_v30, %v5991_v12  ;;  %v19002_v50 = vld [vmem:[#allocation45_spill] sm:$0xff] }
 0x85b   : > { %v6003_v48 = vsel %vm1330_vm6, %v6002_v3, %v6001_v40  ;;  %v6008_v8 = vrot.slane %v19001_v32, 2  ;;  %v6010_v61 = vrot.slane %v16090_v51, 1  ;;  %v5995_v33 = vsel %vm1339_vm9, %v5994_v34, %v5993_v62  ;;  %v19006_v62 = vld [vmem:[#allocation55_spill] sm:$0xff] }
 0x85c   : > { %19000 = vst [vmem:[#allocation40_spill] sm:$0xff] %v16280_v39  ;;  %12440 = vmatmul.mubr.msk.bf16.vlgmr.msra.gmra.mrb[52].mxu1 %vm2892_vm12, %v16280_v39  ;;  %v6005_v45 = vsel %vm1333_vm7, %v6004_v37, %v6003_v48  ;;  %v19004_v42 = vrot.slane %v19003_v36, 6  ;;  %v6018_v30 = vrot.slane %v15875_v6, 4  ;;  %v16301_v3 = vsel %vm1342_vm10, %v5996_v31, %v5995_v33  ;;  %v19010_v48 = vld [vmem:[#allocation46_spill] sm:$0xff] }
 0x85d   : > { %v6007_v12 = vsel %vm1336_vm8, %v6006_v54, %v6005_v45  ;;  %v19005_v40 = vrot.slane %v15871_v22, 5  ;;  %v6020_v34 = vrot.slane %v15873_v55, 3  ;;  %12448 = vmatpush3.bf16.msra.mxu1 %v19006_v62  ;;  %v6022_v33 = vrot.slane %v15877_v21, 2 }
 0x85e   : > { %v6015_v7 = vsel %vm1327_vm5, %v19004_v42, %v19002_v50  ;;  %v6009_v37 = vsel %vm1339_vm9, %v6008_v8, %v6007_v12  ;;  %12457 = vmatprep.subr.bf16.mxu1 %v16285_v1  ;;  %v6026_v54 = vrot.slane %v16151_v24, 7  ;;  %v6030_v36 = vrot.slane %v16159_v20, 5 }
 0x85f   : > { %v6017_v39 = vsel %vm1330_vm6, %v19005_v40, %v6015_v7  ;;  %v16316_v31 = vsel %vm1342_vm10, %v6010_v61, %v6009_v37  ;;  %v6024_v7 = vrot.slane %v15879_v14, 1  ;;  %v6034_v24 = vrot.slane %v16155_v44, 3 }
 0x860   : > { %v6019_v50 = vsel %vm1333_vm7, %v6018_v30, %v6017_v39  ;;  %v16323_v8 = vpack.c.b16 %v16316_v31, %v16301_v3  ;;  %v6028_v39 = vrot.slane %v16157_v56, 6  ;;  %v6027_v61 = vsel %vm1324_vm4, %v6026_v54, %v18964_v52  ;;  %v19008_v54 = vld [vmem:[#allocation39_spill] sm:$0xff] }
 0x861   : > { %v6021_v22 = vsel %vm1336_vm8, %v6020_v34, %v6019_v50  ;;  %v6032_v30 = vrot.slane %v16169_v29, 4  ;;  %v6036_v40 = vrot.slane %v16164_v58, 2  ;;  %v6038_v34 = vrot.slane %v16166_v25, 1 }
 0x862   : > { %19007 = vst [vmem:[#allocation59_spill] sm:$0xff] %v16323_v8  ;;  %v6023_v45 = vsel %vm1339_vm9, %v6022_v33, %v6021_v22  ;;  %12443 = vmatprep.mubr.msk.bf16.mxu1 %vm2892_vm12, %v16323_v8  ;;  %v6029_v12 = vsel %vm1327_vm5, %v6028_v39, %v6027_v61  ;;  %v6130_v62 = vrot.slane %v15904_v38, 7  ;;  %v6132_v50 = vrot.slane %v15906_v2, 6  ;;  %v19009_v39 = vld [vmem:[#allocation51_spill] sm:$0xff] }
 0x863   : > { %v16329_v42 = vsel %vm1342_vm10, %v6024_v7, %v6023_v45  ;;  %v6031_v37 = vsel %vm1330_vm6, %v6030_v36, %v6029_v12  ;;  %v6134_v33 = vrot.slane %v15908_v27, 5  ;;  %v6136_v22 = vrot.slane %v15910_v16, 4 }
 0x864   : > { %v6033_v7 = vsel %vm1333_vm7, %v6032_v30, %v6031_v37  ;;  %v6131_v45 = vsel %vm1324_vm4, %v6130_v62, %v19008_v54  ;;  %v6138_v61 = vrot.slane %v19009_v39, 3  ;;  %v6140_v8 = vrot.slane %v19010_v48, 2 }
 0x865   : > { %v6035_v46 = vsel %vm1336_vm8, %v6034_v24, %v6033_v7  ;;  %v6133_v38 = vsel %vm1327_vm5, %v6132_v50, %v6131_v45  ;;  %v6143_v36 = vrot.slane %v15962_v17, 7  ;;  %v6145_v2 = vrot.slane %v15964_v35, 6  ;;  %v19013_v45 = vld [vmem:[#allocation50_spill] sm:$0xff] }
 0x866   : > { %v6037_v27 = vsel %vm1339_vm9, %v6036_v40, %v6035_v46  ;;  %v6135_v16 = vsel %vm1330_vm6, %v6134_v33, %v6133_v38  ;;  %v6147_v30 = vrot.slane %v15966_v47, 5  ;;  %v6151_v12 = vrot.slane %v15970_v13, 3 }
 0x867   : > { %v16359_v62 = vsel %vm1342_vm10, %v6038_v34, %v6037_v27  ;;  %v6137_v48 = vsel %vm1333_vm7, %v6136_v22, %v6135_v16  ;;  %v6144_v24 = vsel %vm1324_vm4, %v6143_v36, %v15960_v41  ;;  %v6156_v17 = vrot.slane %v15978_v4, 7  ;;  %v19011_v4 = vld [vmem:[#allocation35_spill] sm:$0xff] }
 0x868   : > { %v16367_v35 = vpack.c.b16 %v16359_v62, %v16329_v42  ;;  %v6139_v46 = vsel %vm1336_vm8, %v6138_v61, %v6137_v48  ;;  %v6146_v47 = vsel %vm1327_vm5, %v6145_v2, %v6144_v24  ;;  %v6158_v13 = vrot.slane %v15980_v19, 6  ;;  %v19018_v48 = vld [vmem:[#allocation41_spill] sm:$0xff] }
 0x869   : > { %v6141_v40 = vsel %vm1339_vm9, %v6140_v8, %v6139_v46  ;;  %v6148_v34 = vsel %vm1330_vm6, %v6147_v30, %v6146_v47  ;;  %v6157_v37 = vsel %vm1324_vm4, %v6156_v17, %v15976_v5  ;;  %v6160_v41 = vrot.slane %v15982_v53, 5 }
 0x86a   : > { %12444 = vmatmul.mubr.msk.bf16.gmra.mrb[56].mxu1 %vm2892_vm12, %v16367_v35  ;;  %v16381_v50 = vsel %vm1342_vm10, %v19011_v4, %v6141_v40  ;;  %v19012_v33 = vrot.slane %v15968_v28, 4  ;;  %v6159_v8 = vsel %vm1327_vm5, %v6158_v13, %v6157_v37  ;;  %v6164_v22 = vrot.slane %v18997_v9, 3 }
 0x86b   : > { %v6221_v5 = vpack.c.b16 %v16381_v50, %v14697_v11  ;;  %v6161_v7 = vsel %vm1330_vm6, %v6160_v41, %v6159_v8  ;;  %v6169_v54 = vrot.slane %v16066_v26, 7  ;;  %v19014_v39 = vrot.slane %v19013_v45, 2  ;;  %v19020_v8 = vld [vmem:[#allocation49_spill] sm:$0xff] }
 0x86c   : > { %v6150_v19 = vsel %vm1333_vm7, %v19012_v33, %v6148_v34  ;;  %v19015_v28 = vrot.slane %v18996_v15, 4  ;;  %v6171_v36 = vrot.slane %v16068_v63, 6  ;;  %v6173_v9 = vrot.slane %v16070_v57, 5  ;;  %v19016_v15 = vld [vmem:[#allocation38_spill] sm:$0xff]  ;;  %v16430_v34 = vld [vmem:[#allocation20 + $0x20] sm:$0xff]  }
 0x86d   : > { %v6152_v53 = vsel %vm1336_vm8, %v6151_v12, %v6150_v19  ;;  %12449 = vmatprep.mubr.msk.bf16.mxu1 %vm2892_vm12, %v6221_v5  ;;  %v6170_v27 = vsel %vm1324_vm4, %v6169_v54, %v16064_v60  ;;  %v6175_v16 = vrot.slane %v16072_v0, 4  ;;  %v19017_v30 = vrot.slane %v19016_v15, 2 }
 0x86e   : > { %v6154_v61 = vsel %vm1339_vm9, %v19014_v39, %v6152_v53  ;;  %v6163_v38 = vsel %vm1333_vm7, %v19015_v28, %v6161_v7  ;;  %v6172_v63 = vsel %vm1327_vm5, %v6171_v36, %v6170_v27  ;;  %v6177_v57 = vrot.slane %v16074_v23, 3  ;;  %v19023_v39 = vld [vmem:[#allocation57_spill] sm:$0xff] }
 0x86f   : > { %v16404_v2 = vsel %vm1342_vm10, %v19011_v4, %v6154_v61  ;;  %v6165_v26 = vsel %vm1336_vm8, %v6164_v22, %v6163_v38  ;;  %v6179_v24 = vrot.slane %v19018_v48, 2  ;;  %v6174_v46 = vsel %vm1330_vm6, %v6173_v9, %v6172_v63  ;;  %v19025_v48 = vld [vmem:[#allocation48_spill] sm:$0xff] }
 0x870   : > { %v6167_v12 = vsel %vm1339_vm9, %v19017_v30, %v6165_v26  ;;  %v6182_v60 = vrot.slane %v18998_v10, 7  ;;  %v6184_v0 = vrot.slane %v16084_v49, 6  ;;  %v6176_v13 = vsel %vm1333_vm7, %v6175_v16, %v6174_v46  ;;  %v19019_v49 = vld [vmem:[#allocation58_spill] sm:$0xff]  ;;  %v19024_v30 = vld [vmem:[#allocation65_spill] sm:$0xff] }
 0x871   : > { %v16418_v17 = vsel %vm1342_vm10, %v19011_v4, %v6167_v12  ;;  %v6186_v23 = vrot.slane %v16086_v18, 5  ;;  %v6188_v40 = vrot.slane %v19001_v32, 4  ;;  %v6178_v37 = vsel %vm1336_vm8, %v6177_v57, %v6176_v13 }
 0x872   : > { %v16425_v47 = vpack.c.b16 %v16418_v17, %v16404_v2  ;;  %v6183_v41 = vsel %vm1324_vm4, %v6182_v60, %v16080_v43  ;;  %v6190_v10 = vrot.slane %v16090_v51, 3  ;;  %v6192_v33 = vrot.slane %v19019_v49, 2 }
 0x873   : > { %v6180_v19 = vsel %vm1339_vm9, %v6179_v24, %v6178_v37  ;;  %v6185_v18 = vsel %vm1327_vm5, %v6184_v0, %v6183_v41  ;;  %v19021_v32 = vrot.slane %v15875_v6, 6  ;;  %v6201_v5 = vrot.slane %v15877_v21, 4  ;;  %v19028_v0 = vld [vmem:[#allocation60_spill] sm:$0xff] }
 0x874   : > { %12450 = vmatmul.mubr.msk.bf16.vlgmr.msra.gmra.mrb[52].mxu1 %vm2892_vm12, %v16425_v47  ;;  %v16448_v43 = vsel %vm1342_vm10, %v19011_v4, %v6180_v19  ;;  %v6187_v51 = vsel %vm1330_vm6, %v6186_v23, %v6185_v18  ;;  %v19022_v53 = vrot.slane %v15873_v55, 5  ;;  %v6203_v54 = vrot.slane %v15879_v14, 3 }
 0x875   : > { %v6198_v22 = vsel %vm1327_vm5, %v19021_v32, %v19020_v8  ;;  %12458 = vmatpush3.bf16.msra.mxu1 %v16285_v1  ;;  %v6189_v6 = vsel %vm1333_vm7, %v6188_v40, %v6187_v51  ;;  %v6581_v45 = vpack.c.b16 %v16448_v43, %v16418_v17  ;;  %v6205_v61 = vrot.slane %v19023_v39, 2 }
 0x876   : > { %v6200_v7 = vsel %vm1330_vm6, %v19022_v53, %v6198_v22  ;;  %12467 = vmatprep.subr.bf16.mxu1 %v16430_v34  ;;  %v6191_v28 = vsel %vm1336_vm8, %v6190_v10, %v6189_v6  ;;  %v6208_v38 = vrot.slane %v16159_v20, 7  ;;  %v6210_v14 = vrot.slane %v16169_v29, 6 }
 0x877   : > { %v6202_v21 = vsel %vm1333_vm7, %v6201_v5, %v6200_v7  ;;  %v6193_v1 = vsel %vm1339_vm9, %v6192_v33, %v6191_v28  ;;  %v6212_v9 = vrot.slane %v16155_v44, 5  ;;  %v6214_v20 = vrot.slane %v16164_v58, 4  ;;  %v19026_v58 = vld [vmem:[#allocation33_spill] sm:$0xff] }
 0x878   : > { %v6204_v55 = vsel %vm1336_vm8, %v6203_v54, %v6202_v21  ;;  %v16471_v26 = vsel %vm1342_vm10, %v19011_v4, %v6193_v1  ;;  %v6209_v16 = vsel %vm1324_vm4, %v6208_v38, %v16157_v56  ;;  %v6216_v44 = vrot.slane %v16166_v25, 3  ;;  %v19027_v25 = vld [vmem:[#allocation62_spill] sm:$0xff] }
 0x879   : > { %v6206_v36 = vsel %vm1339_vm9, %v6205_v61, %v6204_v55  ;;  %v16482_v29 = vpack.c.b16 %v16471_v26, %v16448_v43  ;;  %v6211_v15 = vsel %vm1327_vm5, %v6210_v14, %v6209_v16  ;;  %v6354_v12 = vpack.c.b16 %v19024_v30, %v16237_v59  ;;  %v19029_v59 = vld [vmem:[#allocation34_spill] sm:$0xff]  ;;  %v19040_v43 = vld [vmem:[#allocation44_spill] sm:$0xff] }
 0x87a   : > { %v16475_v27 = vsel %vm1342_vm10, %v19011_v4, %v6206_v36  ;;  %v6213_v63 = vsel %vm1330_vm6, %v6212_v9, %v6211_v15  ;;  %v6356_v57 = vpack.c.b16 %v16329_v42, %v16316_v31  ;;  %v5471_v56 = vcombine.high %v19025_v48, %v19025_v48 }
 0x87b   : > { %v5478_v24 = vrot.slane %v19025_v48, %v19026_v58  ;;  %12453 = vmatprep.mubr.msk.bf16.mxu1 %vm2892_vm12, %v16482_v29  ;;  %v6215_v46 = vsel %vm1333_vm7, %v6214_v20, %v6213_v63  ;;  %v6218_v60 = vrot.slane %v19027_v25, 2  ;;  %v6471_v13 = vpack.c.b16 %v19029_v59, %v19028_v0  ;;  %v12858_v25 = vld [vmem:[#allocation20 + $0x28] sm:$0xff]   ;;  %v19039_v0 = vld [vmem:[#allocation59_spill] sm:$0xff] }
 0x87c   : > { %v6217_v23 = vsel %vm1336_vm8, %v6216_v44, %v6215_v46  ;;  %v5485_v31 = vrot.slane %v5471_v56, %v19026_v58  ;;  %v6582_v41 = vpack.c.b16 %v16475_v27, %v16471_v26  ;;  %v19042_v26 = vld [vmem:[#allocation64_spill] sm:$0xff]  ;;  %v12862_v59 = vld [vmem:[#allocation9] sm:$0xff]  }
 0x87d   : > { %v5486_v42 = vcombine.high %v5478_v24, %v5478_v24  ;;  %v5494_v40 = vrot.slane %v5478_v24, %v19026_v58  ;;  %v6219_v37 = vsel %vm1339_vm9, %v6218_v60, %v6217_v23  ;;  %12517 = vmatprep.subr.bf16.mxu0 %v12862_v59 }
 0x87e   : > { %v16509_v10 = vsel %vm1342_vm10, %v19011_v4, %v6219_v37  ;;  %v5487_v49 = vcombine.high %v5485_v31, %v5485_v31  ;;  %v5501_v33 = vrot.slane %v5485_v31, %v19026_v58  ;;  %12518 = vmatpush3.bf16.msra.mxu0 %v12862_v59 }
 0x87f   : > { %v5508_v19 = vrot.slane %v5486_v42, %v19026_v58  ;;  %v16515_v18 = vpack.c.b16 %v16509_v10, %v16475_v27  ;;  %v5516_v8 = vcombine.high %v5494_v40, %v5494_v40  ;;  %v6316_v32 = vpack.c.bf16 %v5494_v40, %v5494_v40  ;;  %v19030_v40 = vld [vmem:[#allocation52_spill] sm:$0xff] }
 0x880   : > { %v5515_v22 = vrot.slane %v5487_v49, %v19026_v58  ;;  %v5517_v5 = vcombine.high %v5501_v33, %v5501_v33  ;;  %v6320_v54 = vpack.c.bf16 %v5501_v33, %v5501_v33  ;;  %v19031_v37 = vpack.c.b16 %v16301_v3, %v19030_v40 }
 0x881   : > { %v5518_v51 = vcombine.high %v5508_v19, %v5508_v19  ;;  %v6317_v53 = vpack.c.bf16 %v5508_v19, %v5508_v19  ;;  %12454 = vmatmul.mubr.msk.bf16.gmra.mrb[56].mxu1 %vm2892_vm12, %v16515_v18  ;;  %v6318_v7 = vpack.c.bf16 %v5516_v8, %v5516_v8  ;;  %v6333_v6 = vunpack.c.l.b16 %v6316_v32 }
 0x882   : > { %12459 = vmatprep.mubr.msk.bf16.mxu1 %vm2892_vm12, %v6354_v12  ;;  %v6321_v39 = vpack.c.bf16 %v5515_v22, %v5515_v22  ;;  %v6322_v61 = vpack.c.bf16 %v5517_v5, %v5517_v5  ;;  %v6337_v38 = vunpack.c.l.b16 %v6320_v54  ;;  %v5519_v1 = vcombine.high %v5515_v22, %v5515_v22 }
 0x883   : > { %v6319_v21 = vpack.c.bf16 %v5518_v51, %v5518_v51  ;;  %v6334_v28 = vunpack.c.l.b16 %v6317_v53  ;;  %v6335_v55 = vunpack.c.l.b16 %v6318_v7  ;;  %v6340_v14 = vrot.slane %v6333_v6, 7 }
 0x884   : > { %v6338_v9 = vunpack.c.l.b16 %v6321_v39  ;;  %v6339_v16 = vunpack.c.l.b16 %v6322_v61  ;;  %v6449_v30 = vpack.c.bf16 %v5519_v1, %v5519_v1  ;;  %v6348_v56 = vrot.slane %v6337_v38, 3 }
 0x885   : > { %v6336_v36 = vunpack.c.l.b16 %v6319_v21  ;;  %v6342_v20 = vrot.slane %v6334_v28, 6  ;;  %v6341_v15 = vsel %vm1324_vm4, %v6340_v14, %v18964_v52  ;;  %v6344_v44 = vrot.slane %v6335_v55, 5 }
 0x886   : > { %v6455_v24 = vrot.slane %v6334_v28, 7  ;;  %v6457_v46 = vrot.slane %v6335_v55, 6  ;;  %v6350_v23 = vrot.slane %v6338_v9, 2  ;;  %v6352_v31 = vrot.slane %v6339_v16, 1 }
 0x887   : > { %v6343_v63 = vsel %vm1327_vm5, %v6342_v20, %v6341_v15  ;;  %v6346_v12 = vrot.slane %v6336_v36, 4  ;;  %v6459_v42 = vrot.slane %v6336_v36, 5  ;;  %v6454_v49 = vunpack.c.l.b16 %v6449_v30  ;;  %v19033_v30 = vld [vmem:[#allocation42_spill] sm:$0xff] }
 0x888   : > { %v6345_v48 = vsel %vm1330_vm6, %v6344_v44, %v6343_v63  ;;  %v6456_v33 = vsel %vm1324_vm4, %v6455_v24, %v6333_v6  ;;  %v6461_v19 = vrot.slane %v6337_v38, 4  ;;  %v6567_v22 = vrot.slane %v6335_v55, 7  ;;  %v19032_v44 = vld [vmem:[#allocation47_spill] sm:$0xff]  ;;  %v19035_v24 = vld [vmem:[#allocation56_spill] sm:$0xff] }
 0x889   : > { %v6347_v60 = vsel %vm1333_vm7, %v6346_v12, %v6345_v48  ;;  %12460 = vmatmul.mubr.msk.bf16.vlgmr.msra.gmra.mrb[52].mxu1 %vm2892_vm12, %v19031_v37  ;;  %v6458_v32 = vsel %vm1327_vm5, %v6457_v46, %v6456_v33  ;;  %v6569_v5 = vrot.slane %v6336_v36, 6  ;;  %v6463_v53 = vrot.slane %v6338_v9, 3  ;;  %v19036_v46 = vld [vmem:[#allocation54_spill] sm:$0xff] }
 0x88a   : > { %v6349_v52 = vsel %vm1336_vm8, %v6348_v56, %v6347_v60  ;;  %12463 = vmatprep.mubr.msk.bf16.mxu1 %vm2892_vm12, %v6356_v57  ;;  %12468 = vmatpush3.bf16.msra.mxu1 %v16430_v34  ;;  %v6460_v51 = vsel %vm1330_vm6, %v6459_v42, %v6458_v32  ;;  %v6465_v7 = vrot.slane %v6339_v16, 2  ;;  %v6568_v57 = vsel %vm1324_vm4, %v6567_v22, %v6334_v28  ;;  %v12859_v56 = vld [vmem:[#allocation20 + $0x30] sm:$0xff]  }
 0x88b   : > { %v6351_v8 = vsel %vm1339_vm9, %v6350_v23, %v6349_v52  ;;  %12477 = vmatprep.subr.bf16.mxu1 %v12858_v25  ;;  %v6462_v6 = vsel %vm1333_vm7, %v6461_v19, %v6460_v51  ;;  %v6571_v21 = vrot.slane %v6337_v38, 5  ;;  %v6467_v39 = vrot.slane %v6454_v49, 1  ;;  %v19034_v38 = vld [vmem:[#allocation63_spill] sm:$0xff] }
 0x88c   : > { %v6353_v3 = vsel %vm1342_vm10, %v6352_v31, %v6351_v8  ;;  %v6464_v34 = vsel %vm1336_vm8, %v6463_v53, %v6462_v6  ;;  %v6570_v61 = vsel %vm1327_vm5, %v6569_v5, %v6568_v57  ;;  %v6573_v55 = vrot.slane %v6338_v9, 4 }
 0x88d   : > { %v6357_v54 = vpack.c.b16 %v6353_v3, %v16359_v62  ;;  %v6466_v14 = vsel %vm1339_vm9, %v6465_v7, %v6464_v34  ;;  %v6572_v1 = vsel %vm1330_vm6, %v6571_v21, %v6570_v61  ;;  %v6575_v36 = vrot.slane %v6339_v16, 3 }
 0x88e   : > { %v6468_v20 = vsel %vm1342_vm10, %v6467_v39, %v6466_v14  ;;  %v6574_v62 = vsel %vm1333_vm7, %v6573_v55, %v6572_v1  ;;  %v6577_v15 = vrot.slane %v6454_v49, 2  ;;  %v6469_v28 = vpack.c.b16 %v19033_v30, %v19032_v44 }
 0x88f   : > { %v6472_v63 = vpack.c.b16 %v6468_v20, %v19034_v38  ;;  %v6576_v12 = vsel %vm1336_vm8, %v6575_v36, %v6574_v62  ;;  %v19037_v60 = vpack.c.b16 %v19035_v24, %v19036_v46  ;;  %v6580_v23 = vpack.c.b16 %v16404_v2, %v16381_v50  ;;  %v19038_v50 = vld [vmem:[#allocation40_spill] sm:$0xff] }
 0x890   : > { %v6578_v9 = vsel %vm1339_vm9, %v6577_v15, %v6576_v12  ;;  %v12861_v2 = vld [vmem:[#allocation20 + $0x40] sm:$0xff]   ;;  %v6678_v17 = vpack.c.b16 %v14697_v11, %v6353_v3  ;;  %v6764_v27 = vpack.c.b16 %v14697_v11, %v6468_v20 }
 0x891   : > { %12464 = vmatmul.mubr.msk.bf16.gmra.mrb[56].mxu1 %vm2892_vm12, %v6357_v54  ;;  %v6579_v16 = vsel %vm1342_vm10, %v19011_v4, %v6578_v9  ;;  %v12860_v4 = vld [vmem:[#allocation20 + $0x38] sm:$0xff]  }
 0x892   : > { %12469 = vmatprep.mubr.msk.bf16.mxu1 %vm2892_vm12, %v6469_v28  ;;  %v6583_v48 = vpack.c.b16 %v6579_v16, %v16509_v10  ;;  %v16604_v10 = vld [vmem:[#allocation9 + $0x18] sm:$0xff]  }
 0x899   : > { %12470 = vmatmul.mubr.msk.bf16.vlgmr.msra.gmra.mrb[52].mxu1 %vm2892_vm12, %v19037_v60 }
 0x89a   : > { %12473 = vmatprep.mubr.msk.bf16.mxu1 %vm2892_vm12, %v6471_v13  ;;  %12478 = vmatpush3.bf16.msra.mxu1 %v12858_v25  ;;  %v12863_v13 = vld [vmem:[#allocation9 + $0x8] sm:$0xff]  }
 0x89b   : > { %12487 = vmatprep.subr.bf16.mxu1 %v12859_v56 }
 0x8a1   : > { %12474 = vmatmul.mubr.msk.bf16.gmra.mrb[56].mxu1 %vm2892_vm12, %v6472_v63 }
 0x8a2   : > { %12479 = vmatprep.mubr.msk.bf16.mxu1 %vm2892_vm12, %v6580_v23 }
 0x8a9   : > { %12480 = vmatmul.mubr.msk.bf16.vlgmr.msra.gmra.mrb[52].mxu1 %vm2892_vm12, %v6581_v45  ;;  %v19041_v45 = vld [vmem:[#allocation61_spill] sm:$0xff] }
 0x8aa   : > { %12483 = vmatprep.mubr.msk.bf16.mxu1 %vm2892_vm12, %v6582_v41  ;;  %12488 = vmatpush3.bf16.msra.mxu1 %v12859_v56  ;;  %v16602_v41 = vld [vmem:[#allocation9 + $0x10] sm:$0xff]  }
 0x8ab   : > { %12497 = vmatprep.subr.bf16.mxu1 %v12860_v4  ;;  %12537 = vmatprep.subr.bf16.mxu0 %v16602_v41 }
 0x8b1   : > { %12484 = vmatmul.mubr.msk.bf16.gmra.mrb[56].mxu1 %vm2892_vm12, %v6583_v48 }
 0x8b2   : > { %12489 = vmatprep.mubr.msk.bf16.mxu1 %vm2892_vm12, %v19038_v50 }
 0x8b9   : > { %12490 = vmatmul.mubr.msk.bf16.vlgmr.msra.gmra.mrb[52].mxu1 %vm2892_vm12, %v19039_v0 }
 0x8ba   : > { %12493 = vmatprep.mubr.msk.bf16.mxu1 %vm2892_vm12, %v16367_v35  ;;  %12498 = vmatpush3.bf16.msra.mxu1 %v12860_v4  ;;  %v6850_v35 = vpack.c.b16 %v14697_v11, %v6579_v16 }
 0x8bb   : > { %12507 = vmatprep.subr.bf16.mxu1 %v12861_v2 }
 0x8c1   : > { %12494 = vmatmul.mubr.msk.bf16.gmra.mrb[56].mxu1 %vm2892_vm12, %v6678_v17 }
 0x8c2   : > { %12499 = vmatprep.mubr.msk.bf16.mxu1 %vm2892_vm12, %v19040_v43 }
 0x8c9   : > { %12500 = vmatmul.mubr.msk.bf16.vlgmr.msra.gmra.mrb[52].mxu1 %vm2892_vm12, %v19041_v45 }
 0x8ca   : > { %12503 = vmatprep.mubr.msk.bf16.mxu1 %vm2892_vm12, %v19042_v26  ;;  %12508 = vmatpush3.bf16.msra.mxu1 %v12861_v2 }
 0x8cb   : > { %12527 = vmatprep.subr.bf16.mxu1 %v12863_v13 }
 0x8d1   : > { %12504 = vmatmul.mubr.msk.bf16.gmra.mrb[56].mxu1 %vm2892_vm12, %v6764_v27 }
 0x8d2   : > { %12509 = vmatprep.mubr.msk.bf16.mxu1 %vm2892_vm12, %v16425_v47  ;;  %v11990_v47 = vld [vmem:[#allocation21] ss:$0 sm:$0xff] }
 0x8d9   : > { %12510 = vmatmul.mubr.msk.bf16.vlgmr.msra.gmra.mrb[52].mxu1 %vm2892_vm12, %v16482_v29 }
 0x8da   : > { %12513 = vmatprep.mubr.msk.bf16.mxu1 %vm2892_vm12, %v16515_v18  ;;  %12528 = vmatpush3.bf16.msra.mxu1 %v12863_v13 }
 0x8db   : > { %12547 = vmatprep.subr.bf16.mxu1 %v16604_v10 }
 0x8e1   : > { %12514 = vmatmul.mubr.msk.bf16.gmra.mrb[56].mxu1 %vm2892_vm12, %v6850_v35 }
 0x9ac   : > { %v12511_v29 = vpop.f32.mrb[52].mxu1 }
 0x9ad   : > { %v6894_v18 = vpop.f32.mrb[53].mxu1  ;;  %v16608_v11 = vadd.f32 %v12511_v29, %v11990_v47 }
 0x9ae   : > { %v16610_v25 = vadd.f32 %v11990_v47, %v6894_v18  ;;  %v12512_v31 = vpop.f32.mrb[54].mxu1 }
 0x9af   : > { %v6897_v42 = vpop.f32.mrb[55].mxu1  ;;  %v16614_v37 = vadd.f32 %v12512_v31, %v11990_v47  ;;  %v6972_v49 = vmul.f32 %v16608_v11, %v16608_v11  ;;  %v6951_v22 = vsel %vm2892_vm12, %v16608_v11, 0.0 }
 0x9b0   : > { %v6970_v40 = vmul.f32 %v16610_v25, %v16610_v25  ;;  %v16616_v52 = vadd.f32 %v11990_v47, %v6897_v42  ;;  %v6948_v33 = vsel %vm2892_vm12, %v16610_v25, 0.0 }
 0x9b1   : > { %v6973_v3 = vmul.f32 %v16614_v37, %v16614_v37  ;;  %v6981_v57 = vsel %vm2892_vm12, %v6972_v49, 0.0  ;;  %v6953_v21 = vsel %vm2892_vm12, %v16614_v37, 0.0 }
 0x9b2   : > { %v6949_v19 = vsel %vm2892_vm12, %v16616_v52, 0.0  ;;  %v6971_v8 = vmul.f32 %v16616_v52, %v16616_v52  ;;  %v6978_v5 = vsel %vm2892_vm12, %v6970_v40, 0.0 }
 0x9b3   : > { %v6950_v32 = vadd.f32 %v6949_v19, %v6948_v33  ;;  %v6983_v36 = vsel %vm2892_vm12, %v6973_v3, 0.0 }
 0x9b4   : > { %v6979_v51 = vsel %vm2892_vm12, %v6971_v8, 0.0  ;;  %v12515_v53 = vpop.f32.mrb[56].mxu1 }
 0x9b5   : > { %v6952_v7 = vadd.f32 %v6951_v22, %v6950_v32  ;;  %v6980_v54 = vadd.f32 %v6979_v51, %v6978_v5  ;;  %v6910_v6 = vpop.f32.mrb[57].mxu1  ;;  %v6946_v55 = vadd.f32 %v12515_v53, %v11990_v47 }
 0x9b6   : > { %v16635_v34 = vadd.f32 %v11990_v47, %v6910_v6  ;;  %v12516_v39 = vpop.f32.mrb[58].mxu1 }
 0x9b7   : > { %v6982_v61 = vadd.f32 %v6981_v57, %v6980_v54  ;;  %v6954_v14 = vadd.f32 %v6953_v21, %v6952_v7  ;;  %v6913_v1 = vpop.f32.mrb[59].mxu1  ;;  %v6947_v28 = vadd.f32 %v12516_v39, %v11990_v47  ;;  %v6976_v12 = vmul.f32 %v6946_v55, %v6946_v55 }
 0x9b8   : > { %v6955_v20 = vsel %vm2892_vm12, %v16635_v34, 0.0  ;;  %v6974_v62 = vmul.f32 %v16635_v34, %v16635_v34  ;;  %v6945_v15 = vadd.f32 %v11990_v47, %v6913_v1  ;;  %v6959_v56 = vsel %vm2892_vm12, %v6946_v55, 0.0 }
 0x9b9   : > { %v6956_v44 = vadd.f32 %v6955_v20, %v6954_v14  ;;  %v6984_v30 = vadd.f32 %v6983_v36, %v6982_v61  ;;  %v6977_v24 = vmul.f32 %v6947_v28, %v6947_v28  ;;  %v6961_v23 = vsel %vm2892_vm12, %v6947_v28, 0.0 }
 0x9ba   : > { %v6985_v38 = vsel %vm2892_vm12, %v6974_v62, 0.0  ;;  %v6957_v63 = vsel %vm2892_vm12, %v6945_v15, 0.0  ;;  %v6975_v48 = vmul.f32 %v6945_v15, %v6945_v15  ;;  %v6989_v50 = vsel %vm2892_vm12, %v6976_v12, 0.0 }
 0x9bb   : > { %v6986_v9 = vadd.f32 %v6985_v38, %v6984_v30  ;;  %v6958_v16 = vadd.f32 %v6957_v63, %v6956_v44  ;;  %v6991_v17 = vsel %vm2892_vm12, %v6977_v24, 0.0 }
 0x9bc   : > { %v6987_v60 = vsel %vm2892_vm12, %v6975_v48, 0.0 }
 0x9bd   : > { %v6960_v46 = vadd.f32 %v6959_v56, %v6958_v16  ;;  %v6988_v4 = vadd.f32 %v6987_v60, %v6986_v9 }
 0x9bf   : > { %v6962_v2 = vadd.f32 %v6961_v23, %v6960_v46  ;;  %v6990_v0 = vadd.f32 %v6989_v50, %v6988_v4 }
 0x9c1   : > { %v6963_v43 = vrot.slane %v6962_v2, 4  ;;  %v6992_v45 = vadd.f32 %v6991_v17, %v6990_v0 }
 0x9c3   : > { %v6964_v26 = vadd.f32 %v6963_v43, %v6962_v2  ;;  %v6993_v27 = vrot.slane %v6992_v45, 4 }
 0x9c5   : > { %v6965_v35 = vrot.slane %v6964_v26, 2  ;;  %v6994_v59 = vadd.f32 %v6993_v27, %v6992_v45 }
 0x9c7   : > { %v6966_v13 = vadd.f32 %v6965_v35, %v6964_v26  ;;  %v6995_v47 = vrot.slane %v6994_v59, 2 }
 0x9c9   : > { %v6967_v29 = vrot.slane %v6966_v13, 1  ;;  %v6996_v18 = vadd.f32 %v6995_v47, %v6994_v59 }
 0x9cb   : > { %v6968_v31 = vadd.f32 %v6967_v29, %v6966_v13  ;;  %v6997_v42 = vrot.slane %v6996_v18, 1 }
 0x9cd   : > { %v6969_v40 = vmul.f32 0.015625, %v6968_v31  ;;  %v6998_v49 = vadd.f32 %v6997_v42, %v6996_v18 }
 0x9cf   : > { %v7000_v33 = vmul.f32 %v6969_v40, %v6969_v40  ;;  %v7008_v19 = vsub.f32 %v6945_v15, %v6969_v40  ;;  %v7003_v8 = vsub.f32 %v16610_v25, %v6969_v40  ;;  %v7004_v32 = vsub.f32 %v16616_v52, %v6969_v40 }
 0x9d0   : > { %v6999_v22 = vmul.f32 0.015625, %v6998_v49  ;;  %v7005_v5 = vsub.f32 %v16608_v11, %v6969_v40  ;;  %v7006_v3 = vsub.f32 %v16614_v37, %v6969_v40  ;;  %v7007_v51 = vsub.f32 %v16635_v34, %v6969_v40 }
 0x9d1   : > { %v7009_v53 = vsub.f32 %v6946_v55, %v6969_v40  ;;  %v7010_v7 = vsub.f32 %v6947_v28, %v6969_v40 }
 0x9d2   : > { %v7001_v54 = vsub.f32 %v6999_v22, %v7000_v33 }
 0x9d4   : > { %v7002_v6 = vmax.f32 %v7001_v54, 0.0 }
 0x9d6   : > { %v7011_v57 = vadd.f32 1e-05, %v7002_v6 }
 0x9d8   : > { %12872 = vrsqrt.f32 %v7011_v57 }
 0x9e2   : > { %v12873_v21 = vpop.eup %12872 }
 0x9e3   : > { %v16654_v39 = vmul.f32 %v12873_v21, %v7008_v19  ;;  %v16656_v61 = vmul.f32 %v12873_v21, %v7003_v8  ;;  %v16658_v25 = vmul.f32 %v12873_v21, %v7004_v32  ;;  %v16660_v52 = vmul.f32 %v12873_v21, %v7005_v5 }
 0x9e4   : > { %v16662_v11 = vmul.f32 %v12873_v21, %v7006_v3  ;;  %v16664_v37 = vmul.f32 %v12873_v21, %v7007_v51  ;;  %v16666_v34 = vmul.f32 %v12873_v21, %v7009_v53  ;;  %v16668_v55 = vmul.f32 %v12873_v21, %v7010_v7 }
 0x9e5   : > { %19043 = vst [vmem:[#allocation43_spill] sm:$0xff] %v16654_v39  ;;  %19044 = vst [vmem:[#allocation45_spill] sm:$0xff] %v16656_v61  ;;  %v18667_v14 = vmax.f32 %v16654_v39, 0.0  ;;  %v18672_v1 = vmax.f32 %v16656_v61, 0.0  ;;  %v18671_v36 = vmax.f32 %v16658_v25, 0.0  ;;  %v18670_v20 = vmax.f32 %v16660_v52, 0.0 }
 0x9e6   : > { %19045 = vst [vmem:[#allocation53_spill] sm:$0xff] %v16658_v25  ;;  %19046 = vst [vmem:[#allocation55_spill] sm:$0xff] %v16660_v52  ;;  %v18669_v62 = vmax.f32 %v16662_v11, 0.0  ;;  %v18668_v15 = vmax.f32 %v16664_v37, 0.0  ;;  %v18666_v38 = vmax.f32 %v16666_v34, 0.0  ;;  %v18665_v63 = vmax.f32 %v16668_v55, 0.0 }
 0x9e7   : > { %19047 = vst [vmem:[#allocation39_spill] sm:$0xff] %v16662_v11  ;;  %19048 = vst [vmem:[#allocation51_spill] sm:$0xff] %v16664_v37  ;;  %v7064_v44 = vpack.c.bf16 %v18671_v36, %v18672_v1 }
 0x9e8   : > { %19049 = vst [vmem:[#allocation46_spill] sm:$0xff] %v16666_v34  ;;  %19050 = vst [vmem:[#allocation35_spill] sm:$0xff] %v16668_v55  ;;  %v7065_v30 = vpack.c.bf16 %v18669_v62, %v18670_v20  ;;  %v7066_v28 = vpack.c.bf16 %v18667_v14, %v18668_v15  ;;  %v7067_v12 = vpack.c.bf16 %v18665_v63, %v18666_v38 }
 0x9e9   : > { %12519 = vmatprep.mubr.msk.bf16.mxu0 %vm2892_vm12, %v7064_v44  ;;  %12529 = vmatprep.mubr.msk.bf16.mxu1 %vm2892_vm12, %v7064_v44 }
 0x9ea   : > { %12520 = vmatmul.mubr.msk.bf16.vlgmr.msra.gmra.mrb[60].mxu0 %vm2892_vm12, %v7065_v30  ;;  %12530 = vmatmul.mubr.msk.bf16.vlgmr.msra.gmra.mrb[60].mxu1 %vm2892_vm12, %v7065_v30 }
 0x9eb   : > { %12523 = vmatprep.mubr.msk.bf16.mxu0 %vm2892_vm12, %v7066_v28  ;;  %12533 = vmatprep.mubr.msk.bf16.mxu1 %vm2892_vm12, %v7066_v28 }
 0x9ec   : > { %12538 = vmatpush3.bf16.msra.mxu0 %v16602_v41  ;;  %12548 = vmatpush3.bf16.msra.mxu1 %v16604_v10  ;;  %v12011_v41 = vld [vmem:[#allocation11] ss:$0 sm:$0xff] }
 0x9ed   : > { %v9237_v10 = vcombine.high %v12011_v41, %v12011_v41  ;;  %v9244_v9 = vrot.slane %v12011_v41, %v19026_v58 }
 0x9ef   : > { %v9251_v16 = vrot.slane %v9237_v10, %v19026_v58  ;;  %v9252_v48 = vcombine.high %v9244_v9, %v9244_v9  ;;  %v16715_v24 = vrot.slane %v9244_v9, %v19026_v58 }
 0x9f1   : > { %v9253_v56 = vcombine.high %v9251_v16, %v9251_v16  ;;  %v16718_v46 = vrot.slane %v9251_v16, %v19026_v58  ;;  %v16721_v60 = vrot.slane %v9252_v48, %v19026_v58  ;;  %v16728_v50 = vcombine.high %v16715_v24, %v16715_v24 }
 0x9f2   : > { %12524 = vmatmul.mubr.msk.bf16.gmra.mrb[64].mxu0 %vm2892_vm12, %v7067_v12  ;;  %12534 = vmatmul.mubr.msk.bf16.gmra.mrb[64].mxu1 %vm2892_vm12, %v7067_v12 }
 0x9f3   : > { %12539 = vmatprep.mubr.msk.bf16.mxu0 %vm2892_vm12, %v7064_v44  ;;  %12549 = vmatprep.mubr.msk.bf16.mxu1 %vm2892_vm12, %v7064_v44  ;;  %v16724_v23 = vrot.slane %v9253_v56, %v19026_v58  ;;  %v16732_v2 = vcombine.high %v16718_v46, %v16718_v46  ;;  %v16736_v17 = vcombine.high %v16721_v60, %v16721_v60 }
 0x9f5   : > { %v16740_v43 = vcombine.high %v16724_v23, %v16724_v23 }
 0x9fa   : > { %12540 = vmatmul.mubr.msk.bf16.vlgmr.msra.gmra.mrb[68].mxu0 %vm2892_vm12, %v7065_v30  ;;  %12550 = vmatmul.mubr.msk.bf16.vlgmr.msra.gmra.mrb[68].mxu1 %vm2892_vm12, %v7065_v30 }
 0x9fb   : > { %12543 = vmatprep.mubr.msk.bf16.mxu0 %vm2892_vm12, %v7066_v28  ;;  %12553 = vmatprep.mubr.msk.bf16.mxu1 %vm2892_vm12, %v7066_v28 }
 0xa02   : > { %12544 = vmatmul.mubr.msk.bf16.gmra.mrb[72].mxu0 %vm2892_vm12, %v7067_v12  ;;  %12554 = vmatmul.mubr.msk.bf16.gmra.mrb[72].mxu1 %vm2892_vm12, %v7067_v12 }
 0xabd   : > { %v12521_v4 = vpop.f32.mrb[60].mxu0  ;;  %v12531_v0 = vpop.f32.mrb[60].mxu1 }
 0xabe   : > { %v7481_v45 = vcombine.high %v12521_v4, %v12521_v4  ;;  %v7488_v26 = vrot.slane %v12521_v4, %v19026_v58  ;;  %v7945_v27 = vcombine.high %v12531_v0, %v12531_v0  ;;  %v7952_v35 = vrot.slane %v12531_v0, %v19026_v58  ;;  %v7122_v59 = vpop.f32.mrb[61].mxu0  ;;  %v7196_v13 = vpop.f32.mrb[61].mxu1 }
 0xabf   : > { %v7383_v47 = vcombine.high %v7122_v59, %v7122_v59  ;;  %v7390_v29 = vrot.slane %v7122_v59, %v19026_v58  ;;  %v7847_v18 = vcombine.high %v7196_v13, %v7196_v13  ;;  %v16746_v31 = vrot.slane %v7196_v13, %v19026_v58  ;;  %v16748_v42 = vpop.f32.mrb[62].mxu0  ;;  %v16750_v40 = vpop.f32.mrb[62].mxu1 }
 0xac0   : > { %v7495_v49 = vrot.slane %v7481_v45, %v19026_v58  ;;  %v7496_v33 = vcombine.high %v7488_v26, %v7488_v26  ;;  %v7504_v19 = vrot.slane %v7488_v26, %v19026_v58  ;;  %v7959_v8 = vrot.slane %v7945_v27, %v19026_v58  ;;  %v16755_v32 = vpop.f32.mrb[63].mxu0  ;;  %v16757_v22 = vpop.f32.mrb[63].mxu1 }
 0xac1   : > { %v7960_v5 = vcombine.high %v7952_v35, %v7952_v35  ;;  %v7968_v3 = vrot.slane %v7952_v35, %v19026_v58  ;;  %v7397_v51 = vrot.slane %v7383_v47, %v19026_v58  ;;  %v7398_v53 = vcombine.high %v7390_v29, %v7390_v29 }
 0xac2   : > { %v7497_v7 = vcombine.high %v7495_v49, %v7495_v49  ;;  %v7511_v54 = vrot.slane %v7495_v49, %v19026_v58  ;;  %v7518_v6 = vrot.slane %v7496_v33, %v19026_v58  ;;  %v7526_v57 = vcombine.high %v7504_v19, %v7504_v19 }
 0xac3   : > { %v16764_v21 = vadd.f32 %v16715_v24, %v7504_v19  ;;  %v7961_v44 = vcombine.high %v7959_v8, %v7959_v8  ;;  %v7975_v30 = vrot.slane %v7959_v8, %v19026_v58  ;;  %v7982_v28 = vrot.slane %v7960_v5, %v19026_v58 }
 0xac4   : > { %v16769_v12 = vrot.slane %v7497_v7, %v19026_v58  ;;  %v7527_v41 = vcombine.high %v7511_v54, %v7511_v54  ;;  %v7528_v10 = vcombine.high %v7518_v6, %v7518_v6  ;;  %v16772_v9 = vadd.f32 %v16728_v50, %v7518_v6 }
 0xac5   : > { %19051 = vst [vmem:[#allocation50_spill] sm:$0xff] %v16764_v21  ;;  %v16775_v16 = vadd.f32 %v16718_v46, %v7526_v57  ;;  %v16778_v48 = vadd.f32 %v16715_v24, %v7511_v54  ;;  %v16781_v56 = vrot.slane %v7961_v44, %v19026_v58  ;;  %v7990_v4 = vcombine.high %v7968_v3, %v7968_v3  ;;  %v16783_v0 = vpop.f32.mrb[64].mxu0  ;;  %v16785_v45 = vpop.f32.mrb[64].mxu1 }
 0xac6   : > { %19052 = vst [vmem:[#allocation38_spill] sm:$0xff] %v16769_v12  ;;  %19053 = vst [vmem:[#allocation41_spill] sm:$0xff] %v16772_v9  ;;  %v16790_v27 = vadd.f32 %v16732_v2, %v7528_v10  ;;  %v16794_v35 = vadd.f32 %v16728_v50, %v16769_v12  ;;  %v16797_v59 = vadd.f32 %v16718_v46, %v7527_v41  ;;  %v16799_v13 = vpop.f32.mrb[65].mxu0  ;;  %v16801_v47 = vpop.f32.mrb[65].mxu1 }
 0xac7   : > { %19054 = vst [vmem:[#allocation58_spill] sm:$0xff] %v16775_v16  ;;  %19055 = vst [vmem:[#allocation49_spill] sm:$0xff] %v16778_v48  ;;  %v7991_v49 = vcombine.high %v7975_v30, %v7975_v30  ;;  %v7992_v33 = vcombine.high %v7982_v28, %v7982_v28  ;;  %v16806_v8 = vadd.f32 %v16721_v60, %v7968_v3  ;;  %v16808_v5 = vpop.f32.mrb[66].mxu0  ;;  %v16810_v7 = vpop.f32.mrb[66].mxu1 }
 0xac8   : > { %19056 = vst [vmem:[#allocation57_spill] sm:$0xff] %v16781_v56  ;;  %19057 = vst [vmem:[#allocation65_spill] sm:$0xff] %v16790_v27  ;;  %v16813_v54 = vadd.f32 %v16736_v17, %v7982_v28  ;;  %v16816_v6 = vadd.f32 %v16724_v23, %v7990_v4  ;;  %v16819_v57 = vadd.f32 %v16721_v60, %v7975_v30  ;;  %v16825_v41 = vpop.f32.mrb[67].mxu0  ;;  %v16827_v3 = vpop.f32.mrb[67].mxu1 }
 0xac9   : > { %19058 = vst [vmem:[#allocation48_spill] sm:$0xff] %v16794_v35  ;;  %19059 = vst [vmem:[#allocation33_spill] sm:$0xff] %v16797_v59  ;;  %v16823_v44 = vadd.f32 %v16736_v17, %v16781_v56  ;;  %v16830_v10 = vadd.f32 %v16740_v43, %v7992_v33  ;;  %v16833_v28 = vadd.f32 %v16724_v23, %v7991_v49 }
 0xaca   : > { %19060 = vst [vmem:[#allocation62_spill] sm:$0xff] %v16806_v8  ;;  %19061 = vst [vmem:[#allocation60_spill] sm:$0xff] %v16813_v54  ;;  %v7399_v63 = vcombine.high %v7397_v51, %v7397_v51  ;;  %v7406_v30 = vrot.slane %v7390_v29, %v19026_v58  ;;  %v7413_v38 = vrot.slane %v7397_v51, %v19026_v58 }
 0xacb   : > { %19062 = vst [vmem:[#allocation34_spill] sm:$0xff] %v16816_v6  ;;  %19063 = vst [vmem:[#allocation52_spill] sm:$0xff] %v16819_v57  ;;  %v7420_v14 = vrot.slane %v7398_v53, %v19026_v58  ;;  %v7861_v15 = vrot.slane %v7847_v18, %v19026_v58  ;;  %v7862_v33 = vcombine.high %v16746_v31, %v16746_v31 }
 0xacc   : > { %19064 = vst [vmem:[#allocation47_spill] sm:$0xff] %v16823_v44  ;;  %19065 = vst [vmem:[#allocation42_spill] sm:$0xff] %v16830_v10  ;;  %v16842_v62 = vrot.slane %v7399_v63, %v19026_v58  ;;  %v7870_v49 = vrot.slane %v16746_v31, %v19026_v58  ;;  %v7530_v20 = vcombine.high %v16748_v42, %v16748_v42 }
 0xacd   : > { %19066 = vst [vmem:[#allocation63_spill] sm:$0xff] %v16833_v28  ;;  %v7428_v36 = vcombine.high %v7406_v30, %v7406_v30  ;;  %v7429_v29 = vcombine.high %v7413_v38, %v7413_v38  ;;  %v7430_v1 = vcombine.high %v7420_v14, %v7420_v14  ;;  %v16851_v51 = vadd.f32 %v16715_v24, %v7406_v30  ;;  %v16865_v19 = vpop.f32.mrb[68].mxu0  ;;  %v16867_v26 = vpop.f32.mrb[68].mxu1 }
 0xace   : > { %v16856_v63 = vadd.f32 %v16728_v50, %v7420_v14  ;;  %v16859_v53 = vadd.f32 %v16715_v24, %v7413_v38  ;;  %v16863_v31 = vadd.f32 %v16728_v50, %v16842_v62  ;;  %v7863_v18 = vcombine.high %v7861_v15, %v7861_v15  ;;  %v16878_v38 = vpop.f32.mrb[69].mxu0  ;;  %v16880_v55 = vpop.f32.mrb[69].mxu1 }
 0xacf   : > { %v16870_v30 = vadd.f32 %v16718_v46, %v7428_v36  ;;  %v16873_v4 = vadd.f32 %v16732_v2, %v7430_v1  ;;  %v16876_v14 = vadd.f32 %v16718_v46, %v7429_v29  ;;  %v7877_v34 = vrot.slane %v7861_v15, %v19026_v58  ;;  %v16887_v36 = vpop.f32.mrb[70].mxu0  ;;  %v16889_v1 = vpop.f32.mrb[70].mxu1 }
 0xad0   : > { %v7884_v39 = vrot.slane %v7862_v33, %v19026_v58  ;;  %v7892_v37 = vcombine.high %v7870_v49, %v7870_v49  ;;  %v16885_v11 = vadd.f32 %v16721_v60, %v7870_v49  ;;  %v16892_v29 = vrot.slane %v7863_v18, %v19026_v58  ;;  %v16899_v33 = vpop.f32.mrb[71].mxu0  ;;  %v16901_v61 = vpop.f32.mrb[71].mxu1 }
 0xad1   : > { %19067 = vst [vmem:[#allocation56_spill] sm:$0xff] %v16876_v14  ;;  %v7537_v52 = vrot.slane %v16748_v42, %v19026_v58  ;;  %v7544_v25 = vrot.slane %v7530_v20, %v19026_v58  ;;  %v7994_v15 = vcombine.high %v16750_v40, %v16750_v40  ;;  %v7893_v49 = vcombine.high %v7877_v34, %v7877_v34 }
 0xad2   : > { %v7894_v59 = vcombine.high %v7884_v39, %v7884_v39  ;;  %v16904_v28 = vadd.f32 %v16736_v17, %v7884_v39  ;;  %v16907_v18 = vadd.f32 %v16724_v23, %v7892_v37  ;;  %v16912_v20 = vadd.f32 %v16721_v60, %v7877_v34 }
 0xad3   : > { %v16916_v35 = vadd.f32 %v16736_v17, %v16892_v29  ;;  %v16924_v39 = vadd.f32 %v16724_v23, %v7893_v49  ;;  %v7545_v37 = vcombine.high %v7537_v52, %v7537_v52  ;;  %v7546_v57 = vcombine.high %v7544_v25, %v7544_v25 }
 0xad4   : > { %v16921_v48 = vadd.f32 %v16740_v43, %v7894_v59  ;;  %v7553_v42 = vrot.slane %v7537_v52, %v19026_v58  ;;  %v7560_v34 = vrot.slane %v7544_v25, %v19026_v58  ;;  %v8001_v56 = vrot.slane %v16750_v40, %v19026_v58 }
 0xad5   : > { %19068 = vst [vmem:[#allocation54_spill] sm:$0xff] %v16924_v39  ;;  %v8008_v12 = vrot.slane %v7994_v15, %v19026_v58  ;;  %v7567_v8 = vrot.slane %v7545_v37, %v19026_v58  ;;  %v16933_v44 = vrot.slane %v7546_v57, %v19026_v58  ;;  %v7432_v59 = vcombine.high %v16755_v32, %v16755_v32  ;;  %v16939_v21 = vpop.f32.mrb[72].mxu0  ;;  %v16941_v52 = vpop.f32.mrb[72].mxu1 }
 0xad6   : > { %v7439_v49 = vrot.slane %v16755_v32, %v19026_v58  ;;  %v7575_v25 = vcombine.high %v7553_v42, %v7553_v42  ;;  %v7576_v27 = vcombine.high %v7560_v34, %v7560_v34  ;;  %v16944_v40 = vadd.f32 %v16715_v24, %v7553_v42  ;;  %v16949_v57 = vpop.f32.mrb[73].mxu0  ;;  %v16951_v37 = vpop.f32.mrb[73].mxu1 }
 0xad7   : > { %19069 = vst [vmem:[#allocation40_spill] sm:$0xff] %v16933_v44  ;;  %v16947_v15 = vadd.f32 %v16715_v24, %v7560_v34  ;;  %v7577_v10 = vcombine.high %v7567_v8, %v7567_v8  ;;  %v16956_v16 = vadd.f32 %v16728_v50, %v7567_v8  ;;  %v16960_v6 = vadd.f32 %v16728_v50, %v16933_v44  ;;  %v16962_v42 = vpop.f32.mrb[74].mxu1 }
 0xad8   : > { %19070 = vst [vmem:[#allocation59_spill] sm:$0xff] %v16944_v40  ;;  %v16965_v34 = vadd.f32 %v16718_v46, %v7575_v25  ;;  %v8009_v9 = vcombine.high %v8001_v56, %v8001_v56  ;;  %v8010_v54 = vcombine.high %v8008_v12, %v8008_v12  ;;  %v8017_v8 = vrot.slane %v8001_v56, %v19026_v58 }
 0xad9   : > { %19071 = vst [vmem:[#allocation44_spill] sm:$0xff] %v16947_v15  ;;  %19072 = vst [vmem:[#allocation61_spill] sm:$0xff] %v16956_v16  ;;  %v16968_v15 = vadd.f32 %v16718_v46, %v7576_v27  ;;  %v16971_v14 = vadd.f32 %v16732_v2, %v7577_v10  ;;  %v8024_v32 = vrot.slane %v8008_v12, %v19026_v58 }
 0xada   : > { %19073 = vst [vmem:[#allocation64_spill] sm:$0xff] %v16960_v6  ;;  %19074 = vst [vmem:[#allocation66_spill] sm:$0xff] %v16965_v34  ;;  %v7446_v44 = vrot.slane %v7432_v59, %v19026_v58  ;;  %v8031_v6 = vrot.slane %v8009_v9, %v19026_v58  ;;  %v16978_v16 = vrot.slane %v8010_v54, %v19026_v58 }
 0xadb   : > { %19075 = vst [vmem:[#allocation67_spill] sm:$0xff] %v16968_v15  ;;  %19076 = vst [vmem:[#allocation68_spill] sm:$0xff] %v16971_v14  ;;  %v7447_v25 = vcombine.high %v7439_v49, %v7439_v49  ;;  %v7455_v27 = vrot.slane %v7439_v49, %v19026_v58  ;;  %v8039_v15 = vcombine.high %v8017_v8, %v8017_v8 }
 0xadc   : > { %19077 = vst [vmem:[#allocation69_spill] sm:$0xff] %v16978_v16  ;;  %v8040_v34 = vcombine.high %v8024_v32, %v8024_v32  ;;  %v16982_v39 = vadd.f32 %v16721_v60, %v8017_v8  ;;  %v16985_v10 = vadd.f32 %v16721_v60, %v8024_v32  ;;  %v8041_v56 = vcombine.high %v8031_v6, %v8031_v6 }
 0xadd   : > { %v16990_v9 = vadd.f32 %v16736_v17, %v8031_v6  ;;  %v16994_v54 = vadd.f32 %v16736_v17, %v16978_v16  ;;  %v16997_v59 = vadd.f32 %v16724_v23, %v8039_v15  ;;  %v7448_v8 = vcombine.high %v7446_v44, %v7446_v44 }
 0xade   : > { %19078 = vst [vmem:[#allocation70_spill] sm:$0xff] %v16982_v39  ;;  %19079 = vst [vmem:[#allocation71_spill] sm:$0xff] %v16985_v10  ;;  %v17000_v49 = vadd.f32 %v16724_v23, %v8040_v34  ;;  %v17005_v10 = vadd.f32 %v16740_v43, %v8041_v56  ;;  %v7462_v6 = vrot.slane %v7446_v44, %v19026_v58 }
 0xadf   : > { %19080 = vst [vmem:[#allocation72_spill] sm:$0xff] %v16990_v9  ;;  %19081 = vst [vmem:[#allocation73_spill] sm:$0xff] %v16994_v54  ;;  %v7469_v12 = vrot.slane %v7447_v25, %v19026_v58  ;;  %v7477_v14 = vcombine.high %v7455_v27, %v7455_v27  ;;  %v17010_v54 = vrot.slane %v7448_v8, %v19026_v58  ;;  %v17025_v25 = vpop.f32.mrb[74].mxu0 }
 0xae0   : > { %19082 = vst [vmem:[#allocation74_spill] sm:$0xff] %v16997_v59  ;;  %19083 = vst [vmem:[#allocation75_spill] sm:$0xff] %v17000_v49  ;;  %v17013_v15 = vadd.f32 %v16715_v24, %v7455_v27  ;;  %v7896_v34 = vcombine.high %v16757_v22, %v16757_v22  ;;  %v7903_v32 = vrot.slane %v16757_v22, %v19026_v58  ;;  %v17037_v40 = vpop.f32.mrb[75].mxu0 }
 0xae1   : > { %19084 = vst [vmem:[#allocation76_spill] sm:$0xff] %v17005_v10  ;;  %19085 = vst [vmem:[#allocation77_spill] sm:$0xff] %v17010_v54  ;;  %v7478_v49 = vcombine.high %v7462_v6, %v7462_v6  ;;  %v7479_v56 = vcombine.high %v7469_v12, %v7469_v12  ;;  %v17020_v16 = vadd.f32 %v16728_v50, %v7469_v12 }
 0xae2   : > { %19086 = vst [vmem:[#allocation78_spill] sm:$0xff] %v17013_v15  ;;  %v17023_v44 = vadd.f32 %v16718_v46, %v7477_v14  ;;  %v17030_v8 = vadd.f32 %v16715_v24, %v7462_v6  ;;  %v17034_v39 = vadd.f32 %v16728_v50, %v17010_v54  ;;  %v7910_v22 = vrot.slane %v7896_v34, %v19026_v58 }
 0xae3   : > { %19087 = vst [vmem:[#allocation79_spill] sm:$0xff] %v17020_v16  ;;  %v17040_v12 = vadd.f32 %v16732_v2, %v7479_v56  ;;  %v17043_v14 = vadd.f32 %v16718_v46, %v7478_v49  ;;  %v7911_v10 = vcombine.high %v7903_v32, %v7903_v32  ;;  %v7919_v27 = vrot.slane %v7903_v32, %v19026_v58 }
 0xae4   : > { %19088 = vst [vmem:[#allocation80_spill] sm:$0xff] %v17023_v44  ;;  %19089 = vst [vmem:[#allocation81_spill] sm:$0xff] %v17030_v8  ;;  %v7912_v59 = vcombine.high %v7910_v22, %v7910_v22  ;;  %v7926_v6 = vrot.slane %v7910_v22, %v19026_v58  ;;  %v7677_v9 = vcombine.high %v16783_v0, %v16783_v0 }
 0xae5   : > { %19090 = vst [vmem:[#allocation82_spill] sm:$0xff] %v17034_v39  ;;  %19091 = vst [vmem:[#allocation83_spill] sm:$0xff] %v17040_v12  ;;  %v7684_v34 = vrot.slane %v16783_v0, %v19026_v58  ;;  %v7933_v39 = vrot.slane %v7911_v10, %v19026_v58  ;;  %v7941_v8 = vcombine.high %v7919_v27, %v7919_v27 }
 0xae6   : > { %19092 = vst [vmem:[#allocation84_spill] sm:$0xff] %v17043_v14  ;;  %v17053_v56 = vadd.f32 %v16721_v60, %v7919_v27  ;;  %v8141_v49 = vcombine.high %v16785_v45, %v16785_v45  ;;  %v17057_v14 = vpop.f32.mrb[75].mxu1  ;;  %v17060_v32 = vrot.slane %v7912_v59, %v19026_v58  ;;  %v7942_v22 = vcombine.high %v7926_v6, %v7926_v6 }
 0xae7   : > { %v17063_v54 = vadd.f32 %v16721_v60, %v7926_v6  ;;  %v7691_v0 = vrot.slane %v7677_v9, %v19026_v58  ;;  %v7943_v12 = vcombine.high %v7933_v39, %v7933_v39  ;;  %v17067_v10 = vadd.f32 %v16736_v17, %v7933_v39 }
 0xae8   : > { %19093 = vst [vmem:[#allocation85_spill] sm:$0xff] %v17053_v56  ;;  %19094 = vst [vmem:[#allocation86_spill] sm:$0xff] %v17060_v32  ;;  %v17070_v27 = vadd.f32 %v16724_v23, %v7941_v8  ;;  %v17078_v16 = vadd.f32 %v16736_v17, %v17060_v32  ;;  %v17081_v6 = vadd.f32 %v16724_v23, %v7942_v22 }
 0xae9   : > { %19095 = vst [vmem:[#allocation87_spill] sm:$0xff] %v17063_v54  ;;  %19096 = vst [vmem:[#allocation88_spill] sm:$0xff] %v17067_v10  ;;  %v7692_v9 = vcombine.high %v7684_v34, %v7684_v34  ;;  %v17084_v39 = vadd.f32 %v16740_v43, %v7943_v12  ;;  %v7693_v54 = vcombine.high %v7691_v0, %v7691_v0 }
 0xaea   : > { %19097 = vst [vmem:[#allocation89_spill] sm:$0xff] %v17070_v27  ;;  %19098 = vst [vmem:[#allocation90_spill] sm:$0xff] %v17078_v16  ;;  %v7700_v8 = vrot.slane %v7684_v34, %v19026_v58  ;;  %v7707_v27 = vrot.slane %v7691_v0, %v19026_v58  ;;  %v8148_v59 = vrot.slane %v16785_v45, %v19026_v58 }
 0xaeb   : > { %19099 = vst [vmem:[#allocation91_spill] sm:$0xff] %v17081_v6  ;;  %19100 = vst [vmem:[#allocation92_spill] sm:$0xff] %v17084_v39  ;;  %v7714_v44 = vrot.slane %v7692_v9, %v19026_v58  ;;  %v8155_v32 = vrot.slane %v8141_v49, %v19026_v58  ;;  %v7579_v22 = vcombine.high %v16799_v13, %v16799_v13 }
 0xaec   : > { %v17095_v6 = vrot.slane %v7693_v54, %v19026_v58  ;;  %v7722_v12 = vcombine.high %v7700_v8, %v7700_v8  ;;  %v7723_v16 = vcombine.high %v7707_v27, %v7707_v27  ;;  %v17098_v56 = vadd.f32 %v16715_v24, %v7700_v8 }
 0xaed   : > { %v7724_v34 = vcombine.high %v7714_v44, %v7714_v44  ;;  %v17101_v0 = vadd.f32 %v16728_v50, %v7714_v44  ;;  %v17104_v9 = vadd.f32 %v16715_v24, %v7707_v27  ;;  %v8156_v45 = vcombine.high %v8148_v59, %v8148_v59 }
 0xaee   : > { %19101 = vst [vmem:[#allocation93_spill] sm:$0xff] %v17095_v6  ;;  %19102 = vst [vmem:[#allocation94_spill] sm:$0xff] %v17098_v56  ;;  %v17109_v15 = vadd.f32 %v16718_v46, %v7722_v12  ;;  %v17113_v54 = vadd.f32 %v16728_v50, %v17095_v6  ;;  %v17116_v8 = vadd.f32 %v16718_v46, %v7723_v16 }
 0xaef   : > { %19103 = vst [vmem:[#allocation95_spill] sm:$0xff] %v17101_v0  ;;  %19104 = vst [vmem:[#allocation96_spill] sm:$0xff] %v17104_v9  ;;  %v17119_v44 = vadd.f32 %v16732_v2, %v7724_v34  ;;  %v8157_v0 = vcombine.high %v8155_v32, %v8155_v32  ;;  %v8164_v27 = vrot.slane %v8148_v59, %v19026_v58 }
 0xaf0   : > { %19105 = vst [vmem:[#allocation97_spill] sm:$0xff] %v17109_v15  ;;  %19106 = vst [vmem:[#allocation98_spill] sm:$0xff] %v17113_v54  ;;  %v8171_v9 = vrot.slane %v8155_v32, %v19026_v58  ;;  %v8178_v49 = vrot.slane %v8156_v45, %v19026_v58  ;;  %v7586_v12 = vrot.slane %v16799_v13, %v19026_v58 }
 0xaf1   : > { %19107 = vst [vmem:[#allocation99_spill] sm:$0xff] %v17116_v8  ;;  %19108 = vst [vmem:[#allocation100_spill] sm:$0xff] %v17119_v44  ;;  %v7593_v15 = vrot.slane %v7579_v22, %v19026_v58  ;;  %v8043_v54 = vcombine.high %v16801_v47, %v16801_v47  ;;  %v17130_v16 = vrot.slane %v8157_v0, %v19026_v58 }
 0xaf2   : > { %v8186_v34 = vcombine.high %v8164_v27, %v8164_v27  ;;  %v8187_v8 = vcombine.high %v8171_v9, %v8171_v9  ;;  %v17133_v6 = vadd.f32 %v16721_v60, %v8164_v27  ;;  %v8188_v59 = vcombine.high %v8178_v49, %v8178_v49 }
 0xaf3   : > { %19109 = vst [vmem:[#allocation101_spill] sm:$0xff] %v17130_v16  ;;  %v17136_v32 = vadd.f32 %v16736_v17, %v8178_v49  ;;  %v17139_v45 = vadd.f32 %v16721_v60, %v8171_v9  ;;  %v7594_v13 = vcombine.high %v7586_v12, %v7586_v12  ;;  %v17148_v0 = vadd.f32 %v16736_v17, %v17130_v16 }
 0xaf4   : > { %19110 = vst [vmem:[#allocation102_spill] sm:$0xff] %v17133_v6  ;;  %v17144_v44 = vadd.f32 %v16724_v23, %v8186_v34  ;;  %v17151_v27 = vadd.f32 %v16724_v23, %v8187_v8  ;;  %v17154_v49 = vadd.f32 %v16740_v43, %v8188_v59  ;;  %v7609_v22 = vrot.slane %v7593_v15, %v19026_v58 }
 0xaf5   : > { %19111 = vst [vmem:[#allocation103_spill] sm:$0xff] %v17136_v32  ;;  %19112 = vst [vmem:[#allocation104_spill] sm:$0xff] %v17139_v45  ;;  %v7595_v45 = vcombine.high %v7593_v15, %v7593_v15  ;;  %v7602_v32 = vrot.slane %v7586_v12, %v19026_v58  ;;  %v7616_v34 = vrot.slane %v7594_v13, %v19026_v58 }
 0xaf6   : > { %19113 = vst [vmem:[#allocation105_spill] sm:$0xff] %v17144_v44  ;;  %19114 = vst [vmem:[#allocation106_spill] sm:$0xff] %v17148_v0  ;;  %v8050_v16 = vrot.slane %v16801_v47, %v19026_v58  ;;  %v8057_v0 = vrot.slane %v8043_v54, %v19026_v58  ;;  %v7726_v9 = vcombine.high %v16808_v5, %v16808_v5 }
 0xaf7   : > { %19115 = vst [vmem:[#allocation107_spill] sm:$0xff] %v17151_v27  ;;  %19116 = vst [vmem:[#allocation108_spill] sm:$0xff] %v17154_v49  ;;  %v17165_v8 = vrot.slane %v7595_v45, %v19026_v58  ;;  %v7624_v59 = vcombine.high %v7602_v32, %v7602_v32  ;;  %v17168_v27 = vadd.f32 %v16715_v24, %v7602_v32 }
 0xaf8   : > { %v7625_v12 = vcombine.high %v7609_v22, %v7609_v22  ;;  %v7626_v6 = vcombine.high %v7616_v34, %v7616_v34  ;;  %v17173_v15 = vadd.f32 %v16728_v50, %v7616_v34  ;;  %v17176_v13 = vadd.f32 %v16715_v24, %v7609_v22 }
 0xaf9   : > { %19117 = vst [vmem:[#allocation109_spill] sm:$0xff] %v17165_v8  ;;  %19118 = vst [vmem:[#allocation110_spill] sm:$0xff] %v17168_v27  ;;  %v17181_v54 = vadd.f32 %v16718_v46, %v7624_v59  ;;  %v17185_v32 = vadd.f32 %v16728_v50, %v17165_v8  ;;  %v8058_v45 = vcombine.high %v8050_v16, %v8050_v16 }
 0xafa   : > { %19119 = vst [vmem:[#allocation111_spill] sm:$0xff] %v17176_v13  ;;  %v17188_v56 = vadd.f32 %v16732_v2, %v7626_v6  ;;  %v17191_v34 = vadd.f32 %v16718_v46, %v7625_v12  ;;  %v8059_v49 = vcombine.high %v8057_v0, %v8057_v0  ;;  %v8066_v22 = vrot.slane %v8050_v16, %v19026_v58 }
 0xafb   : > { %19120 = vst [vmem:[#allocation112_spill] sm:$0xff] %v17185_v32  ;;  %v8073_v44 = vrot.slane %v8057_v0, %v19026_v58  ;;  %v8080_v47 = vrot.slane %v8058_v45, %v19026_v58  ;;  %v7733_v59 = vrot.slane %v16808_v5, %v19026_v58  ;;  %v7740_v39 = vrot.slane %v7726_v9, %v19026_v58 }
 0xafc   : > { %19121 = vst [vmem:[#allocation113_spill] sm:$0xff] %v17188_v56  ;;  %19122 = vst [vmem:[#allocation114_spill] sm:$0xff] %v17191_v34  ;;  %v17200_v10 = vrot.slane %v8059_v49, %v19026_v58  ;;  %v8088_v6 = vcombine.high %v8066_v22, %v8066_v22  ;;  %v17203_v32 = vadd.f32 %v16721_v60, %v8066_v22 }
 0xafd   : > { %v8190_v12 = vcombine.high %v16810_v7, %v16810_v7  ;;  %v8089_v16 = vcombine.high %v8073_v44, %v8073_v44  ;;  %v8090_v34 = vcombine.high %v8080_v47, %v8080_v47  ;;  %v17208_v0 = vadd.f32 %v16736_v17, %v8080_v47 }
 0xafe   : > { %19123 = vst [vmem:[#allocation115_spill] sm:$0xff] %v17200_v10  ;;  %19124 = vst [vmem:[#allocation116_spill] sm:$0xff] %v17203_v32  ;;  %v17211_v45 = vadd.f32 %v16721_v60, %v8073_v44  ;;  %v17216_v49 = vadd.f32 %v16724_v23, %v8088_v6  ;;  %v17220_v9 = vadd.f32 %v16736_v17, %v17200_v10 }
 0xaff   : > { %v17225_v13 = vadd.f32 %v16740_v43, %v8090_v34  ;;  %v17228_v47 = vadd.f32 %v16724_v23, %v8089_v16  ;;  %v7741_v44 = vcombine.high %v7733_v59, %v7733_v59  ;;  %v7749_v5 = vrot.slane %v7733_v59, %v19026_v58 }
 0xb00   : > { %19125 = vst [vmem:[#allocation117_spill] sm:$0xff] %v17211_v45  ;;  %19126 = vst [vmem:[#allocation118_spill] sm:$0xff] %v17220_v9  ;;  %v7742_v45 = vcombine.high %v7740_v39, %v7740_v39  ;;  %v7756_v6 = vrot.slane %v7740_v39, %v19026_v58  ;;  %v8197_v8 = vrot.slane %v16810_v7, %v19026_v58 }
 0xb01   : > { %19127 = vst [vmem:[#allocation119_spill] sm:$0xff] %v17228_v47  ;;  %v8204_v9 = vrot.slane %v8190_v12, %v19026_v58  ;;  %v7763_v10 = vrot.slane %v7741_v44, %v19026_v58  ;;  %v7628_v34 = vcombine.high %v16825_v41, %v16825_v41  ;;  %v7635_v16 = vrot.slane %v16825_v41, %v19026_v58 }
 0xb02   : > { %v17237_v22 = vrot.slane %v7742_v45, %v19026_v58  ;;  %v7771_v47 = vcombine.high %v7749_v5, %v7749_v5  ;;  %v7772_v59 = vcombine.high %v7756_v6, %v7756_v6  ;;  %v17244_v39 = vadd.f32 %v16715_v24, %v7749_v5 }
 0xb03   : > { %v17247_v7 = vadd.f32 %v16715_v24, %v7756_v6  ;;  %v7773_v12 = vcombine.high %v7763_v10, %v7763_v10  ;;  %v17252_v45 = vadd.f32 %v16728_v50, %v7763_v10  ;;  %v8205_v27 = vcombine.high %v8197_v8, %v8197_v8 }
 0xb04   : > { %19128 = vst [vmem:[#allocation120_spill] sm:$0xff] %v17237_v22  ;;  %19129 = vst [vmem:[#allocation121_spill] sm:$0xff] %v17244_v39  ;;  %v17256_v32 = vadd.f32 %v16728_v50, %v17237_v22  ;;  %v17259_v41 = vadd.f32 %v16718_v46, %v7771_v47  ;;  %v17262_v5 = vadd.f32 %v16718_v46, %v7772_v59 }
 0xb05   : > { %19130 = vst [vmem:[#allocation122_spill] sm:$0xff] %v17247_v7  ;;  %19131 = vst [vmem:[#allocation123_spill] sm:$0xff] %v17252_v45  ;;  %v8206_v6 = vcombine.high %v8204_v9, %v8204_v9  ;;  %v17265_v7 = vadd.f32 %v16732_v2, %v7773_v12  ;;  %v8213_v44 = vrot.slane %v8197_v8, %v19026_v58 }
 0xb06   : > { %19132 = vst [vmem:[#allocation124_spill] sm:$0xff] %v17256_v32  ;;  %19133 = vst [vmem:[#allocation125_spill] sm:$0xff] %v17259_v41  ;;  %v8220_v10 = vrot.slane %v8204_v9, %v19026_v58  ;;  %v7642_v45 = vrot.slane %v7628_v34, %v19026_v58  ;;  %v8227_v22 = vrot.slane %v8205_v27, %v19026_v58 }
 0xb07   : > { %19134 = vst [vmem:[#allocation126_spill] sm:$0xff] %v17262_v5  ;;  %19135 = vst [vmem:[#allocation127_spill] sm:$0xff] %v17265_v7  ;;  %v17272_v32 = vrot.slane %v8206_v6, %v19026_v58  ;;  %v7643_v47 = vcombine.high %v7635_v16, %v7635_v16  ;;  %v7651_v59 = vrot.slane %v7635_v16, %v19026_v58 }
 0xb08   : > { %v8235_v5 = vcombine.high %v8213_v44, %v8213_v44  ;;  %v8236_v41 = vcombine.high %v8220_v10, %v8220_v10  ;;  %v17276_v56 = vadd.f32 %v16721_v60, %v8213_v44  ;;  %v17279_v12 = vadd.f32 %v16721_v60, %v8220_v10 }
 0xb09   : > { %19136 = vst [vmem:[#allocation128_spill] sm:$0xff] %v17272_v32  ;;  %v8237_v8 = vcombine.high %v8227_v22, %v8227_v22  ;;  %v17284_v27 = vadd.f32 %v16736_v17, %v8227_v22  ;;  %v17288_v34 = vadd.f32 %v16736_v17, %v17272_v32  ;;  %v7644_v10 = vcombine.high %v7642_v45, %v7642_v45 }
 0xb0a   : > { %19137 = vst [vmem:[#allocation129_spill] sm:$0xff] %v17276_v56  ;;  %19138 = vst [vmem:[#allocation130_spill] sm:$0xff] %v17279_v12  ;;  %v17291_v16 = vadd.f32 %v16724_v23, %v8235_v5  ;;  %v17294_v44 = vadd.f32 %v16724_v23, %v8236_v41  ;;  %v7658_v22 = vrot.slane %v7642_v45, %v19026_v58 }
 0xb0b   : > { %19139 = vst [vmem:[#allocation131_spill] sm:$0xff] %v17284_v27  ;;  %19140 = vst [vmem:[#allocation132_spill] sm:$0xff] %v17288_v34  ;;  %v17299_v12 = vadd.f32 %v16740_v43, %v8237_v8  ;;  %v7665_v9 = vrot.slane %v7643_v47, %v19026_v58  ;;  %v7673_v7 = vcombine.high %v7651_v59, %v7651_v59 }
 0xb0c   : > { %19141 = vst [vmem:[#allocation133_spill] sm:$0xff] %v17291_v16  ;;  %19142 = vst [vmem:[#allocation134_spill] sm:$0xff] %v17294_v44  ;;  %v17304_v34 = vrot.slane %v7644_v10, %v19026_v58  ;;  %v17307_v5 = vadd.f32 %v16715_v24, %v7651_v59  ;;  %v8092_v41 = vcombine.high %v16827_v3, %v16827_v3 }
 0xb0d   : > { %19143 = vst [vmem:[#allocation135_spill] sm:$0xff] %v17299_v12  ;;  %v8099_v6 = vrot.slane %v16827_v3, %v19026_v58  ;;  %v7674_v44 = vcombine.high %v7658_v22, %v7658_v22  ;;  %v7675_v8 = vcombine.high %v7665_v9, %v7665_v9  ;;  %v17314_v32 = vadd.f32 %v16728_v50, %v7665_v9 }
 0xb0e   : > { %19144 = vst [vmem:[#allocation136_spill] sm:$0xff] %v17304_v34  ;;  %19145 = vst [vmem:[#allocation137_spill] sm:$0xff] %v17307_v5  ;;  %v17317_v45 = vadd.f32 %v16718_v46, %v7673_v7  ;;  %v17322_v59 = vadd.f32 %v16715_v24, %v7658_v22  ;;  %v17326_v10 = vadd.f32 %v16728_v50, %v17304_v34 }
 0xb0f   : > { %19146 = vst [vmem:[#allocation138_spill] sm:$0xff] %v17314_v32  ;;  %v8106_v3 = vrot.slane %v8092_v41, %v19026_v58  ;;  %v17330_v56 = vadd.f32 %v16732_v2, %v7675_v8  ;;  %v17333_v9 = vadd.f32 %v16718_v46, %v7674_v44  ;;  %v8107_v7 = vcombine.high %v8099_v6, %v8099_v6 }
 0xb10   : > { %19147 = vst [vmem:[#allocation139_spill] sm:$0xff] %v17317_v45  ;;  %19148 = vst [vmem:[#allocation140_spill] sm:$0xff] %v17322_v59  ;;  %v8115_v39 = vrot.slane %v8099_v6, %v19026_v58  ;;  %v8409_v22 = vcombine.high %v16865_v19, %v16865_v19  ;;  %v8416_v16 = vrot.slane %v16865_v19, %v19026_v58 }
 0xb11   : > { %19149 = vst [vmem:[#allocation141_spill] sm:$0xff] %v17326_v10  ;;  %19150 = vst [vmem:[#allocation142_spill] sm:$0xff] %v17330_v56  ;;  %v8108_v12 = vcombine.high %v8106_v3, %v8106_v3  ;;  %v8122_v47 = vrot.slane %v8106_v3, %v19026_v58  ;;  %v8129_v41 = vrot.slane %v8107_v7, %v19026_v58 }
 0xb12   : > { %19151 = vst [vmem:[#allocation143_spill] sm:$0xff] %v17333_v9  ;;  %v8137_v27 = vcombine.high %v8115_v39, %v8115_v39  ;;  %v17343_v8 = vadd.f32 %v16721_v60, %v8115_v39  ;;  %v8873_v44 = vcombine.high %v16867_v26, %v16867_v26  ;;  %v8423_v10 = vrot.slane %v8409_v22, %v19026_v58 }
 0xb13   : > { %v17348_v6 = vrot.slane %v8108_v12, %v19026_v58  ;;  %v8138_v9 = vcombine.high %v8122_v47, %v8122_v47  ;;  %v17351_v3 = vadd.f32 %v16721_v60, %v8122_v47  ;;  %v8139_v59 = vcombine.high %v8129_v41, %v8129_v41 }
 0xb14   : > { %19152 = vst [vmem:[#allocation144_spill] sm:$0xff] %v17343_v8  ;;  %v17355_v19 = vadd.f32 %v16736_v17, %v8129_v41  ;;  %v17358_v7 = vadd.f32 %v16724_v23, %v8137_v27  ;;  %v8424_v22 = vcombine.high %v8416_v16, %v8416_v16  ;;  %v8432_v27 = vrot.slane %v8416_v16, %v19026_v58 }
 0xb15   : > { %19153 = vst [vmem:[#allocation145_spill] sm:$0xff] %v17348_v6  ;;  %19154 = vst [vmem:[#allocation146_spill] sm:$0xff] %v17351_v3  ;;  %v17366_v34 = vadd.f32 %v16736_v17, %v17348_v6  ;;  %v17369_v47 = vadd.f32 %v16724_v23, %v8138_v9  ;;  %v17372_v41 = vadd.f32 %v16740_v43, %v8139_v59 }
 0xb16   : > { %19155 = vst [vmem:[#allocation147_spill] sm:$0xff] %v17355_v19  ;;  %19156 = vst [vmem:[#allocation148_spill] sm:$0xff] %v17358_v7  ;;  %v8425_v3 = vcombine.high %v8423_v10, %v8423_v10  ;;  %v8439_v56 = vrot.slane %v8423_v10, %v19026_v58  ;;  %v8446_v39 = vrot.slane %v8424_v22, %v19026_v58 }
 0xb17   : > { %19157 = vst [vmem:[#allocation149_spill] sm:$0xff] %v17366_v34  ;;  %19158 = vst [vmem:[#allocation150_spill] sm:$0xff] %v17369_v47  ;;  %v8880_v12 = vrot.slane %v16867_v26, %v19026_v58  ;;  %v8887_v6 = vrot.slane %v8873_v44, %v19026_v58  ;;  %v8311_v9 = vcombine.high %v16878_v38, %v16878_v38 }
 0xb18   : > { %19159 = vst [vmem:[#allocation151_spill] sm:$0xff] %v17372_v41  ;;  %v17383_v47 = vrot.slane %v8425_v3, %v19026_v58  ;;  %v8454_v59 = vcombine.high %v8432_v27, %v8432_v27  ;;  %v8455_v34 = vcombine.high %v8439_v56, %v8439_v56  ;;  %v17386_v8 = vadd.f32 %v16715_v24, %v8432_v27 }
 0xb19   : > { %v8456_v16 = vcombine.high %v8446_v39, %v8446_v39  ;;  %v17389_v10 = vadd.f32 %v16728_v50, %v8446_v39  ;;  %v17392_v22 = vadd.f32 %v16715_v24, %v8439_v56  ;;  %v8888_v26 = vcombine.high %v8880_v12, %v8880_v12 }
 0xb1a   : > { %19160 = vst [vmem:[#allocation152_spill] sm:$0xff] %v17383_v47  ;;  %19161 = vst [vmem:[#allocation153_spill] sm:$0xff] %v17386_v8  ;;  %v17397_v5 = vadd.f32 %v16718_v46, %v8454_v59  ;;  %v17401_v3 = vadd.f32 %v16728_v50, %v17383_v47  ;;  %v17404_v27 = vadd.f32 %v16718_v46, %v8455_v34 }
 0xb1b   : > { %19162 = vst [vmem:[#allocation154_spill] sm:$0xff] %v17389_v10  ;;  %19163 = vst [vmem:[#allocation155_spill] sm:$0xff] %v17392_v22  ;;  %v17407_v39 = vadd.f32 %v16732_v2, %v8456_v16  ;;  %v8889_v10 = vcombine.high %v8887_v6, %v8887_v6  ;;  %v8896_v56 = vrot.slane %v8880_v12, %v19026_v58 }
 0xb1c   : > { %19164 = vst [vmem:[#allocation156_spill] sm:$0xff] %v17397_v5  ;;  %19165 = vst [vmem:[#allocation157_spill] sm:$0xff] %v17401_v3  ;;  %v8903_v22 = vrot.slane %v8887_v6, %v19026_v58  ;;  %v8910_v44 = vrot.slane %v8888_v26, %v19026_v58  ;;  %v8318_v59 = vrot.slane %v16878_v38, %v19026_v58 }
 0xb1d   : > { %19166 = vst [vmem:[#allocation158_spill] sm:$0xff] %v17404_v27  ;;  %19167 = vst [vmem:[#allocation159_spill] sm:$0xff] %v17407_v39  ;;  %v8325_v5 = vrot.slane %v8311_v9, %v19026_v58  ;;  %v8775_v3 = vcombine.high %v16880_v55, %v16880_v55  ;;  %v17418_v34 = vrot.slane %v8889_v10, %v19026_v58 }
 0xb1e   : > { %v8918_v16 = vcombine.high %v8896_v56, %v8896_v56  ;;  %v8919_v27 = vcombine.high %v8903_v22, %v8903_v22  ;;  %v17421_v47 = vadd.f32 %v16721_v60, %v8896_v56  ;;  %v8920_v12 = vcombine.high %v8910_v44, %v8910_v44 }
 0xb1f   : > { %19168 = vst [vmem:[#allocation160_spill] sm:$0xff] %v17418_v34  ;;  %v17424_v6 = vadd.f32 %v16736_v17, %v8910_v44  ;;  %v17427_v26 = vadd.f32 %v16721_v60, %v8903_v22  ;;  %v8326_v38 = vcombine.high %v8318_v59, %v8318_v59  ;;  %v17436_v10 = vadd.f32 %v16736_v17, %v17418_v34 }
 0xb20   : > { %19169 = vst [vmem:[#allocation161_spill] sm:$0xff] %v17421_v47  ;;  %v17432_v39 = vadd.f32 %v16724_v23, %v8918_v16  ;;  %v17439_v56 = vadd.f32 %v16724_v23, %v8919_v27  ;;  %v17442_v44 = vadd.f32 %v16740_v43, %v8920_v12  ;;  %v8341_v9 = vrot.slane %v8325_v5, %v19026_v58 }
 0xb21   : > { %19170 = vst [vmem:[#allocation162_spill] sm:$0xff] %v17424_v6  ;;  %19171 = vst [vmem:[#allocation163_spill] sm:$0xff] %v17427_v26  ;;  %v8327_v26 = vcombine.high %v8325_v5, %v8325_v5  ;;  %v8334_v6 = vrot.slane %v8318_v59, %v19026_v58  ;;  %v8348_v16 = vrot.slane %v8326_v38, %v19026_v58 }
 0xb22   : > { %19172 = vst [vmem:[#allocation164_spill] sm:$0xff] %v17432_v39  ;;  %19173 = vst [vmem:[#allocation165_spill] sm:$0xff] %v17436_v10  ;;  %v8782_v34 = vrot.slane %v16880_v55, %v19026_v58  ;;  %v8789_v10 = vrot.slane %v8775_v3, %v19026_v58  ;;  %v8458_v22 = vcombine.high %v16887_v36, %v16887_v36 }
 0xb23   : > { %19174 = vst [vmem:[#allocation166_spill] sm:$0xff] %v17439_v56  ;;  %19175 = vst [vmem:[#allocation167_spill] sm:$0xff] %v17442_v44  ;;  %v17453_v27 = vrot.slane %v8327_v26, %v19026_v58  ;;  %v8356_v12 = vcombine.high %v8334_v6, %v8334_v6  ;;  %v17456_v56 = vadd.f32 %v16715_v24, %v8334_v6 }
 0xb24   : > { %v8357_v59 = vcombine.high %v8341_v9, %v8341_v9  ;;  %v8358_v47 = vcombine.high %v8348_v16, %v8348_v16  ;;  %v17461_v5 = vadd.f32 %v16728_v50, %v8348_v16  ;;  %v17464_v38 = vadd.f32 %v16715_v24, %v8341_v9 }
 0xb25   : > { %19176 = vst [vmem:[#allocation168_spill] sm:$0xff] %v17453_v27  ;;  %v17469_v3 = vadd.f32 %v16718_v46, %v8356_v12  ;;  %v17473_v6 = vadd.f32 %v16728_v50, %v17453_v27  ;;  %v8790_v26 = vcombine.high %v8782_v34, %v8782_v34  ;;  %v8791_v44 = vcombine.high %v8789_v10, %v8789_v10 }
 0xb26   : > { %19177 = vst [vmem:[#allocation169_spill] sm:$0xff] %v17464_v38  ;;  %v17476_v8 = vadd.f32 %v16732_v2, %v8358_v47  ;;  %v17479_v16 = vadd.f32 %v16718_v46, %v8357_v59  ;;  %v8798_v9 = vrot.slane %v8782_v34, %v19026_v58  ;;  %v8805_v39 = vrot.slane %v8789_v10, %v19026_v58 }
 0xb27   : > { %19178 = vst [vmem:[#allocation170_spill] sm:$0xff] %v17473_v6  ;;  %v8812_v55 = vrot.slane %v8790_v26, %v19026_v58  ;;  %v8465_v12 = vrot.slane %v16887_v36, %v19026_v58  ;;  %v8472_v41 = vrot.slane %v8458_v22, %v19026_v58  ;;  %v17488_v45 = vrot.slane %v8791_v44, %v19026_v58 }
 0xb28   : > { %19179 = vst [vmem:[#allocation171_spill] sm:$0xff] %v17479_v16  ;;  %v8820_v47 = vcombine.high %v8798_v9, %v8798_v9  ;;  %v17491_v7 = vadd.f32 %v16721_v60, %v8798_v9  ;;  %v8922_v59 = vcombine.high %v16889_v1, %v16889_v1  ;;  %v8821_v34 = vcombine.high %v8805_v39, %v8805_v39 }
 0xb29   : > { %19180 = vst [vmem:[#allocation172_spill] sm:$0xff] %v17488_v45  ;;  %v8822_v32 = vcombine.high %v8812_v55, %v8812_v55  ;;  %v17496_v10 = vadd.f32 %v16736_v17, %v8812_v55  ;;  %v17499_v26 = vadd.f32 %v16721_v60, %v8805_v39  ;;  %v17508_v22 = vadd.f32 %v16736_v17, %v17488_v45 }
 0xb2a   : > { %v17504_v44 = vadd.f32 %v16724_v23, %v8820_v47  ;;  %v17516_v55 = vadd.f32 %v16724_v23, %v8821_v34  ;;  %v8473_v39 = vcombine.high %v8465_v12, %v8465_v12  ;;  %v8474_v16 = vcombine.high %v8472_v41, %v8472_v41 }
 0xb2b   : > { %19181 = vst [vmem:[#allocation173_spill] sm:$0xff] %v17499_v26  ;;  %19182 = vst [vmem:[#allocation174_spill] sm:$0xff] %v17508_v22  ;;  %v17513_v19 = vadd.f32 %v16740_v43, %v8822_v32  ;;  %v8481_v36 = vrot.slane %v8465_v12, %v19026_v58  ;;  %v8488_v47 = vrot.slane %v8472_v41, %v19026_v58 }
 0xb2c   : > { %19183 = vst [vmem:[#allocation175_spill] sm:$0xff] %v17516_v55  ;;  %v8929_v6 = vrot.slane %v16889_v1, %v19026_v58  ;;  %v8936_v22 = vrot.slane %v8922_v59, %v19026_v58  ;;  %v8495_v38 = vrot.slane %v8473_v39, %v19026_v58  ;;  %v17525_v9 = vrot.slane %v8474_v16, %v19026_v58 }
 0xb2d   : > { %v8360_v32 = vcombine.high %v16899_v33, %v16899_v33  ;;  %v8367_v34 = vrot.slane %v16899_v33, %v19026_v58  ;;  %v8503_v55 = vcombine.high %v8481_v36, %v8481_v36  ;;  %v8504_v12 = vcombine.high %v8488_v47, %v8488_v47 }
 0xb2e   : > { %19184 = vst [vmem:[#allocation176_spill] sm:$0xff] %v17525_v9  ;;  %v17532_v41 = vadd.f32 %v16715_v24, %v8481_v36  ;;  %v17535_v1 = vadd.f32 %v16715_v24, %v8488_v47  ;;  %v8505_v59 = vcombine.high %v8495_v38, %v8495_v38  ;;  %v17540_v16 = vadd.f32 %v16728_v50, %v8495_v38 }
 0xb2f   : > { %v17544_v26 = vadd.f32 %v16728_v50, %v17525_v9  ;;  %v17547_v33 = vadd.f32 %v16718_v46, %v8503_v55  ;;  %v17550_v36 = vadd.f32 %v16718_v46, %v8504_v12  ;;  %v8937_v45 = vcombine.high %v8929_v6, %v8929_v6 }
 0xb30   : > { %19185 = vst [vmem:[#allocation177_spill] sm:$0xff] %v17532_v41  ;;  %19186 = vst [vmem:[#allocation178_spill] sm:$0xff] %v17535_v1  ;;  %v8938_v47 = vcombine.high %v8936_v22, %v8936_v22  ;;  %v17553_v1 = vadd.f32 %v16732_v2, %v8505_v59  ;;  %v8945_v39 = vrot.slane %v8929_v6, %v19026_v58 }
 0xb31   : > { %19187 = vst [vmem:[#allocation179_spill] sm:$0xff] %v17540_v16  ;;  %19188 = vst [vmem:[#allocation180_spill] sm:$0xff] %v17544_v26  ;;  %v8952_v38 = vrot.slane %v8936_v22, %v19026_v58  ;;  %v8374_v16 = vrot.slane %v8360_v32, %v19026_v58  ;;  %v8959_v9 = vrot.slane %v8937_v45, %v19026_v58 }
 0xb32   : > { %19189 = vst [vmem:[#allocation181_spill] sm:$0xff] %v17547_v33  ;;  %19190 = vst [vmem:[#allocation182_spill] sm:$0xff] %v17550_v36  ;;  %v17560_v26 = vrot.slane %v8938_v47, %v19026_v58  ;;  %v8375_v55 = vcombine.high %v8367_v34, %v8367_v34  ;;  %v8383_v12 = vrot.slane %v8367_v34, %v19026_v58 }
 0xb33   : > { %19191 = vst [vmem:[#allocation183_spill] sm:$0xff] %v17553_v1  ;;  %v8967_v36 = vcombine.high %v8945_v39, %v8945_v39  ;;  %v8968_v33 = vcombine.high %v8952_v38, %v8952_v38  ;;  %v17564_v27 = vadd.f32 %v16721_v60, %v8945_v39  ;;  %v17567_v59 = vadd.f32 %v16721_v60, %v8952_v38 }
 0xb34   : > { %19192 = vst [vmem:[#allocation184_spill] sm:$0xff] %v17560_v26  ;;  %v8969_v6 = vcombine.high %v8959_v9, %v8959_v9  ;;  %v17572_v45 = vadd.f32 %v16736_v17, %v8959_v9  ;;  %v17576_v32 = vadd.f32 %v16736_v17, %v17560_v26  ;;  %v8376_v38 = vcombine.high %v8374_v16, %v8374_v16 }
 0xb35   : > { %19193 = vst [vmem:[#allocation185_spill] sm:$0xff] %v17564_v27  ;;  %19194 = vst [vmem:[#allocation186_spill] sm:$0xff] %v17567_v59  ;;  %v17579_v34 = vadd.f32 %v16724_v23, %v8967_v36  ;;  %v17582_v39 = vadd.f32 %v16724_v23, %v8968_v33  ;;  %v8390_v9 = vrot.slane %v8374_v16, %v19026_v58 }
 0xb36   : > { %19195 = vst [vmem:[#allocation187_spill] sm:$0xff] %v17572_v45  ;;  %19196 = vst [vmem:[#allocation188_spill] sm:$0xff] %v17576_v32  ;;  %v17587_v59 = vadd.f32 %v16740_v43, %v8969_v6  ;;  %v8397_v22 = vrot.slane %v8375_v55, %v19026_v58  ;;  %v8405_v1 = vcombine.high %v8383_v12, %v8383_v12 }
 0xb37   : > { %19197 = vst [vmem:[#allocation189_spill] sm:$0xff] %v17579_v34  ;;  %19198 = vst [vmem:[#allocation190_spill] sm:$0xff] %v17582_v39  ;;  %v17592_v32 = vrot.slane %v8376_v38, %v19026_v58  ;;  %v17595_v36 = vadd.f32 %v16715_v24, %v8383_v12  ;;  %v8824_v33 = vcombine.high %v16901_v61, %v16901_v61 }
 0xb38   : > { %19199 = vst [vmem:[#allocation191_spill] sm:$0xff] %v17587_v59  ;;  %v8831_v47 = vrot.slane %v16901_v61, %v19026_v58  ;;  %v8406_v39 = vcombine.high %v8390_v9, %v8390_v9  ;;  %v8407_v6 = vcombine.high %v8397_v22, %v8397_v22  ;;  %v17602_v26 = vadd.f32 %v16728_v50, %v8397_v22 }
 0xb39   : > { %19200 = vst [vmem:[#allocation192_spill] sm:$0xff] %v17592_v32  ;;  %19201 = vst [vmem:[#allocation193_spill] sm:$0xff] %v17595_v36  ;;  %v17605_v16 = vadd.f32 %v16718_v46, %v8405_v1  ;;  %v17610_v12 = vadd.f32 %v16715_v24, %v8390_v9  ;;  %v17614_v38 = vadd.f32 %v16728_v50, %v17592_v32 }
 0xb3a   : > { %v8838_v61 = vrot.slane %v8824_v33, %v19026_v58  ;;  %v17618_v27 = vadd.f32 %v16732_v2, %v8407_v6  ;;  %v17621_v22 = vadd.f32 %v16718_v46, %v8406_v39  ;;  %v8839_v1 = vcombine.high %v8831_v47, %v8831_v47 }
 0xb3b   : > { %19202 = vst [vmem:[#allocation194_spill] sm:$0xff] %v17605_v16  ;;  %19203 = vst [vmem:[#allocation195_spill] sm:$0xff] %v17610_v12  ;;  %v8847_v41 = vrot.slane %v8831_v47, %v19026_v58  ;;  %v9807_v9 = vcombine.low %v16856_v63, %v16904_v28  ;;  %v9808_v34 = vcombine.low %v16870_v30, %v16907_v18 }
 0xb3c   : > { %19204 = vst [vmem:[#allocation196_spill] sm:$0xff] %v17614_v38  ;;  %19205 = vst [vmem:[#allocation197_spill] sm:$0xff] %v17618_v27  ;;  %v8840_v59 = vcombine.high %v8838_v61, %v8838_v61  ;;  %v8854_v55 = vrot.slane %v8838_v61, %v19026_v58  ;;  %v8861_v33 = vrot.slane %v8839_v1, %v19026_v58 }
 0xb3d   : > { %19206 = vst [vmem:[#allocation198_spill] sm:$0xff] %v17621_v22  ;;  %v8869_v45 = vcombine.high %v8847_v41, %v8847_v41  ;;  %v17631_v6 = vadd.f32 %v16721_v60, %v8847_v41  ;;  %v9809_v39 = vcombine.low %v16873_v4, %v16921_v48  ;;  %v19210_v28 = vcombine.low %v16851_v51, %v16885_v11 }
 0xb3e   : > { %v17636_v47 = vrot.slane %v8840_v59, %v19026_v58  ;;  %v8870_v22 = vcombine.high %v8854_v55, %v8854_v55  ;;  %v17639_v61 = vadd.f32 %v16721_v60, %v8854_v55  ;;  %v8871_v30 = vcombine.high %v8861_v33, %v8861_v33 }
 0xb3f   : > { %19207 = vst [vmem:[#allocation199_spill] sm:$0xff] %v17631_v6  ;;  %v9816_v63 = vrot.slane %v19210_v28, %v19026_v58  ;;  %v17646_v18 = vadd.f32 %v16736_v17, %v8861_v33  ;;  %v17649_v41 = vadd.f32 %v16724_v23, %v8869_v45  ;;  %v9823_v51 = vrot.slane %v9807_v9, %v19026_v58 }
 0xb40   : > { %19208 = vst [vmem:[#allocation200_spill] sm:$0xff] %v17636_v47  ;;  %19209 = vst [vmem:[#allocation201_spill] sm:$0xff] %v17639_v61  ;;  %v17657_v59 = vadd.f32 %v16736_v17, %v17636_v47  ;;  %v17660_v11 = vadd.f32 %v16724_v23, %v8870_v22  ;;  %v17664_v55 = vadd.f32 %v16740_v43, %v8871_v30 }
 0xb41   : > { %v9830_v45 = vrot.slane %v9808_v34, %v19026_v58  ;;  %v9837_v1 = vrot.slane %v9809_v39, %v19026_v58  ;;  %v8605_v33 = vcombine.high %v16939_v21, %v16939_v21  ;;  %v9838_v28 = vcombine.low %v9816_v63, %v9823_v51 }
 0xb42   : > { %19211 = vst [vmem:[#allocation202_spill] sm:$0xff] %v17657_v59  ;;  %19212 = vst [vmem:[#allocation203_spill] sm:$0xff] %v17660_v11  ;;  %v8612_v4 = vrot.slane %v16939_v21, %v19026_v58  ;;  %v9069_v22 = vcombine.high %v16941_v52, %v16941_v52  ;;  %v9076_v9 = vrot.slane %v16941_v52, %v19026_v58 }
 0xb43   : > { %19213 = vst [vmem:[#allocation204_spill] sm:$0xff] %v17664_v55  ;;  %v9839_v48 = vcombine.low %v9830_v45, %v9837_v1  ;;  %v8619_v30 = vrot.slane %v8605_v33, %v19026_v58  ;;  %v8507_v34 = vcombine.high %v16949_v57, %v16949_v57  ;;  %v8514_v39 = vrot.slane %v16949_v57, %v19026_v58 }
 0xb44   : > { %v9846_v63 = vrot.slane %v9838_v28, %v19026_v58  ;;  %v8620_v51 = vcombine.high %v8612_v4, %v8612_v4  ;;  %v8628_v21 = vrot.slane %v8612_v4, %v19026_v58  ;;  %v9083_v11 = vrot.slane %v9069_v22, %v19026_v58 }
 0xb45   : > { %v9853_v38 = vrot.slane %v9839_v48, %v19026_v58  ;;  %v8621_v59 = vcombine.high %v8619_v30, %v8619_v30  ;;  %v8635_v52 = vrot.slane %v8619_v30, %v19026_v58  ;;  %v9084_v45 = vcombine.high %v9076_v9, %v9076_v9 }
 0xb46   : > { %v8642_v1 = vrot.slane %v8620_v51, %v19026_v58  ;;  %v8650_v33 = vcombine.high %v8628_v21, %v8628_v21  ;;  %v17688_v12 = vadd.f32 %v16715_v24, %v8628_v21  ;;  %v9085_v57 = vcombine.high %v9083_v11, %v9083_v11 }
 0xb47   : > { %v9854_v61 = vcombine.low %v9846_v63, %v9853_v38  ;;  %v17691_v28 = vrot.slane %v8621_v59, %v19026_v58  ;;  %v8651_v4 = vcombine.high %v8635_v52, %v8635_v52  ;;  %v17694_v22 = vadd.f32 %v16715_v24, %v8635_v52 }
 0xb48   : > { %19214 = vst [vmem:[#allocation205_spill] sm:$0xff] %v17688_v12  ;;  %v8652_v48 = vcombine.high %v8642_v1, %v8642_v1  ;;  %v17697_v47 = vadd.f32 %v16728_v50, %v8642_v1  ;;  %v17700_v30 = vadd.f32 %v16718_v46, %v8650_v33  ;;  %v9092_v51 = vrot.slane %v9076_v9, %v19026_v58 }
 0xb49   : > { %19215 = vst [vmem:[#allocation206_spill] sm:$0xff] %v17691_v28  ;;  %19216 = vst [vmem:[#allocation207_spill] sm:$0xff] %v17694_v22  ;;  %11406 = vxpose.xlu1.b32.start [1/16] (narrow) %v9854_v61, 16  ;;  %v17707_v59 = vadd.f32 %v16728_v50, %v17691_v28  ;;  %v17710_v63 = vadd.f32 %v16718_v46, %v8651_v4  ;;  %v9099_v21 = vrot.slane %v9083_v11, %v19026_v58 }
 0xb4a   : > { %19217 = vst [vmem:[#allocation208_spill] sm:$0xff] %v17697_v47  ;;  %19218 = vst [vmem:[#allocation209_spill] sm:$0xff] %v17700_v30  ;;  %v17714_v52 = vadd.f32 %v16732_v2, %v8652_v48  ;;  %v9106_v1 = vrot.slane %v9084_v45, %v19026_v58  ;;  %v17718_v9 = vrot.slane %v9085_v57, %v19026_v58 }
 0xb4b   : > { %19219 = vst [vmem:[#allocation210_spill] sm:$0xff] %v17707_v59  ;;  %19220 = vst [vmem:[#allocation211_spill] sm:$0xff] %v17710_v63  ;;  %v9114_v61 = vcombine.high %v9092_v51, %v9092_v51  ;;  %v9115_v33 = vcombine.high %v9099_v21, %v9099_v21  ;;  %v17721_v38 = vadd.f32 %v16721_v60, %v9092_v51 }
 0xb4c   : > { %19221 = vst [vmem:[#allocation212_spill] sm:$0xff] %v17714_v52  ;;  %19222 = vst [vmem:[#allocation213_spill] sm:$0xff] %v17718_v9  ;;  %v17724_v59 = vadd.f32 %v16721_v60, %v9099_v21  ;;  %v8521_v4 = vrot.slane %v8507_v34, %v19026_v58  ;;  %v9116_v63 = vcombine.high %v9106_v1, %v9106_v1 }
 0xb4d   : > { %19223 = vst [vmem:[#allocation214_spill] sm:$0xff] %v17721_v38  ;;  %v17730_v48 = vadd.f32 %v16736_v17, %v9106_v1  ;;  %v17733_v45 = vadd.f32 %v16724_v23, %v9114_v61  ;;  %v17737_v57 = vadd.f32 %v16736_v17, %v17718_v9  ;;  %v17740_v51 = vadd.f32 %v16724_v23, %v9115_v33 }
 0xb4e   : > { %19224 = vst [vmem:[#allocation215_spill] sm:$0xff] %v17724_v59  ;;  %v8522_v21 = vcombine.high %v8514_v39, %v8514_v39  ;;  %v17745_v22 = vadd.f32 %v16740_v43, %v9116_v63  ;;  %v8523_v11 = vcombine.high %v8521_v4, %v8521_v4  ;;  %v8530_v1 = vrot.slane %v8514_v39, %v19026_v58 }
 0xb4f   : > { %19225 = vst [vmem:[#allocation216_spill] sm:$0xff] %v17730_v48  ;;  %19226 = vst [vmem:[#allocation217_spill] sm:$0xff] %v17733_v45  ;;  %v8537_v61 = vrot.slane %v8521_v4, %v19026_v58  ;;  %v8978_v33 = vrot.slane %v16951_v37, %v19026_v58  ;;  %v9118_v34 = vcombine.high %v16962_v42, %v16962_v42 }
 0xb50   : > { %19227 = vst [vmem:[#allocation218_spill] sm:$0xff] %v17737_v57  ;;  %19228 = vst [vmem:[#allocation219_spill] sm:$0xff] %v17740_v51  ;;  %v8544_v59 = vrot.slane %v8522_v21, %v19026_v58  ;;  %v8971_v57 = vcombine.high %v16951_v37, %v16951_v37  ;;  %v17757_v51 = vrot.slane %v8523_v11, %v19026_v58 }
 0xb51   : > { %19229 = vst [vmem:[#allocation220_spill] sm:$0xff] %v17745_v22  ;;  %v8552_v63 = vcombine.high %v8530_v1, %v8530_v1  ;;  %v8553_v9 = vcombine.high %v8537_v61, %v8537_v61  ;;  %v17760_v39 = vadd.f32 %v16715_v24, %v8530_v1  ;;  %v17766_v28 = vadd.f32 %v16715_v24, %v8537_v61 }
 0xb52   : > { %v8554_v4 = vcombine.high %v8544_v59, %v8544_v59  ;;  %v17763_v21 = vadd.f32 %v16728_v50, %v8544_v59  ;;  %v8985_v37 = vrot.slane %v8971_v57, %v19026_v58  ;;  %v17776_v12 = vadd.f32 %v16728_v50, %v17757_v51 }
 0xb53   : > { %v17772_v11 = vadd.f32 %v16718_v46, %v8552_v63  ;;  %v17779_v1 = vadd.f32 %v16718_v46, %v8553_v9  ;;  %v8986_v61 = vcombine.high %v8978_v33, %v8978_v33  ;;  %v8994_v57 = vrot.slane %v8978_v33, %v19026_v58 }
 0xb54   : > { %v17782_v59 = vadd.f32 %v16732_v2, %v8554_v4  ;;  %v8987_v52 = vcombine.high %v8985_v37, %v8985_v37  ;;  %v9001_v22 = vrot.slane %v8985_v37, %v19026_v58  ;;  %v9125_v63 = vrot.slane %v16962_v42, %v19026_v58 }
 0xb55   : > { %v9132_v38 = vrot.slane %v9118_v34, %v19026_v58  ;;  %v19230_v30 = vcombine.high %v16842_v62, %v16842_v62  ;;  %v9008_v45 = vrot.slane %v8986_v61, %v19026_v58  ;;  %v9016_v47 = vcombine.high %v8994_v57, %v8994_v57 }
 0xb56   : > { %v17795_v4 = vrot.slane %v8987_v52, %v19026_v58  ;;  %v17798_v33 = vadd.f32 %v16721_v60, %v8994_v57  ;;  %v9017_v37 = vcombine.high %v9001_v22, %v9001_v22  ;;  %v17801_v48 = vadd.f32 %v16721_v60, %v9001_v22 }
 0xb57   : > { %v9308_v9 = vadd.f32 %v16732_v2, %v19230_v30  ;;  %v9133_v42 = vcombine.high %v9125_v63, %v9125_v63  ;;  %v9134_v34 = vcombine.high %v9132_v38, %v9132_v38  ;;  %v9018_v32 = vcombine.high %v9008_v45, %v9008_v45 }
 0xb58   : > { %v17806_v30 = vadd.f32 %v16736_v17, %v9008_v45  ;;  %v17809_v52 = vadd.f32 %v16724_v23, %v9016_v47  ;;  %v17813_v61 = vadd.f32 %v16736_v17, %v17795_v4  ;;  %v17816_v57 = vadd.f32 %v16724_v23, %v9017_v37 }
 0xb59   : > { %v9141_v6 = vrot.slane %v9125_v63, %v19026_v58  ;;  %v17822_v62 = vadd.f32 %v16740_v43, %v9018_v32  ;;  %v9148_v45 = vrot.slane %v9132_v38, %v19026_v58  ;;  %v9155_v47 = vrot.slane %v9133_v42, %v19026_v58  ;;  %v19241_v38 = vld [vmem:[#allocation56_spill] sm:$0xff] }
 0xb5a   : > { %v17827_v36 = vrot.slane %v9134_v34, %v19026_v58  ;;  %v19233_v37 = vcombine.high %v16892_v29, %v16892_v29  ;;  %v9855_v32 = vcombine.low %v16859_v53, %v16912_v20  ;;  %v9856_v53 = vcombine.low %v16863_v31, %v16916_v35 }
 0xb5b   : > { %v9163_v27 = vcombine.high %v9141_v6, %v9141_v6  ;;  %v17830_v55 = vadd.f32 %v16721_v60, %v9141_v6  ;;  %v9164_v63 = vcombine.high %v9148_v45, %v9148_v45  ;;  %v9165_v16 = vcombine.high %v9155_v47, %v9155_v47 }
 0xb5c   : > { %19231 = vst [vmem:[#allocation221_spill] sm:$0xff] %v17827_v36  ;;  %v9309_v22 = vadd.f32 %v16740_v43, %v19233_v37  ;;  %v17841_v42 = vadd.f32 %v16736_v17, %v9155_v47  ;;  %v17847_v6 = vadd.f32 %v16721_v60, %v9148_v45  ;;  %v17851_v29 = vadd.f32 %v16736_v17, %v17827_v36  ;;  %v19240_v47 = vld [vmem:[#allocation54_spill] sm:$0xff] }
 0xb5d   : > { %19232 = vst [vmem:[#allocation222_spill] sm:$0xff] %v17830_v55  ;;  %v17844_v34 = vadd.f32 %v16724_v23, %v9163_v27  ;;  %v17856_v20 = vadd.f32 %v16740_v43, %v9165_v16  ;;  %v17859_v37 = vadd.f32 %v16724_v23, %v9164_v63  ;;  %v9857_v27 = vcombine.low %v19241_v38, %v19240_v47 }
 0xb5e   : > { %19234 = vst [vmem:[#allocation223_spill] sm:$0xff] %v17841_v42  ;;  %19236 = vst [vmem:[#allocation225_spill] sm:$0xff] %v17847_v6  ;;  %v9865_v45 = vrot.slane %v9855_v32, %v19026_v58  ;;  %v9872_v6 = vrot.slane %v9856_v53, %v19026_v58  ;;  %v8661_v35 = vrot.slane %v17025_v25, %v19026_v58 }
 0xb5f   : > { %19235 = vst [vmem:[#allocation224_spill] sm:$0xff] %v17844_v34  ;;  %19237 = vst [vmem:[#allocation226_spill] sm:$0xff] %v17851_v29  ;;  %v9858_v34 = vcombine.low %v9308_v9, %v9309_v22  ;;  %v8654_v29 = vcombine.high %v17025_v25, %v17025_v25  ;;  %v9879_v31 = vrot.slane %v9857_v27, %v19026_v58 }
 0xb60   : > { %19238 = vst [vmem:[#allocation227_spill] sm:$0xff] %v17856_v20  ;;  %19239 = vst [vmem:[#allocation228_spill] sm:$0xff] %v17859_v37  ;;  %v8556_v63 = vcombine.high %v17037_v40, %v17037_v40  ;;  %v8563_v9 = vrot.slane %v17037_v40, %v19026_v58  ;;  %v9887_v22 = vcombine.low %v9865_v45, %v9872_v6 }
 0xb61   : > { %v9886_v16 = vrot.slane %v9858_v34, %v19026_v58  ;;  %v8668_v32 = vrot.slane %v8654_v29, %v19026_v58  ;;  %v8669_v38 = vcombine.high %v8661_v35, %v8661_v35  ;;  %v8677_v53 = vrot.slane %v8661_v35, %v19026_v58 }
 0xb62   : > { %v8570_v37 = vrot.slane %v8556_v63, %v19026_v58  ;;  %v8571_v25 = vcombine.high %v8563_v9, %v8563_v9  ;;  %v8579_v27 = vrot.slane %v8563_v9, %v19026_v58  ;;  %v9895_v34 = vrot.slane %v9887_v22, %v19026_v58 }
 0xb63   : > { %v9888_v47 = vcombine.low %v9879_v31, %v9886_v16  ;;  %v8670_v36 = vcombine.high %v8668_v32, %v8668_v32  ;;  %v8684_v20 = vrot.slane %v8668_v32, %v19026_v58  ;;  %v8691_v42 = vrot.slane %v8669_v38, %v19026_v58 }
 0xb64   : > { %v8699_v6 = vcombine.high %v8677_v53, %v8677_v53  ;;  %v17884_v29 = vadd.f32 %v16715_v24, %v8677_v53  ;;  %v8572_v45 = vcombine.high %v8570_v37, %v8570_v37  ;;  %v17918_v53 = vadd.f32 %v16715_v24, %v8579_v27 }
 0xb65   : > { %v9902_v40 = vrot.slane %v9888_v47, %v19026_v58  ;;  %v17887_v35 = vrot.slane %v8670_v36, %v19026_v58  ;;  %v8700_v31 = vcombine.high %v8684_v20, %v8684_v20  ;;  %v8701_v16 = vcombine.high %v8691_v42, %v8691_v42 }
 0xb66   : > { %19242 = vst [vmem:[#allocation54_spill] sm:$0xff] %v17884_v29  ;;  %v17890_v63 = vadd.f32 %v16728_v50, %v8691_v42  ;;  %v17893_v22 = vadd.f32 %v16718_v46, %v8699_v6  ;;  %v17896_v32 = vadd.f32 %v16715_v24, %v8684_v20  ;;  %v8586_v20 = vrot.slane %v8570_v37, %v19026_v58 }
 0xb67   : > { %19243 = vst [vmem:[#allocation56_spill] sm:$0xff] %v17887_v35  ;;  %v9903_v9 = vcombine.low %v9895_v34, %v9902_v40  ;;  %v17903_v36 = vadd.f32 %v16732_v2, %v8701_v16  ;;  %v17907_v42 = vadd.f32 %v16728_v50, %v17887_v35  ;;  %v17910_v47 = vadd.f32 %v16718_v46, %v8700_v31 }
 0xb68   : > { %19244 = vst [vmem:[#allocation229_spill] sm:$0xff] %v17890_v63  ;;  %19245 = vst [vmem:[#allocation230_spill] sm:$0xff] %v17893_v22  ;;  %v8593_v34 = vrot.slane %v8571_v25, %v19026_v58  ;;  %v17915_v40 = vrot.slane %v8572_v45, %v19026_v58  ;;  %v8601_v6 = vcombine.high %v8579_v27, %v8579_v27  ;;  %v19263_v63 = vld [vmem:[#allocation112_spill] sm:$0xff] }
 0xb69   : > { %19246 = vst [vmem:[#allocation231_spill] sm:$0xff] %v17896_v32  ;;  %19247 = vst [vmem:[#allocation232_spill] sm:$0xff] %v17903_v36  ;;  %11407 = vxpose.xlu1.b32.cont [2/16] (narrow) %v9903_v9, 16  ;;  %v9020_v16 = vcombine.high %v17057_v14, %v17057_v14  ;;  %v9027_v38 = vrot.slane %v17057_v14, %v19026_v58  ;;  %v10591_v31 = vcombine.low %v17173_v15, %v17208_v0 }
 0xb6a   : > { %19248 = vst [vmem:[#allocation233_spill] sm:$0xff] %v17907_v42  ;;  %19249 = vst [vmem:[#allocation234_spill] sm:$0xff] %v17910_v47  ;;  %v8602_v9 = vcombine.high %v8586_v20, %v8586_v20  ;;  %v8603_v37 = vcombine.high %v8593_v34, %v8593_v34  ;;  %v17929_v45 = vadd.f32 %v16728_v50, %v8593_v34 }
 0xb6b   : > { %v17932_v27 = vadd.f32 %v16718_v46, %v8601_v6  ;;  %v17935_v47 = vadd.f32 %v16715_v24, %v8586_v20  ;;  %v17939_v14 = vadd.f32 %v16728_v50, %v17915_v40  ;;  %v9034_v15 = vrot.slane %v9020_v16, %v19026_v58  ;;  %v19250_v50 = vld [vmem:[#allocation113_spill] sm:$0xff] }
 0xb6c   : > { %v17943_v0 = vadd.f32 %v16732_v2, %v8603_v37  ;;  %v17946_v25 = vadd.f32 %v16718_v46, %v8602_v9  ;;  %v9035_v34 = vcombine.high %v9027_v38, %v9027_v38  ;;  %v9043_v42 = vrot.slane %v9027_v38, %v19026_v58  ;;  %v19251_v46 = vld [vmem:[#allocation110_spill] sm:$0xff]  ;;  %v19252_v9 = vld [vmem:[#allocation116_spill] sm:$0xff] }
 0xb6d   : > { %v9036_v6 = vcombine.high %v9034_v15, %v9034_v15  ;;  %v9050_v32 = vrot.slane %v9034_v15, %v19026_v58  ;;  %v10592_v24 = vcombine.low %v17181_v54, %v17216_v49  ;;  %v10593_v20 = vcombine.low %v19250_v50, %v17225_v13 }
 0xb6e   : > { %v9057_v16 = vrot.slane %v9035_v34, %v19026_v58  ;;  %v9065_v35 = vcombine.high %v9043_v42, %v9043_v42  ;;  %v17956_v37 = vadd.f32 %v16721_v60, %v9043_v42  ;;  %v19253_v55 = vcombine.low %v19251_v46, %v19252_v9  ;;  %v19256_v46 = vld [vmem:[#allocation109_spill] sm:$0xff] }
 0xb6f   : > { %v9064_v29 = vrot.slane %v9036_v6, %v19026_v58  ;;  %v9066_v15 = vcombine.high %v9050_v32, %v9050_v32  ;;  %v17964_v36 = vadd.f32 %v16721_v60, %v9050_v32  ;;  %v10607_v54 = vrot.slane %v10591_v31, %v19026_v58  ;;  %v19260_v34 = vld [vmem:[#allocation117_spill] sm:$0xff]  ;;  %v19261_v31 = vld [vmem:[#allocation111_spill] sm:$0xff] }
 0xb70   : > { %v10600_v38 = vrot.slane %v19253_v55, %v19026_v58  ;;  %v9067_v13 = vcombine.high %v9057_v16, %v9057_v16  ;;  %v17968_v49 = vadd.f32 %v16736_v17, %v9057_v16  ;;  %v17971_v42 = vadd.f32 %v16724_v23, %v9065_v35 }
 0xb71   : > { %19254 = vst [vmem:[#allocation113_spill] sm:$0xff] %v17964_v36  ;;  %v9068_v50 = vcombine.high %v9064_v29, %v9064_v29  ;;  %v17976_v55 = vadd.f32 %v16736_v17, %v9064_v29  ;;  %v17979_v6 = vadd.f32 %v16724_v23, %v9066_v15  ;;  %v10614_v16 = vrot.slane %v10592_v24, %v19026_v58  ;;  %v19262_v24 = vld [vmem:[#allocation118_spill] sm:$0xff] }
 0xb72   : > { %v17984_v32 = vadd.f32 %v16740_v43, %v9067_v13  ;;  %v10621_v23 = vrot.slane %v10593_v20, %v19026_v58  ;;  %v10622_v29 = vcombine.low %v10600_v38, %v10607_v54  ;;  %v19257_v9 = vcombine.high %v19256_v46, %v19256_v46  ;;  %v19258_v13 = vld [vmem:[#allocation115_spill] sm:$0xff]  ;;  %v19265_v36 = vld [vmem:[#allocation114_spill] sm:$0xff] }
 0xb73   : > { %v17992_v17 = vadd.f32 %v16740_v43, %v9068_v50  ;;  %v19259_v60 = vcombine.high %v19258_v13, %v19258_v13  ;;  %v10639_v22 = vcombine.low %v19261_v31, %v19260_v34  ;;  %v10640_v50 = vcombine.low %v19263_v63, %v19262_v24 }
 0xb74   : > { %v9436_v15 = vadd.f32 %v16732_v2, %v19257_v9  ;;  %v10623_v38 = vcombine.low %v10614_v16, %v10621_v23  ;;  %v10630_v54 = vrot.slane %v10622_v29, %v19026_v58  ;;  %v9905_v46 = vcombine.low %v17461_v5, %v17496_v10 }
 0xb75   : > { %19255 = vst [vmem:[#allocation110_spill] sm:$0xff] %v17992_v17  ;;  %v9437_v35 = vadd.f32 %v16740_v43, %v19259_v60  ;;  %v19264_v17 = vld [vmem:[#allocation119_spill] sm:$0xff]  ;;  %v9906_v9 = vcombine.low %v17469_v3, %v17504_v44  ;;  %v10649_v60 = vrot.slane %v10639_v22, %v19026_v58  ;;  %v10656_v34 = vrot.slane %v10640_v50, %v19026_v58 }
 0xb76   : > { %v10641_v20 = vcombine.low %v19265_v36, %v19264_v17  ;;  %v10637_v63 = vrot.slane %v10623_v38, %v19026_v58  ;;  %v9907_v36 = vcombine.low %v17476_v8, %v17513_v19  ;;  %v19266_v16 = vcombine.low %v17456_v56, %v17491_v7  ;;  %v19272_v38 = vld [vmem:[#allocation169_spill] sm:$0xff] }
 0xb77   : > { %v10642_v13 = vcombine.low %v9436_v15, %v9437_v35  ;;  %v9921_v10 = vrot.slane %v9905_v46, %v19026_v58  ;;  %v10671_v44 = vcombine.low %v10649_v60, %v10656_v34  ;;  %v9928_v22 = vrot.slane %v9906_v9, %v19026_v58  ;;  %v19267_v35 = vld [vmem:[#allocation168_spill] sm:$0xff]  ;;  %v19273_v9 = vld [vmem:[#allocation174_spill] sm:$0xff] }
 0xb78   : > { %v10663_v31 = vrot.slane %v10641_v20, %v19026_v58  ;;  %v9914_v5 = vrot.slane %v19266_v16, %v19026_v58  ;;  %v19268_v17 = vcombine.high %v19267_v35, %v19267_v35  ;;  %v10638_v29 = vcombine.low %v10630_v54, %v10637_v63  ;;  %v19269_v15 = vld [vmem:[#allocation172_spill] sm:$0xff]  ;;  %v19271_v20 = vld [vmem:[#allocation173_spill] sm:$0xff]  ;;  %v19275_v63 = vld [vmem:[#allocation175_spill] sm:$0xff] }
 0xb79   : > { %v10670_v3 = vrot.slane %v10642_v13, %v19026_v58  ;;  %v9935_v8 = vrot.slane %v9907_v36, %v19026_v58  ;;  %v19270_v7 = vcombine.high %v19269_v15, %v19269_v15  ;;  %v10679_v50 = vrot.slane %v10671_v44, %v19026_v58  ;;  %v19274_v13 = vld [vmem:[#allocation170_spill] sm:$0xff]  ;;  %v19276_v36 = vld [vmem:[#allocation171_spill] sm:$0xff]  ;;  %v19277_v44 = vld [vmem:[#allocation88_spill] sm:$0xff] }
 0xb7a   : > { %v9324_v23 = vadd.f32 %v16732_v2, %v19268_v17  ;;  %v9936_v19 = vcombine.low %v9914_v5, %v9921_v10  ;;  %v9953_v46 = vcombine.low %v19272_v38, %v19271_v20  ;;  %v9954_v60 = vcombine.low %v19274_v13, %v19273_v9  ;;  %11438 = vxpose.xlu0.b32.start [1/16] (narrow) %v10638_v29, 16  ;;  %v19278_v35 = vld [vmem:[#allocation79_spill] sm:$0xff]  ;;  %v19284_v9 = vld [vmem:[#allocation85_spill] sm:$0xff] }
 0xb7b   : > { %v9325_v56 = vadd.f32 %v16740_v43, %v19270_v7  ;;  %v10672_v24 = vcombine.low %v10663_v31, %v10670_v3  ;;  %v9937_v34 = vcombine.low %v9928_v22, %v9935_v8  ;;  %v9955_v16 = vcombine.low %v19276_v36, %v19275_v63  ;;  %v19279_v8 = vld [vmem:[#allocation89_spill] sm:$0xff] }
 0xb7c   : > { %v9944_v54 = vrot.slane %v9936_v19, %v19026_v58  ;;  %v9963_v31 = vrot.slane %v9953_v46, %v19026_v58  ;;  %v9970_v3 = vrot.slane %v9954_v60, %v19026_v58  ;;  %v10003_v17 = vcombine.low %v19278_v35, %v19277_v44  ;;  %v19280_v19 = vld [vmem:[#allocation80_spill] sm:$0xff]  ;;  %v19283_v46 = vld [vmem:[#allocation78_spill] sm:$0xff] }
 0xb7d   : > { %v9956_v5 = vcombine.low %v9324_v23, %v9325_v56  ;;  %v10686_v10 = vrot.slane %v10672_v24, %v19026_v58  ;;  %v9951_v15 = vrot.slane %v9937_v34, %v19026_v58  ;;  %v9977_v29 = vrot.slane %v9955_v16, %v19026_v58  ;;  %v19281_v56 = vld [vmem:[#allocation92_spill] sm:$0xff]  ;;  %v19282_v24 = vld [vmem:[#allocation83_spill] sm:$0xff] }
 0xb7e   : > { %v10004_v7 = vcombine.low %v19280_v19, %v19279_v8  ;;  %v9985_v23 = vcombine.low %v9963_v31, %v9970_v3  ;;  %v10005_v38 = vcombine.low %v19282_v24, %v19281_v56  ;;  %v19285_v13 = vcombine.low %v19283_v46, %v19284_v9  ;;  %v19293_v24 = vld [vmem:[#allocation90_spill] sm:$0xff] }
 0xb7f   : > { %v9984_v22 = vrot.slane %v9956_v5, %v19026_v58  ;;  %v10687_v20 = vcombine.low %v10679_v50, %v10686_v10  ;;  %v9952_v63 = vcombine.low %v9944_v54, %v9951_v15  ;;  %v10019_v34 = vrot.slane %v10003_v17, %v19026_v58 }
 0xb80   : > { %v10012_v60 = vrot.slane %v19285_v13, %v19026_v58  ;;  %v10026_v16 = vrot.slane %v10004_v7, %v19026_v58  ;;  %v9993_v5 = vrot.slane %v9985_v23, %v19026_v58  ;;  %v10033_v50 = vrot.slane %v10005_v38, %v19026_v58  ;;  %v19292_v23 = vld [vmem:[#allocation81_spill] sm:$0xff]  ;;  %v19294_v38 = vld [vmem:[#allocation82_spill] sm:$0xff]  ;;  %v19295_v13 = vld [vmem:[#allocation91_spill] sm:$0xff] }
 0xb81   : > { %v9986_v36 = vcombine.low %v9977_v29, %v9984_v22  ;;  %11439 = vxpose.xlu0.b32.cont [2/16] (narrow) %v10687_v20, 16  ;;  %v10689_v10 = vcombine.low %v17763_v21, %v17806_v30  ;;  %v10690_v31 = vcombine.low %v17772_v11, %v17809_v52  ;;  %11408 = vxpose.xlu1.b32.cont [3/16] (narrow) %v9952_v63, 16  ;;  %v19287_v30 = vld [vmem:[#allocation77_spill] sm:$0xff]  ;;  %v19291_v20 = vld [vmem:[#allocation87_spill] sm:$0xff] }
 0xb82   : > { %v10034_v54 = vcombine.low %v10012_v60, %v10019_v34  ;;  %v10691_v44 = vcombine.low %v17782_v59, %v17822_v62  ;;  %v19286_v35 = vcombine.low %v17760_v39, %v17798_v33  ;;  %v10035_v15 = vcombine.low %v10026_v16, %v10033_v50  ;;  %v19289_v62 = vld [vmem:[#allocation86_spill] sm:$0xff]  ;;  %v19296_v60 = vld [vmem:[#allocation84_spill] sm:$0xff] }
 0xb83   : > { %v10000_v3 = vrot.slane %v9986_v36, %v19026_v58  ;;  %v10705_v29 = vrot.slane %v10689_v10, %v19026_v58  ;;  %v10712_v21 = vrot.slane %v10690_v31, %v19026_v58  ;;  %v19288_v11 = vcombine.high %v19287_v30, %v19287_v30 }
 0xb84   : > { %v10698_v17 = vrot.slane %v19286_v35, %v19026_v58  ;;  %v10042_v8 = vrot.slane %v10034_v54, %v19026_v58  ;;  %v10719_v59 = vrot.slane %v10691_v44, %v19026_v58  ;;  %v19290_v19 = vcombine.high %v19289_v62, %v19289_v62  ;;  %v19301_v62 = vld [vmem:[#allocation197_spill] sm:$0xff] }
 0xb85   : > { %v9340_v52 = vadd.f32 %v16732_v2, %v19288_v11  ;;  %v10001_v22 = vcombine.low %v9993_v5, %v10000_v3  ;;  %v10049_v33 = vrot.slane %v10035_v15, %v19026_v58  ;;  %v10051_v56 = vcombine.low %v19292_v23, %v19291_v20  ;;  %v19305_v23 = vld [vmem:[#allocation147_spill] sm:$0xff] }
 0xb86   : > { %v9341_v39 = vadd.f32 %v16740_v43, %v19290_v19  ;;  %v10720_v7 = vcombine.low %v10698_v17, %v10705_v29  ;;  %v10052_v46 = vcombine.low %v19294_v38, %v19293_v24  ;;  %v10721_v9 = vcombine.low %v10712_v21, %v10719_v59 }
 0xb87   : > { %11409 = vxpose.xlu1.b32.cont [4/16] (narrow) %v10001_v22, 16  ;;  %v10053_v63 = vcombine.low %v19296_v60, %v19295_v13  ;;  %v19297_v34 = vcombine.high %v17757_v51, %v17757_v51  ;;  %v10050_v5 = vcombine.low %v10042_v8, %v10049_v33  ;;  %v10061_v10 = vrot.slane %v10051_v56, %v19026_v58  ;;  %v19306_v56 = vld [vmem:[#allocation138_spill] sm:$0xff] }
 0xb88   : > { %v10054_v36 = vcombine.low %v9340_v52, %v9341_v39  ;;  %v10728_v50 = vrot.slane %v10720_v7, %v19026_v58  ;;  %v10068_v31 = vrot.slane %v10052_v46, %v19026_v58  ;;  %v10735_v3 = vrot.slane %v10721_v9, %v19026_v58  ;;  %v19303_v39 = vld [vmem:[#allocation199_spill] sm:$0xff] }
 0xb89   : > { %v9452_v16 = vadd.f32 %v16732_v2, %v19297_v34  ;;  %v10075_v54 = vrot.slane %v10053_v63, %v19026_v58  ;;  %v19298_v35 = vcombine.high %v17795_v4, %v17795_v4  ;;  %v10737_v15 = vcombine.low %v17766_v28, %v17801_v48  ;;  %v19307_v63 = vld [vmem:[#allocation148_spill] sm:$0xff] }
 0xb8a   : > { %v10082_v44 = vrot.slane %v10054_v36, %v19026_v58  ;;  %v10083_v17 = vcombine.low %v10061_v10, %v10068_v31  ;;  %v10738_v29 = vcombine.low %v17776_v12, %v17813_v61  ;;  %v10739_v21 = vcombine.low %v17779_v1, %v17816_v57  ;;  %v19299_v1 = vld [vmem:[#allocation194_spill] sm:$0xff]  ;;  %v19300_v57 = vld [vmem:[#allocation204_spill] sm:$0xff]  ;;  %v19308_v36 = vld [vmem:[#allocation139_spill] sm:$0xff] }
 0xb8b   : > { %v9453_v51 = vadd.f32 %v16740_v43, %v19298_v35  ;;  %11410 = vxpose.xlu1.b32.cont [5/16] (narrow) %v10050_v5, 16  ;;  %v10736_v30 = vcombine.low %v10728_v50, %v10735_v3  ;;  %v10101_v22 = vcombine.low %v17602_v26, %v17646_v18  ;;  %v10747_v8 = vrot.slane %v10737_v15, %v19026_v58  ;;  %v19302_v18 = vld [vmem:[#allocation193_spill] sm:$0xff]  ;;  %v19310_v5 = vld [vmem:[#allocation142_spill] sm:$0xff] }
 0xb8c   : > { %v10084_v11 = vcombine.low %v10075_v54, %v10082_v44  ;;  %v10091_v4 = vrot.slane %v10083_v17, %v19026_v58  ;;  %v10754_v59 = vrot.slane %v10738_v29, %v19026_v58  ;;  %v10761_v28 = vrot.slane %v10739_v21, %v19026_v58  ;;  %v19311_v3 = vld [vmem:[#allocation137_spill] sm:$0xff]  ;;  %v19312_v54 = vld [vmem:[#allocation144_spill] sm:$0xff] }
 0xb8d   : > { %v10740_v52 = vcombine.low %v9452_v16, %v9453_v51  ;;  %11440 = vxpose.xlu0.b32.cont [3/16] (narrow) %v10736_v30, 16  ;;  %v10102_v61 = vcombine.low %v19299_v1, %v17649_v41  ;;  %v10103_v19 = vcombine.low %v19301_v62, %v19300_v57  ;;  %v19304_v33 = vcombine.low %v19302_v18, %v19303_v39  ;;  %v19309_v16 = vld [vmem:[#allocation151_spill] sm:$0xff]  ;;  %v19314_v21 = vld [vmem:[#allocation192_spill] sm:$0xff]  ;;  %v19320_v57 = vld [vmem:[#allocation202_spill] sm:$0xff] }
 0xb8e   : > { %v10098_v12 = vrot.slane %v10084_v11, %v19026_v58  ;;  %v10769_v26 = vcombine.low %v10747_v8, %v10754_v59  ;;  %v10117_v20 = vrot.slane %v10101_v22, %v19026_v58  ;;  %v10787_v24 = vcombine.low %v19306_v56, %v19305_v23  ;;  %v19316_v8 = vld [vmem:[#allocation200_spill] sm:$0xff]  ;;  %v19319_v1 = vld [vmem:[#allocation195_spill] sm:$0xff]  ;;  %v19323_v18 = vld [vmem:[#allocation198_spill] sm:$0xff] }
 0xb8f   : > { %v10768_v48 = vrot.slane %v10740_v52, %v19026_v58  ;;  %v10110_v7 = vrot.slane %v19304_v33, %v19026_v58  ;;  %v10124_v9 = vrot.slane %v10102_v61, %v19026_v58  ;;  %v10131_v41 = vrot.slane %v10103_v19, %v19026_v58  ;;  %v19321_v62 = vld [vmem:[#allocation196_spill] sm:$0xff] }
 0xb90   : > { %v10099_v38 = vcombine.low %v10091_v4, %v10098_v12  ;;  %v10777_v13 = vrot.slane %v10769_v26, %v19026_v58  ;;  %v10788_v34 = vcombine.low %v19308_v36, %v19307_v63  ;;  %v10789_v50 = vcombine.low %v19310_v5, %v19309_v16  ;;  %v19322_v26 = vld [vmem:[#allocation203_spill] sm:$0xff]  ;;  %v19324_v23 = vld [vmem:[#allocation136_spill] sm:$0xff] }
 0xb91   : > { %v10770_v46 = vcombine.low %v10761_v28, %v10768_v48  ;;  %v10132_v60 = vcombine.low %v10110_v7, %v10117_v20  ;;  %v10133_v31 = vcombine.low %v10124_v9, %v10131_v41  ;;  %v19313_v44 = vcombine.low %v19311_v3, %v19312_v54  ;;  %v19318_v48 = vld [vmem:[#allocation201_spill] sm:$0xff]  ;;  %v19329_v16 = vld [vmem:[#allocation140_spill] sm:$0xff] }
 0xb92   : > { %11411 = vxpose.xlu1.b32.cont [6/16] (narrow) %v10099_v38, 16  ;;  %v10803_v51 = vrot.slane %v10787_v24, %v19026_v58  ;;  %v10810_v15 = vrot.slane %v10788_v34, %v19026_v58  ;;  %v10817_v29 = vrot.slane %v10789_v50, %v19026_v58  ;;  %v19315_v30 = vcombine.high %v19314_v21, %v19314_v21  ;;  %v19328_v34 = vld [vmem:[#allocation146_spill] sm:$0xff]  ;;  %v19330_v50 = vld [vmem:[#allocation149_spill] sm:$0xff] }
 0xb93   : > { %v10784_v10 = vrot.slane %v10770_v46, %v19026_v58  ;;  %v10796_v35 = vrot.slane %v19313_v44, %v19026_v58  ;;  %v10140_v17 = vrot.slane %v10132_v60, %v19026_v58  ;;  %v10147_v22 = vrot.slane %v10133_v31, %v19026_v58  ;;  %v19326_v60 = vld [vmem:[#allocation145_spill] sm:$0xff]  ;;  %v19332_v44 = vld [vmem:[#allocation150_spill] sm:$0xff] }
 0xb94   : > { %v9356_v11 = vadd.f32 %v16732_v2, %v19315_v30  ;;  %v19317_v59 = vcombine.high %v19316_v8, %v19316_v8  ;;  %v10819_v12 = vcombine.low %v10810_v15, %v10817_v29  ;;  %v10149_v61 = vcombine.low %v19319_v1, %v19318_v48  ;;  %v19335_v15 = vld [vmem:[#allocation41_spill] sm:$0xff]  ;;  %v19336_v8 = vld [vmem:[#allocation34_spill] sm:$0xff] }
 0xb95   : > { %v10785_v52 = vcombine.low %v10777_v13, %v10784_v10  ;;  %v10818_v4 = vcombine.low %v10796_v35, %v10803_v51  ;;  %v10150_v19 = vcombine.low %v19321_v62, %v19320_v57  ;;  %v10151_v39 = vcombine.low %v19323_v18, %v19322_v26  ;;  %v19331_v10 = vld [vmem:[#allocation141_spill] sm:$0xff]  ;;  %v19333_v35 = vld [vmem:[#allocation143_spill] sm:$0xff]  ;;  %v19341_v26 = vld [vmem:[#allocation62_spill] sm:$0xff] }
 0xb96   : > { %v9357_v28 = vadd.f32 %v16740_v43, %v19317_v59  ;;  %v10148_v33 = vcombine.low %v10140_v17, %v10147_v22  ;;  %v19325_v56 = vcombine.high %v19324_v23, %v19324_v23  ;;  %v10833_v38 = vrot.slane %v10819_v12, %v19026_v58  ;;  %v19334_v17 = vld [vmem:[#allocation60_spill] sm:$0xff]  ;;  %v19337_v59 = vld [vmem:[#allocation58_spill] sm:$0xff]  ;;  %v19339_v48 = vld [vmem:[#allocation65_spill] sm:$0xff] }
 0xb97   : > { %11441 = vxpose.xlu0.b32.cont [4/16] (narrow) %v10785_v52, 16  ;;  %v10826_v7 = vrot.slane %v10818_v4, %v19026_v58  ;;  %v10159_v46 = vrot.slane %v10149_v61, %v19026_v58  ;;  %v10166_v9 = vrot.slane %v10150_v19, %v19026_v58  ;;  %v10173_v41 = vrot.slane %v10151_v39, %v19026_v58  ;;  %v19338_v12 = vld [vmem:[#allocation42_spill] sm:$0xff] }
 0xb98   : > { %v10152_v20 = vcombine.low %v9356_v11, %v9357_v28  ;;  %v9468_v24 = vadd.f32 %v16732_v2, %v19325_v56  ;;  %11412 = vxpose.xlu1.b32.cont [7/16] (narrow) %v10148_v33, 16  ;;  %v19327_v63 = vcombine.high %v19326_v60, %v19326_v60  ;;  %v10835_v5 = vcombine.low %v19329_v16, %v19328_v34  ;;  %v19340_v19 = vld [vmem:[#allocation50_spill] sm:$0xff] }
 0xb99   : > { %v10836_v31 = vcombine.low %v19331_v10, %v19330_v50  ;;  %v10834_v3 = vcombine.low %v10826_v7, %v10833_v38  ;;  %v10181_v54 = vcombine.low %v10159_v46, %v10166_v9  ;;  %v10837_v51 = vcombine.low %v19333_v35, %v19332_v44  ;;  %v19346_v16 = vld [vmem:[#allocation38_spill] sm:$0xff]  ;;  %v19350_v10 = vld [vmem:[#allocation52_spill] sm:$0xff]  ;;  %v19352_v35 = vld [vmem:[#allocation47_spill] sm:$0xff] }
 0xb9a   : > { %v10180_v13 = vrot.slane %v10152_v20, %v19026_v58  ;;  %v9469_v36 = vadd.f32 %v16740_v43, %v19327_v63  ;;  %v10199_v29 = vcombine.low %v19335_v15, %v19334_v17  ;;  %v10845_v11 = vrot.slane %v10835_v5, %v19026_v58  ;;  %v19348_v5 = vld [vmem:[#allocation57_spill] sm:$0xff]  ;;  %v19354_v15 = vld [vmem:[#allocation63_spill] sm:$0xff] }
 0xb9b   : > { %v10852_v52 = vrot.slane %v10836_v31, %v19026_v58  ;;  %11442 = vxpose.xlu0.b32.cont [5/16] (narrow) %v10834_v3, 16  ;;  %v10189_v22 = vrot.slane %v10181_v54, %v19026_v58  ;;  %v10859_v4 = vrot.slane %v10837_v51, %v19026_v58  ;;  %v10200_v28 = vcombine.low %v19337_v59, %v19336_v8  ;;  %v19351_v31 = vld [vmem:[#allocation49_spill] sm:$0xff]  ;;  %v19353_v51 = vld [vmem:[#allocation48_spill] sm:$0xff] }
 0xb9c   : > { %v10182_v21 = vcombine.low %v10173_v41, %v10180_v13  ;;  %v10838_v30 = vcombine.low %v9468_v24, %v9469_v36  ;;  %v10201_v1 = vcombine.low %v19339_v48, %v19338_v12  ;;  %v19342_v18 = vcombine.low %v19340_v19, %v19341_v26 }
 0xb9d   : > { %v10867_v62 = vcombine.low %v10845_v11, %v10852_v52  ;;  %v10215_v33 = vrot.slane %v10199_v29, %v19026_v58  ;;  %v10222_v7 = vrot.slane %v10200_v28, %v19026_v58  ;;  %v10887_v23 = vcombine.low %v17943_v0, %v17984_v32  ;;  %v19355_v29 = vld [vmem:[#allocation33_spill] sm:$0xff] }
 0xb9e   : > { %v10196_v61 = vrot.slane %v10182_v21, %v19026_v58  ;;  %v10866_v57 = vrot.slane %v10838_v30, %v19026_v58  ;;  %v10208_v39 = vrot.slane %v19342_v18, %v19026_v58  ;;  %v10229_v20 = vrot.slane %v10201_v1, %v19026_v58 }
 0xb9f   : > { %v10875_v38 = vrot.slane %v10867_v62, %v19026_v58  ;;  %v19343_v46 = vcombine.low %v17918_v53, %v17956_v37  ;;  %v19344_v60 = vcombine.low %v17929_v45, %v17968_v49  ;;  %v19345_v0 = vcombine.low %v17932_v27, %v17971_v42 }
 0xba0   : > { %v10197_v56 = vcombine.low %v10189_v22, %v10196_v61  ;;  %v10868_v24 = vcombine.low %v10859_v4, %v10866_v57  ;;  %v10230_v41 = vcombine.low %v10208_v39, %v10215_v33  ;;  %v10231_v13 = vcombine.low %v10222_v7, %v10229_v20  ;;  %v19357_v57 = vld [vmem:[#allocation113_spill] sm:$0xff]  ;;  %v19359_v39 = vld [vmem:[#allocation110_spill] sm:$0xff] }
 0xba1   : > { %v10894_v9 = vrot.slane %v19343_v46, %v19026_v58  ;;  %v10901_v63 = vrot.slane %v19344_v60, %v19026_v58  ;;  %v10908_v32 = vrot.slane %v19345_v0, %v19026_v58  ;;  %v10915_v34 = vrot.slane %v10887_v23, %v19026_v58  ;;  %v19360_v33 = vld [vmem:[#allocation162_spill] sm:$0xff]  ;;  %v19365_v46 = vld [vmem:[#allocation159_spill] sm:$0xff] }
 0xba2   : > { %11413 = vxpose.xlu1.b32.cont [8/16] (narrow) %v10197_v56, 16  ;;  %v10882_v36 = vrot.slane %v10868_v24, %v19026_v58  ;;  %v19347_v53 = vcombine.high %v19346_v16, %v19346_v16  ;;  %v19349_v50 = vcombine.high %v19348_v5, %v19348_v5  ;;  %v10238_v49 = vrot.slane %v10230_v41, %v19026_v58  ;;  %v19361_v7 = vld [vmem:[#allocation154_spill] sm:$0xff]  ;;  %v19363_v24 = vld [vmem:[#allocation156_spill] sm:$0xff]  ;;  %v19366_v41 = vld [vmem:[#allocation153_spill] sm:$0xff] }
 0xba3   : > { %v10245_v27 = vrot.slane %v10231_v13, %v19026_v58  ;;  %v10916_v42 = vcombine.low %v10894_v9, %v10901_v63  ;;  %v10247_v3 = vcombine.low %v19351_v31, %v19350_v10  ;;  %v10917_v44 = vcombine.low %v10908_v32, %v10915_v34  ;;  %v19367_v13 = vld [vmem:[#allocation161_spill] sm:$0xff]  ;;  %v19370_v5 = vld [vmem:[#allocation95_spill] sm:$0xff] }
 0xba4   : > { %v9372_v37 = vadd.f32 %v16732_v2, %v19347_v53  ;;  %v9373_v45 = vadd.f32 %v16740_v43, %v19349_v50  ;;  %v10883_v54 = vcombine.low %v10875_v38, %v10882_v36  ;;  %v10248_v17 = vcombine.low %v19353_v51, %v19352_v35  ;;  %v19364_v38 = vld [vmem:[#allocation167_spill] sm:$0xff] }
 0xba5   : > { %v10249_v21 = vcombine.low %v19355_v29, %v19354_v15  ;;  %v10246_v30 = vcombine.low %v10238_v49, %v10245_v27  ;;  %v10924_v11 = vrot.slane %v10916_v42, %v19026_v58  ;;  %v10257_v22 = vrot.slane %v10247_v3, %v19026_v58  ;;  %v19372_v49 = vld [vmem:[#allocation97_spill] sm:$0xff]  ;;  %v19373_v3 = vld [vmem:[#allocation108_spill] sm:$0xff]  ;;  %v19376_v15 = vld [vmem:[#allocation102_spill] sm:$0xff] }
 0xba6   : > { %v10250_v52 = vcombine.low %v9372_v37, %v9373_v45  ;;  %11443 = vxpose.xlu0.b32.cont [6/16] (narrow) %v10883_v54, 16  ;;  %v10931_v4 = vrot.slane %v10917_v44, %v19026_v58  ;;  %v10264_v8 = vrot.slane %v10248_v17, %v19026_v58  ;;  %v19356_v28 = vcombine.high %v17915_v40, %v17915_v40  ;;  %v19369_v37 = vld [vmem:[#allocation103_spill] sm:$0xff]  ;;  %v19371_v45 = vld [vmem:[#allocation105_spill] sm:$0xff]  ;;  %v19374_v54 = vld [vmem:[#allocation100_spill] sm:$0xff] }
 0xba7   : > { %v10271_v59 = vrot.slane %v10249_v21, %v19026_v58  ;;  %11414 = vxpose.xlu1.b32.cont [9/16] (narrow) %v10246_v30, 16  ;;  %v10934_v1 = vcombine.low %v17939_v14, %v17976_v55  ;;  %v10935_v61 = vcombine.low %v17946_v25, %v17979_v6  ;;  %v19358_v62 = vcombine.low %v17935_v47, %v19357_v57  ;;  %v19362_v55 = vld [vmem:[#allocation164_spill] sm:$0xff]  ;;  %v19375_v17 = vld [vmem:[#allocation94_spill] sm:$0xff] }
 0xba8   : > { %v9484_v12 = vadd.f32 %v16732_v2, %v19356_v28  ;;  %v10278_v48 = vrot.slane %v10250_v52, %v19026_v58  ;;  %v10932_v26 = vcombine.low %v10924_v11, %v10931_v4  ;;  %v10279_v18 = vcombine.low %v10257_v22, %v10264_v8  ;;  %v19378_v4 = vld [vmem:[#allocation152_spill] sm:$0xff] }
 0xba9   : > { %v10943_v19 = vrot.slane %v19358_v62, %v19026_v58  ;;  %v10297_v20 = vcombine.low %v19361_v7, %v19360_v33  ;;  %v10950_v56 = vrot.slane %v10934_v1, %v19026_v58  ;;  %v10957_v14 = vrot.slane %v10935_v61, %v19026_v58  ;;  %v19380_v1 = vld [vmem:[#allocation160_spill] sm:$0xff]  ;;  %v19386_v7 = vld [vmem:[#allocation166_spill] sm:$0xff] }
 0xbaa   : > { %v10936_v40 = vcombine.low %v9484_v12, %v19359_v39  ;;  %v10280_v23 = vcombine.low %v10271_v59, %v10278_v48  ;;  %v10298_v25 = vcombine.low %v19363_v24, %v19362_v55  ;;  %11444 = vxpose.xlu0.b32.cont [7/16] (narrow) %v10932_v26, 16  ;;  %v10287_v6 = vrot.slane %v10279_v18, %v19026_v58  ;;  %v19383_v26 = vld [vmem:[#allocation155_spill] sm:$0xff]  ;;  %v19384_v39 = vld [vmem:[#allocation165_spill] sm:$0xff] }
 0xbab   : > { %v10299_v9 = vcombine.low %v19365_v46, %v19364_v38  ;;  %v19368_v60 = vcombine.low %v19366_v41, %v19367_v13  ;;  %v10965_v32 = vcombine.low %v10943_v19, %v10950_v56  ;;  %v10313_v36 = vrot.slane %v10297_v20, %v19026_v58  ;;  %v19382_v19 = vld [vmem:[#allocation163_spill] sm:$0xff]  ;;  %v19387_v20 = vld [vmem:[#allocation158_spill] sm:$0xff]  ;;  %v19388_v24 = vld [vmem:[#allocation93_spill] sm:$0xff] }
 0xbac   : > { %v10964_v47 = vrot.slane %v10936_v40, %v19026_v58  ;;  %v10294_v0 = vrot.slane %v10280_v23, %v19026_v58  ;;  %v10320_v34 = vrot.slane %v10298_v25, %v19026_v58  ;;  %v10983_v50 = vcombine.low %v19370_v5, %v19369_v37  ;;  %v19385_v40 = vld [vmem:[#allocation157_spill] sm:$0xff] }
 0xbad   : > { %v10306_v63 = vrot.slane %v19368_v60, %v19026_v58  ;;  %v10327_v53 = vrot.slane %v10299_v9, %v19026_v58  ;;  %v10984_v27 = vcombine.low %v19372_v49, %v19371_v45  ;;  %v10973_v10 = vrot.slane %v10965_v32, %v19026_v58  ;;  %v19390_v13 = vld [vmem:[#allocation101_spill] sm:$0xff]  ;;  %v19393_v32 = vld [vmem:[#allocation96_spill] sm:$0xff]  ;;  %v19397_v45 = vld [vmem:[#allocation99_spill] sm:$0xff] }
 0xbae   : > { %v10966_v16 = vcombine.low %v10957_v14, %v10964_v47  ;;  %v10295_v42 = vcombine.low %v10287_v6, %v10294_v0  ;;  %v10985_v44 = vcombine.low %v19374_v54, %v19373_v3  ;;  %v19377_v29 = vcombine.low %v19375_v17, %v19376_v15  ;;  %v19392_v0 = vld [vmem:[#allocation104_spill] sm:$0xff]  ;;  %v19400_v17 = vld [vmem:[#allocation74_spill] sm:$0xff] }
 0xbaf   : > { %v10328_v31 = vcombine.low %v10306_v63, %v10313_v36  ;;  %v10329_v51 = vcombine.low %v10320_v34, %v10327_v53  ;;  %v10999_v30 = vrot.slane %v10983_v50, %v19026_v58  ;;  %v11006_v52 = vrot.slane %v10984_v27, %v19026_v58  ;;  %v19394_v34 = vld [vmem:[#allocation106_spill] sm:$0xff]  ;;  %v19396_v50 = vld [vmem:[#allocation107_spill] sm:$0xff]  ;;  %v19398_v27 = vld [vmem:[#allocation72_spill] sm:$0xff] }
 0xbb0   : > { %v10980_v35 = vrot.slane %v10966_v16, %v19026_v58  ;;  %v10992_v21 = vrot.slane %v19377_v29, %v19026_v58  ;;  %11415 = vxpose.xlu1.b32.cont [10/16] (narrow) %v10295_v42, 16  ;;  %v11013_v22 = vrot.slane %v10985_v44, %v19026_v58  ;;  %v19379_v8 = vcombine.high %v19378_v4, %v19378_v4  ;;  %v19395_v16 = vld [vmem:[#allocation98_spill] sm:$0xff]  ;;  %v19399_v42 = vld [vmem:[#allocation61_spill] sm:$0xff] }
 0xbb1   : > { %v10336_v11 = vrot.slane %v10328_v31, %v19026_v58  ;;  %v10343_v12 = vrot.slane %v10329_v51, %v19026_v58  ;;  %v19381_v61 = vcombine.high %v19380_v1, %v19380_v1  ;;  %v10345_v18 = vcombine.low %v19383_v26, %v19382_v19  ;;  %v19401_v15 = vld [vmem:[#allocation66_spill] sm:$0xff] }
 0xbb2   : > { %v9388_v59 = vadd.f32 %v16732_v2, %v19379_v8  ;;  %v10981_v28 = vcombine.low %v10973_v10, %v10980_v35  ;;  %v11014_v48 = vcombine.low %v10992_v21, %v10999_v30  ;;  %v11015_v62 = vcombine.low %v11006_v52, %v11013_v22  ;;  %v19402_v21 = vld [vmem:[#allocation76_spill] sm:$0xff]  ;;  %v19404_v8 = vld [vmem:[#allocation59_spill] sm:$0xff] }
 0xbb3   : > { %v9389_v57 = vadd.f32 %v16740_v43, %v19381_v61  ;;  %v10346_v33 = vcombine.low %v19385_v40, %v19384_v39  ;;  %v10347_v23 = vcombine.low %v19387_v20, %v19386_v7  ;;  %v10344_v56 = vcombine.low %v10336_v11, %v10343_v12  ;;  %v19403_v30 = vld [vmem:[#allocation68_spill] sm:$0xff]  ;;  %v19409_v40 = vld [vmem:[#allocation217_spill] sm:$0xff] }
 0xbb4   : > { %11445 = vxpose.xlu0.b32.cont [8/16] (narrow) %v10981_v28, 16  ;;  %v11022_v14 = vrot.slane %v11014_v48, %v19026_v58  ;;  %v19389_v25 = vcombine.high %v19388_v24, %v19388_v24  ;;  %v11029_v47 = vrot.slane %v11015_v62, %v19026_v58  ;;  %v10355_v38 = vrot.slane %v10345_v18, %v19026_v58  ;;  %v19408_v62 = vld [vmem:[#allocation208_spill] sm:$0xff]  ;;  %v19413_v24 = vld [vmem:[#allocation205_spill] sm:$0xff] }
 0xbb5   : > { %v10348_v55 = vcombine.low %v9388_v59, %v9389_v57  ;;  %v10362_v46 = vrot.slane %v10346_v33, %v19026_v58  ;;  %v10369_v9 = vrot.slane %v10347_v23, %v19026_v58  ;;  %11416 = vxpose.xlu1.b32.cont [11/16] (narrow) %v10344_v56, 16  ;;  %v19391_v60 = vcombine.high %v19390_v13, %v19390_v13  ;;  %v19405_v59 = vld [vmem:[#allocation70_spill] sm:$0xff]  ;;  %v19407_v57 = vld [vmem:[#allocation216_spill] sm:$0xff]  ;;  %v19410_v33 = vld [vmem:[#allocation209_spill] sm:$0xff] }
 0xbb6   : > { %v9500_v6 = vadd.f32 %v16732_v2, %v19389_v25  ;;  %v11031_v36 = vcombine.low %v19393_v32, %v19392_v0  ;;  %v11032_v53 = vcombine.low %v19395_v16, %v19394_v34  ;;  %v11030_v37 = vcombine.low %v11022_v14, %v11029_v47  ;;  %v19411_v56 = vld [vmem:[#allocation220_spill] sm:$0xff]  ;;  %v19414_v25 = vld [vmem:[#allocation214_spill] sm:$0xff] }
 0xbb7   : > { %v10376_v41 = vrot.slane %v10348_v55, %v19026_v58  ;;  %v9501_v63 = vadd.f32 %v16740_v43, %v19391_v60  ;;  %v10377_v5 = vcombine.low %v10355_v38, %v10362_v46  ;;  %v11033_v49 = vcombine.low %v19397_v45, %v19396_v50  ;;  %v19412_v14 = vld [vmem:[#allocation212_spill] sm:$0xff] }
 0xbb8   : > { %v10395_v10 = vcombine.low %v19399_v42, %v19398_v27  ;;  %v11041_v54 = vrot.slane %v11031_v36, %v19026_v58  ;;  %v11048_v44 = vrot.slane %v11032_v53, %v19026_v58  ;;  %11446 = vxpose.xlu0.b32.cont [9/16] (narrow) %v11030_v37, 16  ;;  %v10396_v29 = vcombine.low %v19401_v15, %v19400_v17  ;;  %v19418_v36 = vld [vmem:[#allocation69_spill] sm:$0xff]  ;;  %v19421_v50 = vld [vmem:[#allocation44_spill] sm:$0xff] }
 0xbb9   : > { %v10378_v31 = vcombine.low %v10369_v9, %v10376_v41  ;;  %v11034_v3 = vcombine.low %v9500_v6, %v9501_v63  ;;  %v10385_v35 = vrot.slane %v10377_v5, %v19026_v58  ;;  %v11055_v51 = vrot.slane %v11033_v49, %v19026_v58  ;;  %v19416_v41 = vld [vmem:[#allocation40_spill] sm:$0xff]  ;;  %v19420_v5 = vld [vmem:[#allocation71_spill] sm:$0xff]  ;;  %v19422_v49 = vld [vmem:[#allocation73_spill] sm:$0xff] }
 0xbba   : > { %v10397_v11 = vcombine.low %v19403_v30, %v19402_v21  ;;  %v11063_v4 = vcombine.low %v11041_v54, %v11048_v44  ;;  %v19406_v28 = vcombine.low %v19404_v8, %v19405_v59  ;;  %v10411_v48 = vrot.slane %v10395_v10, %v19026_v58  ;;  %v19423_v27 = vld [vmem:[#allocation64_spill] sm:$0xff]  ;;  %v19425_v54 = vld [vmem:[#allocation67_spill] sm:$0xff] }
 0xbbb   : > { %v10392_v52 = vrot.slane %v10378_v31, %v19026_v58  ;;  %v11062_v22 = vrot.slane %v11034_v3, %v19026_v58  ;;  %v10418_v1 = vrot.slane %v10396_v29, %v19026_v58  ;;  %v11081_v19 = vcombine.low %v19408_v62, %v19407_v57  ;;  %v19424_v3 = vld [vmem:[#allocation75_spill] sm:$0xff]  ;;  %v19426_v29 = vld [vmem:[#allocation206_spill] sm:$0xff] }
 0xbbc   : > { %v10404_v12 = vrot.slane %v19406_v28, %v19026_v58  ;;  %v10425_v61 = vrot.slane %v10397_v11, %v19026_v58  ;;  %v11071_v39 = vrot.slane %v11063_v4, %v19026_v58  ;;  %v11082_v7 = vcombine.low %v19410_v33, %v19409_v40  ;;  %v19428_v4 = vld [vmem:[#allocation213_spill] sm:$0xff]  ;;  %v19433_v57 = vld [vmem:[#allocation210_spill] sm:$0xff] }
 0xbbd   : > { %v10393_v26 = vcombine.low %v10385_v35, %v10392_v52  ;;  %v11064_v18 = vcombine.low %v11055_v51, %v11062_v22  ;;  %v11083_v55 = vcombine.low %v19412_v14, %v19411_v56  ;;  %v19415_v6 = vcombine.low %v19413_v24, %v19414_v25 }
 0xbbe   : > { %v10426_v20 = vcombine.low %v10404_v12, %v10411_v48  ;;  %v10427_v23 = vcombine.low %v10418_v1, %v10425_v61  ;;  %v11097_v46 = vrot.slane %v11081_v19, %v19026_v58  ;;  %v11104_v9 = vrot.slane %v11082_v7, %v19026_v58  ;;  %v19430_v12 = vld [vmem:[#allocation215_spill] sm:$0xff]  ;;  %v19432_v61 = vld [vmem:[#allocation218_spill] sm:$0xff] }
 0xbbf   : > { %v11090_v47 = vrot.slane %v19415_v6, %v19026_v58  ;;  %11417 = vxpose.xlu1.b32.cont [12/16] (narrow) %v10393_v26, 16  ;;  %v11078_v38 = vrot.slane %v11064_v18, %v19026_v58  ;;  %v19417_v13 = vcombine.high %v19416_v41, %v19416_v41  ;;  %v11111_v32 = vrot.slane %v11083_v55, %v19026_v58  ;;  %v19431_v48 = vld [vmem:[#allocation207_spill] sm:$0xff] }
 0xbc0   : > { %v10434_v63 = vrot.slane %v10426_v20, %v19026_v58  ;;  %v10441_v0 = vrot.slane %v10427_v23, %v19026_v58  ;;  %v19419_v34 = vcombine.high %v19418_v36, %v19418_v36  ;;  %v10443_v45 = vcombine.low %v19421_v50, %v19420_v5  ;;  %v19434_v19 = vld [vmem:[#allocation219_spill] sm:$0xff] }
 0xbc1   : > { %v9404_v60 = vadd.f32 %v16732_v2, %v19417_v13  ;;  %v11079_v53 = vcombine.low %v11071_v39, %v11078_v38  ;;  %v11112_v37 = vcombine.low %v11090_v47, %v11097_v46  ;;  %v10444_v42 = vcombine.low %v19423_v27, %v19422_v49  ;;  %v19435_v26 = vld [vmem:[#allocation211_spill] sm:$0xff]  ;;  %v19438_v47 = vld [vmem:[#allocation189_spill] sm:$0xff] }
 0xbc2   : > { %v9405_v16 = vadd.f32 %v16740_v43, %v19419_v34  ;;  %v10442_v10 = vcombine.low %v10434_v63, %v10441_v0  ;;  %v11113_v31 = vcombine.low %v11104_v9, %v11111_v32  ;;  %v10445_v44 = vcombine.low %v19425_v54, %v19424_v3  ;;  %v19436_v7 = vld [vmem:[#allocation187_spill] sm:$0xff]  ;;  %v19439_v38 = vld [vmem:[#allocation181_spill] sm:$0xff] }
 0xbc3   : > { %11447 = vxpose.xlu0.b32.cont [10/16] (narrow) %v11079_v53, 16  ;;  %v11120_v51 = vrot.slane %v11112_v37, %v19026_v58  ;;  %v10453_v17 = vrot.slane %v10443_v45, %v19026_v58  ;;  %v10460_v15 = vrot.slane %v10444_v42, %v19026_v58  ;;  %v19427_v21 = vcombine.high %v19426_v29, %v19426_v29  ;;  %v19437_v20 = vld [vmem:[#allocation179_spill] sm:$0xff]  ;;  %v19442_v63 = vld [vmem:[#allocation177_spill] sm:$0xff] }
 0xbc4   : > { %v10446_v35 = vcombine.low %v9404_v60, %v9405_v16  ;;  %11418 = vxpose.xlu1.b32.cont [13/16] (narrow) %v10442_v10, 16  ;;  %v11127_v11 = vrot.slane %v11113_v31, %v19026_v58  ;;  %v10467_v52 = vrot.slane %v10445_v44, %v19026_v58  ;;  %v19429_v8 = vcombine.high %v19428_v4, %v19428_v4  ;;  %v19440_v9 = vld [vmem:[#allocation191_spill] sm:$0xff]  ;;  %v19443_v0 = vld [vmem:[#allocation185_spill] sm:$0xff] }
 0xbc5   : > { %v9516_v30 = vadd.f32 %v16732_v2, %v19427_v21  ;;  %v10475_v28 = vcombine.low %v10453_v17, %v10460_v15  ;;  %v11129_v1 = vcombine.low %v19431_v48, %v19430_v12  ;;  %v11130_v62 = vcombine.low %v19433_v57, %v19432_v61  ;;  %v19441_v41 = vld [vmem:[#allocation183_spill] sm:$0xff]  ;;  %v19447_v10 = vld [vmem:[#allocation133_spill] sm:$0xff]  ;;  %v19456_v61 = vld [vmem:[#allocation184_spill] sm:$0xff] }
 0xbc6   : > { %v10474_v22 = vrot.slane %v10446_v35, %v19026_v58  ;;  %v9517_v59 = vadd.f32 %v16740_v43, %v19429_v8  ;;  %v11131_v18 = vcombine.low %v19435_v26, %v19434_v19  ;;  %v11128_v39 = vcombine.low %v11120_v51, %v11127_v11  ;;  %v19445_v16 = vld [vmem:[#allocation131_spill] sm:$0xff]  ;;  %v19448_v31 = vld [vmem:[#allocation125_spill] sm:$0xff]  ;;  %v19454_v8 = vld [vmem:[#allocation176_spill] sm:$0xff] }
 0xbc7   : > { %v10493_v23 = vcombine.low %v19437_v20, %v19436_v7  ;;  %v10483_v56 = vrot.slane %v10475_v28, %v19026_v58  ;;  %v11139_v14 = vrot.slane %v11129_v1, %v19026_v58  ;;  %v11146_v55 = vrot.slane %v11130_v62, %v19026_v58  ;;  %v19446_v53 = vld [vmem:[#allocation123_spill] sm:$0xff]  ;;  %v19451_v15 = vld [vmem:[#allocation121_spill] sm:$0xff]  ;;  %v19458_v26 = vld [vmem:[#allocation186_spill] sm:$0xff] }
 0xbc8   : > { %v10476_v40 = vcombine.low %v10467_v52, %v10474_v22  ;;  %v11132_v33 = vcombine.low %v9516_v30, %v9517_v59  ;;  %v11153_v24 = vrot.slane %v11131_v18, %v19026_v58  ;;  %11448 = vxpose.xlu0.b32.cont [11/16] (narrow) %v11128_v39, 16  ;;  %v10494_v46 = vcombine.low %v19439_v38, %v19438_v47  ;;  %v19449_v54 = vld [vmem:[#allocation135_spill] sm:$0xff]  ;;  %v19452_v29 = vld [vmem:[#allocation129_spill] sm:$0xff]  ;;  %v19459_v18 = vld [vmem:[#allocation178_spill] sm:$0xff] }
 0xbc9   : > { %v10495_v13 = vcombine.low %v19441_v41, %v19440_v9  ;;  %v11161_v60 = vcombine.low %v11139_v14, %v11146_v55  ;;  %v19444_v32 = vcombine.low %v19442_v63, %v19443_v0  ;;  %v10509_v34 = vrot.slane %v10493_v23, %v19026_v58  ;;  %v19450_v44 = vld [vmem:[#allocation127_spill] sm:$0xff]  ;;  %v19462_v20 = vld [vmem:[#allocation190_spill] sm:$0xff] }
 0xbca   : > { %v10490_v25 = vrot.slane %v10476_v40, %v19026_v58  ;;  %v11160_v6 = vrot.slane %v11132_v33, %v19026_v58  ;;  %v11179_v37 = vcombine.low %v19446_v53, %v19445_v16  ;;  %v10516_v45 = vrot.slane %v10494_v46, %v19026_v58  ;;  %v19460_v40 = vld [vmem:[#allocation188_spill] sm:$0xff]  ;;  %v19463_v23 = vld [vmem:[#allocation182_spill] sm:$0xff] }
 0xbcb   : > { %v10502_v36 = vrot.slane %v19444_v32, %v19026_v58  ;;  %v10523_v49 = vrot.slane %v10495_v13, %v19026_v58  ;;  %v11169_v27 = vrot.slane %v11161_v60, %v19026_v58  ;;  %v11180_v3 = vcombine.low %v19448_v31, %v19447_v10  ;;  %v19461_v33 = vld [vmem:[#allocation180_spill] sm:$0xff]  ;;  %v19468_v32 = vld [vmem:[#allocation130_spill] sm:$0xff]  ;;  %v19475_v10 = vld [vmem:[#allocation229_spill] sm:$0xff] }
 0xbcc   : > { %v10491_v5 = vcombine.low %v10483_v56, %v10490_v25  ;;  %v11162_v50 = vcombine.low %v11153_v24, %v11160_v6  ;;  %v11181_v35 = vcombine.low %v19450_v44, %v19449_v54  ;;  %v19453_v21 = vcombine.low %v19451_v15, %v19452_v29  ;;  %v19464_v25 = vld [vmem:[#allocation120_spill] sm:$0xff]  ;;  %v19477_v29 = vld [vmem:[#allocation230_spill] sm:$0xff] }
 0xbcd   : > { %v10524_v42 = vcombine.low %v10502_v36, %v10509_v34  ;;  %v10525_v17 = vcombine.low %v10516_v45, %v10523_v49  ;;  %v11195_v11 = vrot.slane %v11179_v37, %v19026_v58  ;;  %v11202_v22 = vrot.slane %v11180_v3, %v19026_v58  ;;  %v19466_v60 = vld [vmem:[#allocation128_spill] sm:$0xff]  ;;  %v19469_v36 = vld [vmem:[#allocation122_spill] sm:$0xff] }
 0xbce   : > { %11419 = vxpose.xlu1.b32.cont [14/16] (narrow) %v10491_v5, 16  ;;  %v11176_v51 = vrot.slane %v11162_v50, %v19026_v58  ;;  %v11188_v30 = vrot.slane %v19453_v21, %v19026_v58  ;;  %v11209_v4 = vrot.slane %v11181_v35, %v19026_v58  ;;  %v19455_v59 = vcombine.high %v19454_v8, %v19454_v8  ;;  %v19470_v16 = vld [vmem:[#allocation132_spill] sm:$0xff]  ;;  %v19472_v45 = vld [vmem:[#allocation134_spill] sm:$0xff] }
 0xbcf   : > { %v10532_v52 = vrot.slane %v10524_v42, %v19026_v58  ;;  %v10539_v48 = vrot.slane %v10525_v17, %v19026_v58  ;;  %v19457_v57 = vcombine.high %v19456_v61, %v19456_v61  ;;  %v10541_v39 = vcombine.low %v19459_v18, %v19458_v26  ;;  %v19471_v53 = vld [vmem:[#allocation124_spill] sm:$0xff]  ;;  %v19473_v49 = vld [vmem:[#allocation126_spill] sm:$0xff]  ;;  %v19474_v42 = vld [vmem:[#allocation223_spill] sm:$0xff] }
 0xbd0   : > { %v9420_v28 = vadd.f32 %v16732_v2, %v19455_v59  ;;  %v11177_v12 = vcombine.low %v11169_v27, %v11176_v51  ;;  %v11210_v1 = vcombine.low %v11188_v30, %v11195_v11  ;;  %v11211_v19 = vcombine.low %v11202_v22, %v11209_v4  ;;  %v19476_v15 = vld [vmem:[#allocation224_spill] sm:$0xff]  ;;  %v19478_v30 = vld [vmem:[#allocation227_spill] sm:$0xff]  ;;  %v19480_v59 = vld [vmem:[#allocation54_spill] sm:$0xff] }
 0xbd1   : > { %v9421_v62 = vadd.f32 %v16740_v43, %v19457_v57  ;;  %v10542_v7 = vcombine.low %v19461_v33, %v19460_v40  ;;  %v10543_v56 = vcombine.low %v19463_v23, %v19462_v20  ;;  %v10540_v14 = vcombine.low %v10532_v52, %v10539_v48  ;;  %v19479_v11 = vld [vmem:[#allocation232_spill] sm:$0xff]  ;;  %v19485_v33 = vld [vmem:[#allocation221_spill] sm:$0xff] }
 0xbd2   : > { %11449 = vxpose.xlu0.b32.cont [12/16] (narrow) %v11177_v12, 16  ;;  %v11218_v55 = vrot.slane %v11210_v1, %v19026_v58  ;;  %v19465_v6 = vcombine.high %v19464_v25, %v19464_v25  ;;  %v11225_v38 = vrot.slane %v11211_v19, %v19026_v58  ;;  %v10551_v46 = vrot.slane %v10541_v39, %v19026_v58  ;;  %v19489_v25 = vld [vmem:[#allocation226_spill] sm:$0xff] }
 0xbd3   : > { %v10544_v24 = vcombine.low %v9420_v28, %v9421_v62  ;;  %v10558_v9 = vrot.slane %v10542_v7, %v19026_v58  ;;  %v10565_v41 = vrot.slane %v10543_v56, %v19026_v58  ;;  %11420 = vxpose.xlu1.b32.cont [15/16] (narrow) %v10540_v14, 16  ;;  %v19467_v63 = vcombine.high %v19466_v60, %v19466_v60  ;;  %v19481_v28 = vld [vmem:[#allocation222_spill] sm:$0xff]  ;;  %v19483_v62 = vld [vmem:[#allocation56_spill] sm:$0xff]  ;;  %v19487_v14 = vld [vmem:[#allocation225_spill] sm:$0xff] }
 0xbd4   : > { %v9532_v47 = vadd.f32 %v16732_v2, %v19465_v6  ;;  %v11227_v34 = vcombine.low %v19469_v36, %v19468_v32  ;;  %v11228_v37 = vcombine.low %v19471_v53, %v19470_v16  ;;  %v11226_v5 = vcombine.low %v11218_v55, %v11225_v38  ;;  %v19488_v55 = vld [vmem:[#allocation231_spill] sm:$0xff]  ;;  %v19490_v6 = vld [vmem:[#allocation233_spill] sm:$0xff]  ;;  %v19491_v38 = vld [vmem:[#allocation228_spill] sm:$0xff] }
 0xbd5   : > { %v10572_v13 = vrot.slane %v10544_v24, %v19026_v58  ;;  %v9533_v0 = vadd.f32 %v16740_v43, %v19467_v63  ;;  %v10573_v50 = vcombine.low %v10551_v46, %v10558_v9  ;;  %v11229_v27 = vcombine.low %v19473_v49, %v19472_v45  ;;  %v19492_v46 = vld [vmem:[#allocation234_spill] sm:$0xff] }
 0xbd6   : > { %v11277_v31 = vcombine.low %v19475_v10, %v19474_v42  ;;  %v11237_v44 = vrot.slane %v11227_v34, %v19026_v58  ;;  %v11244_v35 = vrot.slane %v11228_v37, %v19026_v58  ;;  %11450 = vxpose.xlu0.b32.cont [13/16] (narrow) %v11226_v5, 16  ;;  %v11278_v21 = vcombine.low %v19477_v29, %v19476_v15  ;;  %v19493_v37 = vld [vmem:[#allocation45_spill] sm:$0xff] }
 0xbd7   : > { %v10574_v3 = vcombine.low %v10565_v41, %v10572_v13  ;;  %v11230_v54 = vcombine.low %v9532_v47, %v9533_v0  ;;  %v10581_v51 = vrot.slane %v10573_v50, %v19026_v58  ;;  %v11251_v17 = vrot.slane %v11229_v27, %v19026_v58  ;;  %v19495_v27 = vld [vmem:[#allocation53_spill] sm:$0xff] }
 0xbd8   : > { %v11279_v52 = vcombine.low %v19479_v11, %v19478_v30  ;;  %v11259_v8 = vcombine.low %v11237_v44, %v11244_v35  ;;  %v19482_v12 = vcombine.low %v19480_v59, %v19481_v28  ;;  %v11293_v1 = vrot.slane %v11277_v31, %v19026_v58  ;;  %v19497_v31 = vld [vmem:[#allocation55_spill] sm:$0xff]  ;;  %v19509_v11 = vld [vmem:[#allocation36_spill] sm:$0xff] }
 0xbd9   : > { %v10588_v22 = vrot.slane %v10574_v3, %v19026_v58  ;;  %v11258_v4 = vrot.slane %v11230_v54, %v19026_v58  ;;  %v11300_v61 = vrot.slane %v11278_v21, %v19026_v58  ;;  %v19484_v19 = vcombine.high %v19483_v62, %v19483_v62  ;;  %v19499_v54 = vld [vmem:[#allocation39_spill] sm:$0xff] }
 0xbda   : > { %v11286_v48 = vrot.slane %v19482_v12, %v19026_v58  ;;  %v11307_v57 = vrot.slane %v11279_v52, %v19026_v58  ;;  %v11267_v40 = vrot.slane %v11259_v8, %v19026_v58  ;;  %v19486_v7 = vcombine.high %v19485_v33, %v19485_v33  ;;  %v19501_v35 = vld [vmem:[#allocation51_spill] sm:$0xff]  ;;  %v11477_v8 = vld [vmem:[%s18573_s18] sm:$0x3] }
 0xbdb   : > { %v9548_v26 = vadd.f32 %v16732_v2, %v19484_v19  ;;  %v10589_v18 = vcombine.low %v10581_v51, %v10588_v22  ;;  %v11260_v39 = vcombine.low %v11251_v17, %v11258_v4  ;;  %v11325_v24 = vcombine.low %v19488_v55, %v19487_v14  ;;  %v19503_v17 = vld [vmem:[#allocation43_spill] sm:$0xff]  ;;  %v19511_v22 = vld [vmem:[#allocation37_spill] sm:$0xff] }
 0xbdc   : > { %v9549_v20 = vadd.f32 %v16740_v43, %v19486_v7  ;;  %v11308_v23 = vcombine.low %v11286_v48, %v11293_v1  ;;  %v11309_v56 = vcombine.low %v11300_v61, %v11307_v57  ;;  %v11326_v47 = vcombine.low %v19490_v6, %v19489_v25  ;;  %v19507_v21 = vld [vmem:[#allocation35_spill] sm:$0xff]  ;;  %v11474_v57 = vld [vmem:[#allocation23] sm:$0x1] }
 0xbdd   : > { %11421 = vxpose.xlu1.b32.end [16/16] (narrow) %v10589_v18, 16  ;;  %v11274_v2 = vrot.slane %v11260_v39, %v19026_v58  ;;  %v11327_v9 = vcombine.low %v19492_v46, %v19491_v38  ;;  %v11335_v43 = vrot.slane %v11325_v24, %v19026_v58  ;;  %v13315_v0 = vmov 0  }
 0xbde   : > { %v11328_v41 = vcombine.low %v9548_v26, %v9549_v20  ;;  %v11316_v13 = vrot.slane %v11308_v23, %v19026_v58  ;;  %v11323_v60 = vrot.slane %v11309_v56, %v19026_v58  ;;  %v11342_v63 = vrot.slane %v11326_v47, %v19026_v58  ;;  %11518 = vmatprep.mubr.bf16.mxu0 %v13315_v0 }
 0xbdf   : > { %v11275_v32 = vcombine.low %v11267_v40, %v11274_v2  ;;  %v11349_v36 = vrot.slane %v11327_v9, %v19026_v58  ;;  %v19494_v5 = vmax.f32 %v19493_v37, 0.0  ;;  %v19496_v42 = vmax.f32 %v19495_v27, 0.0 }
 0xbe0   : > { %v11356_v34 = vrot.slane %v11328_v41, %v19026_v58  ;;  %v11324_v16 = vcombine.low %v11316_v13, %v11323_v60  ;;  %v11357_v53 = vcombine.low %v11335_v43, %v11342_v63  ;;  %v19498_v3 = vmax.f32 %v19497_v31, 0.0 }
 0xbe1   : > { %11451 = vxpose.xlu0.b32.cont [14/16] (narrow) %v11275_v32, 16  ;;  %7029 = vxpose.xlu1.b32.start [1/8] (short) (narrow) %v19494_v5, 16  ;;  %v19500_v44 = vmax.f32 %v19499_v54, 0.0  ;;  %v19502_v51 = vmax.f32 %v19501_v35, 0.0  ;;  %v19504_v15 = vmax.f32 %v19503_v17, 0.0  ;;  %v19508_v30 = vmax.f32 %v19507_v21, 0.0 }
 0xbe2   : > { %v11358_v50 = vcombine.low %v11349_v36, %v11356_v34  ;;  %v11365_v45 = vrot.slane %v11357_v53, %v19026_v58  ;;  %v19510_v52 = vmax.f32 %v19509_v11, 0.0  ;;  %v19512_v4 = vmax.f32 %v19511_v22, 0.0 }
 0xbe4   : > { %v11372_v49 = vrot.slane %v11358_v50, %v19026_v58  ;;  %v19505_v58 = vld [vmem:[#allocation46_spill] sm:$0xff] }
 0xbe5   : > { %11452 = vxpose.xlu0.b32.cont [15/16] (narrow) %v11324_v16, 16  ;;  %7030 = vxpose.xlu1.b32.cont [2/8] (short) (narrow) %v19496_v42, 16  ;;  %v19506_v29 = vmax.f32 %v19505_v58, 0.0 }
 0xbe6   : > { %v11373_v10 = vcombine.low %v11365_v45, %v11372_v49 }
 0xbe9   : > { %11453 = vxpose.xlu0.b32.end [16/16] (narrow) %v11373_v10, 16  ;;  %7031 = vxpose.xlu1.b32.cont [3/8] (short) (narrow) %v19498_v3, 16 }
 0xbed   : > { %7032 = vxpose.xlu1.b32.cont [4/8] (short) (narrow) %v19500_v44, 16 }
 0xbf1   : > { %7033 = vxpose.xlu1.b32.cont [5/8] (short) (narrow) %v19502_v51, 16 }
 0xbf5   : > { %7034 = vxpose.xlu1.b32.cont [6/8] (short) (narrow) %v19504_v15, 16 }
 0xbf9   : > { %7035 = vxpose.xlu1.b32.cont [7/8] (short) (narrow) %v19506_v29, 16 }
 0xbfd   : > { %7036 = vxpose.xlu1.b32.end [8/8] (short) (narrow) %v19508_v30, 16 }
 0xc01   : > { %2860 = vxpose.xlu1.b32.start [1/2] (short) (narrow) %v19510_v52, 8 }
 0xc05   : > { %2861 = vxpose.xlu1.b32.end [2/2] (short) (narrow) %v19512_v4, 8 }
 0xc12   : > { %12843 = vset.pattern.permute.xlu0 %v13315_v0 }
 0xc13   : > { %11480 = vperm.xlu0 %12843, %v11477_v8  }
 0xc21   : > { %v11422_v59 = vpop.trf.xlu1 }
 0xc22   : > { %11470 = vst [vmem:[%s880_s0] sm:$0xff] %v11422_v59 }
 0xc25   : > { %v11423_v28 = vpop.trf.xlu1 }
 0xc26   : > { %11472 = vst [vmem:[%s880_s0 + $0x10] sm:$0xff] %v11423_v28  ;;  %v11475_v61 = vpack.c.bf16 %v11423_v28, %v11422_v59 }
 0xc2d   : > { %v11454_v12 = vpop.trf.xlu0 }
 0xc2e   : > { %11471 = vst [vmem:[%s880_s0 + $0x8] sm:$0xff] %v11454_v12 }
 0xc31   : > { %v11455_v48 = vpop.trf.xlu0 }
 0xc32   : > { %11473 = vst [vmem:[%s880_s0 + $0x18] sm:$0xff] %v11455_v48  ;;  %v11476_v1 = vpack.c.bf16 %v11455_v48, %v11454_v12 }
 0xc34   : > { %11486 = vmatprep.subr.bf16.mxu0 %v11476_v1 }
 0xc35   : > { %11487 = vmatpush1.bf16.msra.mxu0 %v11475_v61 }
 0xc38   : > { %12012 = vmatmul.mubr.msk.bf16.vlgmr.msra.gmra.mrb[76].mxu0 %vm2892_vm12, %v11474_v57 }
 0xc61   : > { %v7045_v62 = vpop.trf.xlu1 }
 0xc62   : > { %7062 = vst.msk [vmem:[%s875_s20] sm:$0xff] %vm7061_vm13, %v7045_v62 }
 0xc65   : > { %v7046_v19 = vpop.trf.xlu1 }
 0xc66   : > { %7063 = vst.msk [vmem:[%s875_s20 + $0x8] sm:$0xff] %vm7061_vm13, %v7046_v19 }
 0xc81   : > { %v2876_v26 = vpop.trf.xlu1 }
 0xc82   : > { %2893 = vst.msk [vmem:[%s870_s22] sm:$0xff] %vm2892_vm12, %v2876_v26 }
 0xc92   : > { %v11481_v18 = vpop.permute.xlu0 %11480 }
 0xd0b   : > { %v11520_v39 = vpop.f32.mrb[76].mxu0 }
 0xd0c   : > { %v11522_v40 = vpop.f32.mrb[77].mxu0  ;;  %v11521_v33 = vadd.f32 %v11520_v39, %v11481_v18 }
 0xd0d   : > { %v11524_v7 = vpop.f32.mrb[78].mxu0  ;;  %v11523_v20 = vadd.f32 %v11522_v40, %v11481_v18 }
 0xd0e   : > { %v11525_v23 = vpop.f32.mrb[79].mxu0 }
 0xd0f   : > { %v11529_v56 = vcombine.low %v11521_v33, %v11523_v20 }
 0xd11   : > { %12013 = vst.sshfl [vmem:[%s885_s10] sm:$0x33 pattern:$0x76325410] %v11529_v56 }
 0xd12 PF: > { %s19516_s28 = sld [smem:[#allocation32_spill]] }
 0xd18   : > { %s41_s3 = sadd.s32 1, %s19516_s28  }
 0xd19   : > { %p38_p11 = scmp.ge.s32.totalorder %s41_s3, 4  }
 0xd1b   :  { %40 = sbr.rel (!%p38_p11) target bundleno = 23 (0x17), region = 259 }
 0xd22   :  { %11606 = vsyncpa [#allocation3], 1 }
 0xd23   :  { %11608 = vsyncpa [#allocation3 + $0x1], 1 }
 0xd24   :  { %11609 = vsyncpa [#allocation7], 1 }
 0xd25   :  { %11610 = vsyncpa [#allocation10], 1 }
 0xd26   :  { %11611 = vsyncpa [#allocation13], 1 }
 0xd27   :  { %11612 = vsyncpa [#allocation16], 1 }
 0xd28   :  { %11613 = vsyncpa [#allocation19], 1 }
 0xd29   :  { %11614 = vsyncpa [#allocation22], 1 }
 0xd2a   :  { %11615 = vsyncpa [#allocation4], 1 }
 0xd2b   :  { %11617 = vsyncpa [#allocation4 + $0x1], 1 }

</bundles_post_ra>
